<compile_context>
chip_gen: v7x
topology: tpu7x:2x2x1
jax: 0.10.0
libtpu: 0.0.40
codegen_flags: <defaults>
</compile_context>

<pallas_src>
import functools

import jax
import jax.numpy as jnp
from jax.experimental import pallas as pl
from jax.experimental.pallas import tpu as pltpu


def _av_kernel(v_ref, r_ref, o_ref, *, fx0, fy0, m1, m2, z):
    """Single-step kernel computing Av over the retained-mode window.

    v_ref: (B, 2, dim_x, dim_y*z)      lane-dense input (real/imag on axis 1)
    r_ref: (m1, m2, 2, z, 2z)          packed complex operators
    o_ref: (B, 2, dim_x, dim_y*z)      lane-dense output
    """
    # Zero the full output once; only the mode window is overwritten below.
    o_ref[...] = jnp.zeros_like(o_ref)

    for xi in range(m1):                     # static unroll over window x rows
        x = fx0 + xi
        for j in range(m2):                  # static unroll over window y modes
            col = (fy0 + j) * z              # static lane offset (multiple of z)
            sl = pl.ds(col, z)
            vr = v_ref[:, 0, x, sl]          # (B, z)
            vi = v_ref[:, 1, x, sl]          # (B, z)
            # [out_r | out_i] = vr @ [A0^T|A1^T] + vi @ [-A1^T|A0^T]
            res = (jnp.dot(vr, r_ref[xi, j, 0], preferred_element_type=jnp.float32)
                   + jnp.dot(vi, r_ref[xi, j, 1], preferred_element_type=jnp.float32))
            o_ref[:, 0, x, sl] = res[:, :z].astype(o_ref.dtype)
            o_ref[:, 1, x, sl] = res[:, z:].astype(o_ref.dtype)


def _controlled_ode_av(R, v, *, modes):
    """R: (m1, m2, 2, z, 2z) packed operator; v: (B, 2, dim_x, dim_y, z) -> Av (same shape)."""
    B, two, dim_x, dim_y, z = v.shape
    assert two == 2
    m1, m2 = modes
    fx0 = dim_x // 2 - m1 // 2
    fy0 = dim_y // 2 - m2 // 2

    # Free contiguous reshape -> lane-dense trailing dims (dim_x, dim_y*z).
    v2 = v.reshape(B, 2, dim_x, dim_y * z)

    kernel = functools.partial(_av_kernel, fx0=fx0, fy0=fy0, m1=m1, m2=m2, z=z)

    out = pl.pallas_call(
        kernel,
        out_shape=jax.ShapeDtypeStruct((B, 2, dim_x, dim_y * z), v.dtype),
        grid=(1,),
        in_specs=[
            pl.BlockSpec((B, 2, dim_x, dim_y * z), lambda i: (0, 0, 0, 0)),
            pl.BlockSpec((m1, m2, 2, z, 2 * z), lambda i: (0, 0, 0, 0, 0)),
        ],
        out_specs=pl.BlockSpec((B, 2, dim_x, dim_y * z), lambda i: (0, 0, 0, 0)),
        compiler_params=pltpu.CompilerParams(dimension_semantics=("arbitrary",)),
    )(v2, R)

    # Contiguous split of the merged last dim -> free reshape back to 5-D.
    return out.reshape(B, 2, dim_x, dim_y, z)


class ControlledODEPallas:
    """R'(t) = A*R(t) in Fourier space; only the forward pass (Av) is implemented."""

    def __init__(self, z_dim, modes1, modes2, key):
        scale = 1.0 / z_dim ** 2
        # torch.rand -> uniform [0, 1); deterministic synthetic init.
        self.A = scale * jax.random.uniform(
            key, (2, modes1, modes2, z_dim, z_dim), dtype=jnp.float32)
        self.modes = (modes1, modes2)
        # Pack the complex operator ONCE (hoisted out of forward / every ODE step):
        #   R[x,y,0] = [A0^T | A1^T]   (multiplied by v_real)
        #   R[x,y,1] = [-A1^T | A0^T]  (multiplied by v_imag)
        # so  vr @ R0 + vi @ R1 = [out_r | out_i]  with no LHS concatenation in the kernel.
        a0t = jnp.swapaxes(self.A[0], -1, -2)                  # (m1, m2, z, z)
        a1t = jnp.swapaxes(self.A[1], -1, -2)
        r_vr = jnp.concatenate([a0t, a1t], axis=-1)            # (m1, m2, z, 2z)
        r_vi = jnp.concatenate([-a1t, a0t], axis=-1)           # (m1, m2, z, 2z)
        self.R = jnp.stack([r_vr, r_vi], axis=2)               # (m1, m2, 2, z, 2z)
        self._fwd = jax.jit(functools.partial(_controlled_ode_av, modes=self.modes))

    def forward(self, t, v):
        # v: (batch, 2, dim_x, dim_y, hidden); t unused (autonomous linear term).
        del t
        return self._fwd(self.R, v)


def _reference_forward(A, modes, v):
    """Pure-JAX reference mirroring the PyTorch semantics, for verification."""
    freqs = [(v.shape[2 + i] // 2 - modes[i] // 2,
              v.shape[2 + i] // 2 + modes[i] // 2) for i in range(2)]
    zwin = v[:, :, freqs[0][0]:freqs[0][1], freqs[1][0]:freqs[1][1], :]
    op = lambda a, x: jnp.einsum('xyij,bxyj->bxyi', a, x)
    win = jnp.stack([op(A[0], zwin[:, 0]) - op(A[1], zwin[:, 1]),
                     op(A[1], zwin[:, 0]) + op(A[0], zwin[:, 1])], axis=1)
    Av = jnp.zeros(v.shape, dtype=v.dtype)
    return Av.at[:, :, freqs[0][0]:freqs[0][1],
                 freqs[1][0]:freqs[1][1], :].set(win)


if __name__ == "__main__":
    key = jax.random.PRNGKey(0)
    k_param, k_v = jax.random.split(key)

    batch, dim_x, dim_y, hidden = 2, 16, 16, 32
    modes1, modes2 = 8, 8

    module = ControlledODEPallas(z_dim=hidden, modes1=modes1, modes2=modes2,
                                 key=k_param)
    v = jax.random.normal(k_v, (batch, 2, dim_x, dim_y, hidden),
                          dtype=jnp.float32)
    t = jnp.float32(0.0)

    out = module.forward(t, v)
    out = jax.block_until_ready(out)

    ref = _reference_forward(module.A, module.modes, v)
    assert out.shape == v.shape and out.dtype == v.dtype
    assert jnp.allclose(out, ref, atol=1e-5, rtol=1e-5)

    print("KERNEL_OK")
</pallas_src>

<mosaic_0001>
module attributes {stable_mosaic.version = 11 : i64} {
  func.func @_av_kernel(%arg0: i32, %arg1: memref<2x2x16x512xf32, #tpu.memory_space<vmem>>, %arg2: memref<8x8x2x32x64xf32, #tpu.memory_space<vmem>>, %arg3: memref<2x2x16x512xf32, #tpu.memory_space<vmem>>) attributes {dimension_semantics = [#tpu.dimension_semantics<arbitrary>], iteration_bounds = array<i64: 1>, scalar_prefetch = 0 : i64, scratch_operands = 0 : i64, tpu.core_type = #tpu.core_type<tc>, window_params = [{pipeline_mode = #tpu.pipeline_mode<synchronous>, transform_indices = @transform_0, window_bounds = array<i64: 2, 2, 16, 512>}, {pipeline_mode = #tpu.pipeline_mode<synchronous>, transform_indices = @transform_1, window_bounds = array<i64: 8, 8, 2, 32, 64>}, {pipeline_mode = #tpu.pipeline_mode<synchronous>, transform_indices = @transform_2, window_bounds = array<i64: 2, 2, 16, 512>}]} {
    %cst = arith.constant 0.000000e+00 : f32
    %0 = vector.broadcast %cst : f32 to vector<2x2x16x512xf32>
    %c0 = arith.constant 0 : index
    %c0_0 = arith.constant 0 : index
    %c0_1 = arith.constant 0 : index
    %c0_2 = arith.constant 0 : index
    %1 = vector.load %arg3[%c0, %c0_0, %c0_1, %c0_2] : memref<2x2x16x512xf32, #tpu.memory_space<vmem>>, vector<2x2x16x512xf32>
    tpu.vector_store %arg3[%c0, %c0_0, %c0_1, %c0_2], %0 {strides = array<i32>} : memref<2x2x16x512xf32, #tpu.memory_space<vmem>>, vector<2x2x16x512xf32>,
    %c0_3 = arith.constant 0 : index
    %c0_4 = arith.constant 0 : index
    %c4 = arith.constant 4 : index
    %c128 = arith.constant 128 : index
    %2 = vector.load %arg1[%c0_3, %c0_4, %c4, %c128] : memref<2x2x16x512xf32, #tpu.memory_space<vmem>>, vector<2x1x1x32xf32>
    %3 = vector.shape_cast %2 : vector<2x1x1x32xf32> to vector<2x32xf32>
    %c0_5 = arith.constant 0 : index
    %c1 = arith.constant 1 : index
    %c4_6 = arith.constant 4 : index
    %c128_7 = arith.constant 128 : index
    %4 = vector.load %arg1[%c0_5, %c1, %c4_6, %c128_7] : memref<2x2x16x512xf32, #tpu.memory_space<vmem>>, vector<2x1x1x32xf32>
    %5 = vector.shape_cast %4 : vector<2x1x1x32xf32> to vector<2x32xf32>
    %c0_8 = arith.constant 0 : index
    %c0_9 = arith.constant 0 : index
    %c0_10 = arith.constant 0 : index
    %c0_11 = arith.constant 0 : index
    %c0_12 = arith.constant 0 : index
    %6 = vector.load %arg2[%c0_8, %c0_9, %c0_10, %c0_11, %c0_12] : memref<8x8x2x32x64xf32, #tpu.memory_space<vmem>>, vector<1x1x1x32x64xf32>
    %7 = vector.shape_cast %6 : vector<1x1x1x32x64xf32> to vector<32x64xf32>
    %cst_13 = arith.constant dense<0.000000e+00> : vector<2x64xf32>
    %8 = tpu.matmul %3, %7, %cst_13 {dimension_numbers = #tpu.dot_dimension_numbers<[1], [0], [0], [1], [0, 0, 1, 1], [], []>} : vector<2x32xf32>, vector<32x64xf32>, vector<2x64xf32> -> vector<2x64xf32>
    %c0_14 = arith.constant 0 : index
    %c0_15 = arith.constant 0 : index
    %c1_16 = arith.constant 1 : index
    %c0_17 = arith.constant 0 : index
    %c0_18 = arith.constant 0 : index
    %9 = vector.load %arg2[%c0_14, %c0_15, %c1_16, %c0_17, %c0_18] : memref<8x8x2x32x64xf32, #tpu.memory_space<vmem>>, vector<1x1x1x32x64xf32>
    %10 = vector.shape_cast %9 : vector<1x1x1x32x64xf32> to vector<32x64xf32>
    %cst_19 = arith.constant dense<0.000000e+00> : vector<2x64xf32>
    %11 = tpu.matmul %5, %10, %cst_19 {dimension_numbers = #tpu.dot_dimension_numbers<[1], [0], [0], [1], [0, 0, 1, 1], [], []>} : vector<2x32xf32>, vector<32x64xf32>, vector<2x64xf32> -> vector<2x64xf32>
    %12 = arith.addf %8, %11 : vector<2x64xf32>
    %13 = vector.extract_strided_slice %12 {offsets = [0, 0], sizes = [2, 32], strides = [1, 1]} : vector<2x64xf32> to vector<2x32xf32>
    %c0_20 = arith.constant 0 : index
    %c0_21 = arith.constant 0 : index
    %c4_22 = arith.constant 4 : index
    %c128_23 = arith.constant 128 : index
    %14 = vector.load %arg3[%c0_20, %c0_21, %c4_22, %c128_23] : memref<2x2x16x512xf32, #tpu.memory_space<vmem>>, vector<2x1x1x32xf32>
    %15 = vector.shape_cast %14 : vector<2x1x1x32xf32> to vector<2x32xf32>
    %16 = vector.shape_cast %13 : vector<2x32xf32> to vector<2x1x1x32xf32>
    tpu.vector_store %arg3[%c0_20, %c0_21, %c4_22, %c128_23], %16 {strides = array<i32>} : memref<2x2x16x512xf32, #tpu.memory_space<vmem>>, vector<2x1x1x32xf32>,
    %17 = vector.extract_strided_slice %12 {offsets = [0, 32], sizes = [2, 32], strides = [1, 1]} : vector<2x64xf32> to vector<2x32xf32>
    %c0_24 = arith.constant 0 : index
    %c1_25 = arith.constant 1 : index
    %c4_26 = arith.constant 4 : index
    %c128_27 = arith.constant 128 : index
    %18 = vector.load %arg3[%c0_24, %c1_25, %c4_26, %c128_27] : memref<2x2x16x512xf32, #tpu.memory_space<vmem>>, vector<2x1x1x32xf32>
    %19 = vector.shape_cast %18 : vector<2x1x1x32xf32> to vector<2x32xf32>
    %20 = vector.shape_cast %17 : vector<2x32xf32> to vector<2x1x1x32xf32>
    tpu.vector_store %arg3[%c0_24, %c1_25, %c4_26, %c128_27], %20 {strides = array<i32>} : memref<2x2x16x512xf32, #tpu.memory_space<vmem>>, vector<2x1x1x32xf32>,
    %c0_28 = arith.constant 0 : index
    %c0_29 = arith.constant 0 : index
    %c4_30 = arith.constant 4 : index
    %c160 = arith.constant 160 : index
    %21 = vector.load %arg1[%c0_28, %c0_29, %c4_30, %c160] : memref<2x2x16x512xf32, #tpu.memory_space<vmem>>, vector<2x1x1x32xf32>
    %22 = vector.shape_cast %21 : vector<2x1x1x32xf32> to vector<2x32xf32>
    %c0_31 = arith.constant 0 : index
    %c1_32 = arith.constant 1 : index
    %c4_33 = arith.constant 4 : index
    %c160_34 = arith.constant 160 : index
    %23 = vector.load %arg1[%c0_31, %c1_32, %c4_33, %c160_34] : memref<2x2x16x512xf32, #tpu.memory_space<vmem>>, vector<2x1x1x32xf32>
    %24 = vector.shape_cast %23 : vector<2x1x1x32xf32> to vector<2x32xf32>
    %c0_35 = arith.constant 0 : index
    %c1_36 = arith.constant 1 : index
    %c0_37 = arith.constant 0 : index
    %c0_38 = arith.constant 0 : index
    %c0_39 = arith.constant 0 : index
    %25 = vector.load %arg2[%c0_35, %c1_36, %c0_37, %c0_38, %c0_39] : memref<8x8x2x32x64xf32, #tpu.memory_space<vmem>>, vector<1x1x1x32x64xf32>
    %26 = vector.shape_cast %25 : vector<1x1x1x32x64xf32> to vector<32x64xf32>
    %cst_40 = arith.constant dense<0.000000e+00> : vector<2x64xf32>
    %27 = tpu.matmul %22, %26, %cst_40 {dimension_numbers = #tpu.dot_dimension_numbers<[1], [0], [0], [1], [0, 0, 1, 1], [], []>} : vector<2x32xf32>, vector<32x64xf32>, vector<2x64xf32> -> vector<2x64xf32>
    %c0_41 = arith.constant 0 : index
    %c1_42 = arith.constant 1 : index
    %c1_43 = arith.constant 1 : index
    %c0_44 = arith.constant 0 : index
    %c0_45 = arith.constant 0 : index
    %28 = vector.load %arg2[%c0_41, %c1_42, %c1_43, %c0_44, %c0_45] : memref<8x8x2x32x64xf32, #tpu.memory_space<vmem>>, vector<1x1x1x32x64xf32>
    %29 = vector.shape_cast %28 : vector<1x1x1x32x64xf32> to vector<32x64xf32>
    %cst_46 = arith.constant dense<0.000000e+00> : vector<2x64xf32>
    %30 = tpu.matmul %24, %29, %cst_46 {dimension_numbers = #tpu.dot_dimension_numbers<[1], [0], [0], [1], [0, 0, 1, 1], [], []>} : vector<2x32xf32>, vector<32x64xf32>, vector<2x64xf32> -> vector<2x64xf32>
    %31 = arith.addf %27, %30 : vector<2x64xf32>
    %32 = vector.extract_strided_slice %31 {offsets = [0, 0], sizes = [2, 32], strides = [1, 1]} : vector<2x64xf32> to vector<2x32xf32>
    %c0_47 = arith.constant 0 : index
    %c0_48 = arith.constant 0 : index
    %c4_49 = arith.constant 4 : index
    %c160_50 = arith.constant 160 : index
    %33 = vector.load %arg3[%c0_47, %c0_48, %c4_49, %c160_50] : memref<2x2x16x512xf32, #tpu.memory_space<vmem>>, vector<2x1x1x32xf32>
    %34 = vector.shape_cast %33 : vector<2x1x1x32xf32> to vector<2x32xf32>
    %35 = vector.shape_cast %32 : vector<2x32xf32> to vector<2x1x1x32xf32>
    tpu.vector_store %arg3[%c0_47, %c0_48, %c4_49, %c160_50], %35 {strides = array<i32>} : memref<2x2x16x512xf32, #tpu.memory_space<vmem>>, vector<2x1x1x32xf32>,
    %36 = vector.extract_strided_slice %31 {offsets = [0, 32], sizes = [2, 32], strides = [1, 1]} : vector<2x64xf32> to vector<2x32xf32>
    %c0_51 = arith.constant 0 : index
    %c1_52 = arith.constant 1 : index
    %c4_53 = arith.constant 4 : index
    %c160_54 = arith.constant 160 : index
    %37 = vector.load %arg3[%c0_51, %c1_52, %c4_53, %c160_54] : memref<2x2x16x512xf32, #tpu.memory_space<vmem>>, vector<2x1x1x32xf32>
    %38 = vector.shape_cast %37 : vector<2x1x1x32xf32> to vector<2x32xf32>
    %39 = vector.shape_cast %36 : vector<2x32xf32> to vector<2x1x1x32xf32>
    tpu.vector_store %arg3[%c0_51, %c1_52, %c4_53, %c160_54], %39 {strides = array<i32>} : memref<2x2x16x512xf32, #tpu.memory_space<vmem>>, vector<2x1x1x32xf32>,
    %c0_55 = arith.constant 0 : index
    %c0_56 = arith.constant 0 : index
    %c4_57 = arith.constant 4 : index
    %c192 = arith.constant 192 : index
    %40 = vector.load %arg1[%c0_55, %c0_56, %c4_57, %c192] : memref<2x2x16x512xf32, #tpu.memory_space<vmem>>, vector<2x1x1x32xf32>
    %41 = vector.shape_cast %40 : vector<2x1x1x32xf32> to vector<2x32xf32>
    %c0_58 = arith.constant 0 : index
    %c1_59 = arith.constant 1 : index
    %c4_60 = arith.constant 4 : index
    %c192_61 = arith.constant 192 : index
    %42 = vector.load %arg1[%c0_58, %c1_59, %c4_60, %c192_61] : memref<2x2x16x512xf32, #tpu.memory_space<vmem>>, vector<2x1x1x32xf32>
    %43 = vector.shape_cast %42 : vector<2x1x1x32xf32> to vector<2x32xf32>
    %c0_62 = arith.constant 0 : index
    %c2 = arith.constant 2 : index
    %c0_63 = arith.constant 0 : index
    %c0_64 = arith.constant 0 : index
    %c0_65 = arith.constant 0 : index
    %44 = vector.load %arg2[%c0_62, %c2, %c0_63, %c0_64, %c0_65] : memref<8x8x2x32x64xf32, #tpu.memory_space<vmem>>, vector<1x1x1x32x64xf32>
    %45 = vector.shape_cast %44 : vector<1x1x1x32x64xf32> to vector<32x64xf32>
    %cst_66 = arith.constant dense<0.000000e+00> : vector<2x64xf32>
    %46 = tpu.matmul %41, %45, %cst_66 {dimension_numbers = #tpu.dot_dimension_numbers<[1], [0], [0], [1], [0, 0, 1, 1], [], []>} : vector<2x32xf32>, vector<32x64xf32>, vector<2x64xf32> -> vector<2x64xf32>
    %c0_67 = arith.constant 0 : index
    %c2_68 = arith.constant 2 : index
    %c1_69 = arith.constant 1 : index
    %c0_70 = arith.constant 0 : index
    %c0_71 = arith.constant 0 : index
    %47 = vector.load %arg2[%c0_67, %c2_68, %c1_69, %c0_70, %c0_71] : memref<8x8x2x32x64xf32, #tpu.memory_space<vmem>>, vector<1x1x1x32x64xf32>
    %48 = vector.shape_cast %47 : vector<1x1x1x32x64xf32> to vector<32x64xf32>
    %cst_72 = arith.constant dense<0.000000e+00> : vector<2x64xf32>
    %49 = tpu.matmul %43, %48, %cst_72 {dimension_numbers = #tpu.dot_dimension_numbers<[1], [0], [0], [1], [0, 0, 1, 1], [], []>} : vector<2x32xf32>, vector<32x64xf32>, vector<2x64xf32> -> vector<2x64xf32>
    %50 = arith.addf %46, %49 : vector<2x64xf32>
    %51 = vector.extract_strided_slice %50 {offsets = [0, 0], sizes = [2, 32], strides = [1, 1]} : vector<2x64xf32> to vector<2x32xf32>
    %c0_73 = arith.constant 0 : index
    %c0_74 = arith.constant 0 : index
    %c4_75 = arith.constant 4 : index
    %c192_76 = arith.constant 192 : index
    %52 = vector.load %arg3[%c0_73, %c0_74, %c4_75, %c192_76] : memref<2x2x16x512xf32, #tpu.memory_space<vmem>>, vector<2x1x1x32xf32>
    %53 = vector.shape_cast %52 : vector<2x1x1x32xf32> to vector<2x32xf32>
    %54 = vector.shape_cast %51 : vector<2x32xf32> to vector<2x1x1x32xf32>
    tpu.vector_store %arg3[%c0_73, %c0_74, %c4_75, %c192_76], %54 {strides = array<i32>} : memref<2x2x16x512xf32, #tpu.memory_space<vmem>>, vector<2x1x1x32xf32>,
    %55 = vector.extract_strided_slice %50 {offsets = [0, 32], sizes = [2, 32], strides = [1, 1]} : vector<2x64xf32> to vector<2x32xf32>
    %c0_77 = arith.constant 0 : index
    %c1_78 = arith.constant 1 : index
    %c4_79 = arith.constant 4 : index
    %c192_80 = arith.constant 192 : index
    %56 = vector.load %arg3[%c0_77, %c1_78, %c4_79, %c192_80] : memref<2x2x16x512xf32, #tpu.memory_space<vmem>>, vector<2x1x1x32xf32>
    %57 = vector.shape_cast %56 : vector<2x1x1x32xf32> to vector<2x32xf32>
    %58 = vector.shape_cast %55 : vector<2x32xf32> to vector<2x1x1x32xf32>
    tpu.vector_store %arg3[%c0_77, %c1_78, %c4_79, %c192_80], %58 {strides = array<i32>} : memref<2x2x16x512xf32, #tpu.memory_space<vmem>>, vector<2x1x1x32xf32>,
    %c0_81 = arith.constant 0 : index
    %c0_82 = arith.constant 0 : index
    %c4_83 = arith.constant 4 : index
    %c224 = arith.constant 224 : index
    %59 = vector.load %arg1[%c0_81, %c0_82, %c4_83, %c224] : memref<2x2x16x512xf32, #tpu.memory_space<vmem>>, vector<2x1x1x32xf32>
    %60 = vector.shape_cast %59 : vector<2x1x1x32xf32> to vector<2x32xf32>
    %c0_84 = arith.constant 0 : index
    %c1_85 = arith.constant 1 : index
    %c4_86 = arith.constant 4 : index
    %c224_87 = arith.constant 224 : index
    %61 = vector.load %arg1[%c0_84, %c1_85, %c4_86, %c224_87] : memref<2x2x16x512xf32, #tpu.memory_space<vmem>>, vector<2x1x1x32xf32>
    %62 = vector.shape_cast %61 : vector<2x1x1x32xf32> to vector<2x32xf32>
    %c0_88 = arith.constant 0 : index
    %c3 = arith.constant 3 : index
    %c0_89 = arith.constant 0 : index
    %c0_90 = arith.constant 0 : index
    %c0_91 = arith.constant 0 : index
    %63 = vector.load %arg2[%c0_88, %c3, %c0_89, %c0_90, %c0_91] : memref<8x8x2x32x64xf32, #tpu.memory_space<vmem>>, vector<1x1x1x32x64xf32>
    %64 = vector.shape_cast %63 : vector<1x1x1x32x64xf32> to vector<32x64xf32>
    %cst_92 = arith.constant dense<0.000000e+00> : vector<2x64xf32>
    %65 = tpu.matmul %60, %64, %cst_92 {dimension_numbers = #tpu.dot_dimension_numbers<[1], [0], [0], [1], [0, 0, 1, 1], [], []>} : vector<2x32xf32>, vector<32x64xf32>, vector<2x64xf32> -> vector<2x64xf32>
    %c0_93 = arith.constant 0 : index
    %c3_94 = arith.constant 3 : index
    %c1_95 = arith.constant 1 : index
    %c0_96 = arith.constant 0 : index
    %c0_97 = arith.constant 0 : index
    %66 = vector.load %arg2[%c0_93, %c3_94, %c1_95, %c0_96, %c0_97] : memref<8x8x2x32x64xf32, #tpu.memory_space<vmem>>, vector<1x1x1x32x64xf32>
    %67 = vector.shape_cast %66 : vector<1x1x1x32x64xf32> to vector<32x64xf32>
    %cst_98 = arith.constant dense<0.000000e+00> : vector<2x64xf32>
    %68 = tpu.matmul %62, %67, %cst_98 {dimension_numbers = #tpu.dot_dimension_numbers<[1], [0], [0], [1], [0, 0, 1, 1], [], []>} : vector<2x32xf32>, vector<32x64xf32>, vector<2x64xf32> -> vector<2x64xf32>
    %69 = arith.addf %65, %68 : vector<2x64xf32>
    %70 = vector.extract_strided_slice %69 {offsets = [0, 0], sizes = [2, 32], strides = [1, 1]} : vector<2x64xf32> to vector<2x32xf32>
    %c0_99 = arith.constant 0 : index
    %c0_100 = arith.constant 0 : index
    %c4_101 = arith.constant 4 : index
    %c224_102 = arith.constant 224 : index
    %71 = vector.load %arg3[%c0_99, %c0_100, %c4_101, %c224_102] : memref<2x2x16x512xf32, #tpu.memory_space<vmem>>, vector<2x1x1x32xf32>
    %72 = vector.shape_cast %71 : vector<2x1x1x32xf32> to vector<2x32xf32>
    %73 = vector.shape_cast %70 : vector<2x32xf32> to vector<2x1x1x32xf32>
    tpu.vector_store %arg3[%c0_99, %c0_100, %c4_101, %c224_102], %73 {strides = array<i32>} : memref<2x2x16x512xf32, #tpu.memory_space<vmem>>, vector<2x1x1x32xf32>,
    %74 = vector.extract_strided_slice %69 {offsets = [0, 32], sizes = [2, 32], strides = [1, 1]} : vector<2x64xf32> to vector<2x32xf32>
    %c0_103 = arith.constant 0 : index
    %c1_104 = arith.constant 1 : index
    %c4_105 = arith.constant 4 : index
    %c224_106 = arith.constant 224 : index
    %75 = vector.load %arg3[%c0_103, %c1_104, %c4_105, %c224_106] : memref<2x2x16x512xf32, #tpu.memory_space<vmem>>, vector<2x1x1x32xf32>
    %76 = vector.shape_cast %75 : vector<2x1x1x32xf32> to vector<2x32xf32>
    %77 = vector.shape_cast %74 : vector<2x32xf32> to vector<2x1x1x32xf32>
    tpu.vector_store %arg3[%c0_103, %c1_104, %c4_105, %c224_106], %77 {strides = array<i32>} : memref<2x2x16x512xf32, #tpu.memory_space<vmem>>, vector<2x1x1x32xf32>,
    %c0_107 = arith.constant 0 : index
    %c0_108 = arith.constant 0 : index
    %c4_109 = arith.constant 4 : index
    %c256 = arith.constant 256 : index
    %78 = vector.load %arg1[%c0_107, %c0_108, %c4_109, %c256] : memref<2x2x16x512xf32, #tpu.memory_space<vmem>>, vector<2x1x1x32xf32>
    %79 = vector.shape_cast %78 : vector<2x1x1x32xf32> to vector<2x32xf32>
    %c0_110 = arith.constant 0 : index
    %c1_111 = arith.constant 1 : index
    %c4_112 = arith.constant 4 : index
    %c256_113 = arith.constant 256 : index
    %80 = vector.load %arg1[%c0_110, %c1_111, %c4_112, %c256_113] : memref<2x2x16x512xf32, #tpu.memory_space<vmem>>, vector<2x1x1x32xf32>
    %81 = vector.shape_cast %80 : vector<2x1x1x32xf32> to vector<2x32xf32>
    %c0_114 = arith.constant 0 : index
    %c4_115 = arith.constant 4 : index
    %c0_116 = arith.constant 0 : index
    %c0_117 = arith.constant 0 : index
    %c0_118 = arith.constant 0 : index
    %82 = vector.load %arg2[%c0_114, %c4_115, %c0_116, %c0_117, %c0_118] : memref<8x8x2x32x64xf32, #tpu.memory_space<vmem>>, vector<1x1x1x32x64xf32>
    %83 = vector.shape_cast %82 : vector<1x1x1x32x64xf32> to vector<32x64xf32>
    %cst_119 = arith.constant dense<0.000000e+00> : vector<2x64xf32>
    %84 = tpu.matmul %79, %83, %cst_119 {dimension_numbers = #tpu.dot_dimension_numbers<[1], [0], [0], [1], [0, 0, 1, 1], [], []>} : vector<2x32xf32>, vector<32x64xf32>, vector<2x64xf32> -> vector<2x64xf32>
    %c0_120 = arith.constant 0 : index
    %c4_121 = arith.constant 4 : index
    %c1_122 = arith.constant 1 : index
    %c0_123 = arith.constant 0 : index
    %c0_124 = arith.constant 0 : index
    %85 = vector.load %arg2[%c0_120, %c4_121, %c1_122, %c0_123, %c0_124] : memref<8x8x2x32x64xf32, #tpu.memory_space<vmem>>, vector<1x1x1x32x64xf32>
    %86 = vector.shape_cast %85 : vector<1x1x1x32x64xf32> to vector<32x64xf32>
    %cst_125 = arith.constant dense<0.000000e+00> : vector<2x64xf32>
    %87 = tpu.matmul %81, %86, %cst_125 {dimension_numbers = #tpu.dot_dimension_numbers<[1], [0], [0], [1], [0, 0, 1, 1], [], []>} : vector<2x32xf32>, vector<32x64xf32>, vector<2x64xf32> -> vector<2x64xf32>
    %88 = arith.addf %84, %87 : vector<2x64xf32>
    %89 = vector.extract_strided_slice %88 {offsets = [0, 0], sizes = [2, 32], strides = [1, 1]} : vector<2x64xf32> to vector<2x32xf32>
    %c0_126 = arith.constant 0 : index
    %c0_127 = arith.constant 0 : index
    %c4_128 = arith.constant 4 : index
    %c256_129 = arith.constant 256 : index
    %90 = vector.load %arg3[%c0_126, %c0_127, %c4_128, %c256_129] : memref<2x2x16x512xf32, #tpu.memory_space<vmem>>, vector<2x1x1x32xf32>
    %91 = vector.shape_cast %90 : vector<2x1x1x32xf32> to vector<2x32xf32>
    %92 = vector.shape_cast %89 : vector<2x32xf32> to vector<2x1x1x32xf32>
    tpu.vector_store %arg3[%c0_126, %c0_127, %c4_128, %c256_129], %92 {strides = array<i32>} : memref<2x2x16x512xf32, #tpu.memory_space<vmem>>, vector<2x1x1x32xf32>,
    %93 = vector.extract_strided_slice %88 {offsets = [0, 32], sizes = [2, 32], strides = [1, 1]} : vector<2x64xf32> to vector<2x32xf32>
    %c0_130 = arith.constant 0 : index
    %c1_131 = arith.constant 1 : index
    %c4_132 = arith.constant 4 : index
    %c256_133 = arith.constant 256 : index
    %94 = vector.load %arg3[%c0_130, %c1_131, %c4_132, %c256_133] : memref<2x2x16x512xf32, #tpu.memory_space<vmem>>, vector<2x1x1x32xf32>
    %95 = vector.shape_cast %94 : vector<2x1x1x32xf32> to vector<2x32xf32>
    %96 = vector.shape_cast %93 : vector<2x32xf32> to vector<2x1x1x32xf32>
    tpu.vector_store %arg3[%c0_130, %c1_131, %c4_132, %c256_133], %96 {strides = array<i32>} : memref<2x2x16x512xf32, #tpu.memory_space<vmem>>, vector<2x1x1x32xf32>,
    %c0_134 = arith.constant 0 : index
    %c0_135 = arith.constant 0 : index
    %c4_136 = arith.constant 4 : index
    %c288 = arith.constant 288 : index
    %97 = vector.load %arg1[%c0_134, %c0_135, %c4_136, %c288] : memref<2x2x16x512xf32, #tpu.memory_space<vmem>>, vector<2x1x1x32xf32>
    %98 = vector.shape_cast %97 : vector<2x1x1x32xf32> to vector<2x32xf32>
    %c0_137 = arith.constant 0 : index
    %c1_138 = arith.constant 1 : index
    %c4_139 = arith.constant 4 : index
    %c288_140 = arith.constant 288 : index
    %99 = vector.load %arg1[%c0_137, %c1_138, %c4_139, %c288_140] : memref<2x2x16x512xf32, #tpu.memory_space<vmem>>, vector<2x1x1x32xf32>
    %100 = vector.shape_cast %99 : vector<2x1x1x32xf32> to vector<2x32xf32>
    %c0_141 = arith.constant 0 : index
    %c5 = arith.constant 5 : index
    %c0_142 = arith.constant 0 : index
    %c0_143 = arith.constant 0 : index
    %c0_144 = arith.constant 0 : index
    %101 = vector.load %arg2[%c0_141, %c5, %c0_142, %c0_143, %c0_144] : memref<8x8x2x32x64xf32, #tpu.memory_space<vmem>>, vector<1x1x1x32x64xf32>
    %102 = vector.shape_cast %101 : vector<1x1x1x32x64xf32> to vector<32x64xf32>
    %cst_145 = arith.constant dense<0.000000e+00> : vector<2x64xf32>
    %103 = tpu.matmul %98, %102, %cst_145 {dimension_numbers = #tpu.dot_dimension_numbers<[1], [0], [0], [1], [0, 0, 1, 1], [], []>} : vector<2x32xf32>, vector<32x64xf32>, vector<2x64xf32> -> vector<2x64xf32>
    %c0_146 = arith.constant 0 : index
    %c5_147 = arith.constant 5 : index
    %c1_148 = arith.constant 1 : index
    %c0_149 = arith.constant 0 : index
    %c0_150 = arith.constant 0 : index
    %104 = vector.load %arg2[%c0_146, %c5_147, %c1_148, %c0_149, %c0_150] : memref<8x8x2x32x64xf32, #tpu.memory_space<vmem>>, vector<1x1x1x32x64xf32>
    %105 = vector.shape_cast %104 : vector<1x1x1x32x64xf32> to vector<32x64xf32>
    %cst_151 = arith.constant dense<0.000000e+00> : vector<2x64xf32>
    %106 = tpu.matmul %100, %105, %cst_151 {dimension_numbers = #tpu.dot_dimension_numbers<[1], [0], [0], [1], [0, 0, 1, 1], [], []>} : vector<2x32xf32>, vector<32x64xf32>, vector<2x64xf32> -> vector<2x64xf32>
    %107 = arith.addf %103, %106 : vector<2x64xf32>
    %108 = vector.extract_strided_slice %107 {offsets = [0, 0], sizes = [2, 32], strides = [1, 1]} : vector<2x64xf32> to vector<2x32xf32>
    %c0_152 = arith.constant 0 : index
    %c0_153 = arith.constant 0 : index
    %c4_154 = arith.constant 4 : index
    %c288_155 = arith.constant 288 : index
    %109 = vector.load %arg3[%c0_152, %c0_153, %c4_154, %c288_155] : memref<2x2x16x512xf32, #tpu.memory_space<vmem>>, vector<2x1x1x32xf32>
    %110 = vector.shape_cast %109 : vector<2x1x1x32xf32> to vector<2x32xf32>
    %111 = vector.shape_cast %108 : vector<2x32xf32> to vector<2x1x1x32xf32>
    tpu.vector_store %arg3[%c0_152, %c0_153, %c4_154, %c288_155], %111 {strides = array<i32>} : memref<2x2x16x512xf32, #tpu.memory_space<vmem>>, vector<2x1x1x32xf32>,
    %112 = vector.extract_strided_slice %107 {offsets = [0, 32], sizes = [2, 32], strides = [1, 1]} : vector<2x64xf32> to vector<2x32xf32>
    %c0_156 = arith.constant 0 : index
    %c1_157 = arith.constant 1 : index
    %c4_158 = arith.constant 4 : index
    %c288_159 = arith.constant 288 : index
    %113 = vector.load %arg3[%c0_156, %c1_157, %c4_158, %c288_159] : memref<2x2x16x512xf32, #tpu.memory_space<vmem>>, vector<2x1x1x32xf32>
    %114 = vector.shape_cast %113 : vector<2x1x1x32xf32> to vector<2x32xf32>
    %115 = vector.shape_cast %112 : vector<2x32xf32> to vector<2x1x1x32xf32>
    tpu.vector_store %arg3[%c0_156, %c1_157, %c4_158, %c288_159], %115 {strides = array<i32>} : memref<2x2x16x512xf32, #tpu.memory_space<vmem>>, vector<2x1x1x32xf32>,
    %c0_160 = arith.constant 0 : index
    %c0_161 = arith.constant 0 : index
    %c4_162 = arith.constant 4 : index
    %c320 = arith.constant 320 : index
    %116 = vector.load %arg1[%c0_160, %c0_161, %c4_162, %c320] : memref<2x2x16x512xf32, #tpu.memory_space<vmem>>, vector<2x1x1x32xf32>
    %117 = vector.shape_cast %116 : vector<2x1x1x32xf32> to vector<2x32xf32>
    %c0_163 = arith.constant 0 : index
    %c1_164 = arith.constant 1 : index
    %c4_165 = arith.constant 4 : index
    %c320_166 = arith.constant 320 : index
    %118 = vector.load %arg1[%c0_163, %c1_164, %c4_165, %c320_166] : memref<2x2x16x512xf32, #tpu.memory_space<vmem>>, vector<2x1x1x32xf32>
    %119 = vector.shape_cast %118 : vector<2x1x1x32xf32> to vector<2x32xf32>
    %c0_167 = arith.constant 0 : index
    %c6 = arith.constant 6 : index
    %c0_168 = arith.constant 0 : index
    %c0_169 = arith.constant 0 : index
    %c0_170 = arith.constant 0 : index
    %120 = vector.load %arg2[%c0_167, %c6, %c0_168, %c0_169, %c0_170] : memref<8x8x2x32x64xf32, #tpu.memory_space<vmem>>, vector<1x1x1x32x64xf32>
    %121 = vector.shape_cast %120 : vector<1x1x1x32x64xf32> to vector<32x64xf32>
    %cst_171 = arith.constant dense<0.000000e+00> : vector<2x64xf32>
    %122 = tpu.matmul %117, %121, %cst_171 {dimension_numbers = #tpu.dot_dimension_numbers<[1], [0], [0], [1], [0, 0, 1, 1], [], []>} : vector<2x32xf32>, vector<32x64xf32>, vector<2x64xf32> -> vector<2x64xf32>
    %c0_172 = arith.constant 0 : index
    %c6_173 = arith.constant 6 : index
    %c1_174 = arith.constant 1 : index
    %c0_175 = arith.constant 0 : index
    %c0_176 = arith.constant 0 : index
    %123 = vector.load %arg2[%c0_172, %c6_173, %c1_174, %c0_175, %c0_176] : memref<8x8x2x32x64xf32, #tpu.memory_space<vmem>>, vector<1x1x1x32x64xf32>
    %124 = vector.shape_cast %123 : vector<1x1x1x32x64xf32> to vector<32x64xf32>
    %cst_177 = arith.constant dense<0.000000e+00> : vector<2x64xf32>
    %125 = tpu.matmul %119, %124, %cst_177 {dimension_numbers = #tpu.dot_dimension_numbers<[1], [0], [0], [1], [0, 0, 1, 1], [], []>} : vector<2x32xf32>, vector<32x64xf32>, vector<2x64xf32> -> vector<2x64xf32>
    %126 = arith.addf %122, %125 : vector<2x64xf32>
    %127 = vector.extract_strided_slice %126 {offsets = [0, 0], sizes = [2, 32], strides = [1, 1]} : vector<2x64xf32> to vector<2x32xf32>
    %c0_178 = arith.constant 0 : index
    %c0_179 = arith.constant 0 : index
    %c4_180 = arith.constant 4 : index
    %c320_181 = arith.constant 320 : index
    %128 = vector.load %arg3[%c0_178, %c0_179, %c4_180, %c320_181] : memref<2x2x16x512xf32, #tpu.memory_space<vmem>>, vector<2x1x1x32xf32>
    %129 = vector.shape_cast %128 : vector<2x1x1x32xf32> to vector<2x32xf32>
    %130 = vector.shape_cast %127 : vector<2x32xf32> to vector<2x1x1x32xf32>
    tpu.vector_store %arg3[%c0_178, %c0_179, %c4_180, %c320_181], %130 {strides = array<i32>} : memref<2x2x16x512xf32, #tpu.memory_space<vmem>>, vector<2x1x1x32xf32>,
    %131 = vector.extract_strided_slice %126 {offsets = [0, 32], sizes = [2, 32], strides = [1, 1]} : vector<2x64xf32> to vector<2x32xf32>
    %c0_182 = arith.constant 0 : index
    %c1_183 = arith.constant 1 : index
    %c4_184 = arith.constant 4 : index
    %c320_185 = arith.constant 320 : index
    %132 = vector.load %arg3[%c0_182, %c1_183, %c4_184, %c320_185] : memref<2x2x16x512xf32, #tpu.memory_space<vmem>>, vector<2x1x1x32xf32>
    %133 = vector.shape_cast %132 : vector<2x1x1x32xf32> to vector<2x32xf32>
    %134 = vector.shape_cast %131 : vector<2x32xf32> to vector<2x1x1x32xf32>
    tpu.vector_store %arg3[%c0_182, %c1_183, %c4_184, %c320_185], %134 {strides = array<i32>} : memref<2x2x16x512xf32, #tpu.memory_space<vmem>>, vector<2x1x1x32xf32>,
    %c0_186 = arith.constant 0 : index
    %c0_187 = arith.constant 0 : index
    %c4_188 = arith.constant 4 : index
    %c352 = arith.constant 352 : index
    %135 = vector.load %arg1[%c0_186, %c0_187, %c4_188, %c352] : memref<2x2x16x512xf32, #tpu.memory_space<vmem>>, vector<2x1x1x32xf32>
    %136 = vector.shape_cast %135 : vector<2x1x1x32xf32> to vector<2x32xf32>
    %c0_189 = arith.constant 0 : index
    %c1_190 = arith.constant 1 : index
    %c4_191 = arith.constant 4 : index
    %c352_192 = arith.constant 352 : index
    %137 = vector.load %arg1[%c0_189, %c1_190, %c4_191, %c352_192] : memref<2x2x16x512xf32, #tpu.memory_space<vmem>>, vector<2x1x1x32xf32>
    %138 = vector.shape_cast %137 : vector<2x1x1x32xf32> to vector<2x32xf32>
    %c0_193 = arith.constant 0 : index
    %c7 = arith.constant 7 : index
    %c0_194 = arith.constant 0 : index
    %c0_195 = arith.constant 0 : index
    %c0_196 = arith.constant 0 : index
    %139 = vector.load %arg2[%c0_193, %c7, %c0_194, %c0_195, %c0_196] : memref<8x8x2x32x64xf32, #tpu.memory_space<vmem>>, vector<1x1x1x32x64xf32>
    %140 = vector.shape_cast %139 : vector<1x1x1x32x64xf32> to vector<32x64xf32>
    %cst_197 = arith.constant dense<0.000000e+00> : vector<2x64xf32>
    %141 = tpu.matmul %136, %140, %cst_197 {dimension_numbers = #tpu.dot_dimension_numbers<[1], [0], [0], [1], [0, 0, 1, 1], [], []>} : vector<2x32xf32>, vector<32x64xf32>, vector<2x64xf32> -> vector<2x64xf32>
    %c0_198 = arith.constant 0 : index
    %c7_199 = arith.constant 7 : index
    %c1_200 = arith.constant 1 : index
    %c0_201 = arith.constant 0 : index
    %c0_202 = arith.constant 0 : index
    %142 = vector.load %arg2[%c0_198, %c7_199, %c1_200, %c0_201, %c0_202] : memref<8x8x2x32x64xf32, #tpu.memory_space<vmem>>, vector<1x1x1x32x64xf32>
    %143 = vector.shape_cast %142 : vector<1x1x1x32x64xf32> to vector<32x64xf32>
    %cst_203 = arith.constant dense<0.000000e+00> : vector<2x64xf32>
    %144 = tpu.matmul %138, %143, %cst_203 {dimension_numbers = #tpu.dot_dimension_numbers<[1], [0], [0], [1], [0, 0, 1, 1], [], []>} : vector<2x32xf32>, vector<32x64xf32>, vector<2x64xf32> -> vector<2x64xf32>
    %145 = arith.addf %141, %144 : vector<2x64xf32>
    %146 = vector.extract_strided_slice %145 {offsets = [0, 0], sizes = [2, 32], strides = [1, 1]} : vector<2x64xf32> to vector<2x32xf32>
    %c0_204 = arith.constant 0 : index
    %c0_205 = arith.constant 0 : index
    %c4_206 = arith.constant 4 : index
    %c352_207 = arith.constant 352 : index
    %147 = vector.load %arg3[%c0_204, %c0_205, %c4_206, %c352_207] : memref<2x2x16x512xf32, #tpu.memory_space<vmem>>, vector<2x1x1x32xf32>
    %148 = vector.shape_cast %147 : vector<2x1x1x32xf32> to vector<2x32xf32>
    %149 = vector.shape_cast %146 : vector<2x32xf32> to vector<2x1x1x32xf32>
    tpu.vector_store %arg3[%c0_204, %c0_205, %c4_206, %c352_207], %149 {strides = array<i32>} : memref<2x2x16x512xf32, #tpu.memory_space<vmem>>, vector<2x1x1x32xf32>,
    %150 = vector.extract_strided_slice %145 {offsets = [0, 32], sizes = [2, 32], strides = [1, 1]} : vector<2x64xf32> to vector<2x32xf32>
    %c0_208 = arith.constant 0 : index
    %c1_209 = arith.constant 1 : index
    %c4_210 = arith.constant 4 : index
    %c352_211 = arith.constant 352 : index
    %151 = vector.load %arg3[%c0_208, %c1_209, %c4_210, %c352_211] : memref<2x2x16x512xf32, #tpu.memory_space<vmem>>, vector<2x1x1x32xf32>
    %152 = vector.shape_cast %151 : vector<2x1x1x32xf32> to vector<2x32xf32>
    %153 = vector.shape_cast %150 : vector<2x32xf32> to vector<2x1x1x32xf32>
    tpu.vector_store %arg3[%c0_208, %c1_209, %c4_210, %c352_211], %153 {strides = array<i32>} : memref<2x2x16x512xf32, #tpu.memory_space<vmem>>, vector<2x1x1x32xf32>,
    %c0_212 = arith.constant 0 : index
    %c0_213 = arith.constant 0 : index
    %c5_214 = arith.constant 5 : index
    %c128_215 = arith.constant 128 : index
    %154 = vector.load %arg1[%c0_212, %c0_213, %c5_214, %c128_215] : memref<2x2x16x512xf32, #tpu.memory_space<vmem>>, vector<2x1x1x32xf32>
    %155 = vector.shape_cast %154 : vector<2x1x1x32xf32> to vector<2x32xf32>
    %c0_216 = arith.constant 0 : index
    %c1_217 = arith.constant 1 : index
    %c5_218 = arith.constant 5 : index
    %c128_219 = arith.constant 128 : index
    %156 = vector.load %arg1[%c0_216, %c1_217, %c5_218, %c128_219] : memref<2x2x16x512xf32, #tpu.memory_space<vmem>>, vector<2x1x1x32xf32>
    %157 = vector.shape_cast %156 : vector<2x1x1x32xf32> to vector<2x32xf32>
    %c1_220 = arith.constant 1 : index
    %c0_221 = arith.constant 0 : index
    %c0_222 = arith.constant 0 : index
    %c0_223 = arith.constant 0 : index
    %c0_224 = arith.constant 0 : index
    %158 = vector.load %arg2[%c1_220, %c0_221, %c0_222, %c0_223, %c0_224] : memref<8x8x2x32x64xf32, #tpu.memory_space<vmem>>, vector<1x1x1x32x64xf32>
    %159 = vector.shape_cast %158 : vector<1x1x1x32x64xf32> to vector<32x64xf32>
    %cst_225 = arith.constant dense<0.000000e+00> : vector<2x64xf32>
    %160 = tpu.matmul %155, %159, %cst_225 {dimension_numbers = #tpu.dot_dimension_numbers<[1], [0], [0], [1], [0, 0, 1, 1], [], []>} : vector<2x32xf32>, vector<32x64xf32>, vector<2x64xf32> -> vector<2x64xf32>
    %c1_226 = arith.constant 1 : index
    %c0_227 = arith.constant 0 : index
    %c1_228 = arith.constant 1 : index
    %c0_229 = arith.constant 0 : index
    %c0_230 = arith.constant 0 : index
    %161 = vector.load %arg2[%c1_226, %c0_227, %c1_228, %c0_229, %c0_230] : memref<8x8x2x32x64xf32, #tpu.memory_space<vmem>>, vector<1x1x1x32x64xf32>
    %162 = vector.shape_cast %161 : vector<1x1x1x32x64xf32> to vector<32x64xf32>
    %cst_231 = arith.constant dense<0.000000e+00> : vector<2x64xf32>
    %163 = tpu.matmul %157, %162, %cst_231 {dimension_numbers = #tpu.dot_dimension_numbers<[1], [0], [0], [1], [0, 0, 1, 1], [], []>} : vector<2x32xf32>, vector<32x64xf32>, vector<2x64xf32> -> vector<2x64xf32>
    %164 = arith.addf %160, %163 : vector<2x64xf32>
    %165 = vector.extract_strided_slice %164 {offsets = [0, 0], sizes = [2, 32], strides = [1, 1]} : vector<2x64xf32> to vector<2x32xf32>
    %c0_232 = arith.constant 0 : index
    %c0_233 = arith.constant 0 : index
    %c5_234 = arith.constant 5 : index
    %c128_235 = arith.constant 128 : index
    %166 = vector.load %arg3[%c0_232, %c0_233, %c5_234, %c128_235] : memref<2x2x16x512xf32, #tpu.memory_space<vmem>>, vector<2x1x1x32xf32>
    %167 = vector.shape_cast %166 : vector<2x1x1x32xf32> to vector<2x32xf32>
    %168 = vector.shape_cast %165 : vector<2x32xf32> to vector<2x1x1x32xf32>
    tpu.vector_store %arg3[%c0_232, %c0_233, %c5_234, %c128_235], %168 {strides = array<i32>} : memref<2x2x16x512xf32, #tpu.memory_space<vmem>>, vector<2x1x1x32xf32>,
    %169 = vector.extract_strided_slice %164 {offsets = [0, 32], sizes = [2, 32], strides = [1, 1]} : vector<2x64xf32> to vector<2x32xf32>
    %c0_236 = arith.constant 0 : index
    %c1_237 = arith.constant 1 : index
    %c5_238 = arith.constant 5 : index
    %c128_239 = arith.constant 128 : index
    %170 = vector.load %arg3[%c0_236, %c1_237, %c5_238, %c128_239] : memref<2x2x16x512xf32, #tpu.memory_space<vmem>>, vector<2x1x1x32xf32>
    %171 = vector.shape_cast %170 : vector<2x1x1x32xf32> to vector<2x32xf32>
    %172 = vector.shape_cast %169 : vector<2x32xf32> to vector<2x1x1x32xf32>
    tpu.vector_store %arg3[%c0_236, %c1_237, %c5_238, %c128_239], %172 {strides = array<i32>} : memref<2x2x16x512xf32, #tpu.memory_space<vmem>>, vector<2x1x1x32xf32>,
    %c0_240 = arith.constant 0 : index
    %c0_241 = arith.constant 0 : index
    %c5_242 = arith.constant 5 : index
    %c160_243 = arith.constant 160 : index
    %173 = vector.load %arg1[%c0_240, %c0_241, %c5_242, %c160_243] : memref<2x2x16x512xf32, #tpu.memory_space<vmem>>, vector<2x1x1x32xf32>
    %174 = vector.shape_cast %173 : vector<2x1x1x32xf32> to vector<2x32xf32>
    %c0_244 = arith.constant 0 : index
    %c1_245 = arith.constant 1 : index
    %c5_246 = arith.constant 5 : index
    %c160_247 = arith.constant 160 : index
    %175 = vector.load %arg1[%c0_244, %c1_245, %c5_246, %c160_247] : memref<2x2x16x512xf32, #tpu.memory_space<vmem>>, vector<2x1x1x32xf32>
    %176 = vector.shape_cast %175 : vector<2x1x1x32xf32> to vector<2x32xf32>
    %c1_248 = arith.constant 1 : index
    %c1_249 = arith.constant 1 : index
    %c0_250 = arith.constant 0 : index
    %c0_251 = arith.constant 0 : index
    %c0_252 = arith.constant 0 : index
    %177 = vector.load %arg2[%c1_248, %c1_249, %c0_250, %c0_251, %c0_252] : memref<8x8x2x32x64xf32, #tpu.memory_space<vmem>>, vector<1x1x1x32x64xf32>
    %178 = vector.shape_cast %177 : vector<1x1x1x32x64xf32> to vector<32x64xf32>
    %cst_253 = arith.constant dense<0.000000e+00> : vector<2x64xf32>
    %179 = tpu.matmul %174, %178, %cst_253 {dimension_numbers = #tpu.dot_dimension_numbers<[1], [0], [0], [1], [0, 0, 1, 1], [], []>} : vector<2x32xf32>, vector<32x64xf32>, vector<2x64xf32> -> vector<2x64xf32>
    %c1_254 = arith.constant 1 : index
    %c1_255 = arith.constant 1 : index
    %c1_256 = arith.constant 1 : index
    %c0_257 = arith.constant 0 : index
    %c0_258 = arith.constant 0 : index
    %180 = vector.load %arg2[%c1_254, %c1_255, %c1_256, %c0_257, %c0_258] : memref<8x8x2x32x64xf32, #tpu.memory_space<vmem>>, vector<1x1x1x32x64xf32>
    %181 = vector.shape_cast %180 : vector<1x1x1x32x64xf32> to vector<32x64xf32>
    %cst_259 = arith.constant dense<0.000000e+00> : vector<2x64xf32>
    %182 = tpu.matmul %176, %181, %cst_259 {dimension_numbers = #tpu.dot_dimension_numbers<[1], [0], [0], [1], [0, 0, 1, 1], [], []>} : vector<2x32xf32>, vector<32x64xf32>, vector<2x64xf32> -> vector<2x64xf32>
    %183 = arith.addf %179, %182 : vector<2x64xf32>
    %184 = vector.extract_strided_slice %183 {offsets = [0, 0], sizes = [2, 32], strides = [1, 1]} : vector<2x64xf32> to vector<2x32xf32>
    %c0_260 = arith.constant 0 : index
    %c0_261 = arith.constant 0 : index
    %c5_262 = arith.constant 5 : index
    %c160_263 = arith.constant 160 : index
    %185 = vector.load %arg3[%c0_260, %c0_261, %c5_262, %c160_263] : memref<2x2x16x512xf32, #tpu.memory_space<vmem>>, vector<2x1x1x32xf32>
    %186 = vector.shape_cast %185 : vector<2x1x1x32xf32> to vector<2x32xf32>
    %187 = vector.shape_cast %184 : vector<2x32xf32> to vector<2x1x1x32xf32>
    tpu.vector_store %arg3[%c0_260, %c0_261, %c5_262, %c160_263], %187 {strides = array<i32>} : memref<2x2x16x512xf32, #tpu.memory_space<vmem>>, vector<2x1x1x32xf32>,
    %188 = vector.extract_strided_slice %183 {offsets = [0, 32], sizes = [2, 32], strides = [1, 1]} : vector<2x64xf32> to vector<2x32xf32>
    %c0_264 = arith.constant 0 : index
    %c1_265 = arith.constant 1 : index
    %c5_266 = arith.constant 5 : index
    %c160_267 = arith.constant 160 : index
    %189 = vector.load %arg3[%c0_264, %c1_265, %c5_266, %c160_267] : memref<2x2x16x512xf32, #tpu.memory_space<vmem>>, vector<2x1x1x32xf32>
    %190 = vector.shape_cast %189 : vector<2x1x1x32xf32> to vector<2x32xf32>
    %191 = vector.shape_cast %188 : vector<2x32xf32> to vector<2x1x1x32xf32>
    tpu.vector_store %arg3[%c0_264, %c1_265, %c5_266, %c160_267], %191 {strides = array<i32>} : memref<2x2x16x512xf32, #tpu.memory_space<vmem>>, vector<2x1x1x32xf32>,
    %c0_268 = arith.constant 0 : index
    %c0_269 = arith.constant 0 : index
    %c5_270 = arith.constant 5 : index
    %c192_271 = arith.constant 192 : index
    %192 = vector.load %arg1[%c0_268, %c0_269, %c5_270, %c192_271] : memref<2x2x16x512xf32, #tpu.memory_space<vmem>>, vector<2x1x1x32xf32>
    %193 = vector.shape_cast %192 : vector<2x1x1x32xf32> to vector<2x32xf32>
    %c0_272 = arith.constant 0 : index
    %c1_273 = arith.constant 1 : index
    %c5_274 = arith.constant 5 : index
    %c192_275 = arith.constant 192 : index
    %194 = vector.load %arg1[%c0_272, %c1_273, %c5_274, %c192_275] : memref<2x2x16x512xf32, #tpu.memory_space<vmem>>, vector<2x1x1x32xf32>
    %195 = vector.shape_cast %194 : vector<2x1x1x32xf32> to vector<2x32xf32>
    %c1_276 = arith.constant 1 : index
    %c2_277 = arith.constant 2 : index
    %c0_278 = arith.constant 0 : index
    %c0_279 = arith.constant 0 : index
    %c0_280 = arith.constant 0 : index
    %196 = vector.load %arg2[%c1_276, %c2_277, %c0_278, %c0_279, %c0_280] : memref<8x8x2x32x64xf32, #tpu.memory_space<vmem>>, vector<1x1x1x32x64xf32>
    %197 = vector.shape_cast %196 : vector<1x1x1x32x64xf32> to vector<32x64xf32>
    %cst_281 = arith.constant dense<0.000000e+00> : vector<2x64xf32>
    %198 = tpu.matmul %193, %197, %cst_281 {dimension_numbers = #tpu.dot_dimension_numbers<[1], [0], [0], [1], [0, 0, 1, 1], [], []>} : vector<2x32xf32>, vector<32x64xf32>, vector<2x64xf32> -> vector<2x64xf32>
    %c1_282 = arith.constant 1 : index
    %c2_283 = arith.constant 2 : index
    %c1_284 = arith.constant 1 : index
    %c0_285 = arith.constant 0 : index
    %c0_286 = arith.constant 0 : index
    %199 = vector.load %arg2[%c1_282, %c2_283, %c1_284, %c0_285, %c0_286] : memref<8x8x2x32x64xf32, #tpu.memory_space<vmem>>, vector<1x1x1x32x64xf32>
    %200 = vector.shape_cast %199 : vector<1x1x1x32x64xf32> to vector<32x64xf32>
    %cst_287 = arith.constant dense<0.000000e+00> : vector<2x64xf32>
    %201 = tpu.matmul %195, %200, %cst_287 {dimension_numbers = #tpu.dot_dimension_numbers<[1], [0], [0], [1], [0, 0, 1, 1], [], []>} : vector<2x32xf32>, vector<32x64xf32>, vector<2x64xf32> -> vector<2x64xf32>
    %202 = arith.addf %198, %201 : vector<2x64xf32>
    %203 = vector.extract_strided_slice %202 {offsets = [0, 0], sizes = [2, 32], strides = [1, 1]} : vector<2x64xf32> to vector<2x32xf32>
    %c0_288 = arith.constant 0 : index
    %c0_289 = arith.constant 0 : index
    %c5_290 = arith.constant 5 : index
    %c192_291 = arith.constant 192 : index
    %204 = vector.load %arg3[%c0_288, %c0_289, %c5_290, %c192_291] : memref<2x2x16x512xf32, #tpu.memory_space<vmem>>, vector<2x1x1x32xf32>
    %205 = vector.shape_cast %204 : vector<2x1x1x32xf32> to vector<2x32xf32>
    %206 = vector.shape_cast %203 : vector<2x32xf32> to vector<2x1x1x32xf32>
    tpu.vector_store %arg3[%c0_288, %c0_289, %c5_290, %c192_291], %206 {strides = array<i32>} : memref<2x2x16x512xf32, #tpu.memory_space<vmem>>, vector<2x1x1x32xf32>,
    %207 = vector.extract_strided_slice %202 {offsets = [0, 32], sizes = [2, 32], strides = [1, 1]} : vector<2x64xf32> to vector<2x32xf32>
    %c0_292 = arith.constant 0 : index
    %c1_293 = arith.constant 1 : index
    %c5_294 = arith.constant 5 : index
    %c192_295 = arith.constant 192 : index
    %208 = vector.load %arg3[%c0_292, %c1_293, %c5_294, %c192_295] : memref<2x2x16x512xf32, #tpu.memory_space<vmem>>, vector<2x1x1x32xf32>
    %209 = vector.shape_cast %208 : vector<2x1x1x32xf32> to vector<2x32xf32>
    %210 = vector.shape_cast %207 : vector<2x32xf32> to vector<2x1x1x32xf32>
    tpu.vector_store %arg3[%c0_292, %c1_293, %c5_294, %c192_295], %210 {strides = array<i32>} : memref<2x2x16x512xf32, #tpu.memory_space<vmem>>, vector<2x1x1x32xf32>,
    %c0_296 = arith.constant 0 : index
    %c0_297 = arith.constant 0 : index
    %c5_298 = arith.constant 5 : index
    %c224_299 = arith.constant 224 : index
    %211 = vector.load %arg1[%c0_296, %c0_297, %c5_298, %c224_299] : memref<2x2x16x512xf32, #tpu.memory_space<vmem>>, vector<2x1x1x32xf32>
    %212 = vector.shape_cast %211 : vector<2x1x1x32xf32> to vector<2x32xf32>
    %c0_300 = arith.constant 0 : index
    %c1_301 = arith.constant 1 : index
    %c5_302 = arith.constant 5 : index
    %c224_303 = arith.constant 224 : index
    %213 = vector.load %arg1[%c0_300, %c1_301, %c5_302, %c224_303] : memref<2x2x16x512xf32, #tpu.memory_space<vmem>>, vector<2x1x1x32xf32>
    %214 = vector.shape_cast %213 : vector<2x1x1x32xf32> to vector<2x32xf32>
    %c1_304 = arith.constant 1 : index
    %c3_305 = arith.constant 3 : index
    %c0_306 = arith.constant 0 : index
    %c0_307 = arith.constant 0 : index
    %c0_308 = arith.constant 0 : index
    %215 = vector.load %arg2[%c1_304, %c3_305, %c0_306, %c0_307, %c0_308] : memref<8x8x2x32x64xf32, #tpu.memory_space<vmem>>, vector<1x1x1x32x64xf32>
    %216 = vector.shape_cast %215 : vector<1x1x1x32x64xf32> to vector<32x64xf32>
    %cst_309 = arith.constant dense<0.000000e+00> : vector<2x64xf32>
    %217 = tpu.matmul %212, %216, %cst_309 {dimension_numbers = #tpu.dot_dimension_numbers<[1], [0], [0], [1], [0, 0, 1, 1], [], []>} : vector<2x32xf32>, vector<32x64xf32>, vector<2x64xf32> -> vector<2x64xf32>
    %c1_310 = arith.constant 1 : index
    %c3_311 = arith.constant 3 : index
    %c1_312 = arith.constant 1 : index
    %c0_313 = arith.constant 0 : index
    %c0_314 = arith.constant 0 : index
    %218 = vector.load %arg2[%c1_310, %c3_311, %c1_312, %c0_313, %c0_314] : memref<8x8x2x32x64xf32, #tpu.memory_space<vmem>>, vector<1x1x1x32x64xf32>
    %219 = vector.shape_cast %218 : vector<1x1x1x32x64xf32> to vector<32x64xf32>
    %cst_315 = arith.constant dense<0.000000e+00> : vector<2x64xf32>
    %220 = tpu.matmul %214, %219, %cst_315 {dimension_numbers = #tpu.dot_dimension_numbers<[1], [0], [0], [1], [0, 0, 1, 1], [], []>} : vector<2x32xf32>, vector<32x64xf32>, vector<2x64xf32> -> vector<2x64xf32>
    %221 = arith.addf %217, %220 : vector<2x64xf32>
    %222 = vector.extract_strided_slice %221 {offsets = [0, 0], sizes = [2, 32], strides = [1, 1]} : vector<2x64xf32> to vector<2x32xf32>
    %c0_316 = arith.constant 0 : index
    %c0_317 = arith.constant 0 : index
    %c5_318 = arith.constant 5 : index
    %c224_319 = arith.constant 224 : index
    %223 = vector.load %arg3[%c0_316, %c0_317, %c5_318, %c224_319] : memref<2x2x16x512xf32, #tpu.memory_space<vmem>>, vector<2x1x1x32xf32>
    %224 = vector.shape_cast %223 : vector<2x1x1x32xf32> to vector<2x32xf32>
    %225 = vector.shape_cast %222 : vector<2x32xf32> to vector<2x1x1x32xf32>
    tpu.vector_store %arg3[%c0_316, %c0_317, %c5_318, %c224_319], %225 {strides = array<i32>} : memref<2x2x16x512xf32, #tpu.memory_space<vmem>>, vector<2x1x1x32xf32>,
    %226 = vector.extract_strided_slice %221 {offsets = [0, 32], sizes = [2, 32], strides = [1, 1]} : vector<2x64xf32> to vector<2x32xf32>
    %c0_320 = arith.constant 0 : index
    %c1_321 = arith.constant 1 : index
    %c5_322 = arith.constant 5 : index
    %c224_323 = arith.constant 224 : index
    %227 = vector.load %arg3[%c0_320, %c1_321, %c5_322, %c224_323] : memref<2x2x16x512xf32, #tpu.memory_space<vmem>>, vector<2x1x1x32xf32>
    %228 = vector.shape_cast %227 : vector<2x1x1x32xf32> to vector<2x32xf32>
    %229 = vector.shape_cast %226 : vector<2x32xf32> to vector<2x1x1x32xf32>
    tpu.vector_store %arg3[%c0_320, %c1_321, %c5_322, %c224_323], %229 {strides = array<i32>} : memref<2x2x16x512xf32, #tpu.memory_space<vmem>>, vector<2x1x1x32xf32>,
    %c0_324 = arith.constant 0 : index
    %c0_325 = arith.constant 0 : index
    %c5_326 = arith.constant 5 : index
    %c256_327 = arith.constant 256 : index
    %230 = vector.load %arg1[%c0_324, %c0_325, %c5_326, %c256_327] : memref<2x2x16x512xf32, #tpu.memory_space<vmem>>, vector<2x1x1x32xf32>
    %231 = vector.shape_cast %230 : vector<2x1x1x32xf32> to vector<2x32xf32>
    %c0_328 = arith.constant 0 : index
    %c1_329 = arith.constant 1 : index
    %c5_330 = arith.constant 5 : index
    %c256_331 = arith.constant 256 : index
    %232 = vector.load %arg1[%c0_328, %c1_329, %c5_330, %c256_331] : memref<2x2x16x512xf32, #tpu.memory_space<vmem>>, vector<2x1x1x32xf32>
    %233 = vector.shape_cast %232 : vector<2x1x1x32xf32> to vector<2x32xf32>
    %c1_332 = arith.constant 1 : index
    %c4_333 = arith.constant 4 : index
    %c0_334 = arith.constant 0 : index
    %c0_335 = arith.constant 0 : index
    %c0_336 = arith.constant 0 : index
    %234 = vector.load %arg2[%c1_332, %c4_333, %c0_334, %c0_335, %c0_336] : memref<8x8x2x32x64xf32, #tpu.memory_space<vmem>>, vector<1x1x1x32x64xf32>
    %235 = vector.shape_cast %234 : vector<1x1x1x32x64xf32> to vector<32x64xf32>
    %cst_337 = arith.constant dense<0.000000e+00> : vector<2x64xf32>
    %236 = tpu.matmul %231, %235, %cst_337 {dimension_numbers = #tpu.dot_dimension_numbers<[1], [0], [0], [1], [0, 0, 1, 1], [], []>} : vector<2x32xf32>, vector<32x64xf32>, vector<2x64xf32> -> vector<2x64xf32>
    %c1_338 = arith.constant 1 : index
    %c4_339 = arith.constant 4 : index
    %c1_340 = arith.constant 1 : index
    %c0_341 = arith.constant 0 : index
    %c0_342 = arith.constant 0 : index
    %237 = vector.load %arg2[%c1_338, %c4_339, %c1_340, %c0_341, %c0_342] : memref<8x8x2x32x64xf32, #tpu.memory_space<vmem>>, vector<1x1x1x32x64xf32>
    %238 = vector.shape_cast %237 : vector<1x1x1x32x64xf32> to vector<32x64xf32>
    %cst_343 = arith.constant dense<0.000000e+00> : vector<2x64xf32>
    %239 = tpu.matmul %233, %238, %cst_343 {dimension_numbers = #tpu.dot_dimension_numbers<[1], [0], [0], [1], [0, 0, 1, 1], [], []>} : vector<2x32xf32>, vector<32x64xf32>, vector<2x64xf32> -> vector<2x64xf32>
    %240 = arith.addf %236, %239 : vector<2x64xf32>
    %241 = vector.extract_strided_slice %240 {offsets = [0, 0], sizes = [2, 32], strides = [1, 1]} : vector<2x64xf32> to vector<2x32xf32>
    %c0_344 = arith.constant 0 : index
    %c0_345 = arith.constant 0 : index
    %c5_346 = arith.constant 5 : index
    %c256_347 = arith.constant 256 : index
    %242 = vector.load %arg3[%c0_344, %c0_345, %c5_346, %c256_347] : memref<2x2x16x512xf32, #tpu.memory_space<vmem>>, vector<2x1x1x32xf32>
    %243 = vector.shape_cast %242 : vector<2x1x1x32xf32> to vector<2x32xf32>
    %244 = vector.shape_cast %241 : vector<2x32xf32> to vector<2x1x1x32xf32>
    tpu.vector_store %arg3[%c0_344, %c0_345, %c5_346, %c256_347], %244 {strides = array<i32>} : memref<2x2x16x512xf32, #tpu.memory_space<vmem>>, vector<2x1x1x32xf32>,
    %245 = vector.extract_strided_slice %240 {offsets = [0, 32], sizes = [2, 32], strides = [1, 1]} : vector<2x64xf32> to vector<2x32xf32>
    %c0_348 = arith.constant 0 : index
    %c1_349 = arith.constant 1 : index
    %c5_350 = arith.constant 5 : index
    %c256_351 = arith.constant 256 : index
    %246 = vector.load %arg3[%c0_348, %c1_349, %c5_350, %c256_351] : memref<2x2x16x512xf32, #tpu.memory_space<vmem>>, vector<2x1x1x32xf32>
    %247 = vector.shape_cast %246 : vector<2x1x1x32xf32> to vector<2x32xf32>
    %248 = vector.shape_cast %245 : vector<2x32xf32> to vector<2x1x1x32xf32>
    tpu.vector_store %arg3[%c0_348, %c1_349, %c5_350, %c256_351], %248 {strides = array<i32>} : memref<2x2x16x512xf32, #tpu.memory_space<vmem>>, vector<2x1x1x32xf32>,
    %c0_352 = arith.constant 0 : index
    %c0_353 = arith.constant 0 : index
    %c5_354 = arith.constant 5 : index
    %c288_355 = arith.constant 288 : index
    %249 = vector.load %arg1[%c0_352, %c0_353, %c5_354, %c288_355] : memref<2x2x16x512xf32, #tpu.memory_space<vmem>>, vector<2x1x1x32xf32>
    %250 = vector.shape_cast %249 : vector<2x1x1x32xf32> to vector<2x32xf32>
    %c0_356 = arith.constant 0 : index
    %c1_357 = arith.constant 1 : index
    %c5_358 = arith.constant 5 : index
    %c288_359 = arith.constant 288 : index
    %251 = vector.load %arg1[%c0_356, %c1_357, %c5_358, %c288_359] : memref<2x2x16x512xf32, #tpu.memory_space<vmem>>, vector<2x1x1x32xf32>
    %252 = vector.shape_cast %251 : vector<2x1x1x32xf32> to vector<2x32xf32>
    %c1_360 = arith.constant 1 : index
    %c5_361 = arith.constant 5 : index
    %c0_362 = arith.constant 0 : index
    %c0_363 = arith.constant 0 : index
    %c0_364 = arith.constant 0 : index
    %253 = vector.load %arg2[%c1_360, %c5_361, %c0_362, %c0_363, %c0_364] : memref<8x8x2x32x64xf32, #tpu.memory_space<vmem>>, vector<1x1x1x32x64xf32>
    %254 = vector.shape_cast %253 : vector<1x1x1x32x64xf32> to vector<32x64xf32>
    %cst_365 = arith.constant dense<0.000000e+00> : vector<2x64xf32>
    %255 = tpu.matmul %250, %254, %cst_365 {dimension_numbers = #tpu.dot_dimension_numbers<[1], [0], [0], [1], [0, 0, 1, 1], [], []>} : vector<2x32xf32>, vector<32x64xf32>, vector<2x64xf32> -> vector<2x64xf32>
    %c1_366 = arith.constant 1 : index
    %c5_367 = arith.constant 5 : index
    %c1_368 = arith.constant 1 : index
    %c0_369 = arith.constant 0 : index
    %c0_370 = arith.constant 0 : index
    %256 = vector.load %arg2[%c1_366, %c5_367, %c1_368, %c0_369, %c0_370] : memref<8x8x2x32x64xf32, #tpu.memory_space<vmem>>, vector<1x1x1x32x64xf32>
    %257 = vector.shape_cast %256 : vector<1x1x1x32x64xf32> to vector<32x64xf32>
    %cst_371 = arith.constant dense<0.000000e+00> : vector<2x64xf32>
    %258 = tpu.matmul %252, %257, %cst_371 {dimension_numbers = #tpu.dot_dimension_numbers<[1], [0], [0], [1], [0, 0, 1, 1], [], []>} : vector<2x32xf32>, vector<32x64xf32>, vector<2x64xf32> -> vector<2x64xf32>
    %259 = arith.addf %255, %258 : vector<2x64xf32>
    %260 = vector.extract_strided_slice %259 {offsets = [0, 0], sizes = [2, 32], strides = [1, 1]} : vector<2x64xf32> to vector<2x32xf32>
    %c0_372 = arith.constant 0 : index
    %c0_373 = arith.constant 0 : index
    %c5_374 = arith.constant 5 : index
    %c288_375 = arith.constant 288 : index
    %261 = vector.load %arg3[%c0_372, %c0_373, %c5_374, %c288_375] : memref<2x2x16x512xf32, #tpu.memory_space<vmem>>, vector<2x1x1x32xf32>
    %262 = vector.shape_cast %261 : vector<2x1x1x32xf32> to vector<2x32xf32>
    %263 = vector.shape_cast %260 : vector<2x32xf32> to vector<2x1x1x32xf32>
    tpu.vector_store %arg3[%c0_372, %c0_373, %c5_374, %c288_375], %263 {strides = array<i32>} : memref<2x2x16x512xf32, #tpu.memory_space<vmem>>, vector<2x1x1x32xf32>,
    %264 = vector.extract_strided_slice %259 {offsets = [0, 32], sizes = [2, 32], strides = [1, 1]} : vector<2x64xf32> to vector<2x32xf32>
    %c0_376 = arith.constant 0 : index
    %c1_377 = arith.constant 1 : index
    %c5_378 = arith.constant 5 : index
    %c288_379 = arith.constant 288 : index
    %265 = vector.load %arg3[%c0_376, %c1_377, %c5_378, %c288_379] : memref<2x2x16x512xf32, #tpu.memory_space<vmem>>, vector<2x1x1x32xf32>
    %266 = vector.shape_cast %265 : vector<2x1x1x32xf32> to vector<2x32xf32>
    %267 = vector.shape_cast %264 : vector<2x32xf32> to vector<2x1x1x32xf32>
    tpu.vector_store %arg3[%c0_376, %c1_377, %c5_378, %c288_379], %267 {strides = array<i32>} : memref<2x2x16x512xf32, #tpu.memory_space<vmem>>, vector<2x1x1x32xf32>,
    %c0_380 = arith.constant 0 : index
    %c0_381 = arith.constant 0 : index
    %c5_382 = arith.constant 5 : index
    %c320_383 = arith.constant 320 : index
    %268 = vector.load %arg1[%c0_380, %c0_381, %c5_382, %c320_383] : memref<2x2x16x512xf32, #tpu.memory_space<vmem>>, vector<2x1x1x32xf32>
    %269 = vector.shape_cast %268 : vector<2x1x1x32xf32> to vector<2x32xf32>
    %c0_384 = arith.constant 0 : index
    %c1_385 = arith.constant 1 : index
    %c5_386 = arith.constant 5 : index
    %c320_387 = arith.constant 320 : index
    %270 = vector.load %arg1[%c0_384, %c1_385, %c5_386, %c320_387] : memref<2x2x16x512xf32, #tpu.memory_space<vmem>>, vector<2x1x1x32xf32>
    %271 = vector.shape_cast %270 : vector<2x1x1x32xf32> to vector<2x32xf32>
    %c1_388 = arith.constant 1 : index
    %c6_389 = arith.constant 6 : index
    %c0_390 = arith.constant 0 : index
    %c0_391 = arith.constant 0 : index
    %c0_392 = arith.constant 0 : index
    %272 = vector.load %arg2[%c1_388, %c6_389, %c0_390, %c0_391, %c0_392] : memref<8x8x2x32x64xf32, #tpu.memory_space<vmem>>, vector<1x1x1x32x64xf32>
    %273 = vector.shape_cast %272 : vector<1x1x1x32x64xf32> to vector<32x64xf32>
    %cst_393 = arith.constant dense<0.000000e+00> : vector<2x64xf32>
    %274 = tpu.matmul %269, %273, %cst_393 {dimension_numbers = #tpu.dot_dimension_numbers<[1], [0], [0], [1], [0, 0, 1, 1], [], []>} : vector<2x32xf32>, vector<32x64xf32>, vector<2x64xf32> -> vector<2x64xf32>
    %c1_394 = arith.constant 1 : index
    %c6_395 = arith.constant 6 : index
    %c1_396 = arith.constant 1 : index
    %c0_397 = arith.constant 0 : index
    %c0_398 = arith.constant 0 : index
    %275 = vector.load %arg2[%c1_394, %c6_395, %c1_396, %c0_397, %c0_398] : memref<8x8x2x32x64xf32, #tpu.memory_space<vmem>>, vector<1x1x1x32x64xf32>
    %276 = vector.shape_cast %275 : vector<1x1x1x32x64xf32> to vector<32x64xf32>
    %cst_399 = arith.constant dense<0.000000e+00> : vector<2x64xf32>
    %277 = tpu.matmul %271, %276, %cst_399 {dimension_numbers = #tpu.dot_dimension_numbers<[1], [0], [0], [1], [0, 0, 1, 1], [], []>} : vector<2x32xf32>, vector<32x64xf32>, vector<2x64xf32> -> vector<2x64xf32>
    %278 = arith.addf %274, %277 : vector<2x64xf32>
    %279 = vector.extract_strided_slice %278 {offsets = [0, 0], sizes = [2, 32], strides = [1, 1]} : vector<2x64xf32> to vector<2x32xf32>
    %c0_400 = arith.constant 0 : index
    %c0_401 = arith.constant 0 : index
    %c5_402 = arith.constant 5 : index
    %c320_403 = arith.constant 320 : index
    %280 = vector.load %arg3[%c0_400, %c0_401, %c5_402, %c320_403] : memref<2x2x16x512xf32, #tpu.memory_space<vmem>>, vector<2x1x1x32xf32>
    %281 = vector.shape_cast %280 : vector<2x1x1x32xf32> to vector<2x32xf32>
    %282 = vector.shape_cast %279 : vector<2x32xf32> to vector<2x1x1x32xf32>
    tpu.vector_store %arg3[%c0_400, %c0_401, %c5_402, %c320_403], %282 {strides = array<i32>} : memref<2x2x16x512xf32, #tpu.memory_space<vmem>>, vector<2x1x1x32xf32>,
    %283 = vector.extract_strided_slice %278 {offsets = [0, 32], sizes = [2, 32], strides = [1, 1]} : vector<2x64xf32> to vector<2x32xf32>
    %c0_404 = arith.constant 0 : index
    %c1_405 = arith.constant 1 : index
    %c5_406 = arith.constant 5 : index
    %c320_407 = arith.constant 320 : index
    %284 = vector.load %arg3[%c0_404, %c1_405, %c5_406, %c320_407] : memref<2x2x16x512xf32, #tpu.memory_space<vmem>>, vector<2x1x1x32xf32>
    %285 = vector.shape_cast %284 : vector<2x1x1x32xf32> to vector<2x32xf32>
    %286 = vector.shape_cast %283 : vector<2x32xf32> to vector<2x1x1x32xf32>
    tpu.vector_store %arg3[%c0_404, %c1_405, %c5_406, %c320_407], %286 {strides = array<i32>} : memref<2x2x16x512xf32, #tpu.memory_space<vmem>>, vector<2x1x1x32xf32>,
    %c0_408 = arith.constant 0 : index
    %c0_409 = arith.constant 0 : index
    %c5_410 = arith.constant 5 : index
    %c352_411 = arith.constant 352 : index
    %287 = vector.load %arg1[%c0_408, %c0_409, %c5_410, %c352_411] : memref<2x2x16x512xf32, #tpu.memory_space<vmem>>, vector<2x1x1x32xf32>
    %288 = vector.shape_cast %287 : vector<2x1x1x32xf32> to vector<2x32xf32>
    %c0_412 = arith.constant 0 : index
    %c1_413 = arith.constant 1 : index
    %c5_414 = arith.constant 5 : index
    %c352_415 = arith.constant 352 : index
    %289 = vector.load %arg1[%c0_412, %c1_413, %c5_414, %c352_415] : memref<2x2x16x512xf32, #tpu.memory_space<vmem>>, vector<2x1x1x32xf32>
    %290 = vector.shape_cast %289 : vector<2x1x1x32xf32> to vector<2x32xf32>
    %c1_416 = arith.constant 1 : index
    %c7_417 = arith.constant 7 : index
    %c0_418 = arith.constant 0 : index
    %c0_419 = arith.constant 0 : index
    %c0_420 = arith.constant 0 : index
    %291 = vector.load %arg2[%c1_416, %c7_417, %c0_418, %c0_419, %c0_420] : memref<8x8x2x32x64xf32, #tpu.memory_space<vmem>>, vector<1x1x1x32x64xf32>
    %292 = vector.shape_cast %291 : vector<1x1x1x32x64xf32> to vector<32x64xf32>
    %cst_421 = arith.constant dense<0.000000e+00> : vector<2x64xf32>
    %293 = tpu.matmul %288, %292, %cst_421 {dimension_numbers = #tpu.dot_dimension_numbers<[1], [0], [0], [1], [0, 0, 1, 1], [], []>} : vector<2x32xf32>, vector<32x64xf32>, vector<2x64xf32> -> vector<2x64xf32>
    %c1_422 = arith.constant 1 : index
    %c7_423 = arith.constant 7 : index
    %c1_424 = arith.constant 1 : index
    %c0_425 = arith.constant 0 : index
    %c0_426 = arith.constant 0 : index
    %294 = vector.load %arg2[%c1_422, %c7_423, %c1_424, %c0_425, %c0_426] : memref<8x8x2x32x64xf32, #tpu.memory_space<vmem>>, vector<1x1x1x32x64xf32>
    %295 = vector.shape_cast %294 : vector<1x1x1x32x64xf32> to vector<32x64xf32>
    %cst_427 = arith.constant dense<0.000000e+00> : vector<2x64xf32>
    %296 = tpu.matmul %290, %295, %cst_427 {dimension_numbers = #tpu.dot_dimension_numbers<[1], [0], [0], [1], [0, 0, 1, 1], [], []>} : vector<2x32xf32>, vector<32x64xf32>, vector<2x64xf32> -> vector<2x64xf32>
    %297 = arith.addf %293, %296 : vector<2x64xf32>
    %298 = vector.extract_strided_slice %297 {offsets = [0, 0], sizes = [2, 32], strides = [1, 1]} : vector<2x64xf32> to vector<2x32xf32>
    %c0_428 = arith.constant 0 : index
    %c0_429 = arith.constant 0 : index
    %c5_430 = arith.constant 5 : index
    %c352_431 = arith.constant 352 : index
    %299 = vector.load %arg3[%c0_428, %c0_429, %c5_430, %c352_431] : memref<2x2x16x512xf32, #tpu.memory_space<vmem>>, vector<2x1x1x32xf32>
    %300 = vector.shape_cast %299 : vector<2x1x1x32xf32> to vector<2x32xf32>
    %301 = vector.shape_cast %298 : vector<2x32xf32> to vector<2x1x1x32xf32>
    tpu.vector_store %arg3[%c0_428, %c0_429, %c5_430, %c352_431], %301 {strides = array<i32>} : memref<2x2x16x512xf32, #tpu.memory_space<vmem>>, vector<2x1x1x32xf32>,
    %302 = vector.extract_strided_slice %297 {offsets = [0, 32], sizes = [2, 32], strides = [1, 1]} : vector<2x64xf32> to vector<2x32xf32>
    %c0_432 = arith.constant 0 : index
    %c1_433 = arith.constant 1 : index
    %c5_434 = arith.constant 5 : index
    %c352_435 = arith.constant 352 : index
    %303 = vector.load %arg3[%c0_432, %c1_433, %c5_434, %c352_435] : memref<2x2x16x512xf32, #tpu.memory_space<vmem>>, vector<2x1x1x32xf32>
    %304 = vector.shape_cast %303 : vector<2x1x1x32xf32> to vector<2x32xf32>
    %305 = vector.shape_cast %302 : vector<2x32xf32> to vector<2x1x1x32xf32>
    tpu.vector_store %arg3[%c0_432, %c1_433, %c5_434, %c352_435], %305 {strides = array<i32>} : memref<2x2x16x512xf32, #tpu.memory_space<vmem>>, vector<2x1x1x32xf32>,
    %c0_436 = arith.constant 0 : index
    %c0_437 = arith.constant 0 : index
    %c6_438 = arith.constant 6 : index
    %c128_439 = arith.constant 128 : index
    %306 = vector.load %arg1[%c0_436, %c0_437, %c6_438, %c128_439] : memref<2x2x16x512xf32, #tpu.memory_space<vmem>>, vector<2x1x1x32xf32>
    %307 = vector.shape_cast %306 : vector<2x1x1x32xf32> to vector<2x32xf32>
    %c0_440 = arith.constant 0 : index
    %c1_441 = arith.constant 1 : index
    %c6_442 = arith.constant 6 : index
    %c128_443 = arith.constant 128 : index
    %308 = vector.load %arg1[%c0_440, %c1_441, %c6_442, %c128_443] : memref<2x2x16x512xf32, #tpu.memory_space<vmem>>, vector<2x1x1x32xf32>
    %309 = vector.shape_cast %308 : vector<2x1x1x32xf32> to vector<2x32xf32>
    %c2_444 = arith.constant 2 : index
    %c0_445 = arith.constant 0 : index
    %c0_446 = arith.constant 0 : index
    %c0_447 = arith.constant 0 : index
    %c0_448 = arith.constant 0 : index
    %310 = vector.load %arg2[%c2_444, %c0_445, %c0_446, %c0_447, %c0_448] : memref<8x8x2x32x64xf32, #tpu.memory_space<vmem>>, vector<1x1x1x32x64xf32>
    %311 = vector.shape_cast %310 : vector<1x1x1x32x64xf32> to vector<32x64xf32>
    %cst_449 = arith.constant dense<0.000000e+00> : vector<2x64xf32>
    %312 = tpu.matmul %307, %311, %cst_449 {dimension_numbers = #tpu.dot_dimension_numbers<[1], [0], [0], [1], [0, 0, 1, 1], [], []>} : vector<2x32xf32>, vector<32x64xf32>, vector<2x64xf32> -> vector<2x64xf32>
    %c2_450 = arith.constant 2 : index
    %c0_451 = arith.constant 0 : index
    %c1_452 = arith.constant 1 : index
    %c0_453 = arith.constant 0 : index
    %c0_454 = arith.constant 0 : index
    %313 = vector.load %arg2[%c2_450, %c0_451, %c1_452, %c0_453, %c0_454] : memref<8x8x2x32x64xf32, #tpu.memory_space<vmem>>, vector<1x1x1x32x64xf32>
    %314 = vector.shape_cast %313 : vector<1x1x1x32x64xf32> to vector<32x64xf32>
    %cst_455 = arith.constant dense<0.000000e+00> : vector<2x64xf32>
    %315 = tpu.matmul %309, %314, %cst_455 {dimension_numbers = #tpu.dot_dimension_numbers<[1], [0], [0], [1], [0, 0, 1, 1], [], []>} : vector<2x32xf32>, vector<32x64xf32>, vector<2x64xf32> -> vector<2x64xf32>
    %316 = arith.addf %312, %315 : vector<2x64xf32>
    %317 = vector.extract_strided_slice %316 {offsets = [0, 0], sizes = [2, 32], strides = [1, 1]} : vector<2x64xf32> to vector<2x32xf32>
    %c0_456 = arith.constant 0 : index
    %c0_457 = arith.constant 0 : index
    %c6_458 = arith.constant 6 : index
    %c128_459 = arith.constant 128 : index
    %318 = vector.load %arg3[%c0_456, %c0_457, %c6_458, %c128_459] : memref<2x2x16x512xf32, #tpu.memory_space<vmem>>, vector<2x1x1x32xf32>
    %319 = vector.shape_cast %318 : vector<2x1x1x32xf32> to vector<2x32xf32>
    %320 = vector.shape_cast %317 : vector<2x32xf32> to vector<2x1x1x32xf32>
    tpu.vector_store %arg3[%c0_456, %c0_457, %c6_458, %c128_459], %320 {strides = array<i32>} : memref<2x2x16x512xf32, #tpu.memory_space<vmem>>, vector<2x1x1x32xf32>,
    %321 = vector.extract_strided_slice %316 {offsets = [0, 32], sizes = [2, 32], strides = [1, 1]} : vector<2x64xf32> to vector<2x32xf32>
    %c0_460 = arith.constant 0 : index
    %c1_461 = arith.constant 1 : index
    %c6_462 = arith.constant 6 : index
    %c128_463 = arith.constant 128 : index
    %322 = vector.load %arg3[%c0_460, %c1_461, %c6_462, %c128_463] : memref<2x2x16x512xf32, #tpu.memory_space<vmem>>, vector<2x1x1x32xf32>
    %323 = vector.shape_cast %322 : vector<2x1x1x32xf32> to vector<2x32xf32>
    %324 = vector.shape_cast %321 : vector<2x32xf32> to vector<2x1x1x32xf32>
    tpu.vector_store %arg3[%c0_460, %c1_461, %c6_462, %c128_463], %324 {strides = array<i32>} : memref<2x2x16x512xf32, #tpu.memory_space<vmem>>, vector<2x1x1x32xf32>,
    %c0_464 = arith.constant 0 : index
    %c0_465 = arith.constant 0 : index
    %c6_466 = arith.constant 6 : index
    %c160_467 = arith.constant 160 : index
    %325 = vector.load %arg1[%c0_464, %c0_465, %c6_466, %c160_467] : memref<2x2x16x512xf32, #tpu.memory_space<vmem>>, vector<2x1x1x32xf32>
    %326 = vector.shape_cast %325 : vector<2x1x1x32xf32> to vector<2x32xf32>
    %c0_468 = arith.constant 0 : index
    %c1_469 = arith.constant 1 : index
    %c6_470 = arith.constant 6 : index
    %c160_471 = arith.constant 160 : index
    %327 = vector.load %arg1[%c0_468, %c1_469, %c6_470, %c160_471] : memref<2x2x16x512xf32, #tpu.memory_space<vmem>>, vector<2x1x1x32xf32>
    %328 = vector.shape_cast %327 : vector<2x1x1x32xf32> to vector<2x32xf32>
    %c2_472 = arith.constant 2 : index
    %c1_473 = arith.constant 1 : index
    %c0_474 = arith.constant 0 : index
    %c0_475 = arith.constant 0 : index
    %c0_476 = arith.constant 0 : index
    %329 = vector.load %arg2[%c2_472, %c1_473, %c0_474, %c0_475, %c0_476] : memref<8x8x2x32x64xf32, #tpu.memory_space<vmem>>, vector<1x1x1x32x64xf32>
    %330 = vector.shape_cast %329 : vector<1x1x1x32x64xf32> to vector<32x64xf32>
    %cst_477 = arith.constant dense<0.000000e+00> : vector<2x64xf32>
    %331 = tpu.matmul %326, %330, %cst_477 {dimension_numbers = #tpu.dot_dimension_numbers<[1], [0], [0], [1], [0, 0, 1, 1], [], []>} : vector<2x32xf32>, vector<32x64xf32>, vector<2x64xf32> -> vector<2x64xf32>
    %c2_478 = arith.constant 2 : index
    %c1_479 = arith.constant 1 : index
    %c1_480 = arith.constant 1 : index
    %c0_481 = arith.constant 0 : index
    %c0_482 = arith.constant 0 : index
    %332 = vector.load %arg2[%c2_478, %c1_479, %c1_480, %c0_481, %c0_482] : memref<8x8x2x32x64xf32, #tpu.memory_space<vmem>>, vector<1x1x1x32x64xf32>
    %333 = vector.shape_cast %332 : vector<1x1x1x32x64xf32> to vector<32x64xf32>
    %cst_483 = arith.constant dense<0.000000e+00> : vector<2x64xf32>
    %334 = tpu.matmul %328, %333, %cst_483 {dimension_numbers = #tpu.dot_dimension_numbers<[1], [0], [0], [1], [0, 0, 1, 1], [], []>} : vector<2x32xf32>, vector<32x64xf32>, vector<2x64xf32> -> vector<2x64xf32>
    %335 = arith.addf %331, %334 : vector<2x64xf32>
    %336 = vector.extract_strided_slice %335 {offsets = [0, 0], sizes = [2, 32], strides = [1, 1]} : vector<2x64xf32> to vector<2x32xf32>
    %c0_484 = arith.constant 0 : index
    %c0_485 = arith.constant 0 : index
    %c6_486 = arith.constant 6 : index
    %c160_487 = arith.constant 160 : index
    %337 = vector.load %arg3[%c0_484, %c0_485, %c6_486, %c160_487] : memref<2x2x16x512xf32, #tpu.memory_space<vmem>>, vector<2x1x1x32xf32>
    %338 = vector.shape_cast %337 : vector<2x1x1x32xf32> to vector<2x32xf32>
    %339 = vector.shape_cast %336 : vector<2x32xf32> to vector<2x1x1x32xf32>
    tpu.vector_store %arg3[%c0_484, %c0_485, %c6_486, %c160_487], %339 {strides = array<i32>} : memref<2x2x16x512xf32, #tpu.memory_space<vmem>>, vector<2x1x1x32xf32>,
    %340 = vector.extract_strided_slice %335 {offsets = [0, 32], sizes = [2, 32], strides = [1, 1]} : vector<2x64xf32> to vector<2x32xf32>
    %c0_488 = arith.constant 0 : index
    %c1_489 = arith.constant 1 : index
    %c6_490 = arith.constant 6 : index
    %c160_491 = arith.constant 160 : index
    %341 = vector.load %arg3[%c0_488, %c1_489, %c6_490, %c160_491] : memref<2x2x16x512xf32, #tpu.memory_space<vmem>>, vector<2x1x1x32xf32>
    %342 = vector.shape_cast %341 : vector<2x1x1x32xf32> to vector<2x32xf32>
    %343 = vector.shape_cast %340 : vector<2x32xf32> to vector<2x1x1x32xf32>
    tpu.vector_store %arg3[%c0_488, %c1_489, %c6_490, %c160_491], %343 {strides = array<i32>} : memref<2x2x16x512xf32, #tpu.memory_space<vmem>>, vector<2x1x1x32xf32>,
    %c0_492 = arith.constant 0 : index
    %c0_493 = arith.constant 0 : index
    %c6_494 = arith.constant 6 : index
    %c192_495 = arith.constant 192 : index
    %344 = vector.load %arg1[%c0_492, %c0_493, %c6_494, %c192_495] : memref<2x2x16x512xf32, #tpu.memory_space<vmem>>, vector<2x1x1x32xf32>
    %345 = vector.shape_cast %344 : vector<2x1x1x32xf32> to vector<2x32xf32>
    %c0_496 = arith.constant 0 : index
    %c1_497 = arith.constant 1 : index
    %c6_498 = arith.constant 6 : index
    %c192_499 = arith.constant 192 : index
    %346 = vector.load %arg1[%c0_496, %c1_497, %c6_498, %c192_499] : memref<2x2x16x512xf32, #tpu.memory_space<vmem>>, vector<2x1x1x32xf32>
    %347 = vector.shape_cast %346 : vector<2x1x1x32xf32> to vector<2x32xf32>
    %c2_500 = arith.constant 2 : index
    %c2_501 = arith.constant 2 : index
    %c0_502 = arith.constant 0 : index
    %c0_503 = arith.constant 0 : index
    %c0_504 = arith.constant 0 : index
    %348 = vector.load %arg2[%c2_500, %c2_501, %c0_502, %c0_503, %c0_504] : memref<8x8x2x32x64xf32, #tpu.memory_space<vmem>>, vector<1x1x1x32x64xf32>
    %349 = vector.shape_cast %348 : vector<1x1x1x32x64xf32> to vector<32x64xf32>
    %cst_505 = arith.constant dense<0.000000e+00> : vector<2x64xf32>
    %350 = tpu.matmul %345, %349, %cst_505 {dimension_numbers = #tpu.dot_dimension_numbers<[1], [0], [0], [1], [0, 0, 1, 1], [], []>} : vector<2x32xf32>, vector<32x64xf32>, vector<2x64xf32> -> vector<2x64xf32>
    %c2_506 = arith.constant 2 : index
    %c2_507 = arith.constant 2 : index
    %c1_508 = arith.constant 1 : index
    %c0_509 = arith.constant 0 : index
    %c0_510 = arith.constant 0 : index
    %351 = vector.load %arg2[%c2_506, %c2_507, %c1_508, %c0_509, %c0_510] : memref<8x8x2x32x64xf32, #tpu.memory_space<vmem>>, vector<1x1x1x32x64xf32>
    %352 = vector.shape_cast %351 : vector<1x1x1x32x64xf32> to vector<32x64xf32>
    %cst_511 = arith.constant dense<0.000000e+00> : vector<2x64xf32>
    %353 = tpu.matmul %347, %352, %cst_511 {dimension_numbers = #tpu.dot_dimension_numbers<[1], [0], [0], [1], [0, 0, 1, 1], [], []>} : vector<2x32xf32>, vector<32x64xf32>, vector<2x64xf32> -> vector<2x64xf32>
    %354 = arith.addf %350, %353 : vector<2x64xf32>
    %355 = vector.extract_strided_slice %354 {offsets = [0, 0], sizes = [2, 32], strides = [1, 1]} : vector<2x64xf32> to vector<2x32xf32>
    %c0_512 = arith.constant 0 : index
    %c0_513 = arith.constant 0 : index
    %c6_514 = arith.constant 6 : index
    %c192_515 = arith.constant 192 : index
    %356 = vector.load %arg3[%c0_512, %c0_513, %c6_514, %c192_515] : memref<2x2x16x512xf32, #tpu.memory_space<vmem>>, vector<2x1x1x32xf32>
    %357 = vector.shape_cast %356 : vector<2x1x1x32xf32> to vector<2x32xf32>
    %358 = vector.shape_cast %355 : vector<2x32xf32> to vector<2x1x1x32xf32>
    tpu.vector_store %arg3[%c0_512, %c0_513, %c6_514, %c192_515], %358 {strides = array<i32>} : memref<2x2x16x512xf32, #tpu.memory_space<vmem>>, vector<2x1x1x32xf32>,
    %359 = vector.extract_strided_slice %354 {offsets = [0, 32], sizes = [2, 32], strides = [1, 1]} : vector<2x64xf32> to vector<2x32xf32>
    %c0_516 = arith.constant 0 : index
    %c1_517 = arith.constant 1 : index
    %c6_518 = arith.constant 6 : index
    %c192_519 = arith.constant 192 : index
    %360 = vector.load %arg3[%c0_516, %c1_517, %c6_518, %c192_519] : memref<2x2x16x512xf32, #tpu.memory_space<vmem>>, vector<2x1x1x32xf32>
    %361 = vector.shape_cast %360 : vector<2x1x1x32xf32> to vector<2x32xf32>
    %362 = vector.shape_cast %359 : vector<2x32xf32> to vector<2x1x1x32xf32>
    tpu.vector_store %arg3[%c0_516, %c1_517, %c6_518, %c192_519], %362 {strides = array<i32>} : memref<2x2x16x512xf32, #tpu.memory_space<vmem>>, vector<2x1x1x32xf32>,
    %c0_520 = arith.constant 0 : index
    %c0_521 = arith.constant 0 : index
    %c6_522 = arith.constant 6 : index
    %c224_523 = arith.constant 224 : index
    %363 = vector.load %arg1[%c0_520, %c0_521, %c6_522, %c224_523] : memref<2x2x16x512xf32, #tpu.memory_space<vmem>>, vector<2x1x1x32xf32>
    %364 = vector.shape_cast %363 : vector<2x1x1x32xf32> to vector<2x32xf32>
    %c0_524 = arith.constant 0 : index
    %c1_525 = arith.constant 1 : index
    %c6_526 = arith.constant 6 : index
    %c224_527 = arith.constant 224 : index
    %365 = vector.load %arg1[%c0_524, %c1_525, %c6_526, %c224_527] : memref<2x2x16x512xf32, #tpu.memory_space<vmem>>, vector<2x1x1x32xf32>
    %366 = vector.shape_cast %365 : vector<2x1x1x32xf32> to vector<2x32xf32>
    %c2_528 = arith.constant 2 : index
    %c3_529 = arith.constant 3 : index
    %c0_530 = arith.constant 0 : index
    %c0_531 = arith.constant 0 : index
    %c0_532 = arith.constant 0 : index
    %367 = vector.load %arg2[%c2_528, %c3_529, %c0_530, %c0_531, %c0_532] : memref<8x8x2x32x64xf32, #tpu.memory_space<vmem>>, vector<1x1x1x32x64xf32>
    %368 = vector.shape_cast %367 : vector<1x1x1x32x64xf32> to vector<32x64xf32>
    %cst_533 = arith.constant dense<0.000000e+00> : vector<2x64xf32>
    %369 = tpu.matmul %364, %368, %cst_533 {dimension_numbers = #tpu.dot_dimension_numbers<[1], [0], [0], [1], [0, 0, 1, 1], [], []>} : vector<2x32xf32>, vector<32x64xf32>, vector<2x64xf32> -> vector<2x64xf32>
    %c2_534 = arith.constant 2 : index
    %c3_535 = arith.constant 3 : index
    %c1_536 = arith.constant 1 : index
    %c0_537 = arith.constant 0 : index
    %c0_538 = arith.constant 0 : index
    %370 = vector.load %arg2[%c2_534, %c3_535, %c1_536, %c0_537, %c0_538] : memref<8x8x2x32x64xf32, #tpu.memory_space<vmem>>, vector<1x1x1x32x64xf32>
    %371 = vector.shape_cast %370 : vector<1x1x1x32x64xf32> to vector<32x64xf32>
    %cst_539 = arith.constant dense<0.000000e+00> : vector<2x64xf32>
    %372 = tpu.matmul %366, %371, %cst_539 {dimension_numbers = #tpu.dot_dimension_numbers<[1], [0], [0], [1], [0, 0, 1, 1], [], []>} : vector<2x32xf32>, vector<32x64xf32>, vector<2x64xf32> -> vector<2x64xf32>
    %373 = arith.addf %369, %372 : vector<2x64xf32>
    %374 = vector.extract_strided_slice %373 {offsets = [0, 0], sizes = [2, 32], strides = [1, 1]} : vector<2x64xf32> to vector<2x32xf32>
    %c0_540 = arith.constant 0 : index
    %c0_541 = arith.constant 0 : index
    %c6_542 = arith.constant 6 : index
    %c224_543 = arith.constant 224 : index
    %375 = vector.load %arg3[%c0_540, %c0_541, %c6_542, %c224_543] : memref<2x2x16x512xf32, #tpu.memory_space<vmem>>, vector<2x1x1x32xf32>
    %376 = vector.shape_cast %375 : vector<2x1x1x32xf32> to vector<2x32xf32>
    %377 = vector.shape_cast %374 : vector<2x32xf32> to vector<2x1x1x32xf32>
    tpu.vector_store %arg3[%c0_540, %c0_541, %c6_542, %c224_543], %377 {strides = array<i32>} : memref<2x2x16x512xf32, #tpu.memory_space<vmem>>, vector<2x1x1x32xf32>,
    %378 = vector.extract_strided_slice %373 {offsets = [0, 32], sizes = [2, 32], strides = [1, 1]} : vector<2x64xf32> to vector<2x32xf32>
    %c0_544 = arith.constant 0 : index
    %c1_545 = arith.constant 1 : index
    %c6_546 = arith.constant 6 : index
    %c224_547 = arith.constant 224 : index
    %379 = vector.load %arg3[%c0_544, %c1_545, %c6_546, %c224_547] : memref<2x2x16x512xf32, #tpu.memory_space<vmem>>, vector<2x1x1x32xf32>
    %380 = vector.shape_cast %379 : vector<2x1x1x32xf32> to vector<2x32xf32>
    %381 = vector.shape_cast %378 : vector<2x32xf32> to vector<2x1x1x32xf32>
    tpu.vector_store %arg3[%c0_544, %c1_545, %c6_546, %c224_547], %381 {strides = array<i32>} : memref<2x2x16x512xf32, #tpu.memory_space<vmem>>, vector<2x1x1x32xf32>,
    %c0_548 = arith.constant 0 : index
    %c0_549 = arith.constant 0 : index
    %c6_550 = arith.constant 6 : index
    %c256_551 = arith.constant 256 : index
    %382 = vector.load %arg1[%c0_548, %c0_549, %c6_550, %c256_551] : memref<2x2x16x512xf32, #tpu.memory_space<vmem>>, vector<2x1x1x32xf32>
    %383 = vector.shape_cast %382 : vector<2x1x1x32xf32> to vector<2x32xf32>
    %c0_552 = arith.constant 0 : index
    %c1_553 = arith.constant 1 : index
    %c6_554 = arith.constant 6 : index
    %c256_555 = arith.constant 256 : index
    %384 = vector.load %arg1[%c0_552, %c1_553, %c6_554, %c256_555] : memref<2x2x16x512xf32, #tpu.memory_space<vmem>>, vector<2x1x1x32xf32>
    %385 = vector.shape_cast %384 : vector<2x1x1x32xf32> to vector<2x32xf32>
    %c2_556 = arith.constant 2 : index
    %c4_557 = arith.constant 4 : index
    %c0_558 = arith.constant 0 : index
    %c0_559 = arith.constant 0 : index
    %c0_560 = arith.constant 0 : index
    %386 = vector.load %arg2[%c2_556, %c4_557, %c0_558, %c0_559, %c0_560] : memref<8x8x2x32x64xf32, #tpu.memory_space<vmem>>, vector<1x1x1x32x64xf32>
    %387 = vector.shape_cast %386 : vector<1x1x1x32x64xf32> to vector<32x64xf32>
    %cst_561 = arith.constant dense<0.000000e+00> : vector<2x64xf32>
    %388 = tpu.matmul %383, %387, %cst_561 {dimension_numbers = #tpu.dot_dimension_numbers<[1], [0], [0], [1], [0, 0, 1, 1], [], []>} : vector<2x32xf32>, vector<32x64xf32>, vector<2x64xf32> -> vector<2x64xf32>
    %c2_562 = arith.constant 2 : index
    %c4_563 = arith.constant 4 : index
    %c1_564 = arith.constant 1 : index
    %c0_565 = arith.constant 0 : index
    %c0_566 = arith.constant 0 : index
    %389 = vector.load %arg2[%c2_562, %c4_563, %c1_564, %c0_565, %c0_566] : memref<8x8x2x32x64xf32, #tpu.memory_space<vmem>>, vector<1x1x1x32x64xf32>
    %390 = vector.shape_cast %389 : vector<1x1x1x32x64xf32> to vector<32x64xf32>
    %cst_567 = arith.constant dense<0.000000e+00> : vector<2x64xf32>
    %391 = tpu.matmul %385, %390, %cst_567 {dimension_numbers = #tpu.dot_dimension_numbers<[1], [0], [0], [1], [0, 0, 1, 1], [], []>} : vector<2x32xf32>, vector<32x64xf32>, vector<2x64xf32> -> vector<2x64xf32>
    %392 = arith.addf %388, %391 : vector<2x64xf32>
    %393 = vector.extract_strided_slice %392 {offsets = [0, 0], sizes = [2, 32], strides = [1, 1]} : vector<2x64xf32> to vector<2x32xf32>
    %c0_568 = arith.constant 0 : index
    %c0_569 = arith.constant 0 : index
    %c6_570 = arith.constant 6 : index
    %c256_571 = arith.constant 256 : index
    %394 = vector.load %arg3[%c0_568, %c0_569, %c6_570, %c256_571] : memref<2x2x16x512xf32, #tpu.memory_space<vmem>>, vector<2x1x1x32xf32>
    %395 = vector.shape_cast %394 : vector<2x1x1x32xf32> to vector<2x32xf32>
    %396 = vector.shape_cast %393 : vector<2x32xf32> to vector<2x1x1x32xf32>
    tpu.vector_store %arg3[%c0_568, %c0_569, %c6_570, %c256_571], %396 {strides = array<i32>} : memref<2x2x16x512xf32, #tpu.memory_space<vmem>>, vector<2x1x1x32xf32>,
    %397 = vector.extract_strided_slice %392 {offsets = [0, 32], sizes = [2, 32], strides = [1, 1]} : vector<2x64xf32> to vector<2x32xf32>
    %c0_572 = arith.constant 0 : index
    %c1_573 = arith.constant 1 : index
    %c6_574 = arith.constant 6 : index
    %c256_575 = arith.constant 256 : index
    %398 = vector.load %arg3[%c0_572, %c1_573, %c6_574, %c256_575] : memref<2x2x16x512xf32, #tpu.memory_space<vmem>>, vector<2x1x1x32xf32>
    %399 = vector.shape_cast %398 : vector<2x1x1x32xf32> to vector<2x32xf32>
    %400 = vector.shape_cast %397 : vector<2x32xf32> to vector<2x1x1x32xf32>
    tpu.vector_store %arg3[%c0_572, %c1_573, %c6_574, %c256_575], %400 {strides = array<i32>} : memref<2x2x16x512xf32, #tpu.memory_space<vmem>>, vector<2x1x1x32xf32>,
    %c0_576 = arith.constant 0 : index
    %c0_577 = arith.constant 0 : index
    %c6_578 = arith.constant 6 : index
    %c288_579 = arith.constant 288 : index
    %401 = vector.load %arg1[%c0_576, %c0_577, %c6_578, %c288_579] : memref<2x2x16x512xf32, #tpu.memory_space<vmem>>, vector<2x1x1x32xf32>
    %402 = vector.shape_cast %401 : vector<2x1x1x32xf32> to vector<2x32xf32>
    %c0_580 = arith.constant 0 : index
    %c1_581 = arith.constant 1 : index
    %c6_582 = arith.constant 6 : index
    %c288_583 = arith.constant 288 : index
    %403 = vector.load %arg1[%c0_580, %c1_581, %c6_582, %c288_583] : memref<2x2x16x512xf32, #tpu.memory_space<vmem>>, vector<2x1x1x32xf32>
    %404 = vector.shape_cast %403 : vector<2x1x1x32xf32> to vector<2x32xf32>
    %c2_584 = arith.constant 2 : index
    %c5_585 = arith.constant 5 : index
    %c0_586 = arith.constant 0 : index
    %c0_587 = arith.constant 0 : index
    %c0_588 = arith.constant 0 : index
    %405 = vector.load %arg2[%c2_584, %c5_585, %c0_586, %c0_587, %c0_588] : memref<8x8x2x32x64xf32, #tpu.memory_space<vmem>>, vector<1x1x1x32x64xf32>
    %406 = vector.shape_cast %405 : vector<1x1x1x32x64xf32> to vector<32x64xf32>
    %cst_589 = arith.constant dense<0.000000e+00> : vector<2x64xf32>
    %407 = tpu.matmul %402, %406, %cst_589 {dimension_numbers = #tpu.dot_dimension_numbers<[1], [0], [0], [1], [0, 0, 1, 1], [], []>} : vector<2x32xf32>, vector<32x64xf32>, vector<2x64xf32> -> vector<2x64xf32>
    %c2_590 = arith.constant 2 : index
    %c5_591 = arith.constant 5 : index
    %c1_592 = arith.constant 1 : index
    %c0_593 = arith.constant 0 : index
    %c0_594 = arith.constant 0 : index
    %408 = vector.load %arg2[%c2_590, %c5_591, %c1_592, %c0_593, %c0_594] : memref<8x8x2x32x64xf32, #tpu.memory_space<vmem>>, vector<1x1x1x32x64xf32>
    %409 = vector.shape_cast %408 : vector<1x1x1x32x64xf32> to vector<32x64xf32>
    %cst_595 = arith.constant dense<0.000000e+00> : vector<2x64xf32>
    %410 = tpu.matmul %404, %409, %cst_595 {dimension_numbers = #tpu.dot_dimension_numbers<[1], [0], [0], [1], [0, 0, 1, 1], [], []>} : vector<2x32xf32>, vector<32x64xf32>, vector<2x64xf32> -> vector<2x64xf32>
    %411 = arith.addf %407, %410 : vector<2x64xf32>
    %412 = vector.extract_strided_slice %411 {offsets = [0, 0], sizes = [2, 32], strides = [1, 1]} : vector<2x64xf32> to vector<2x32xf32>
    %c0_596 = arith.constant 0 : index
    %c0_597 = arith.constant 0 : index
    %c6_598 = arith.constant 6 : index
    %c288_599 = arith.constant 288 : index
    %413 = vector.load %arg3[%c0_596, %c0_597, %c6_598, %c288_599] : memref<2x2x16x512xf32, #tpu.memory_space<vmem>>, vector<2x1x1x32xf32>
    %414 = vector.shape_cast %413 : vector<2x1x1x32xf32> to vector<2x32xf32>
    %415 = vector.shape_cast %412 : vector<2x32xf32> to vector<2x1x1x32xf32>
    tpu.vector_store %arg3[%c0_596, %c0_597, %c6_598, %c288_599], %415 {strides = array<i32>} : memref<2x2x16x512xf32, #tpu.memory_space<vmem>>, vector<2x1x1x32xf32>,
    %416 = vector.extract_strided_slice %411 {offsets = [0, 32], sizes = [2, 32], strides = [1, 1]} : vector<2x64xf32> to vector<2x32xf32>
    %c0_600 = arith.constant 0 : index
    %c1_601 = arith.constant 1 : index
    %c6_602 = arith.constant 6 : index
    %c288_603 = arith.constant 288 : index
    %417 = vector.load %arg3[%c0_600, %c1_601, %c6_602, %c288_603] : memref<2x2x16x512xf32, #tpu.memory_space<vmem>>, vector<2x1x1x32xf32>
    %418 = vector.shape_cast %417 : vector<2x1x1x32xf32> to vector<2x32xf32>
    %419 = vector.shape_cast %416 : vector<2x32xf32> to vector<2x1x1x32xf32>
    tpu.vector_store %arg3[%c0_600, %c1_601, %c6_602, %c288_603], %419 {strides = array<i32>} : memref<2x2x16x512xf32, #tpu.memory_space<vmem>>, vector<2x1x1x32xf32>,
    %c0_604 = arith.constant 0 : index
    %c0_605 = arith.constant 0 : index
    %c6_606 = arith.constant 6 : index
    %c320_607 = arith.constant 320 : index
    %420 = vector.load %arg1[%c0_604, %c0_605, %c6_606, %c320_607] : memref<2x2x16x512xf32, #tpu.memory_space<vmem>>, vector<2x1x1x32xf32>
    %421 = vector.shape_cast %420 : vector<2x1x1x32xf32> to vector<2x32xf32>
    %c0_608 = arith.constant 0 : index
    %c1_609 = arith.constant 1 : index
    %c6_610 = arith.constant 6 : index
    %c320_611 = arith.constant 320 : index
    %422 = vector.load %arg1[%c0_608, %c1_609, %c6_610, %c320_611] : memref<2x2x16x512xf32, #tpu.memory_space<vmem>>, vector<2x1x1x32xf32>
    %423 = vector.shape_cast %422 : vector<2x1x1x32xf32> to vector<2x32xf32>
    %c2_612 = arith.constant 2 : index
    %c6_613 = arith.constant 6 : index
    %c0_614 = arith.constant 0 : index
    %c0_615 = arith.constant 0 : index
    %c0_616 = arith.constant 0 : index
    %424 = vector.load %arg2[%c2_612, %c6_613, %c0_614, %c0_615, %c0_616] : memref<8x8x2x32x64xf32, #tpu.memory_space<vmem>>, vector<1x1x1x32x64xf32>
    %425 = vector.shape_cast %424 : vector<1x1x1x32x64xf32> to vector<32x64xf32>
    %cst_617 = arith.constant dense<0.000000e+00> : vector<2x64xf32>
    %426 = tpu.matmul %421, %425, %cst_617 {dimension_numbers = #tpu.dot_dimension_numbers<[1], [0], [0], [1], [0, 0, 1, 1], [], []>} : vector<2x32xf32>, vector<32x64xf32>, vector<2x64xf32> -> vector<2x64xf32>
    %c2_618 = arith.constant 2 : index
    %c6_619 = arith.constant 6 : index
    %c1_620 = arith.constant 1 : index
    %c0_621 = arith.constant 0 : index
    %c0_622 = arith.constant 0 : index
    %427 = vector.load %arg2[%c2_618, %c6_619, %c1_620, %c0_621, %c0_622] : memref<8x8x2x32x64xf32, #tpu.memory_space<vmem>>, vector<1x1x1x32x64xf32>
    %428 = vector.shape_cast %427 : vector<1x1x1x32x64xf32> to vector<32x64xf32>
    %cst_623 = arith.constant dense<0.000000e+00> : vector<2x64xf32>
    %429 = tpu.matmul %423, %428, %cst_623 {dimension_numbers = #tpu.dot_dimension_numbers<[1], [0], [0], [1], [0, 0, 1, 1], [], []>} : vector<2x32xf32>, vector<32x64xf32>, vector<2x64xf32> -> vector<2x64xf32>
    %430 = arith.addf %426, %429 : vector<2x64xf32>
    %431 = vector.extract_strided_slice %430 {offsets = [0, 0], sizes = [2, 32], strides = [1, 1]} : vector<2x64xf32> to vector<2x32xf32>
    %c0_624 = arith.constant 0 : index
    %c0_625 = arith.constant 0 : index
    %c6_626 = arith.constant 6 : index
    %c320_627 = arith.constant 320 : index
    %432 = vector.load %arg3[%c0_624, %c0_625, %c6_626, %c320_627] : memref<2x2x16x512xf32, #tpu.memory_space<vmem>>, vector<2x1x1x32xf32>
    %433 = vector.shape_cast %432 : vector<2x1x1x32xf32> to vector<2x32xf32>
    %434 = vector.shape_cast %431 : vector<2x32xf32> to vector<2x1x1x32xf32>
    tpu.vector_store %arg3[%c0_624, %c0_625, %c6_626, %c320_627], %434 {strides = array<i32>} : memref<2x2x16x512xf32, #tpu.memory_space<vmem>>, vector<2x1x1x32xf32>,
    %435 = vector.extract_strided_slice %430 {offsets = [0, 32], sizes = [2, 32], strides = [1, 1]} : vector<2x64xf32> to vector<2x32xf32>
    %c0_628 = arith.constant 0 : index
    %c1_629 = arith.constant 1 : index
    %c6_630 = arith.constant 6 : index
    %c320_631 = arith.constant 320 : index
    %436 = vector.load %arg3[%c0_628, %c1_629, %c6_630, %c320_631] : memref<2x2x16x512xf32, #tpu.memory_space<vmem>>, vector<2x1x1x32xf32>
    %437 = vector.shape_cast %436 : vector<2x1x1x32xf32> to vector<2x32xf32>
    %438 = vector.shape_cast %435 : vector<2x32xf32> to vector<2x1x1x32xf32>
    tpu.vector_store %arg3[%c0_628, %c1_629, %c6_630, %c320_631], %438 {strides = array<i32>} : memref<2x2x16x512xf32, #tpu.memory_space<vmem>>, vector<2x1x1x32xf32>,
    %c0_632 = arith.constant 0 : index
    %c0_633 = arith.constant 0 : index
    %c6_634 = arith.constant 6 : index
    %c352_635 = arith.constant 352 : index
    %439 = vector.load %arg1[%c0_632, %c0_633, %c6_634, %c352_635] : memref<2x2x16x512xf32, #tpu.memory_space<vmem>>, vector<2x1x1x32xf32>
    %440 = vector.shape_cast %439 : vector<2x1x1x32xf32> to vector<2x32xf32>
    %c0_636 = arith.constant 0 : index
    %c1_637 = arith.constant 1 : index
    %c6_638 = arith.constant 6 : index
    %c352_639 = arith.constant 352 : index
    %441 = vector.load %arg1[%c0_636, %c1_637, %c6_638, %c352_639] : memref<2x2x16x512xf32, #tpu.memory_space<vmem>>, vector<2x1x1x32xf32>
    %442 = vector.shape_cast %441 : vector<2x1x1x32xf32> to vector<2x32xf32>
    %c2_640 = arith.constant 2 : index
    %c7_641 = arith.constant 7 : index
    %c0_642 = arith.constant 0 : index
    %c0_643 = arith.constant 0 : index
    %c0_644 = arith.constant 0 : index
    %443 = vector.load %arg2[%c2_640, %c7_641, %c0_642, %c0_643, %c0_644] : memref<8x8x2x32x64xf32, #tpu.memory_space<vmem>>, vector<1x1x1x32x64xf32>
    %444 = vector.shape_cast %443 : vector<1x1x1x32x64xf32> to vector<32x64xf32>
    %cst_645 = arith.constant dense<0.000000e+00> : vector<2x64xf32>
    %445 = tpu.matmul %440, %444, %cst_645 {dimension_numbers = #tpu.dot_dimension_numbers<[1], [0], [0], [1], [0, 0, 1, 1], [], []>} : vector<2x32xf32>, vector<32x64xf32>, vector<2x64xf32> -> vector<2x64xf32>
    %c2_646 = arith.constant 2 : index
    %c7_647 = arith.constant 7 : index
    %c1_648 = arith.constant 1 : index
    %c0_649 = arith.constant 0 : index
    %c0_650 = arith.constant 0 : index
    %446 = vector.load %arg2[%c2_646, %c7_647, %c1_648, %c0_649, %c0_650] : memref<8x8x2x32x64xf32, #tpu.memory_space<vmem>>, vector<1x1x1x32x64xf32>
    %447 = vector.shape_cast %446 : vector<1x1x1x32x64xf32> to vector<32x64xf32>
    %cst_651 = arith.constant dense<0.000000e+00> : vector<2x64xf32>
    %448 = tpu.matmul %442, %447, %cst_651 {dimension_numbers = #tpu.dot_dimension_numbers<[1], [0], [0], [1], [0, 0, 1, 1], [], []>} : vector<2x32xf32>, vector<32x64xf32>, vector<2x64xf32> -> vector<2x64xf32>
    %449 = arith.addf %445, %448 : vector<2x64xf32>
    %450 = vector.extract_strided_slice %449 {offsets = [0, 0], sizes = [2, 32], strides = [1, 1]} : vector<2x64xf32> to vector<2x32xf32>
    %c0_652 = arith.constant 0 : index
    %c0_653 = arith.constant 0 : index
    %c6_654 = arith.constant 6 : index
    %c352_655 = arith.constant 352 : index
    %451 = vector.load %arg3[%c0_652, %c0_653, %c6_654, %c352_655] : memref<2x2x16x512xf32, #tpu.memory_space<vmem>>, vector<2x1x1x32xf32>
    %452 = vector.shape_cast %451 : vector<2x1x1x32xf32> to vector<2x32xf32>
    %453 = vector.shape_cast %450 : vector<2x32xf32> to vector<2x1x1x32xf32>
    tpu.vector_store %arg3[%c0_652, %c0_653, %c6_654, %c352_655], %453 {strides = array<i32>} : memref<2x2x16x512xf32, #tpu.memory_space<vmem>>, vector<2x1x1x32xf32>,
    %454 = vector.extract_strided_slice %449 {offsets = [0, 32], sizes = [2, 32], strides = [1, 1]} : vector<2x64xf32> to vector<2x32xf32>
    %c0_656 = arith.constant 0 : index
    %c1_657 = arith.constant 1 : index
    %c6_658 = arith.constant 6 : index
    %c352_659 = arith.constant 352 : index
    %455 = vector.load %arg3[%c0_656, %c1_657, %c6_658, %c352_659] : memref<2x2x16x512xf32, #tpu.memory_space<vmem>>, vector<2x1x1x32xf32>
    %456 = vector.shape_cast %455 : vector<2x1x1x32xf32> to vector<2x32xf32>
    %457 = vector.shape_cast %454 : vector<2x32xf32> to vector<2x1x1x32xf32>
    tpu.vector_store %arg3[%c0_656, %c1_657, %c6_658, %c352_659], %457 {strides = array<i32>} : memref<2x2x16x512xf32, #tpu.memory_space<vmem>>, vector<2x1x1x32xf32>,
    %c0_660 = arith.constant 0 : index
    %c0_661 = arith.constant 0 : index
    %c7_662 = arith.constant 7 : index
    %c128_663 = arith.constant 128 : index
    %458 = vector.load %arg1[%c0_660, %c0_661, %c7_662, %c128_663] : memref<2x2x16x512xf32, #tpu.memory_space<vmem>>, vector<2x1x1x32xf32>
    %459 = vector.shape_cast %458 : vector<2x1x1x32xf32> to vector<2x32xf32>
    %c0_664 = arith.constant 0 : index
    %c1_665 = arith.constant 1 : index
    %c7_666 = arith.constant 7 : index
    %c128_667 = arith.constant 128 : index
    %460 = vector.load %arg1[%c0_664, %c1_665, %c7_666, %c128_667] : memref<2x2x16x512xf32, #tpu.memory_space<vmem>>, vector<2x1x1x32xf32>
    %461 = vector.shape_cast %460 : vector<2x1x1x32xf32> to vector<2x32xf32>
    %c3_668 = arith.constant 3 : index
    %c0_669 = arith.constant 0 : index
    %c0_670 = arith.constant 0 : index
    %c0_671 = arith.constant 0 : index
    %c0_672 = arith.constant 0 : index
    %462 = vector.load %arg2[%c3_668, %c0_669, %c0_670, %c0_671, %c0_672] : memref<8x8x2x32x64xf32, #tpu.memory_space<vmem>>, vector<1x1x1x32x64xf32>
    %463 = vector.shape_cast %462 : vector<1x1x1x32x64xf32> to vector<32x64xf32>
    %cst_673 = arith.constant dense<0.000000e+00> : vector<2x64xf32>
    %464 = tpu.matmul %459, %463, %cst_673 {dimension_numbers = #tpu.dot_dimension_numbers<[1], [0], [0], [1], [0, 0, 1, 1], [], []>} : vector<2x32xf32>, vector<32x64xf32>, vector<2x64xf32> -> vector<2x64xf32>
    %c3_674 = arith.constant 3 : index
    %c0_675 = arith.constant 0 : index
    %c1_676 = arith.constant 1 : index
    %c0_677 = arith.constant 0 : index
    %c0_678 = arith.constant 0 : index
    %465 = vector.load %arg2[%c3_674, %c0_675, %c1_676, %c0_677, %c0_678] : memref<8x8x2x32x64xf32, #tpu.memory_space<vmem>>, vector<1x1x1x32x64xf32>
    %466 = vector.shape_cast %465 : vector<1x1x1x32x64xf32> to vector<32x64xf32>
    %cst_679 = arith.constant dense<0.000000e+00> : vector<2x64xf32>
    %467 = tpu.matmul %461, %466, %cst_679 {dimension_numbers = #tpu.dot_dimension_numbers<[1], [0], [0], [1], [0, 0, 1, 1], [], []>} : vector<2x32xf32>, vector<32x64xf32>, vector<2x64xf32> -> vector<2x64xf32>
    %468 = arith.addf %464, %467 : vector<2x64xf32>
    %469 = vector.extract_strided_slice %468 {offsets = [0, 0], sizes = [2, 32], strides = [1, 1]} : vector<2x64xf32> to vector<2x32xf32>
    %c0_680 = arith.constant 0 : index
    %c0_681 = arith.constant 0 : index
    %c7_682 = arith.constant 7 : index
    %c128_683 = arith.constant 128 : index
    %470 = vector.load %arg3[%c0_680, %c0_681, %c7_682, %c128_683] : memref<2x2x16x512xf32, #tpu.memory_space<vmem>>, vector<2x1x1x32xf32>
    %471 = vector.shape_cast %470 : vector<2x1x1x32xf32> to vector<2x32xf32>
    %472 = vector.shape_cast %469 : vector<2x32xf32> to vector<2x1x1x32xf32>
    tpu.vector_store %arg3[%c0_680, %c0_681, %c7_682, %c128_683], %472 {strides = array<i32>} : memref<2x2x16x512xf32, #tpu.memory_space<vmem>>, vector<2x1x1x32xf32>,
    %473 = vector.extract_strided_slice %468 {offsets = [0, 32], sizes = [2, 32], strides = [1, 1]} : vector<2x64xf32> to vector<2x32xf32>
    %c0_684 = arith.constant 0 : index
    %c1_685 = arith.constant 1 : index
    %c7_686 = arith.constant 7 : index
    %c128_687 = arith.constant 128 : index
    %474 = vector.load %arg3[%c0_684, %c1_685, %c7_686, %c128_687] : memref<2x2x16x512xf32, #tpu.memory_space<vmem>>, vector<2x1x1x32xf32>
    %475 = vector.shape_cast %474 : vector<2x1x1x32xf32> to vector<2x32xf32>
    %476 = vector.shape_cast %473 : vector<2x32xf32> to vector<2x1x1x32xf32>
    tpu.vector_store %arg3[%c0_684, %c1_685, %c7_686, %c128_687], %476 {strides = array<i32>} : memref<2x2x16x512xf32, #tpu.memory_space<vmem>>, vector<2x1x1x32xf32>,
    %c0_688 = arith.constant 0 : index
    %c0_689 = arith.constant 0 : index
    %c7_690 = arith.constant 7 : index
    %c160_691 = arith.constant 160 : index
    %477 = vector.load %arg1[%c0_688, %c0_689, %c7_690, %c160_691] : memref<2x2x16x512xf32, #tpu.memory_space<vmem>>, vector<2x1x1x32xf32>
    %478 = vector.shape_cast %477 : vector<2x1x1x32xf32> to vector<2x32xf32>
    %c0_692 = arith.constant 0 : index
    %c1_693 = arith.constant 1 : index
    %c7_694 = arith.constant 7 : index
    %c160_695 = arith.constant 160 : index
    %479 = vector.load %arg1[%c0_692, %c1_693, %c7_694, %c160_695] : memref<2x2x16x512xf32, #tpu.memory_space<vmem>>, vector<2x1x1x32xf32>
    %480 = vector.shape_cast %479 : vector<2x1x1x32xf32> to vector<2x32xf32>
    %c3_696 = arith.constant 3 : index
    %c1_697 = arith.constant 1 : index
    %c0_698 = arith.constant 0 : index
    %c0_699 = arith.constant 0 : index
    %c0_700 = arith.constant 0 : index
    %481 = vector.load %arg2[%c3_696, %c1_697, %c0_698, %c0_699, %c0_700] : memref<8x8x2x32x64xf32, #tpu.memory_space<vmem>>, vector<1x1x1x32x64xf32>
    %482 = vector.shape_cast %481 : vector<1x1x1x32x64xf32> to vector<32x64xf32>
    %cst_701 = arith.constant dense<0.000000e+00> : vector<2x64xf32>
    %483 = tpu.matmul %478, %482, %cst_701 {dimension_numbers = #tpu.dot_dimension_numbers<[1], [0], [0], [1], [0, 0, 1, 1], [], []>} : vector<2x32xf32>, vector<32x64xf32>, vector<2x64xf32> -> vector<2x64xf32>
    %c3_702 = arith.constant 3 : index
    %c1_703 = arith.constant 1 : index
    %c1_704 = arith.constant 1 : index
    %c0_705 = arith.constant 0 : index
    %c0_706 = arith.constant 0 : index
    %484 = vector.load %arg2[%c3_702, %c1_703, %c1_704, %c0_705, %c0_706] : memref<8x8x2x32x64xf32, #tpu.memory_space<vmem>>, vector<1x1x1x32x64xf32>
    %485 = vector.shape_cast %484 : vector<1x1x1x32x64xf32> to vector<32x64xf32>
    %cst_707 = arith.constant dense<0.000000e+00> : vector<2x64xf32>
    %486 = tpu.matmul %480, %485, %cst_707 {dimension_numbers = #tpu.dot_dimension_numbers<[1], [0], [0], [1], [0, 0, 1, 1], [], []>} : vector<2x32xf32>, vector<32x64xf32>, vector<2x64xf32> -> vector<2x64xf32>
    %487 = arith.addf %483, %486 : vector<2x64xf32>
    %488 = vector.extract_strided_slice %487 {offsets = [0, 0], sizes = [2, 32], strides = [1, 1]} : vector<2x64xf32> to vector<2x32xf32>
    %c0_708 = arith.constant 0 : index
    %c0_709 = arith.constant 0 : index
    %c7_710 = arith.constant 7 : index
    %c160_711 = arith.constant 160 : index
    %489 = vector.load %arg3[%c0_708, %c0_709, %c7_710, %c160_711] : memref<2x2x16x512xf32, #tpu.memory_space<vmem>>, vector<2x1x1x32xf32>
    %490 = vector.shape_cast %489 : vector<2x1x1x32xf32> to vector<2x32xf32>
    %491 = vector.shape_cast %488 : vector<2x32xf32> to vector<2x1x1x32xf32>
    tpu.vector_store %arg3[%c0_708, %c0_709, %c7_710, %c160_711], %491 {strides = array<i32>} : memref<2x2x16x512xf32, #tpu.memory_space<vmem>>, vector<2x1x1x32xf32>,
    %492 = vector.extract_strided_slice %487 {offsets = [0, 32], sizes = [2, 32], strides = [1, 1]} : vector<2x64xf32> to vector<2x32xf32>
    %c0_712 = arith.constant 0 : index
    %c1_713 = arith.constant 1 : index
    %c7_714 = arith.constant 7 : index
    %c160_715 = arith.constant 160 : index
    %493 = vector.load %arg3[%c0_712, %c1_713, %c7_714, %c160_715] : memref<2x2x16x512xf32, #tpu.memory_space<vmem>>, vector<2x1x1x32xf32>
    %494 = vector.shape_cast %493 : vector<2x1x1x32xf32> to vector<2x32xf32>
    %495 = vector.shape_cast %492 : vector<2x32xf32> to vector<2x1x1x32xf32>
    tpu.vector_store %arg3[%c0_712, %c1_713, %c7_714, %c160_715], %495 {strides = array<i32>} : memref<2x2x16x512xf32, #tpu.memory_space<vmem>>, vector<2x1x1x32xf32>,
    %c0_716 = arith.constant 0 : index
    %c0_717 = arith.constant 0 : index
    %c7_718 = arith.constant 7 : index
    %c192_719 = arith.constant 192 : index
    %496 = vector.load %arg1[%c0_716, %c0_717, %c7_718, %c192_719] : memref<2x2x16x512xf32, #tpu.memory_space<vmem>>, vector<2x1x1x32xf32>
    %497 = vector.shape_cast %496 : vector<2x1x1x32xf32> to vector<2x32xf32>
    %c0_720 = arith.constant 0 : index
    %c1_721 = arith.constant 1 : index
    %c7_722 = arith.constant 7 : index
    %c192_723 = arith.constant 192 : index
    %498 = vector.load %arg1[%c0_720, %c1_721, %c7_722, %c192_723] : memref<2x2x16x512xf32, #tpu.memory_space<vmem>>, vector<2x1x1x32xf32>
    %499 = vector.shape_cast %498 : vector<2x1x1x32xf32> to vector<2x32xf32>
    %c3_724 = arith.constant 3 : index
    %c2_725 = arith.constant 2 : index
    %c0_726 = arith.constant 0 : index
    %c0_727 = arith.constant 0 : index
    %c0_728 = arith.constant 0 : index
    %500 = vector.load %arg2[%c3_724, %c2_725, %c0_726, %c0_727, %c0_728] : memref<8x8x2x32x64xf32, #tpu.memory_space<vmem>>, vector<1x1x1x32x64xf32>
    %501 = vector.shape_cast %500 : vector<1x1x1x32x64xf32> to vector<32x64xf32>
    %cst_729 = arith.constant dense<0.000000e+00> : vector<2x64xf32>
    %502 = tpu.matmul %497, %501, %cst_729 {dimension_numbers = #tpu.dot_dimension_numbers<[1], [0], [0], [1], [0, 0, 1, 1], [], []>} : vector<2x32xf32>, vector<32x64xf32>, vector<2x64xf32> -> vector<2x64xf32>
    %c3_730 = arith.constant 3 : index
    %c2_731 = arith.constant 2 : index
    %c1_732 = arith.constant 1 : index
    %c0_733 = arith.constant 0 : index
    %c0_734 = arith.constant 0 : index
    %503 = vector.load %arg2[%c3_730, %c2_731, %c1_732, %c0_733, %c0_734] : memref<8x8x2x32x64xf32, #tpu.memory_space<vmem>>, vector<1x1x1x32x64xf32>
    %504 = vector.shape_cast %503 : vector<1x1x1x32x64xf32> to vector<32x64xf32>
    %cst_735 = arith.constant dense<0.000000e+00> : vector<2x64xf32>
    %505 = tpu.matmul %499, %504, %cst_735 {dimension_numbers = #tpu.dot_dimension_numbers<[1], [0], [0], [1], [0, 0, 1, 1], [], []>} : vector<2x32xf32>, vector<32x64xf32>, vector<2x64xf32> -> vector<2x64xf32>
    %506 = arith.addf %502, %505 : vector<2x64xf32>
    %507 = vector.extract_strided_slice %506 {offsets = [0, 0], sizes = [2, 32], strides = [1, 1]} : vector<2x64xf32> to vector<2x32xf32>
    %c0_736 = arith.constant 0 : index
    %c0_737 = arith.constant 0 : index
    %c7_738 = arith.constant 7 : index
    %c192_739 = arith.constant 192 : index
    %508 = vector.load %arg3[%c0_736, %c0_737, %c7_738, %c192_739] : memref<2x2x16x512xf32, #tpu.memory_space<vmem>>, vector<2x1x1x32xf32>
    %509 = vector.shape_cast %508 : vector<2x1x1x32xf32> to vector<2x32xf32>
    %510 = vector.shape_cast %507 : vector<2x32xf32> to vector<2x1x1x32xf32>
    tpu.vector_store %arg3[%c0_736, %c0_737, %c7_738, %c192_739], %510 {strides = array<i32>} : memref<2x2x16x512xf32, #tpu.memory_space<vmem>>, vector<2x1x1x32xf32>,
    %511 = vector.extract_strided_slice %506 {offsets = [0, 32], sizes = [2, 32], strides = [1, 1]} : vector<2x64xf32> to vector<2x32xf32>
    %c0_740 = arith.constant 0 : index
    %c1_741 = arith.constant 1 : index
    %c7_742 = arith.constant 7 : index
    %c192_743 = arith.constant 192 : index
    %512 = vector.load %arg3[%c0_740, %c1_741, %c7_742, %c192_743] : memref<2x2x16x512xf32, #tpu.memory_space<vmem>>, vector<2x1x1x32xf32>
    %513 = vector.shape_cast %512 : vector<2x1x1x32xf32> to vector<2x32xf32>
    %514 = vector.shape_cast %511 : vector<2x32xf32> to vector<2x1x1x32xf32>
    tpu.vector_store %arg3[%c0_740, %c1_741, %c7_742, %c192_743], %514 {strides = array<i32>} : memref<2x2x16x512xf32, #tpu.memory_space<vmem>>, vector<2x1x1x32xf32>,
    %c0_744 = arith.constant 0 : index
    %c0_745 = arith.constant 0 : index
    %c7_746 = arith.constant 7 : index
    %c224_747 = arith.constant 224 : index
    %515 = vector.load %arg1[%c0_744, %c0_745, %c7_746, %c224_747] : memref<2x2x16x512xf32, #tpu.memory_space<vmem>>, vector<2x1x1x32xf32>
    %516 = vector.shape_cast %515 : vector<2x1x1x32xf32> to vector<2x32xf32>
    %c0_748 = arith.constant 0 : index
    %c1_749 = arith.constant 1 : index
    %c7_750 = arith.constant 7 : index
    %c224_751 = arith.constant 224 : index
    %517 = vector.load %arg1[%c0_748, %c1_749, %c7_750, %c224_751] : memref<2x2x16x512xf32, #tpu.memory_space<vmem>>, vector<2x1x1x32xf32>
    %518 = vector.shape_cast %517 : vector<2x1x1x32xf32> to vector<2x32xf32>
    %c3_752 = arith.constant 3 : index
    %c3_753 = arith.constant 3 : index
    %c0_754 = arith.constant 0 : index
    %c0_755 = arith.constant 0 : index
    %c0_756 = arith.constant 0 : index
    %519 = vector.load %arg2[%c3_752, %c3_753, %c0_754, %c0_755, %c0_756] : memref<8x8x2x32x64xf32, #tpu.memory_space<vmem>>, vector<1x1x1x32x64xf32>
    %520 = vector.shape_cast %519 : vector<1x1x1x32x64xf32> to vector<32x64xf32>
    %cst_757 = arith.constant dense<0.000000e+00> : vector<2x64xf32>
    %521 = tpu.matmul %516, %520, %cst_757 {dimension_numbers = #tpu.dot_dimension_numbers<[1], [0], [0], [1], [0, 0, 1, 1], [], []>} : vector<2x32xf32>, vector<32x64xf32>, vector<2x64xf32> -> vector<2x64xf32>
    %c3_758 = arith.constant 3 : index
    %c3_759 = arith.constant 3 : index
    %c1_760 = arith.constant 1 : index
    %c0_761 = arith.constant 0 : index
    %c0_762 = arith.constant 0 : index
    %522 = vector.load %arg2[%c3_758, %c3_759, %c1_760, %c0_761, %c0_762] : memref<8x8x2x32x64xf32, #tpu.memory_space<vmem>>, vector<1x1x1x32x64xf32>
    %523 = vector.shape_cast %522 : vector<1x1x1x32x64xf32> to vector<32x64xf32>
    %cst_763 = arith.constant dense<0.000000e+00> : vector<2x64xf32>
    %524 = tpu.matmul %518, %523, %cst_763 {dimension_numbers = #tpu.dot_dimension_numbers<[1], [0], [0], [1], [0, 0, 1, 1], [], []>} : vector<2x32xf32>, vector<32x64xf32>, vector<2x64xf32> -> vector<2x64xf32>
    %525 = arith.addf %521, %524 : vector<2x64xf32>
    %526 = vector.extract_strided_slice %525 {offsets = [0, 0], sizes = [2, 32], strides = [1, 1]} : vector<2x64xf32> to vector<2x32xf32>
    %c0_764 = arith.constant 0 : index
    %c0_765 = arith.constant 0 : index
    %c7_766 = arith.constant 7 : index
    %c224_767 = arith.constant 224 : index
    %527 = vector.load %arg3[%c0_764, %c0_765, %c7_766, %c224_767] : memref<2x2x16x512xf32, #tpu.memory_space<vmem>>, vector<2x1x1x32xf32>
    %528 = vector.shape_cast %527 : vector<2x1x1x32xf32> to vector<2x32xf32>
    %529 = vector.shape_cast %526 : vector<2x32xf32> to vector<2x1x1x32xf32>
    tpu.vector_store %arg3[%c0_764, %c0_765, %c7_766, %c224_767], %529 {strides = array<i32>} : memref<2x2x16x512xf32, #tpu.memory_space<vmem>>, vector<2x1x1x32xf32>,
    %530 = vector.extract_strided_slice %525 {offsets = [0, 32], sizes = [2, 32], strides = [1, 1]} : vector<2x64xf32> to vector<2x32xf32>
    %c0_768 = arith.constant 0 : index
    %c1_769 = arith.constant 1 : index
    %c7_770 = arith.constant 7 : index
    %c224_771 = arith.constant 224 : index
    %531 = vector.load %arg3[%c0_768, %c1_769, %c7_770, %c224_771] : memref<2x2x16x512xf32, #tpu.memory_space<vmem>>, vector<2x1x1x32xf32>
    %532 = vector.shape_cast %531 : vector<2x1x1x32xf32> to vector<2x32xf32>
    %533 = vector.shape_cast %530 : vector<2x32xf32> to vector<2x1x1x32xf32>
    tpu.vector_store %arg3[%c0_768, %c1_769, %c7_770, %c224_771], %533 {strides = array<i32>} : memref<2x2x16x512xf32, #tpu.memory_space<vmem>>, vector<2x1x1x32xf32>,
    %c0_772 = arith.constant 0 : index
    %c0_773 = arith.constant 0 : index
    %c7_774 = arith.constant 7 : index
    %c256_775 = arith.constant 256 : index
    %534 = vector.load %arg1[%c0_772, %c0_773, %c7_774, %c256_775] : memref<2x2x16x512xf32, #tpu.memory_space<vmem>>, vector<2x1x1x32xf32>
    %535 = vector.shape_cast %534 : vector<2x1x1x32xf32> to vector<2x32xf32>
    %c0_776 = arith.constant 0 : index
    %c1_777 = arith.constant 1 : index
    %c7_778 = arith.constant 7 : index
    %c256_779 = arith.constant 256 : index
    %536 = vector.load %arg1[%c0_776, %c1_777, %c7_778, %c256_779] : memref<2x2x16x512xf32, #tpu.memory_space<vmem>>, vector<2x1x1x32xf32>
    %537 = vector.shape_cast %536 : vector<2x1x1x32xf32> to vector<2x32xf32>
    %c3_780 = arith.constant 3 : index
    %c4_781 = arith.constant 4 : index
    %c0_782 = arith.constant 0 : index
    %c0_783 = arith.constant 0 : index
    %c0_784 = arith.constant 0 : index
    %538 = vector.load %arg2[%c3_780, %c4_781, %c0_782, %c0_783, %c0_784] : memref<8x8x2x32x64xf32, #tpu.memory_space<vmem>>, vector<1x1x1x32x64xf32>
    %539 = vector.shape_cast %538 : vector<1x1x1x32x64xf32> to vector<32x64xf32>
    %cst_785 = arith.constant dense<0.000000e+00> : vector<2x64xf32>
    %540 = tpu.matmul %535, %539, %cst_785 {dimension_numbers = #tpu.dot_dimension_numbers<[1], [0], [0], [1], [0, 0, 1, 1], [], []>} : vector<2x32xf32>, vector<32x64xf32>, vector<2x64xf32> -> vector<2x64xf32>
    %c3_786 = arith.constant 3 : index
    %c4_787 = arith.constant 4 : index
    %c1_788 = arith.constant 1 : index
    %c0_789 = arith.constant 0 : index
    %c0_790 = arith.constant 0 : index
    %541 = vector.load %arg2[%c3_786, %c4_787, %c1_788, %c0_789, %c0_790] : memref<8x8x2x32x64xf32, #tpu.memory_space<vmem>>, vector<1x1x1x32x64xf32>
    %542 = vector.shape_cast %541 : vector<1x1x1x32x64xf32> to vector<32x64xf32>
    %cst_791 = arith.constant dense<0.000000e+00> : vector<2x64xf32>
    %543 = tpu.matmul %537, %542, %cst_791 {dimension_numbers = #tpu.dot_dimension_numbers<[1], [0], [0], [1], [0, 0, 1, 1], [], []>} : vector<2x32xf32>, vector<32x64xf32>, vector<2x64xf32> -> vector<2x64xf32>
    %544 = arith.addf %540, %543 : vector<2x64xf32>
    %545 = vector.extract_strided_slice %544 {offsets = [0, 0], sizes = [2, 32], strides = [1, 1]} : vector<2x64xf32> to vector<2x32xf32>
    %c0_792 = arith.constant 0 : index
    %c0_793 = arith.constant 0 : index
    %c7_794 = arith.constant 7 : index
    %c256_795 = arith.constant 256 : index
    %546 = vector.load %arg3[%c0_792, %c0_793, %c7_794, %c256_795] : memref<2x2x16x512xf32, #tpu.memory_space<vmem>>, vector<2x1x1x32xf32>
    %547 = vector.shape_cast %546 : vector<2x1x1x32xf32> to vector<2x32xf32>
    %548 = vector.shape_cast %545 : vector<2x32xf32> to vector<2x1x1x32xf32>
    tpu.vector_store %arg3[%c0_792, %c0_793, %c7_794, %c256_795], %548 {strides = array<i32>} : memref<2x2x16x512xf32, #tpu.memory_space<vmem>>, vector<2x1x1x32xf32>,
    %549 = vector.extract_strided_slice %544 {offsets = [0, 32], sizes = [2, 32], strides = [1, 1]} : vector<2x64xf32> to vector<2x32xf32>
    %c0_796 = arith.constant 0 : index
    %c1_797 = arith.constant 1 : index
    %c7_798 = arith.constant 7 : index
    %c256_799 = arith.constant 256 : index
    %550 = vector.load %arg3[%c0_796, %c1_797, %c7_798, %c256_799] : memref<2x2x16x512xf32, #tpu.memory_space<vmem>>, vector<2x1x1x32xf32>
    %551 = vector.shape_cast %550 : vector<2x1x1x32xf32> to vector<2x32xf32>
    %552 = vector.shape_cast %549 : vector<2x32xf32> to vector<2x1x1x32xf32>
    tpu.vector_store %arg3[%c0_796, %c1_797, %c7_798, %c256_799], %552 {strides = array<i32>} : memref<2x2x16x512xf32, #tpu.memory_space<vmem>>, vector<2x1x1x32xf32>,
    %c0_800 = arith.constant 0 : index
    %c0_801 = arith.constant 0 : index
    %c7_802 = arith.constant 7 : index
    %c288_803 = arith.constant 288 : index
    %553 = vector.load %arg1[%c0_800, %c0_801, %c7_802, %c288_803] : memref<2x2x16x512xf32, #tpu.memory_space<vmem>>, vector<2x1x1x32xf32>
    %554 = vector.shape_cast %553 : vector<2x1x1x32xf32> to vector<2x32xf32>
    %c0_804 = arith.constant 0 : index
    %c1_805 = arith.constant 1 : index
    %c7_806 = arith.constant 7 : index
    %c288_807 = arith.constant 288 : index
    %555 = vector.load %arg1[%c0_804, %c1_805, %c7_806, %c288_807] : memref<2x2x16x512xf32, #tpu.memory_space<vmem>>, vector<2x1x1x32xf32>
    %556 = vector.shape_cast %555 : vector<2x1x1x32xf32> to vector<2x32xf32>
    %c3_808 = arith.constant 3 : index
    %c5_809 = arith.constant 5 : index
    %c0_810 = arith.constant 0 : index
    %c0_811 = arith.constant 0 : index
    %c0_812 = arith.constant 0 : index
    %557 = vector.load %arg2[%c3_808, %c5_809, %c0_810, %c0_811, %c0_812] : memref<8x8x2x32x64xf32, #tpu.memory_space<vmem>>, vector<1x1x1x32x64xf32>
    %558 = vector.shape_cast %557 : vector<1x1x1x32x64xf32> to vector<32x64xf32>
    %cst_813 = arith.constant dense<0.000000e+00> : vector<2x64xf32>
    %559 = tpu.matmul %554, %558, %cst_813 {dimension_numbers = #tpu.dot_dimension_numbers<[1], [0], [0], [1], [0, 0, 1, 1], [], []>} : vector<2x32xf32>, vector<32x64xf32>, vector<2x64xf32> -> vector<2x64xf32>
    %c3_814 = arith.constant 3 : index
    %c5_815 = arith.constant 5 : index
    %c1_816 = arith.constant 1 : index
    %c0_817 = arith.constant 0 : index
    %c0_818 = arith.constant 0 : index
    %560 = vector.load %arg2[%c3_814, %c5_815, %c1_816, %c0_817, %c0_818] : memref<8x8x2x32x64xf32, #tpu.memory_space<vmem>>, vector<1x1x1x32x64xf32>
    %561 = vector.shape_cast %560 : vector<1x1x1x32x64xf32> to vector<32x64xf32>
    %cst_819 = arith.constant dense<0.000000e+00> : vector<2x64xf32>
    %562 = tpu.matmul %556, %561, %cst_819 {dimension_numbers = #tpu.dot_dimension_numbers<[1], [0], [0], [1], [0, 0, 1, 1], [], []>} : vector<2x32xf32>, vector<32x64xf32>, vector<2x64xf32> -> vector<2x64xf32>
    %563 = arith.addf %559, %562 : vector<2x64xf32>
    %564 = vector.extract_strided_slice %563 {offsets = [0, 0], sizes = [2, 32], strides = [1, 1]} : vector<2x64xf32> to vector<2x32xf32>
    %c0_820 = arith.constant 0 : index
    %c0_821 = arith.constant 0 : index
    %c7_822 = arith.constant 7 : index
    %c288_823 = arith.constant 288 : index
    %565 = vector.load %arg3[%c0_820, %c0_821, %c7_822, %c288_823] : memref<2x2x16x512xf32, #tpu.memory_space<vmem>>, vector<2x1x1x32xf32>
    %566 = vector.shape_cast %565 : vector<2x1x1x32xf32> to vector<2x32xf32>
    %567 = vector.shape_cast %564 : vector<2x32xf32> to vector<2x1x1x32xf32>
    tpu.vector_store %arg3[%c0_820, %c0_821, %c7_822, %c288_823], %567 {strides = array<i32>} : memref<2x2x16x512xf32, #tpu.memory_space<vmem>>, vector<2x1x1x32xf32>,
    %568 = vector.extract_strided_slice %563 {offsets = [0, 32], sizes = [2, 32], strides = [1, 1]} : vector<2x64xf32> to vector<2x32xf32>
    %c0_824 = arith.constant 0 : index
    %c1_825 = arith.constant 1 : index
    %c7_826 = arith.constant 7 : index
    %c288_827 = arith.constant 288 : index
    %569 = vector.load %arg3[%c0_824, %c1_825, %c7_826, %c288_827] : memref<2x2x16x512xf32, #tpu.memory_space<vmem>>, vector<2x1x1x32xf32>
    %570 = vector.shape_cast %569 : vector<2x1x1x32xf32> to vector<2x32xf32>
    %571 = vector.shape_cast %568 : vector<2x32xf32> to vector<2x1x1x32xf32>
    tpu.vector_store %arg3[%c0_824, %c1_825, %c7_826, %c288_827], %571 {strides = array<i32>} : memref<2x2x16x512xf32, #tpu.memory_space<vmem>>, vector<2x1x1x32xf32>,
    %c0_828 = arith.constant 0 : index
    %c0_829 = arith.constant 0 : index
    %c7_830 = arith.constant 7 : index
    %c320_831 = arith.constant 320 : index
    %572 = vector.load %arg1[%c0_828, %c0_829, %c7_830, %c320_831] : memref<2x2x16x512xf32, #tpu.memory_space<vmem>>, vector<2x1x1x32xf32>
    %573 = vector.shape_cast %572 : vector<2x1x1x32xf32> to vector<2x32xf32>
    %c0_832 = arith.constant 0 : index
    %c1_833 = arith.constant 1 : index
    %c7_834 = arith.constant 7 : index
    %c320_835 = arith.constant 320 : index
    %574 = vector.load %arg1[%c0_832, %c1_833, %c7_834, %c320_835] : memref<2x2x16x512xf32, #tpu.memory_space<vmem>>, vector<2x1x1x32xf32>
    %575 = vector.shape_cast %574 : vector<2x1x1x32xf32> to vector<2x32xf32>
    %c3_836 = arith.constant 3 : index
    %c6_837 = arith.constant 6 : index
    %c0_838 = arith.constant 0 : index
    %c0_839 = arith.constant 0 : index
    %c0_840 = arith.constant 0 : index
    %576 = vector.load %arg2[%c3_836, %c6_837, %c0_838, %c0_839, %c0_840] : memref<8x8x2x32x64xf32, #tpu.memory_space<vmem>>, vector<1x1x1x32x64xf32>
    %577 = vector.shape_cast %576 : vector<1x1x1x32x64xf32> to vector<32x64xf32>
    %cst_841 = arith.constant dense<0.000000e+00> : vector<2x64xf32>
    %578 = tpu.matmul %573, %577, %cst_841 {dimension_numbers = #tpu.dot_dimension_numbers<[1], [0], [0], [1], [0, 0, 1, 1], [], []>} : vector<2x32xf32>, vector<32x64xf32>, vector<2x64xf32> -> vector<2x64xf32>
    %c3_842 = arith.constant 3 : index
    %c6_843 = arith.constant 6 : index
    %c1_844 = arith.constant 1 : index
    %c0_845 = arith.constant 0 : index
    %c0_846 = arith.constant 0 : index
    %579 = vector.load %arg2[%c3_842, %c6_843, %c1_844, %c0_845, %c0_846] : memref<8x8x2x32x64xf32, #tpu.memory_space<vmem>>, vector<1x1x1x32x64xf32>
    %580 = vector.shape_cast %579 : vector<1x1x1x32x64xf32> to vector<32x64xf32>
    %cst_847 = arith.constant dense<0.000000e+00> : vector<2x64xf32>
    %581 = tpu.matmul %575, %580, %cst_847 {dimension_numbers = #tpu.dot_dimension_numbers<[1], [0], [0], [1], [0, 0, 1, 1], [], []>} : vector<2x32xf32>, vector<32x64xf32>, vector<2x64xf32> -> vector<2x64xf32>
    %582 = arith.addf %578, %581 : vector<2x64xf32>
    %583 = vector.extract_strided_slice %582 {offsets = [0, 0], sizes = [2, 32], strides = [1, 1]} : vector<2x64xf32> to vector<2x32xf32>
    %c0_848 = arith.constant 0 : index
    %c0_849 = arith.constant 0 : index
    %c7_850 = arith.constant 7 : index
    %c320_851 = arith.constant 320 : index
    %584 = vector.load %arg3[%c0_848, %c0_849, %c7_850, %c320_851] : memref<2x2x16x512xf32, #tpu.memory_space<vmem>>, vector<2x1x1x32xf32>
    %585 = vector.shape_cast %584 : vector<2x1x1x32xf32> to vector<2x32xf32>
    %586 = vector.shape_cast %583 : vector<2x32xf32> to vector<2x1x1x32xf32>
    tpu.vector_store %arg3[%c0_848, %c0_849, %c7_850, %c320_851], %586 {strides = array<i32>} : memref<2x2x16x512xf32, #tpu.memory_space<vmem>>, vector<2x1x1x32xf32>,
    %587 = vector.extract_strided_slice %582 {offsets = [0, 32], sizes = [2, 32], strides = [1, 1]} : vector<2x64xf32> to vector<2x32xf32>
    %c0_852 = arith.constant 0 : index
    %c1_853 = arith.constant 1 : index
    %c7_854 = arith.constant 7 : index
    %c320_855 = arith.constant 320 : index
    %588 = vector.load %arg3[%c0_852, %c1_853, %c7_854, %c320_855] : memref<2x2x16x512xf32, #tpu.memory_space<vmem>>, vector<2x1x1x32xf32>
    %589 = vector.shape_cast %588 : vector<2x1x1x32xf32> to vector<2x32xf32>
    %590 = vector.shape_cast %587 : vector<2x32xf32> to vector<2x1x1x32xf32>
    tpu.vector_store %arg3[%c0_852, %c1_853, %c7_854, %c320_855], %590 {strides = array<i32>} : memref<2x2x16x512xf32, #tpu.memory_space<vmem>>, vector<2x1x1x32xf32>,
    %c0_856 = arith.constant 0 : index
    %c0_857 = arith.constant 0 : index
    %c7_858 = arith.constant 7 : index
    %c352_859 = arith.constant 352 : index
    %591 = vector.load %arg1[%c0_856, %c0_857, %c7_858, %c352_859] : memref<2x2x16x512xf32, #tpu.memory_space<vmem>>, vector<2x1x1x32xf32>
    %592 = vector.shape_cast %591 : vector<2x1x1x32xf32> to vector<2x32xf32>
    %c0_860 = arith.constant 0 : index
    %c1_861 = arith.constant 1 : index
    %c7_862 = arith.constant 7 : index
    %c352_863 = arith.constant 352 : index
    %593 = vector.load %arg1[%c0_860, %c1_861, %c7_862, %c352_863] : memref<2x2x16x512xf32, #tpu.memory_space<vmem>>, vector<2x1x1x32xf32>
    %594 = vector.shape_cast %593 : vector<2x1x1x32xf32> to vector<2x32xf32>
    %c3_864 = arith.constant 3 : index
    %c7_865 = arith.constant 7 : index
    %c0_866 = arith.constant 0 : index
    %c0_867 = arith.constant 0 : index
    %c0_868 = arith.constant 0 : index
    %595 = vector.load %arg2[%c3_864, %c7_865, %c0_866, %c0_867, %c0_868] : memref<8x8x2x32x64xf32, #tpu.memory_space<vmem>>, vector<1x1x1x32x64xf32>
    %596 = vector.shape_cast %595 : vector<1x1x1x32x64xf32> to vector<32x64xf32>
    %cst_869 = arith.constant dense<0.000000e+00> : vector<2x64xf32>
    %597 = tpu.matmul %592, %596, %cst_869 {dimension_numbers = #tpu.dot_dimension_numbers<[1], [0], [0], [1], [0, 0, 1, 1], [], []>} : vector<2x32xf32>, vector<32x64xf32>, vector<2x64xf32> -> vector<2x64xf32>
    %c3_870 = arith.constant 3 : index
    %c7_871 = arith.constant 7 : index
    %c1_872 = arith.constant 1 : index
    %c0_873 = arith.constant 0 : index
    %c0_874 = arith.constant 0 : index
    %598 = vector.load %arg2[%c3_870, %c7_871, %c1_872, %c0_873, %c0_874] : memref<8x8x2x32x64xf32, #tpu.memory_space<vmem>>, vector<1x1x1x32x64xf32>
    %599 = vector.shape_cast %598 : vector<1x1x1x32x64xf32> to vector<32x64xf32>
    %cst_875 = arith.constant dense<0.000000e+00> : vector<2x64xf32>
    %600 = tpu.matmul %594, %599, %cst_875 {dimension_numbers = #tpu.dot_dimension_numbers<[1], [0], [0], [1], [0, 0, 1, 1], [], []>} : vector<2x32xf32>, vector<32x64xf32>, vector<2x64xf32> -> vector<2x64xf32>
    %601 = arith.addf %597, %600 : vector<2x64xf32>
    %602 = vector.extract_strided_slice %601 {offsets = [0, 0], sizes = [2, 32], strides = [1, 1]} : vector<2x64xf32> to vector<2x32xf32>
    %c0_876 = arith.constant 0 : index
    %c0_877 = arith.constant 0 : index
    %c7_878 = arith.constant 7 : index
    %c352_879 = arith.constant 352 : index
    %603 = vector.load %arg3[%c0_876, %c0_877, %c7_878, %c352_879] : memref<2x2x16x512xf32, #tpu.memory_space<vmem>>, vector<2x1x1x32xf32>
    %604 = vector.shape_cast %603 : vector<2x1x1x32xf32> to vector<2x32xf32>
    %605 = vector.shape_cast %602 : vector<2x32xf32> to vector<2x1x1x32xf32>
    tpu.vector_store %arg3[%c0_876, %c0_877, %c7_878, %c352_879], %605 {strides = array<i32>} : memref<2x2x16x512xf32, #tpu.memory_space<vmem>>, vector<2x1x1x32xf32>,
    %606 = vector.extract_strided_slice %601 {offsets = [0, 32], sizes = [2, 32], strides = [1, 1]} : vector<2x64xf32> to vector<2x32xf32>
    %c0_880 = arith.constant 0 : index
    %c1_881 = arith.constant 1 : index
    %c7_882 = arith.constant 7 : index
    %c352_883 = arith.constant 352 : index
    %607 = vector.load %arg3[%c0_880, %c1_881, %c7_882, %c352_883] : memref<2x2x16x512xf32, #tpu.memory_space<vmem>>, vector<2x1x1x32xf32>
    %608 = vector.shape_cast %607 : vector<2x1x1x32xf32> to vector<2x32xf32>
    %609 = vector.shape_cast %606 : vector<2x32xf32> to vector<2x1x1x32xf32>
    tpu.vector_store %arg3[%c0_880, %c1_881, %c7_882, %c352_883], %609 {strides = array<i32>} : memref<2x2x16x512xf32, #tpu.memory_space<vmem>>, vector<2x1x1x32xf32>,
    %c0_884 = arith.constant 0 : index
    %c0_885 = arith.constant 0 : index
    %c8 = arith.constant 8 : index
    %c128_886 = arith.constant 128 : index
    %610 = vector.load %arg1[%c0_884, %c0_885, %c8, %c128_886] : memref<2x2x16x512xf32, #tpu.memory_space<vmem>>, vector<2x1x1x32xf32>
    %611 = vector.shape_cast %610 : vector<2x1x1x32xf32> to vector<2x32xf32>
    %c0_887 = arith.constant 0 : index
    %c1_888 = arith.constant 1 : index
    %c8_889 = arith.constant 8 : index
    %c128_890 = arith.constant 128 : index
    %612 = vector.load %arg1[%c0_887, %c1_888, %c8_889, %c128_890] : memref<2x2x16x512xf32, #tpu.memory_space<vmem>>, vector<2x1x1x32xf32>
    %613 = vector.shape_cast %612 : vector<2x1x1x32xf32> to vector<2x32xf32>
    %c4_891 = arith.constant 4 : index
    %c0_892 = arith.constant 0 : index
    %c0_893 = arith.constant 0 : index
    %c0_894 = arith.constant 0 : index
    %c0_895 = arith.constant 0 : index
    %614 = vector.load %arg2[%c4_891, %c0_892, %c0_893, %c0_894, %c0_895] : memref<8x8x2x32x64xf32, #tpu.memory_space<vmem>>, vector<1x1x1x32x64xf32>
    %615 = vector.shape_cast %614 : vector<1x1x1x32x64xf32> to vector<32x64xf32>
    %cst_896 = arith.constant dense<0.000000e+00> : vector<2x64xf32>
    %616 = tpu.matmul %611, %615, %cst_896 {dimension_numbers = #tpu.dot_dimension_numbers<[1], [0], [0], [1], [0, 0, 1, 1], [], []>} : vector<2x32xf32>, vector<32x64xf32>, vector<2x64xf32> -> vector<2x64xf32>
    %c4_897 = arith.constant 4 : index
    %c0_898 = arith.constant 0 : index
    %c1_899 = arith.constant 1 : index
    %c0_900 = arith.constant 0 : index
    %c0_901 = arith.constant 0 : index
    %617 = vector.load %arg2[%c4_897, %c0_898, %c1_899, %c0_900, %c0_901] : memref<8x8x2x32x64xf32, #tpu.memory_space<vmem>>, vector<1x1x1x32x64xf32>
    %618 = vector.shape_cast %617 : vector<1x1x1x32x64xf32> to vector<32x64xf32>
    %cst_902 = arith.constant dense<0.000000e+00> : vector<2x64xf32>
    %619 = tpu.matmul %613, %618, %cst_902 {dimension_numbers = #tpu.dot_dimension_numbers<[1], [0], [0], [1], [0, 0, 1, 1], [], []>} : vector<2x32xf32>, vector<32x64xf32>, vector<2x64xf32> -> vector<2x64xf32>
    %620 = arith.addf %616, %619 : vector<2x64xf32>
    %621 = vector.extract_strided_slice %620 {offsets = [0, 0], sizes = [2, 32], strides = [1, 1]} : vector<2x64xf32> to vector<2x32xf32>
    %c0_903 = arith.constant 0 : index
    %c0_904 = arith.constant 0 : index
    %c8_905 = arith.constant 8 : index
    %c128_906 = arith.constant 128 : index
    %622 = vector.load %arg3[%c0_903, %c0_904, %c8_905, %c128_906] : memref<2x2x16x512xf32, #tpu.memory_space<vmem>>, vector<2x1x1x32xf32>
    %623 = vector.shape_cast %622 : vector<2x1x1x32xf32> to vector<2x32xf32>
    %624 = vector.shape_cast %621 : vector<2x32xf32> to vector<2x1x1x32xf32>
    tpu.vector_store %arg3[%c0_903, %c0_904, %c8_905, %c128_906], %624 {strides = array<i32>} : memref<2x2x16x512xf32, #tpu.memory_space<vmem>>, vector<2x1x1x32xf32>,
    %625 = vector.extract_strided_slice %620 {offsets = [0, 32], sizes = [2, 32], strides = [1, 1]} : vector<2x64xf32> to vector<2x32xf32>
    %c0_907 = arith.constant 0 : index
    %c1_908 = arith.constant 1 : index
    %c8_909 = arith.constant 8 : index
    %c128_910 = arith.constant 128 : index
    %626 = vector.load %arg3[%c0_907, %c1_908, %c8_909, %c128_910] : memref<2x2x16x512xf32, #tpu.memory_space<vmem>>, vector<2x1x1x32xf32>
    %627 = vector.shape_cast %626 : vector<2x1x1x32xf32> to vector<2x32xf32>
    %628 = vector.shape_cast %625 : vector<2x32xf32> to vector<2x1x1x32xf32>
    tpu.vector_store %arg3[%c0_907, %c1_908, %c8_909, %c128_910], %628 {strides = array<i32>} : memref<2x2x16x512xf32, #tpu.memory_space<vmem>>, vector<2x1x1x32xf32>,
    %c0_911 = arith.constant 0 : index
    %c0_912 = arith.constant 0 : index
    %c8_913 = arith.constant 8 : index
    %c160_914 = arith.constant 160 : index
    %629 = vector.load %arg1[%c0_911, %c0_912, %c8_913, %c160_914] : memref<2x2x16x512xf32, #tpu.memory_space<vmem>>, vector<2x1x1x32xf32>
    %630 = vector.shape_cast %629 : vector<2x1x1x32xf32> to vector<2x32xf32>
    %c0_915 = arith.constant 0 : index
    %c1_916 = arith.constant 1 : index
    %c8_917 = arith.constant 8 : index
    %c160_918 = arith.constant 160 : index
    %631 = vector.load %arg1[%c0_915, %c1_916, %c8_917, %c160_918] : memref<2x2x16x512xf32, #tpu.memory_space<vmem>>, vector<2x1x1x32xf32>
    %632 = vector.shape_cast %631 : vector<2x1x1x32xf32> to vector<2x32xf32>
    %c4_919 = arith.constant 4 : index
    %c1_920 = arith.constant 1 : index
    %c0_921 = arith.constant 0 : index
    %c0_922 = arith.constant 0 : index
    %c0_923 = arith.constant 0 : index
    %633 = vector.load %arg2[%c4_919, %c1_920, %c0_921, %c0_922, %c0_923] : memref<8x8x2x32x64xf32, #tpu.memory_space<vmem>>, vector<1x1x1x32x64xf32>
    %634 = vector.shape_cast %633 : vector<1x1x1x32x64xf32> to vector<32x64xf32>
    %cst_924 = arith.constant dense<0.000000e+00> : vector<2x64xf32>
    %635 = tpu.matmul %630, %634, %cst_924 {dimension_numbers = #tpu.dot_dimension_numbers<[1], [0], [0], [1], [0, 0, 1, 1], [], []>} : vector<2x32xf32>, vector<32x64xf32>, vector<2x64xf32> -> vector<2x64xf32>
    %c4_925 = arith.constant 4 : index
    %c1_926 = arith.constant 1 : index
    %c1_927 = arith.constant 1 : index
    %c0_928 = arith.constant 0 : index
    %c0_929 = arith.constant 0 : index
    %636 = vector.load %arg2[%c4_925, %c1_926, %c1_927, %c0_928, %c0_929] : memref<8x8x2x32x64xf32, #tpu.memory_space<vmem>>, vector<1x1x1x32x64xf32>
    %637 = vector.shape_cast %636 : vector<1x1x1x32x64xf32> to vector<32x64xf32>
    %cst_930 = arith.constant dense<0.000000e+00> : vector<2x64xf32>
    %638 = tpu.matmul %632, %637, %cst_930 {dimension_numbers = #tpu.dot_dimension_numbers<[1], [0], [0], [1], [0, 0, 1, 1], [], []>} : vector<2x32xf32>, vector<32x64xf32>, vector<2x64xf32> -> vector<2x64xf32>
    %639 = arith.addf %635, %638 : vector<2x64xf32>
    %640 = vector.extract_strided_slice %639 {offsets = [0, 0], sizes = [2, 32], strides = [1, 1]} : vector<2x64xf32> to vector<2x32xf32>
    %c0_931 = arith.constant 0 : index
    %c0_932 = arith.constant 0 : index
    %c8_933 = arith.constant 8 : index
    %c160_934 = arith.constant 160 : index
    %641 = vector.load %arg3[%c0_931, %c0_932, %c8_933, %c160_934] : memref<2x2x16x512xf32, #tpu.memory_space<vmem>>, vector<2x1x1x32xf32>
    %642 = vector.shape_cast %641 : vector<2x1x1x32xf32> to vector<2x32xf32>
    %643 = vector.shape_cast %640 : vector<2x32xf32> to vector<2x1x1x32xf32>
    tpu.vector_store %arg3[%c0_931, %c0_932, %c8_933, %c160_934], %643 {strides = array<i32>} : memref<2x2x16x512xf32, #tpu.memory_space<vmem>>, vector<2x1x1x32xf32>,
    %644 = vector.extract_strided_slice %639 {offsets = [0, 32], sizes = [2, 32], strides = [1, 1]} : vector<2x64xf32> to vector<2x32xf32>
    %c0_935 = arith.constant 0 : index
    %c1_936 = arith.constant 1 : index
    %c8_937 = arith.constant 8 : index
    %c160_938 = arith.constant 160 : index
    %645 = vector.load %arg3[%c0_935, %c1_936, %c8_937, %c160_938] : memref<2x2x16x512xf32, #tpu.memory_space<vmem>>, vector<2x1x1x32xf32>
    %646 = vector.shape_cast %645 : vector<2x1x1x32xf32> to vector<2x32xf32>
    %647 = vector.shape_cast %644 : vector<2x32xf32> to vector<2x1x1x32xf32>
    tpu.vector_store %arg3[%c0_935, %c1_936, %c8_937, %c160_938], %647 {strides = array<i32>} : memref<2x2x16x512xf32, #tpu.memory_space<vmem>>, vector<2x1x1x32xf32>,
    %c0_939 = arith.constant 0 : index
    %c0_940 = arith.constant 0 : index
    %c8_941 = arith.constant 8 : index
    %c192_942 = arith.constant 192 : index
    %648 = vector.load %arg1[%c0_939, %c0_940, %c8_941, %c192_942] : memref<2x2x16x512xf32, #tpu.memory_space<vmem>>, vector<2x1x1x32xf32>
    %649 = vector.shape_cast %648 : vector<2x1x1x32xf32> to vector<2x32xf32>
    %c0_943 = arith.constant 0 : index
    %c1_944 = arith.constant 1 : index
    %c8_945 = arith.constant 8 : index
    %c192_946 = arith.constant 192 : index
    %650 = vector.load %arg1[%c0_943, %c1_944, %c8_945, %c192_946] : memref<2x2x16x512xf32, #tpu.memory_space<vmem>>, vector<2x1x1x32xf32>
    %651 = vector.shape_cast %650 : vector<2x1x1x32xf32> to vector<2x32xf32>
    %c4_947 = arith.constant 4 : index
    %c2_948 = arith.constant 2 : index
    %c0_949 = arith.constant 0 : index
    %c0_950 = arith.constant 0 : index
    %c0_951 = arith.constant 0 : index
    %652 = vector.load %arg2[%c4_947, %c2_948, %c0_949, %c0_950, %c0_951] : memref<8x8x2x32x64xf32, #tpu.memory_space<vmem>>, vector<1x1x1x32x64xf32>
    %653 = vector.shape_cast %652 : vector<1x1x1x32x64xf32> to vector<32x64xf32>
    %cst_952 = arith.constant dense<0.000000e+00> : vector<2x64xf32>
    %654 = tpu.matmul %649, %653, %cst_952 {dimension_numbers = #tpu.dot_dimension_numbers<[1], [0], [0], [1], [0, 0, 1, 1], [], []>} : vector<2x32xf32>, vector<32x64xf32>, vector<2x64xf32> -> vector<2x64xf32>
    %c4_953 = arith.constant 4 : index
    %c2_954 = arith.constant 2 : index
    %c1_955 = arith.constant 1 : index
    %c0_956 = arith.constant 0 : index
    %c0_957 = arith.constant 0 : index
    %655 = vector.load %arg2[%c4_953, %c2_954, %c1_955, %c0_956, %c0_957] : memref<8x8x2x32x64xf32, #tpu.memory_space<vmem>>, vector<1x1x1x32x64xf32>
    %656 = vector.shape_cast %655 : vector<1x1x1x32x64xf32> to vector<32x64xf32>
    %cst_958 = arith.constant dense<0.000000e+00> : vector<2x64xf32>
    %657 = tpu.matmul %651, %656, %cst_958 {dimension_numbers = #tpu.dot_dimension_numbers<[1], [0], [0], [1], [0, 0, 1, 1], [], []>} : vector<2x32xf32>, vector<32x64xf32>, vector<2x64xf32> -> vector<2x64xf32>
    %658 = arith.addf %654, %657 : vector<2x64xf32>
    %659 = vector.extract_strided_slice %658 {offsets = [0, 0], sizes = [2, 32], strides = [1, 1]} : vector<2x64xf32> to vector<2x32xf32>
    %c0_959 = arith.constant 0 : index
    %c0_960 = arith.constant 0 : index
    %c8_961 = arith.constant 8 : index
    %c192_962 = arith.constant 192 : index
    %660 = vector.load %arg3[%c0_959, %c0_960, %c8_961, %c192_962] : memref<2x2x16x512xf32, #tpu.memory_space<vmem>>, vector<2x1x1x32xf32>
    %661 = vector.shape_cast %660 : vector<2x1x1x32xf32> to vector<2x32xf32>
    %662 = vector.shape_cast %659 : vector<2x32xf32> to vector<2x1x1x32xf32>
    tpu.vector_store %arg3[%c0_959, %c0_960, %c8_961, %c192_962], %662 {strides = array<i32>} : memref<2x2x16x512xf32, #tpu.memory_space<vmem>>, vector<2x1x1x32xf32>,
    %663 = vector.extract_strided_slice %658 {offsets = [0, 32], sizes = [2, 32], strides = [1, 1]} : vector<2x64xf32> to vector<2x32xf32>
    %c0_963 = arith.constant 0 : index
    %c1_964 = arith.constant 1 : index
    %c8_965 = arith.constant 8 : index
    %c192_966 = arith.constant 192 : index
    %664 = vector.load %arg3[%c0_963, %c1_964, %c8_965, %c192_966] : memref<2x2x16x512xf32, #tpu.memory_space<vmem>>, vector<2x1x1x32xf32>
    %665 = vector.shape_cast %664 : vector<2x1x1x32xf32> to vector<2x32xf32>
    %666 = vector.shape_cast %663 : vector<2x32xf32> to vector<2x1x1x32xf32>
    tpu.vector_store %arg3[%c0_963, %c1_964, %c8_965, %c192_966], %666 {strides = array<i32>} : memref<2x2x16x512xf32, #tpu.memory_space<vmem>>, vector<2x1x1x32xf32>,
    %c0_967 = arith.constant 0 : index
    %c0_968 = arith.constant 0 : index
    %c8_969 = arith.constant 8 : index
    %c224_970 = arith.constant 224 : index
    %667 = vector.load %arg1[%c0_967, %c0_968, %c8_969, %c224_970] : memref<2x2x16x512xf32, #tpu.memory_space<vmem>>, vector<2x1x1x32xf32>
    %668 = vector.shape_cast %667 : vector<2x1x1x32xf32> to vector<2x32xf32>
    %c0_971 = arith.constant 0 : index
    %c1_972 = arith.constant 1 : index
    %c8_973 = arith.constant 8 : index
    %c224_974 = arith.constant 224 : index
    %669 = vector.load %arg1[%c0_971, %c1_972, %c8_973, %c224_974] : memref<2x2x16x512xf32, #tpu.memory_space<vmem>>, vector<2x1x1x32xf32>
    %670 = vector.shape_cast %669 : vector<2x1x1x32xf32> to vector<2x32xf32>
    %c4_975 = arith.constant 4 : index
    %c3_976 = arith.constant 3 : index
    %c0_977 = arith.constant 0 : index
    %c0_978 = arith.constant 0 : index
    %c0_979 = arith.constant 0 : index
    %671 = vector.load %arg2[%c4_975, %c3_976, %c0_977, %c0_978, %c0_979] : memref<8x8x2x32x64xf32, #tpu.memory_space<vmem>>, vector<1x1x1x32x64xf32>
    %672 = vector.shape_cast %671 : vector<1x1x1x32x64xf32> to vector<32x64xf32>
    %cst_980 = arith.constant dense<0.000000e+00> : vector<2x64xf32>
    %673 = tpu.matmul %668, %672, %cst_980 {dimension_numbers = #tpu.dot_dimension_numbers<[1], [0], [0], [1], [0, 0, 1, 1], [], []>} : vector<2x32xf32>, vector<32x64xf32>, vector<2x64xf32> -> vector<2x64xf32>
    %c4_981 = arith.constant 4 : index
    %c3_982 = arith.constant 3 : index
    %c1_983 = arith.constant 1 : index
    %c0_984 = arith.constant 0 : index
    %c0_985 = arith.constant 0 : index
    %674 = vector.load %arg2[%c4_981, %c3_982, %c1_983, %c0_984, %c0_985] : memref<8x8x2x32x64xf32, #tpu.memory_space<vmem>>, vector<1x1x1x32x64xf32>
    %675 = vector.shape_cast %674 : vector<1x1x1x32x64xf32> to vector<32x64xf32>
    %cst_986 = arith.constant dense<0.000000e+00> : vector<2x64xf32>
    %676 = tpu.matmul %670, %675, %cst_986 {dimension_numbers = #tpu.dot_dimension_numbers<[1], [0], [0], [1], [0, 0, 1, 1], [], []>} : vector<2x32xf32>, vector<32x64xf32>, vector<2x64xf32> -> vector<2x64xf32>
    %677 = arith.addf %673, %676 : vector<2x64xf32>
    %678 = vector.extract_strided_slice %677 {offsets = [0, 0], sizes = [2, 32], strides = [1, 1]} : vector<2x64xf32> to vector<2x32xf32>
    %c0_987 = arith.constant 0 : index
    %c0_988 = arith.constant 0 : index
    %c8_989 = arith.constant 8 : index
    %c224_990 = arith.constant 224 : index
    %679 = vector.load %arg3[%c0_987, %c0_988, %c8_989, %c224_990] : memref<2x2x16x512xf32, #tpu.memory_space<vmem>>, vector<2x1x1x32xf32>
    %680 = vector.shape_cast %679 : vector<2x1x1x32xf32> to vector<2x32xf32>
    %681 = vector.shape_cast %678 : vector<2x32xf32> to vector<2x1x1x32xf32>
    tpu.vector_store %arg3[%c0_987, %c0_988, %c8_989, %c224_990], %681 {strides = array<i32>} : memref<2x2x16x512xf32, #tpu.memory_space<vmem>>, vector<2x1x1x32xf32>,
    %682 = vector.extract_strided_slice %677 {offsets = [0, 32], sizes = [2, 32], strides = [1, 1]} : vector<2x64xf32> to vector<2x32xf32>
    %c0_991 = arith.constant 0 : index
    %c1_992 = arith.constant 1 : index
    %c8_993 = arith.constant 8 : index
    %c224_994 = arith.constant 224 : index
    %683 = vector.load %arg3[%c0_991, %c1_992, %c8_993, %c224_994] : memref<2x2x16x512xf32, #tpu.memory_space<vmem>>, vector<2x1x1x32xf32>
    %684 = vector.shape_cast %683 : vector<2x1x1x32xf32> to vector<2x32xf32>
    %685 = vector.shape_cast %682 : vector<2x32xf32> to vector<2x1x1x32xf32>
    tpu.vector_store %arg3[%c0_991, %c1_992, %c8_993, %c224_994], %685 {strides = array<i32>} : memref<2x2x16x512xf32, #tpu.memory_space<vmem>>, vector<2x1x1x32xf32>,
    %c0_995 = arith.constant 0 : index
    %c0_996 = arith.constant 0 : index
    %c8_997 = arith.constant 8 : index
    %c256_998 = arith.constant 256 : index
    %686 = vector.load %arg1[%c0_995, %c0_996, %c8_997, %c256_998] : memref<2x2x16x512xf32, #tpu.memory_space<vmem>>, vector<2x1x1x32xf32>
    %687 = vector.shape_cast %686 : vector<2x1x1x32xf32> to vector<2x32xf32>
    %c0_999 = arith.constant 0 : index
    %c1_1000 = arith.constant 1 : index
    %c8_1001 = arith.constant 8 : index
    %c256_1002 = arith.constant 256 : index
    %688 = vector.load %arg1[%c0_999, %c1_1000, %c8_1001, %c256_1002] : memref<2x2x16x512xf32, #tpu.memory_space<vmem>>, vector<2x1x1x32xf32>
    %689 = vector.shape_cast %688 : vector<2x1x1x32xf32> to vector<2x32xf32>
    %c4_1003 = arith.constant 4 : index
    %c4_1004 = arith.constant 4 : index
    %c0_1005 = arith.constant 0 : index
    %c0_1006 = arith.constant 0 : index
    %c0_1007 = arith.constant 0 : index
    %690 = vector.load %arg2[%c4_1003, %c4_1004, %c0_1005, %c0_1006, %c0_1007] : memref<8x8x2x32x64xf32, #tpu.memory_space<vmem>>, vector<1x1x1x32x64xf32>
    %691 = vector.shape_cast %690 : vector<1x1x1x32x64xf32> to vector<32x64xf32>
    %cst_1008 = arith.constant dense<0.000000e+00> : vector<2x64xf32>
    %692 = tpu.matmul %687, %691, %cst_1008 {dimension_numbers = #tpu.dot_dimension_numbers<[1], [0], [0], [1], [0, 0, 1, 1], [], []>} : vector<2x32xf32>, vector<32x64xf32>, vector<2x64xf32> -> vector<2x64xf32>
    %c4_1009 = arith.constant 4 : index
    %c4_1010 = arith.constant 4 : index
    %c1_1011 = arith.constant 1 : index
    %c0_1012 = arith.constant 0 : index
    %c0_1013 = arith.constant 0 : index
    %693 = vector.load %arg2[%c4_1009, %c4_1010, %c1_1011, %c0_1012, %c0_1013] : memref<8x8x2x32x64xf32, #tpu.memory_space<vmem>>, vector<1x1x1x32x64xf32>
    %694 = vector.shape_cast %693 : vector<1x1x1x32x64xf32> to vector<32x64xf32>
    %cst_1014 = arith.constant dense<0.000000e+00> : vector<2x64xf32>
    %695 = tpu.matmul %689, %694, %cst_1014 {dimension_numbers = #tpu.dot_dimension_numbers<[1], [0], [0], [1], [0, 0, 1, 1], [], []>} : vector<2x32xf32>, vector<32x64xf32>, vector<2x64xf32> -> vector<2x64xf32>
    %696 = arith.addf %692, %695 : vector<2x64xf32>
    %697 = vector.extract_strided_slice %696 {offsets = [0, 0], sizes = [2, 32], strides = [1, 1]} : vector<2x64xf32> to vector<2x32xf32>
    %c0_1015 = arith.constant 0 : index
    %c0_1016 = arith.constant 0 : index
    %c8_1017 = arith.constant 8 : index
    %c256_1018 = arith.constant 256 : index
    %698 = vector.load %arg3[%c0_1015, %c0_1016, %c8_1017, %c256_1018] : memref<2x2x16x512xf32, #tpu.memory_space<vmem>>, vector<2x1x1x32xf32>
    %699 = vector.shape_cast %698 : vector<2x1x1x32xf32> to vector<2x32xf32>
    %700 = vector.shape_cast %697 : vector<2x32xf32> to vector<2x1x1x32xf32>
    tpu.vector_store %arg3[%c0_1015, %c0_1016, %c8_1017, %c256_1018], %700 {strides = array<i32>} : memref<2x2x16x512xf32, #tpu.memory_space<vmem>>, vector<2x1x1x32xf32>,
    %701 = vector.extract_strided_slice %696 {offsets = [0, 32], sizes = [2, 32], strides = [1, 1]} : vector<2x64xf32> to vector<2x32xf32>
    %c0_1019 = arith.constant 0 : index
    %c1_1020 = arith.constant 1 : index
    %c8_1021 = arith.constant 8 : index
    %c256_1022 = arith.constant 256 : index
    %702 = vector.load %arg3[%c0_1019, %c1_1020, %c8_1021, %c256_1022] : memref<2x2x16x512xf32, #tpu.memory_space<vmem>>, vector<2x1x1x32xf32>
    %703 = vector.shape_cast %702 : vector<2x1x1x32xf32> to vector<2x32xf32>
    %704 = vector.shape_cast %701 : vector<2x32xf32> to vector<2x1x1x32xf32>
    tpu.vector_store %arg3[%c0_1019, %c1_1020, %c8_1021, %c256_1022], %704 {strides = array<i32>} : memref<2x2x16x512xf32, #tpu.memory_space<vmem>>, vector<2x1x1x32xf32>,
    %c0_1023 = arith.constant 0 : index
    %c0_1024 = arith.constant 0 : index
    %c8_1025 = arith.constant 8 : index
    %c288_1026 = arith.constant 288 : index
    %705 = vector.load %arg1[%c0_1023, %c0_1024, %c8_1025, %c288_1026] : memref<2x2x16x512xf32, #tpu.memory_space<vmem>>, vector<2x1x1x32xf32>
    %706 = vector.shape_cast %705 : vector<2x1x1x32xf32> to vector<2x32xf32>
    %c0_1027 = arith.constant 0 : index
    %c1_1028 = arith.constant 1 : index
    %c8_1029 = arith.constant 8 : index
    %c288_1030 = arith.constant 288 : index
    %707 = vector.load %arg1[%c0_1027, %c1_1028, %c8_1029, %c288_1030] : memref<2x2x16x512xf32, #tpu.memory_space<vmem>>, vector<2x1x1x32xf32>
    %708 = vector.shape_cast %707 : vector<2x1x1x32xf32> to vector<2x32xf32>
    %c4_1031 = arith.constant 4 : index
    %c5_1032 = arith.constant 5 : index
    %c0_1033 = arith.constant 0 : index
    %c0_1034 = arith.constant 0 : index
    %c0_1035 = arith.constant 0 : index
    %709 = vector.load %arg2[%c4_1031, %c5_1032, %c0_1033, %c0_1034, %c0_1035] : memref<8x8x2x32x64xf32, #tpu.memory_space<vmem>>, vector<1x1x1x32x64xf32>
    %710 = vector.shape_cast %709 : vector<1x1x1x32x64xf32> to vector<32x64xf32>
    %cst_1036 = arith.constant dense<0.000000e+00> : vector<2x64xf32>
    %711 = tpu.matmul %706, %710, %cst_1036 {dimension_numbers = #tpu.dot_dimension_numbers<[1], [0], [0], [1], [0, 0, 1, 1], [], []>} : vector<2x32xf32>, vector<32x64xf32>, vector<2x64xf32> -> vector<2x64xf32>
    %c4_1037 = arith.constant 4 : index
    %c5_1038 = arith.constant 5 : index
    %c1_1039 = arith.constant 1 : index
    %c0_1040 = arith.constant 0 : index
    %c0_1041 = arith.constant 0 : index
    %712 = vector.load %arg2[%c4_1037, %c5_1038, %c1_1039, %c0_1040, %c0_1041] : memref<8x8x2x32x64xf32, #tpu.memory_space<vmem>>, vector<1x1x1x32x64xf32>
    %713 = vector.shape_cast %712 : vector<1x1x1x32x64xf32> to vector<32x64xf32>
    %cst_1042 = arith.constant dense<0.000000e+00> : vector<2x64xf32>
    %714 = tpu.matmul %708, %713, %cst_1042 {dimension_numbers = #tpu.dot_dimension_numbers<[1], [0], [0], [1], [0, 0, 1, 1], [], []>} : vector<2x32xf32>, vector<32x64xf32>, vector<2x64xf32> -> vector<2x64xf32>
    %715 = arith.addf %711, %714 : vector<2x64xf32>
    %716 = vector.extract_strided_slice %715 {offsets = [0, 0], sizes = [2, 32], strides = [1, 1]} : vector<2x64xf32> to vector<2x32xf32>
    %c0_1043 = arith.constant 0 : index
    %c0_1044 = arith.constant 0 : index
    %c8_1045 = arith.constant 8 : index
    %c288_1046 = arith.constant 288 : index
    %717 = vector.load %arg3[%c0_1043, %c0_1044, %c8_1045, %c288_1046] : memref<2x2x16x512xf32, #tpu.memory_space<vmem>>, vector<2x1x1x32xf32>
    %718 = vector.shape_cast %717 : vector<2x1x1x32xf32> to vector<2x32xf32>
    %719 = vector.shape_cast %716 : vector<2x32xf32> to vector<2x1x1x32xf32>
    tpu.vector_store %arg3[%c0_1043, %c0_1044, %c8_1045, %c288_1046], %719 {strides = array<i32>} : memref<2x2x16x512xf32, #tpu.memory_space<vmem>>, vector<2x1x1x32xf32>,
    %720 = vector.extract_strided_slice %715 {offsets = [0, 32], sizes = [2, 32], strides = [1, 1]} : vector<2x64xf32> to vector<2x32xf32>
    %c0_1047 = arith.constant 0 : index
    %c1_1048 = arith.constant 1 : index
    %c8_1049 = arith.constant 8 : index
    %c288_1050 = arith.constant 288 : index
    %721 = vector.load %arg3[%c0_1047, %c1_1048, %c8_1049, %c288_1050] : memref<2x2x16x512xf32, #tpu.memory_space<vmem>>, vector<2x1x1x32xf32>
    %722 = vector.shape_cast %721 : vector<2x1x1x32xf32> to vector<2x32xf32>
    %723 = vector.shape_cast %720 : vector<2x32xf32> to vector<2x1x1x32xf32>
    tpu.vector_store %arg3[%c0_1047, %c1_1048, %c8_1049, %c288_1050], %723 {strides = array<i32>} : memref<2x2x16x512xf32, #tpu.memory_space<vmem>>, vector<2x1x1x32xf32>,
    %c0_1051 = arith.constant 0 : index
    %c0_1052 = arith.constant 0 : index
    %c8_1053 = arith.constant 8 : index
    %c320_1054 = arith.constant 320 : index
    %724 = vector.load %arg1[%c0_1051, %c0_1052, %c8_1053, %c320_1054] : memref<2x2x16x512xf32, #tpu.memory_space<vmem>>, vector<2x1x1x32xf32>
    %725 = vector.shape_cast %724 : vector<2x1x1x32xf32> to vector<2x32xf32>
    %c0_1055 = arith.constant 0 : index
    %c1_1056 = arith.constant 1 : index
    %c8_1057 = arith.constant 8 : index
    %c320_1058 = arith.constant 320 : index
    %726 = vector.load %arg1[%c0_1055, %c1_1056, %c8_1057, %c320_1058] : memref<2x2x16x512xf32, #tpu.memory_space<vmem>>, vector<2x1x1x32xf32>
    %727 = vector.shape_cast %726 : vector<2x1x1x32xf32> to vector<2x32xf32>
    %c4_1059 = arith.constant 4 : index
    %c6_1060 = arith.constant 6 : index
    %c0_1061 = arith.constant 0 : index
    %c0_1062 = arith.constant 0 : index
    %c0_1063 = arith.constant 0 : index
    %728 = vector.load %arg2[%c4_1059, %c6_1060, %c0_1061, %c0_1062, %c0_1063] : memref<8x8x2x32x64xf32, #tpu.memory_space<vmem>>, vector<1x1x1x32x64xf32>
    %729 = vector.shape_cast %728 : vector<1x1x1x32x64xf32> to vector<32x64xf32>
    %cst_1064 = arith.constant dense<0.000000e+00> : vector<2x64xf32>
    %730 = tpu.matmul %725, %729, %cst_1064 {dimension_numbers = #tpu.dot_dimension_numbers<[1], [0], [0], [1], [0, 0, 1, 1], [], []>} : vector<2x32xf32>, vector<32x64xf32>, vector<2x64xf32> -> vector<2x64xf32>
    %c4_1065 = arith.constant 4 : index
    %c6_1066 = arith.constant 6 : index
    %c1_1067 = arith.constant 1 : index
    %c0_1068 = arith.constant 0 : index
    %c0_1069 = arith.constant 0 : index
    %731 = vector.load %arg2[%c4_1065, %c6_1066, %c1_1067, %c0_1068, %c0_1069] : memref<8x8x2x32x64xf32, #tpu.memory_space<vmem>>, vector<1x1x1x32x64xf32>
    %732 = vector.shape_cast %731 : vector<1x1x1x32x64xf32> to vector<32x64xf32>
    %cst_1070 = arith.constant dense<0.000000e+00> : vector<2x64xf32>
    %733 = tpu.matmul %727, %732, %cst_1070 {dimension_numbers = #tpu.dot_dimension_numbers<[1], [0], [0], [1], [0, 0, 1, 1], [], []>} : vector<2x32xf32>, vector<32x64xf32>, vector<2x64xf32> -> vector<2x64xf32>
    %734 = arith.addf %730, %733 : vector<2x64xf32>
    %735 = vector.extract_strided_slice %734 {offsets = [0, 0], sizes = [2, 32], strides = [1, 1]} : vector<2x64xf32> to vector<2x32xf32>
    %c0_1071 = arith.constant 0 : index
    %c0_1072 = arith.constant 0 : index
    %c8_1073 = arith.constant 8 : index
    %c320_1074 = arith.constant 320 : index
    %736 = vector.load %arg3[%c0_1071, %c0_1072, %c8_1073, %c320_1074] : memref<2x2x16x512xf32, #tpu.memory_space<vmem>>, vector<2x1x1x32xf32>
    %737 = vector.shape_cast %736 : vector<2x1x1x32xf32> to vector<2x32xf32>
    %738 = vector.shape_cast %735 : vector<2x32xf32> to vector<2x1x1x32xf32>
    tpu.vector_store %arg3[%c0_1071, %c0_1072, %c8_1073, %c320_1074], %738 {strides = array<i32>} : memref<2x2x16x512xf32, #tpu.memory_space<vmem>>, vector<2x1x1x32xf32>,
    %739 = vector.extract_strided_slice %734 {offsets = [0, 32], sizes = [2, 32], strides = [1, 1]} : vector<2x64xf32> to vector<2x32xf32>
    %c0_1075 = arith.constant 0 : index
    %c1_1076 = arith.constant 1 : index
    %c8_1077 = arith.constant 8 : index
    %c320_1078 = arith.constant 320 : index
    %740 = vector.load %arg3[%c0_1075, %c1_1076, %c8_1077, %c320_1078] : memref<2x2x16x512xf32, #tpu.memory_space<vmem>>, vector<2x1x1x32xf32>
    %741 = vector.shape_cast %740 : vector<2x1x1x32xf32> to vector<2x32xf32>
    %742 = vector.shape_cast %739 : vector<2x32xf32> to vector<2x1x1x32xf32>
    tpu.vector_store %arg3[%c0_1075, %c1_1076, %c8_1077, %c320_1078], %742 {strides = array<i32>} : memref<2x2x16x512xf32, #tpu.memory_space<vmem>>, vector<2x1x1x32xf32>,
    %c0_1079 = arith.constant 0 : index
    %c0_1080 = arith.constant 0 : index
    %c8_1081 = arith.constant 8 : index
    %c352_1082 = arith.constant 352 : index
    %743 = vector.load %arg1[%c0_1079, %c0_1080, %c8_1081, %c352_1082] : memref<2x2x16x512xf32, #tpu.memory_space<vmem>>, vector<2x1x1x32xf32>
    %744 = vector.shape_cast %743 : vector<2x1x1x32xf32> to vector<2x32xf32>
    %c0_1083 = arith.constant 0 : index
    %c1_1084 = arith.constant 1 : index
    %c8_1085 = arith.constant 8 : index
    %c352_1086 = arith.constant 352 : index
    %745 = vector.load %arg1[%c0_1083, %c1_1084, %c8_1085, %c352_1086] : memref<2x2x16x512xf32, #tpu.memory_space<vmem>>, vector<2x1x1x32xf32>
    %746 = vector.shape_cast %745 : vector<2x1x1x32xf32> to vector<2x32xf32>
    %c4_1087 = arith.constant 4 : index
    %c7_1088 = arith.constant 7 : index
    %c0_1089 = arith.constant 0 : index
    %c0_1090 = arith.constant 0 : index
    %c0_1091 = arith.constant 0 : index
    %747 = vector.load %arg2[%c4_1087, %c7_1088, %c0_1089, %c0_1090, %c0_1091] : memref<8x8x2x32x64xf32, #tpu.memory_space<vmem>>, vector<1x1x1x32x64xf32>
    %748 = vector.shape_cast %747 : vector<1x1x1x32x64xf32> to vector<32x64xf32>
    %cst_1092 = arith.constant dense<0.000000e+00> : vector<2x64xf32>
    %749 = tpu.matmul %744, %748, %cst_1092 {dimension_numbers = #tpu.dot_dimension_numbers<[1], [0], [0], [1], [0, 0, 1, 1], [], []>} : vector<2x32xf32>, vector<32x64xf32>, vector<2x64xf32> -> vector<2x64xf32>
    %c4_1093 = arith.constant 4 : index
    %c7_1094 = arith.constant 7 : index
    %c1_1095 = arith.constant 1 : index
    %c0_1096 = arith.constant 0 : index
    %c0_1097 = arith.constant 0 : index
    %750 = vector.load %arg2[%c4_1093, %c7_1094, %c1_1095, %c0_1096, %c0_1097] : memref<8x8x2x32x64xf32, #tpu.memory_space<vmem>>, vector<1x1x1x32x64xf32>
    %751 = vector.shape_cast %750 : vector<1x1x1x32x64xf32> to vector<32x64xf32>
    %cst_1098 = arith.constant dense<0.000000e+00> : vector<2x64xf32>
    %752 = tpu.matmul %746, %751, %cst_1098 {dimension_numbers = #tpu.dot_dimension_numbers<[1], [0], [0], [1], [0, 0, 1, 1], [], []>} : vector<2x32xf32>, vector<32x64xf32>, vector<2x64xf32> -> vector<2x64xf32>
    %753 = arith.addf %749, %752 : vector<2x64xf32>
    %754 = vector.extract_strided_slice %753 {offsets = [0, 0], sizes = [2, 32], strides = [1, 1]} : vector<2x64xf32> to vector<2x32xf32>
    %c0_1099 = arith.constant 0 : index
    %c0_1100 = arith.constant 0 : index
    %c8_1101 = arith.constant 8 : index
    %c352_1102 = arith.constant 352 : index
    %755 = vector.load %arg3[%c0_1099, %c0_1100, %c8_1101, %c352_1102] : memref<2x2x16x512xf32, #tpu.memory_space<vmem>>, vector<2x1x1x32xf32>
    %756 = vector.shape_cast %755 : vector<2x1x1x32xf32> to vector<2x32xf32>
    %757 = vector.shape_cast %754 : vector<2x32xf32> to vector<2x1x1x32xf32>
    tpu.vector_store %arg3[%c0_1099, %c0_1100, %c8_1101, %c352_1102], %757 {strides = array<i32>} : memref<2x2x16x512xf32, #tpu.memory_space<vmem>>, vector<2x1x1x32xf32>,
    %758 = vector.extract_strided_slice %753 {offsets = [0, 32], sizes = [2, 32], strides = [1, 1]} : vector<2x64xf32> to vector<2x32xf32>
    %c0_1103 = arith.constant 0 : index
    %c1_1104 = arith.constant 1 : index
    %c8_1105 = arith.constant 8 : index
    %c352_1106 = arith.constant 352 : index
    %759 = vector.load %arg3[%c0_1103, %c1_1104, %c8_1105, %c352_1106] : memref<2x2x16x512xf32, #tpu.memory_space<vmem>>, vector<2x1x1x32xf32>
    %760 = vector.shape_cast %759 : vector<2x1x1x32xf32> to vector<2x32xf32>
    %761 = vector.shape_cast %758 : vector<2x32xf32> to vector<2x1x1x32xf32>
    tpu.vector_store %arg3[%c0_1103, %c1_1104, %c8_1105, %c352_1106], %761 {strides = array<i32>} : memref<2x2x16x512xf32, #tpu.memory_space<vmem>>, vector<2x1x1x32xf32>,
    %c0_1107 = arith.constant 0 : index
    %c0_1108 = arith.constant 0 : index
    %c9 = arith.constant 9 : index
    %c128_1109 = arith.constant 128 : index
    %762 = vector.load %arg1[%c0_1107, %c0_1108, %c9, %c128_1109] : memref<2x2x16x512xf32, #tpu.memory_space<vmem>>, vector<2x1x1x32xf32>
    %763 = vector.shape_cast %762 : vector<2x1x1x32xf32> to vector<2x32xf32>
    %c0_1110 = arith.constant 0 : index
    %c1_1111 = arith.constant 1 : index
    %c9_1112 = arith.constant 9 : index
    %c128_1113 = arith.constant 128 : index
    %764 = vector.load %arg1[%c0_1110, %c1_1111, %c9_1112, %c128_1113] : memref<2x2x16x512xf32, #tpu.memory_space<vmem>>, vector<2x1x1x32xf32>
    %765 = vector.shape_cast %764 : vector<2x1x1x32xf32> to vector<2x32xf32>
    %c5_1114 = arith.constant 5 : index
    %c0_1115 = arith.constant 0 : index
    %c0_1116 = arith.constant 0 : index
    %c0_1117 = arith.constant 0 : index
    %c0_1118 = arith.constant 0 : index
    %766 = vector.load %arg2[%c5_1114, %c0_1115, %c0_1116, %c0_1117, %c0_1118] : memref<8x8x2x32x64xf32, #tpu.memory_space<vmem>>, vector<1x1x1x32x64xf32>
    %767 = vector.shape_cast %766 : vector<1x1x1x32x64xf32> to vector<32x64xf32>
    %cst_1119 = arith.constant dense<0.000000e+00> : vector<2x64xf32>
    %768 = tpu.matmul %763, %767, %cst_1119 {dimension_numbers = #tpu.dot_dimension_numbers<[1], [0], [0], [1], [0, 0, 1, 1], [], []>} : vector<2x32xf32>, vector<32x64xf32>, vector<2x64xf32> -> vector<2x64xf32>
    %c5_1120 = arith.constant 5 : index
    %c0_1121 = arith.constant 0 : index
    %c1_1122 = arith.constant 1 : index
    %c0_1123 = arith.constant 0 : index
    %c0_1124 = arith.constant 0 : index
    %769 = vector.load %arg2[%c5_1120, %c0_1121, %c1_1122, %c0_1123, %c0_1124] : memref<8x8x2x32x64xf32, #tpu.memory_space<vmem>>, vector<1x1x1x32x64xf32>
    %770 = vector.shape_cast %769 : vector<1x1x1x32x64xf32> to vector<32x64xf32>
    %cst_1125 = arith.constant dense<0.000000e+00> : vector<2x64xf32>
    %771 = tpu.matmul %765, %770, %cst_1125 {dimension_numbers = #tpu.dot_dimension_numbers<[1], [0], [0], [1], [0, 0, 1, 1], [], []>} : vector<2x32xf32>, vector<32x64xf32>, vector<2x64xf32> -> vector<2x64xf32>
    %772 = arith.addf %768, %771 : vector<2x64xf32>
    %773 = vector.extract_strided_slice %772 {offsets = [0, 0], sizes = [2, 32], strides = [1, 1]} : vector<2x64xf32> to vector<2x32xf32>
    %c0_1126 = arith.constant 0 : index
    %c0_1127 = arith.constant 0 : index
    %c9_1128 = arith.constant 9 : index
    %c128_1129 = arith.constant 128 : index
    %774 = vector.load %arg3[%c0_1126, %c0_1127, %c9_1128, %c128_1129] : memref<2x2x16x512xf32, #tpu.memory_space<vmem>>, vector<2x1x1x32xf32>
    %775 = vector.shape_cast %774 : vector<2x1x1x32xf32> to vector<2x32xf32>
    %776 = vector.shape_cast %773 : vector<2x32xf32> to vector<2x1x1x32xf32>
    tpu.vector_store %arg3[%c0_1126, %c0_1127, %c9_1128, %c128_1129], %776 {strides = array<i32>} : memref<2x2x16x512xf32, #tpu.memory_space<vmem>>, vector<2x1x1x32xf32>,
    %777 = vector.extract_strided_slice %772 {offsets = [0, 32], sizes = [2, 32], strides = [1, 1]} : vector<2x64xf32> to vector<2x32xf32>
    %c0_1130 = arith.constant 0 : index
    %c1_1131 = arith.constant 1 : index
    %c9_1132 = arith.constant 9 : index
    %c128_1133 = arith.constant 128 : index
    %778 = vector.load %arg3[%c0_1130, %c1_1131, %c9_1132, %c128_1133] : memref<2x2x16x512xf32, #tpu.memory_space<vmem>>, vector<2x1x1x32xf32>
    %779 = vector.shape_cast %778 : vector<2x1x1x32xf32> to vector<2x32xf32>
    %780 = vector.shape_cast %777 : vector<2x32xf32> to vector<2x1x1x32xf32>
    tpu.vector_store %arg3[%c0_1130, %c1_1131, %c9_1132, %c128_1133], %780 {strides = array<i32>} : memref<2x2x16x512xf32, #tpu.memory_space<vmem>>, vector<2x1x1x32xf32>,
    %c0_1134 = arith.constant 0 : index
    %c0_1135 = arith.constant 0 : index
    %c9_1136 = arith.constant 9 : index
    %c160_1137 = arith.constant 160 : index
    %781 = vector.load %arg1[%c0_1134, %c0_1135, %c9_1136, %c160_1137] : memref<2x2x16x512xf32, #tpu.memory_space<vmem>>, vector<2x1x1x32xf32>
    %782 = vector.shape_cast %781 : vector<2x1x1x32xf32> to vector<2x32xf32>
    %c0_1138 = arith.constant 0 : index
    %c1_1139 = arith.constant 1 : index
    %c9_1140 = arith.constant 9 : index
    %c160_1141 = arith.constant 160 : index
    %783 = vector.load %arg1[%c0_1138, %c1_1139, %c9_1140, %c160_1141] : memref<2x2x16x512xf32, #tpu.memory_space<vmem>>, vector<2x1x1x32xf32>
    %784 = vector.shape_cast %783 : vector<2x1x1x32xf32> to vector<2x32xf32>
    %c5_1142 = arith.constant 5 : index
    %c1_1143 = arith.constant 1 : index
    %c0_1144 = arith.constant 0 : index
    %c0_1145 = arith.constant 0 : index
    %c0_1146 = arith.constant 0 : index
    %785 = vector.load %arg2[%c5_1142, %c1_1143, %c0_1144, %c0_1145, %c0_1146] : memref<8x8x2x32x64xf32, #tpu.memory_space<vmem>>, vector<1x1x1x32x64xf32>
    %786 = vector.shape_cast %785 : vector<1x1x1x32x64xf32> to vector<32x64xf32>
    %cst_1147 = arith.constant dense<0.000000e+00> : vector<2x64xf32>
    %787 = tpu.matmul %782, %786, %cst_1147 {dimension_numbers = #tpu.dot_dimension_numbers<[1], [0], [0], [1], [0, 0, 1, 1], [], []>} : vector<2x32xf32>, vector<32x64xf32>, vector<2x64xf32> -> vector<2x64xf32>
    %c5_1148 = arith.constant 5 : index
    %c1_1149 = arith.constant 1 : index
    %c1_1150 = arith.constant 1 : index
    %c0_1151 = arith.constant 0 : index
    %c0_1152 = arith.constant 0 : index
    %788 = vector.load %arg2[%c5_1148, %c1_1149, %c1_1150, %c0_1151, %c0_1152] : memref<8x8x2x32x64xf32, #tpu.memory_space<vmem>>, vector<1x1x1x32x64xf32>
    %789 = vector.shape_cast %788 : vector<1x1x1x32x64xf32> to vector<32x64xf32>
    %cst_1153 = arith.constant dense<0.000000e+00> : vector<2x64xf32>
    %790 = tpu.matmul %784, %789, %cst_1153 {dimension_numbers = #tpu.dot_dimension_numbers<[1], [0], [0], [1], [0, 0, 1, 1], [], []>} : vector<2x32xf32>, vector<32x64xf32>, vector<2x64xf32> -> vector<2x64xf32>
    %791 = arith.addf %787, %790 : vector<2x64xf32>
    %792 = vector.extract_strided_slice %791 {offsets = [0, 0], sizes = [2, 32], strides = [1, 1]} : vector<2x64xf32> to vector<2x32xf32>
    %c0_1154 = arith.constant 0 : index
    %c0_1155 = arith.constant 0 : index
    %c9_1156 = arith.constant 9 : index
    %c160_1157 = arith.constant 160 : index
    %793 = vector.load %arg3[%c0_1154, %c0_1155, %c9_1156, %c160_1157] : memref<2x2x16x512xf32, #tpu.memory_space<vmem>>, vector<2x1x1x32xf32>
    %794 = vector.shape_cast %793 : vector<2x1x1x32xf32> to vector<2x32xf32>
    %795 = vector.shape_cast %792 : vector<2x32xf32> to vector<2x1x1x32xf32>
    tpu.vector_store %arg3[%c0_1154, %c0_1155, %c9_1156, %c160_1157], %795 {strides = array<i32>} : memref<2x2x16x512xf32, #tpu.memory_space<vmem>>, vector<2x1x1x32xf32>,
    %796 = vector.extract_strided_slice %791 {offsets = [0, 32], sizes = [2, 32], strides = [1, 1]} : vector<2x64xf32> to vector<2x32xf32>
    %c0_1158 = arith.constant 0 : index
    %c1_1159 = arith.constant 1 : index
    %c9_1160 = arith.constant 9 : index
    %c160_1161 = arith.constant 160 : index
    %797 = vector.load %arg3[%c0_1158, %c1_1159, %c9_1160, %c160_1161] : memref<2x2x16x512xf32, #tpu.memory_space<vmem>>, vector<2x1x1x32xf32>
    %798 = vector.shape_cast %797 : vector<2x1x1x32xf32> to vector<2x32xf32>
    %799 = vector.shape_cast %796 : vector<2x32xf32> to vector<2x1x1x32xf32>
    tpu.vector_store %arg3[%c0_1158, %c1_1159, %c9_1160, %c160_1161], %799 {strides = array<i32>} : memref<2x2x16x512xf32, #tpu.memory_space<vmem>>, vector<2x1x1x32xf32>,
    %c0_1162 = arith.constant 0 : index
    %c0_1163 = arith.constant 0 : index
    %c9_1164 = arith.constant 9 : index
    %c192_1165 = arith.constant 192 : index
    %800 = vector.load %arg1[%c0_1162, %c0_1163, %c9_1164, %c192_1165] : memref<2x2x16x512xf32, #tpu.memory_space<vmem>>, vector<2x1x1x32xf32>
    %801 = vector.shape_cast %800 : vector<2x1x1x32xf32> to vector<2x32xf32>
    %c0_1166 = arith.constant 0 : index
    %c1_1167 = arith.constant 1 : index
    %c9_1168 = arith.constant 9 : index
    %c192_1169 = arith.constant 192 : index
    %802 = vector.load %arg1[%c0_1166, %c1_1167, %c9_1168, %c192_1169] : memref<2x2x16x512xf32, #tpu.memory_space<vmem>>, vector<2x1x1x32xf32>
    %803 = vector.shape_cast %802 : vector<2x1x1x32xf32> to vector<2x32xf32>
    %c5_1170 = arith.constant 5 : index
    %c2_1171 = arith.constant 2 : index
    %c0_1172 = arith.constant 0 : index
    %c0_1173 = arith.constant 0 : index
    %c0_1174 = arith.constant 0 : index
    %804 = vector.load %arg2[%c5_1170, %c2_1171, %c0_1172, %c0_1173, %c0_1174] : memref<8x8x2x32x64xf32, #tpu.memory_space<vmem>>, vector<1x1x1x32x64xf32>
    %805 = vector.shape_cast %804 : vector<1x1x1x32x64xf32> to vector<32x64xf32>
    %cst_1175 = arith.constant dense<0.000000e+00> : vector<2x64xf32>
    %806 = tpu.matmul %801, %805, %cst_1175 {dimension_numbers = #tpu.dot_dimension_numbers<[1], [0], [0], [1], [0, 0, 1, 1], [], []>} : vector<2x32xf32>, vector<32x64xf32>, vector<2x64xf32> -> vector<2x64xf32>
    %c5_1176 = arith.constant 5 : index
    %c2_1177 = arith.constant 2 : index
    %c1_1178 = arith.constant 1 : index
    %c0_1179 = arith.constant 0 : index
    %c0_1180 = arith.constant 0 : index
    %807 = vector.load %arg2[%c5_1176, %c2_1177, %c1_1178, %c0_1179, %c0_1180] : memref<8x8x2x32x64xf32, #tpu.memory_space<vmem>>, vector<1x1x1x32x64xf32>
    %808 = vector.shape_cast %807 : vector<1x1x1x32x64xf32> to vector<32x64xf32>
    %cst_1181 = arith.constant dense<0.000000e+00> : vector<2x64xf32>
    %809 = tpu.matmul %803, %808, %cst_1181 {dimension_numbers = #tpu.dot_dimension_numbers<[1], [0], [0], [1], [0, 0, 1, 1], [], []>} : vector<2x32xf32>, vector<32x64xf32>, vector<2x64xf32> -> vector<2x64xf32>
    %810 = arith.addf %806, %809 : vector<2x64xf32>
    %811 = vector.extract_strided_slice %810 {offsets = [0, 0], sizes = [2, 32], strides = [1, 1]} : vector<2x64xf32> to vector<2x32xf32>
    %c0_1182 = arith.constant 0 : index
    %c0_1183 = arith.constant 0 : index
    %c9_1184 = arith.constant 9 : index
    %c192_1185 = arith.constant 192 : index
    %812 = vector.load %arg3[%c0_1182, %c0_1183, %c9_1184, %c192_1185] : memref<2x2x16x512xf32, #tpu.memory_space<vmem>>, vector<2x1x1x32xf32>
    %813 = vector.shape_cast %812 : vector<2x1x1x32xf32> to vector<2x32xf32>
    %814 = vector.shape_cast %811 : vector<2x32xf32> to vector<2x1x1x32xf32>
    tpu.vector_store %arg3[%c0_1182, %c0_1183, %c9_1184, %c192_1185], %814 {strides = array<i32>} : memref<2x2x16x512xf32, #tpu.memory_space<vmem>>, vector<2x1x1x32xf32>,
    %815 = vector.extract_strided_slice %810 {offsets = [0, 32], sizes = [2, 32], strides = [1, 1]} : vector<2x64xf32> to vector<2x32xf32>
    %c0_1186 = arith.constant 0 : index
    %c1_1187 = arith.constant 1 : index
    %c9_1188 = arith.constant 9 : index
    %c192_1189 = arith.constant 192 : index
    %816 = vector.load %arg3[%c0_1186, %c1_1187, %c9_1188, %c192_1189] : memref<2x2x16x512xf32, #tpu.memory_space<vmem>>, vector<2x1x1x32xf32>
    %817 = vector.shape_cast %816 : vector<2x1x1x32xf32> to vector<2x32xf32>
    %818 = vector.shape_cast %815 : vector<2x32xf32> to vector<2x1x1x32xf32>
    tpu.vector_store %arg3[%c0_1186, %c1_1187, %c9_1188, %c192_1189], %818 {strides = array<i32>} : memref<2x2x16x512xf32, #tpu.memory_space<vmem>>, vector<2x1x1x32xf32>,
    %c0_1190 = arith.constant 0 : index
    %c0_1191 = arith.constant 0 : index
    %c9_1192 = arith.constant 9 : index
    %c224_1193 = arith.constant 224 : index
    %819 = vector.load %arg1[%c0_1190, %c0_1191, %c9_1192, %c224_1193] : memref<2x2x16x512xf32, #tpu.memory_space<vmem>>, vector<2x1x1x32xf32>
    %820 = vector.shape_cast %819 : vector<2x1x1x32xf32> to vector<2x32xf32>
    %c0_1194 = arith.constant 0 : index
    %c1_1195 = arith.constant 1 : index
    %c9_1196 = arith.constant 9 : index
    %c224_1197 = arith.constant 224 : index
    %821 = vector.load %arg1[%c0_1194, %c1_1195, %c9_1196, %c224_1197] : memref<2x2x16x512xf32, #tpu.memory_space<vmem>>, vector<2x1x1x32xf32>
    %822 = vector.shape_cast %821 : vector<2x1x1x32xf32> to vector<2x32xf32>
    %c5_1198 = arith.constant 5 : index
    %c3_1199 = arith.constant 3 : index
    %c0_1200 = arith.constant 0 : index
    %c0_1201 = arith.constant 0 : index
    %c0_1202 = arith.constant 0 : index
    %823 = vector.load %arg2[%c5_1198, %c3_1199, %c0_1200, %c0_1201, %c0_1202] : memref<8x8x2x32x64xf32, #tpu.memory_space<vmem>>, vector<1x1x1x32x64xf32>
    %824 = vector.shape_cast %823 : vector<1x1x1x32x64xf32> to vector<32x64xf32>
    %cst_1203 = arith.constant dense<0.000000e+00> : vector<2x64xf32>
    %825 = tpu.matmul %820, %824, %cst_1203 {dimension_numbers = #tpu.dot_dimension_numbers<[1], [0], [0], [1], [0, 0, 1, 1], [], []>} : vector<2x32xf32>, vector<32x64xf32>, vector<2x64xf32> -> vector<2x64xf32>
    %c5_1204 = arith.constant 5 : index
    %c3_1205 = arith.constant 3 : index
    %c1_1206 = arith.constant 1 : index
    %c0_1207 = arith.constant 0 : index
    %c0_1208 = arith.constant 0 : index
    %826 = vector.load %arg2[%c5_1204, %c3_1205, %c1_1206, %c0_1207, %c0_1208] : memref<8x8x2x32x64xf32, #tpu.memory_space<vmem>>, vector<1x1x1x32x64xf32>
    %827 = vector.shape_cast %826 : vector<1x1x1x32x64xf32> to vector<32x64xf32>
    %cst_1209 = arith.constant dense<0.000000e+00> : vector<2x64xf32>
    %828 = tpu.matmul %822, %827, %cst_1209 {dimension_numbers = #tpu.dot_dimension_numbers<[1], [0], [0], [1], [0, 0, 1, 1], [], []>} : vector<2x32xf32>, vector<32x64xf32>, vector<2x64xf32> -> vector<2x64xf32>
    %829 = arith.addf %825, %828 : vector<2x64xf32>
    %830 = vector.extract_strided_slice %829 {offsets = [0, 0], sizes = [2, 32], strides = [1, 1]} : vector<2x64xf32> to vector<2x32xf32>
    %c0_1210 = arith.constant 0 : index
    %c0_1211 = arith.constant 0 : index
    %c9_1212 = arith.constant 9 : index
    %c224_1213 = arith.constant 224 : index
    %831 = vector.load %arg3[%c0_1210, %c0_1211, %c9_1212, %c224_1213] : memref<2x2x16x512xf32, #tpu.memory_space<vmem>>, vector<2x1x1x32xf32>
    %832 = vector.shape_cast %831 : vector<2x1x1x32xf32> to vector<2x32xf32>
    %833 = vector.shape_cast %830 : vector<2x32xf32> to vector<2x1x1x32xf32>
    tpu.vector_store %arg3[%c0_1210, %c0_1211, %c9_1212, %c224_1213], %833 {strides = array<i32>} : memref<2x2x16x512xf32, #tpu.memory_space<vmem>>, vector<2x1x1x32xf32>,
    %834 = vector.extract_strided_slice %829 {offsets = [0, 32], sizes = [2, 32], strides = [1, 1]} : vector<2x64xf32> to vector<2x32xf32>
    %c0_1214 = arith.constant 0 : index
    %c1_1215 = arith.constant 1 : index
    %c9_1216 = arith.constant 9 : index
    %c224_1217 = arith.constant 224 : index
    %835 = vector.load %arg3[%c0_1214, %c1_1215, %c9_1216, %c224_1217] : memref<2x2x16x512xf32, #tpu.memory_space<vmem>>, vector<2x1x1x32xf32>
    %836 = vector.shape_cast %835 : vector<2x1x1x32xf32> to vector<2x32xf32>
    %837 = vector.shape_cast %834 : vector<2x32xf32> to vector<2x1x1x32xf32>
    tpu.vector_store %arg3[%c0_1214, %c1_1215, %c9_1216, %c224_1217], %837 {strides = array<i32>} : memref<2x2x16x512xf32, #tpu.memory_space<vmem>>, vector<2x1x1x32xf32>,
    %c0_1218 = arith.constant 0 : index
    %c0_1219 = arith.constant 0 : index
    %c9_1220 = arith.constant 9 : index
    %c256_1221 = arith.constant 256 : index
    %838 = vector.load %arg1[%c0_1218, %c0_1219, %c9_1220, %c256_1221] : memref<2x2x16x512xf32, #tpu.memory_space<vmem>>, vector<2x1x1x32xf32>
    %839 = vector.shape_cast %838 : vector<2x1x1x32xf32> to vector<2x32xf32>
    %c0_1222 = arith.constant 0 : index
    %c1_1223 = arith.constant 1 : index
    %c9_1224 = arith.constant 9 : index
    %c256_1225 = arith.constant 256 : index
    %840 = vector.load %arg1[%c0_1222, %c1_1223, %c9_1224, %c256_1225] : memref<2x2x16x512xf32, #tpu.memory_space<vmem>>, vector<2x1x1x32xf32>
    %841 = vector.shape_cast %840 : vector<2x1x1x32xf32> to vector<2x32xf32>
    %c5_1226 = arith.constant 5 : index
    %c4_1227 = arith.constant 4 : index
    %c0_1228 = arith.constant 0 : index
    %c0_1229 = arith.constant 0 : index
    %c0_1230 = arith.constant 0 : index
    %842 = vector.load %arg2[%c5_1226, %c4_1227, %c0_1228, %c0_1229, %c0_1230] : memref<8x8x2x32x64xf32, #tpu.memory_space<vmem>>, vector<1x1x1x32x64xf32>
    %843 = vector.shape_cast %842 : vector<1x1x1x32x64xf32> to vector<32x64xf32>
    %cst_1231 = arith.constant dense<0.000000e+00> : vector<2x64xf32>
    %844 = tpu.matmul %839, %843, %cst_1231 {dimension_numbers = #tpu.dot_dimension_numbers<[1], [0], [0], [1], [0, 0, 1, 1], [], []>} : vector<2x32xf32>, vector<32x64xf32>, vector<2x64xf32> -> vector<2x64xf32>
    %c5_1232 = arith.constant 5 : index
    %c4_1233 = arith.constant 4 : index
    %c1_1234 = arith.constant 1 : index
    %c0_1235 = arith.constant 0 : index
    %c0_1236 = arith.constant 0 : index
    %845 = vector.load %arg2[%c5_1232, %c4_1233, %c1_1234, %c0_1235, %c0_1236] : memref<8x8x2x32x64xf32, #tpu.memory_space<vmem>>, vector<1x1x1x32x64xf32>
    %846 = vector.shape_cast %845 : vector<1x1x1x32x64xf32> to vector<32x64xf32>
    %cst_1237 = arith.constant dense<0.000000e+00> : vector<2x64xf32>
    %847 = tpu.matmul %841, %846, %cst_1237 {dimension_numbers = #tpu.dot_dimension_numbers<[1], [0], [0], [1], [0, 0, 1, 1], [], []>} : vector<2x32xf32>, vector<32x64xf32>, vector<2x64xf32> -> vector<2x64xf32>
    %848 = arith.addf %844, %847 : vector<2x64xf32>
    %849 = vector.extract_strided_slice %848 {offsets = [0, 0], sizes = [2, 32], strides = [1, 1]} : vector<2x64xf32> to vector<2x32xf32>
    %c0_1238 = arith.constant 0 : index
    %c0_1239 = arith.constant 0 : index
    %c9_1240 = arith.constant 9 : index
    %c256_1241 = arith.constant 256 : index
    %850 = vector.load %arg3[%c0_1238, %c0_1239, %c9_1240, %c256_1241] : memref<2x2x16x512xf32, #tpu.memory_space<vmem>>, vector<2x1x1x32xf32>
    %851 = vector.shape_cast %850 : vector<2x1x1x32xf32> to vector<2x32xf32>
    %852 = vector.shape_cast %849 : vector<2x32xf32> to vector<2x1x1x32xf32>
    tpu.vector_store %arg3[%c0_1238, %c0_1239, %c9_1240, %c256_1241], %852 {strides = array<i32>} : memref<2x2x16x512xf32, #tpu.memory_space<vmem>>, vector<2x1x1x32xf32>,
    %853 = vector.extract_strided_slice %848 {offsets = [0, 32], sizes = [2, 32], strides = [1, 1]} : vector<2x64xf32> to vector<2x32xf32>
    %c0_1242 = arith.constant 0 : index
    %c1_1243 = arith.constant 1 : index
    %c9_1244 = arith.constant 9 : index
    %c256_1245 = arith.constant 256 : index
    %854 = vector.load %arg3[%c0_1242, %c1_1243, %c9_1244, %c256_1245] : memref<2x2x16x512xf32, #tpu.memory_space<vmem>>, vector<2x1x1x32xf32>
    %855 = vector.shape_cast %854 : vector<2x1x1x32xf32> to vector<2x32xf32>
    %856 = vector.shape_cast %853 : vector<2x32xf32> to vector<2x1x1x32xf32>
    tpu.vector_store %arg3[%c0_1242, %c1_1243, %c9_1244, %c256_1245], %856 {strides = array<i32>} : memref<2x2x16x512xf32, #tpu.memory_space<vmem>>, vector<2x1x1x32xf32>,
    %c0_1246 = arith.constant 0 : index
    %c0_1247 = arith.constant 0 : index
    %c9_1248 = arith.constant 9 : index
    %c288_1249 = arith.constant 288 : index
    %857 = vector.load %arg1[%c0_1246, %c0_1247, %c9_1248, %c288_1249] : memref<2x2x16x512xf32, #tpu.memory_space<vmem>>, vector<2x1x1x32xf32>
    %858 = vector.shape_cast %857 : vector<2x1x1x32xf32> to vector<2x32xf32>
    %c0_1250 = arith.constant 0 : index
    %c1_1251 = arith.constant 1 : index
    %c9_1252 = arith.constant 9 : index
    %c288_1253 = arith.constant 288 : index
    %859 = vector.load %arg1[%c0_1250, %c1_1251, %c9_1252, %c288_1253] : memref<2x2x16x512xf32, #tpu.memory_space<vmem>>, vector<2x1x1x32xf32>
    %860 = vector.shape_cast %859 : vector<2x1x1x32xf32> to vector<2x32xf32>
    %c5_1254 = arith.constant 5 : index
    %c5_1255 = arith.constant 5 : index
    %c0_1256 = arith.constant 0 : index
    %c0_1257 = arith.constant 0 : index
    %c0_1258 = arith.constant 0 : index
    %861 = vector.load %arg2[%c5_1254, %c5_1255, %c0_1256, %c0_1257, %c0_1258] : memref<8x8x2x32x64xf32, #tpu.memory_space<vmem>>, vector<1x1x1x32x64xf32>
    %862 = vector.shape_cast %861 : vector<1x1x1x32x64xf32> to vector<32x64xf32>
    %cst_1259 = arith.constant dense<0.000000e+00> : vector<2x64xf32>
    %863 = tpu.matmul %858, %862, %cst_1259 {dimension_numbers = #tpu.dot_dimension_numbers<[1], [0], [0], [1], [0, 0, 1, 1], [], []>} : vector<2x32xf32>, vector<32x64xf32>, vector<2x64xf32> -> vector<2x64xf32>
    %c5_1260 = arith.constant 5 : index
    %c5_1261 = arith.constant 5 : index
    %c1_1262 = arith.constant 1 : index
    %c0_1263 = arith.constant 0 : index
    %c0_1264 = arith.constant 0 : index
    %864 = vector.load %arg2[%c5_1260, %c5_1261, %c1_1262, %c0_1263, %c0_1264] : memref<8x8x2x32x64xf32, #tpu.memory_space<vmem>>, vector<1x1x1x32x64xf32>
    %865 = vector.shape_cast %864 : vector<1x1x1x32x64xf32> to vector<32x64xf32>
    %cst_1265 = arith.constant dense<0.000000e+00> : vector<2x64xf32>
    %866 = tpu.matmul %860, %865, %cst_1265 {dimension_numbers = #tpu.dot_dimension_numbers<[1], [0], [0], [1], [0, 0, 1, 1], [], []>} : vector<2x32xf32>, vector<32x64xf32>, vector<2x64xf32> -> vector<2x64xf32>
    %867 = arith.addf %863, %866 : vector<2x64xf32>
    %868 = vector.extract_strided_slice %867 {offsets = [0, 0], sizes = [2, 32], strides = [1, 1]} : vector<2x64xf32> to vector<2x32xf32>
    %c0_1266 = arith.constant 0 : index
    %c0_1267 = arith.constant 0 : index
    %c9_1268 = arith.constant 9 : index
    %c288_1269 = arith.constant 288 : index
    %869 = vector.load %arg3[%c0_1266, %c0_1267, %c9_1268, %c288_1269] : memref<2x2x16x512xf32, #tpu.memory_space<vmem>>, vector<2x1x1x32xf32>
    %870 = vector.shape_cast %869 : vector<2x1x1x32xf32> to vector<2x32xf32>
    %871 = vector.shape_cast %868 : vector<2x32xf32> to vector<2x1x1x32xf32>
    tpu.vector_store %arg3[%c0_1266, %c0_1267, %c9_1268, %c288_1269], %871 {strides = array<i32>} : memref<2x2x16x512xf32, #tpu.memory_space<vmem>>, vector<2x1x1x32xf32>,
    %872 = vector.extract_strided_slice %867 {offsets = [0, 32], sizes = [2, 32], strides = [1, 1]} : vector<2x64xf32> to vector<2x32xf32>
    %c0_1270 = arith.constant 0 : index
    %c1_1271 = arith.constant 1 : index
    %c9_1272 = arith.constant 9 : index
    %c288_1273 = arith.constant 288 : index
    %873 = vector.load %arg3[%c0_1270, %c1_1271, %c9_1272, %c288_1273] : memref<2x2x16x512xf32, #tpu.memory_space<vmem>>, vector<2x1x1x32xf32>
    %874 = vector.shape_cast %873 : vector<2x1x1x32xf32> to vector<2x32xf32>
    %875 = vector.shape_cast %872 : vector<2x32xf32> to vector<2x1x1x32xf32>
    tpu.vector_store %arg3[%c0_1270, %c1_1271, %c9_1272, %c288_1273], %875 {strides = array<i32>} : memref<2x2x16x512xf32, #tpu.memory_space<vmem>>, vector<2x1x1x32xf32>,
    %c0_1274 = arith.constant 0 : index
    %c0_1275 = arith.constant 0 : index
    %c9_1276 = arith.constant 9 : index
    %c320_1277 = arith.constant 320 : index
    %876 = vector.load %arg1[%c0_1274, %c0_1275, %c9_1276, %c320_1277] : memref<2x2x16x512xf32, #tpu.memory_space<vmem>>, vector<2x1x1x32xf32>
    %877 = vector.shape_cast %876 : vector<2x1x1x32xf32> to vector<2x32xf32>
    %c0_1278 = arith.constant 0 : index
    %c1_1279 = arith.constant 1 : index
    %c9_1280 = arith.constant 9 : index
    %c320_1281 = arith.constant 320 : index
    %878 = vector.load %arg1[%c0_1278, %c1_1279, %c9_1280, %c320_1281] : memref<2x2x16x512xf32, #tpu.memory_space<vmem>>, vector<2x1x1x32xf32>
    %879 = vector.shape_cast %878 : vector<2x1x1x32xf32> to vector<2x32xf32>
    %c5_1282 = arith.constant 5 : index
    %c6_1283 = arith.constant 6 : index
    %c0_1284 = arith.constant 0 : index
    %c0_1285 = arith.constant 0 : index
    %c0_1286 = arith.constant 0 : index
    %880 = vector.load %arg2[%c5_1282, %c6_1283, %c0_1284, %c0_1285, %c0_1286] : memref<8x8x2x32x64xf32, #tpu.memory_space<vmem>>, vector<1x1x1x32x64xf32>
    %881 = vector.shape_cast %880 : vector<1x1x1x32x64xf32> to vector<32x64xf32>
    %cst_1287 = arith.constant dense<0.000000e+00> : vector<2x64xf32>
    %882 = tpu.matmul %877, %881, %cst_1287 {dimension_numbers = #tpu.dot_dimension_numbers<[1], [0], [0], [1], [0, 0, 1, 1], [], []>} : vector<2x32xf32>, vector<32x64xf32>, vector<2x64xf32> -> vector<2x64xf32>
    %c5_1288 = arith.constant 5 : index
    %c6_1289 = arith.constant 6 : index
    %c1_1290 = arith.constant 1 : index
    %c0_1291 = arith.constant 0 : index
    %c0_1292 = arith.constant 0 : index
    %883 = vector.load %arg2[%c5_1288, %c6_1289, %c1_1290, %c0_1291, %c0_1292] : memref<8x8x2x32x64xf32, #tpu.memory_space<vmem>>, vector<1x1x1x32x64xf32>
    %884 = vector.shape_cast %883 : vector<1x1x1x32x64xf32> to vector<32x64xf32>
    %cst_1293 = arith.constant dense<0.000000e+00> : vector<2x64xf32>
    %885 = tpu.matmul %879, %884, %cst_1293 {dimension_numbers = #tpu.dot_dimension_numbers<[1], [0], [0], [1], [0, 0, 1, 1], [], []>} : vector<2x32xf32>, vector<32x64xf32>, vector<2x64xf32> -> vector<2x64xf32>
    %886 = arith.addf %882, %885 : vector<2x64xf32>
    %887 = vector.extract_strided_slice %886 {offsets = [0, 0], sizes = [2, 32], strides = [1, 1]} : vector<2x64xf32> to vector<2x32xf32>
    %c0_1294 = arith.constant 0 : index
    %c0_1295 = arith.constant 0 : index
    %c9_1296 = arith.constant 9 : index
    %c320_1297 = arith.constant 320 : index
    %888 = vector.load %arg3[%c0_1294, %c0_1295, %c9_1296, %c320_1297] : memref<2x2x16x512xf32, #tpu.memory_space<vmem>>, vector<2x1x1x32xf32>
    %889 = vector.shape_cast %888 : vector<2x1x1x32xf32> to vector<2x32xf32>
    %890 = vector.shape_cast %887 : vector<2x32xf32> to vector<2x1x1x32xf32>
    tpu.vector_store %arg3[%c0_1294, %c0_1295, %c9_1296, %c320_1297], %890 {strides = array<i32>} : memref<2x2x16x512xf32, #tpu.memory_space<vmem>>, vector<2x1x1x32xf32>,
    %891 = vector.extract_strided_slice %886 {offsets = [0, 32], sizes = [2, 32], strides = [1, 1]} : vector<2x64xf32> to vector<2x32xf32>
    %c0_1298 = arith.constant 0 : index
    %c1_1299 = arith.constant 1 : index
    %c9_1300 = arith.constant 9 : index
    %c320_1301 = arith.constant 320 : index
    %892 = vector.load %arg3[%c0_1298, %c1_1299, %c9_1300, %c320_1301] : memref<2x2x16x512xf32, #tpu.memory_space<vmem>>, vector<2x1x1x32xf32>
    %893 = vector.shape_cast %892 : vector<2x1x1x32xf32> to vector<2x32xf32>
    %894 = vector.shape_cast %891 : vector<2x32xf32> to vector<2x1x1x32xf32>
    tpu.vector_store %arg3[%c0_1298, %c1_1299, %c9_1300, %c320_1301], %894 {strides = array<i32>} : memref<2x2x16x512xf32, #tpu.memory_space<vmem>>, vector<2x1x1x32xf32>,
    %c0_1302 = arith.constant 0 : index
    %c0_1303 = arith.constant 0 : index
    %c9_1304 = arith.constant 9 : index
    %c352_1305 = arith.constant 352 : index
    %895 = vector.load %arg1[%c0_1302, %c0_1303, %c9_1304, %c352_1305] : memref<2x2x16x512xf32, #tpu.memory_space<vmem>>, vector<2x1x1x32xf32>
    %896 = vector.shape_cast %895 : vector<2x1x1x32xf32> to vector<2x32xf32>
    %c0_1306 = arith.constant 0 : index
    %c1_1307 = arith.constant 1 : index
    %c9_1308 = arith.constant 9 : index
    %c352_1309 = arith.constant 352 : index
    %897 = vector.load %arg1[%c0_1306, %c1_1307, %c9_1308, %c352_1309] : memref<2x2x16x512xf32, #tpu.memory_space<vmem>>, vector<2x1x1x32xf32>
    %898 = vector.shape_cast %897 : vector<2x1x1x32xf32> to vector<2x32xf32>
    %c5_1310 = arith.constant 5 : index
    %c7_1311 = arith.constant 7 : index
    %c0_1312 = arith.constant 0 : index
    %c0_1313 = arith.constant 0 : index
    %c0_1314 = arith.constant 0 : index
    %899 = vector.load %arg2[%c5_1310, %c7_1311, %c0_1312, %c0_1313, %c0_1314] : memref<8x8x2x32x64xf32, #tpu.memory_space<vmem>>, vector<1x1x1x32x64xf32>
    %900 = vector.shape_cast %899 : vector<1x1x1x32x64xf32> to vector<32x64xf32>
    %cst_1315 = arith.constant dense<0.000000e+00> : vector<2x64xf32>
    %901 = tpu.matmul %896, %900, %cst_1315 {dimension_numbers = #tpu.dot_dimension_numbers<[1], [0], [0], [1], [0, 0, 1, 1], [], []>} : vector<2x32xf32>, vector<32x64xf32>, vector<2x64xf32> -> vector<2x64xf32>
    %c5_1316 = arith.constant 5 : index
    %c7_1317 = arith.constant 7 : index
    %c1_1318 = arith.constant 1 : index
    %c0_1319 = arith.constant 0 : index
    %c0_1320 = arith.constant 0 : index
    %902 = vector.load %arg2[%c5_1316, %c7_1317, %c1_1318, %c0_1319, %c0_1320] : memref<8x8x2x32x64xf32, #tpu.memory_space<vmem>>, vector<1x1x1x32x64xf32>
    %903 = vector.shape_cast %902 : vector<1x1x1x32x64xf32> to vector<32x64xf32>
    %cst_1321 = arith.constant dense<0.000000e+00> : vector<2x64xf32>
    %904 = tpu.matmul %898, %903, %cst_1321 {dimension_numbers = #tpu.dot_dimension_numbers<[1], [0], [0], [1], [0, 0, 1, 1], [], []>} : vector<2x32xf32>, vector<32x64xf32>, vector<2x64xf32> -> vector<2x64xf32>
    %905 = arith.addf %901, %904 : vector<2x64xf32>
    %906 = vector.extract_strided_slice %905 {offsets = [0, 0], sizes = [2, 32], strides = [1, 1]} : vector<2x64xf32> to vector<2x32xf32>
    %c0_1322 = arith.constant 0 : index
    %c0_1323 = arith.constant 0 : index
    %c9_1324 = arith.constant 9 : index
    %c352_1325 = arith.constant 352 : index
    %907 = vector.load %arg3[%c0_1322, %c0_1323, %c9_1324, %c352_1325] : memref<2x2x16x512xf32, #tpu.memory_space<vmem>>, vector<2x1x1x32xf32>
    %908 = vector.shape_cast %907 : vector<2x1x1x32xf32> to vector<2x32xf32>
    %909 = vector.shape_cast %906 : vector<2x32xf32> to vector<2x1x1x32xf32>
    tpu.vector_store %arg3[%c0_1322, %c0_1323, %c9_1324, %c352_1325], %909 {strides = array<i32>} : memref<2x2x16x512xf32, #tpu.memory_space<vmem>>, vector<2x1x1x32xf32>,
    %910 = vector.extract_strided_slice %905 {offsets = [0, 32], sizes = [2, 32], strides = [1, 1]} : vector<2x64xf32> to vector<2x32xf32>
    %c0_1326 = arith.constant 0 : index
    %c1_1327 = arith.constant 1 : index
    %c9_1328 = arith.constant 9 : index
    %c352_1329 = arith.constant 352 : index
    %911 = vector.load %arg3[%c0_1326, %c1_1327, %c9_1328, %c352_1329] : memref<2x2x16x512xf32, #tpu.memory_space<vmem>>, vector<2x1x1x32xf32>
    %912 = vector.shape_cast %911 : vector<2x1x1x32xf32> to vector<2x32xf32>
    %913 = vector.shape_cast %910 : vector<2x32xf32> to vector<2x1x1x32xf32>
    tpu.vector_store %arg3[%c0_1326, %c1_1327, %c9_1328, %c352_1329], %913 {strides = array<i32>} : memref<2x2x16x512xf32, #tpu.memory_space<vmem>>, vector<2x1x1x32xf32>,
    %c0_1330 = arith.constant 0 : index
    %c0_1331 = arith.constant 0 : index
    %c10 = arith.constant 10 : index
    %c128_1332 = arith.constant 128 : index
    %914 = vector.load %arg1[%c0_1330, %c0_1331, %c10, %c128_1332] : memref<2x2x16x512xf32, #tpu.memory_space<vmem>>, vector<2x1x1x32xf32>
    %915 = vector.shape_cast %914 : vector<2x1x1x32xf32> to vector<2x32xf32>
    %c0_1333 = arith.constant 0 : index
    %c1_1334 = arith.constant 1 : index
    %c10_1335 = arith.constant 10 : index
    %c128_1336 = arith.constant 128 : index
    %916 = vector.load %arg1[%c0_1333, %c1_1334, %c10_1335, %c128_1336] : memref<2x2x16x512xf32, #tpu.memory_space<vmem>>, vector<2x1x1x32xf32>
    %917 = vector.shape_cast %916 : vector<2x1x1x32xf32> to vector<2x32xf32>
    %c6_1337 = arith.constant 6 : index
    %c0_1338 = arith.constant 0 : index
    %c0_1339 = arith.constant 0 : index
    %c0_1340 = arith.constant 0 : index
    %c0_1341 = arith.constant 0 : index
    %918 = vector.load %arg2[%c6_1337, %c0_1338, %c0_1339, %c0_1340, %c0_1341] : memref<8x8x2x32x64xf32, #tpu.memory_space<vmem>>, vector<1x1x1x32x64xf32>
    %919 = vector.shape_cast %918 : vector<1x1x1x32x64xf32> to vector<32x64xf32>
    %cst_1342 = arith.constant dense<0.000000e+00> : vector<2x64xf32>
    %920 = tpu.matmul %915, %919, %cst_1342 {dimension_numbers = #tpu.dot_dimension_numbers<[1], [0], [0], [1], [0, 0, 1, 1], [], []>} : vector<2x32xf32>, vector<32x64xf32>, vector<2x64xf32> -> vector<2x64xf32>
    %c6_1343 = arith.constant 6 : index
    %c0_1344 = arith.constant 0 : index
    %c1_1345 = arith.constant 1 : index
    %c0_1346 = arith.constant 0 : index
    %c0_1347 = arith.constant 0 : index
    %921 = vector.load %arg2[%c6_1343, %c0_1344, %c1_1345, %c0_1346, %c0_1347] : memref<8x8x2x32x64xf32, #tpu.memory_space<vmem>>, vector<1x1x1x32x64xf32>
    %922 = vector.shape_cast %921 : vector<1x1x1x32x64xf32> to vector<32x64xf32>
    %cst_1348 = arith.constant dense<0.000000e+00> : vector<2x64xf32>
    %923 = tpu.matmul %917, %922, %cst_1348 {dimension_numbers = #tpu.dot_dimension_numbers<[1], [0], [0], [1], [0, 0, 1, 1], [], []>} : vector<2x32xf32>, vector<32x64xf32>, vector<2x64xf32> -> vector<2x64xf32>
    %924 = arith.addf %920, %923 : vector<2x64xf32>
    %925 = vector.extract_strided_slice %924 {offsets = [0, 0], sizes = [2, 32], strides = [1, 1]} : vector<2x64xf32> to vector<2x32xf32>
    %c0_1349 = arith.constant 0 : index
    %c0_1350 = arith.constant 0 : index
    %c10_1351 = arith.constant 10 : index
    %c128_1352 = arith.constant 128 : index
    %926 = vector.load %arg3[%c0_1349, %c0_1350, %c10_1351, %c128_1352] : memref<2x2x16x512xf32, #tpu.memory_space<vmem>>, vector<2x1x1x32xf32>
    %927 = vector.shape_cast %926 : vector<2x1x1x32xf32> to vector<2x32xf32>
    %928 = vector.shape_cast %925 : vector<2x32xf32> to vector<2x1x1x32xf32>
    tpu.vector_store %arg3[%c0_1349, %c0_1350, %c10_1351, %c128_1352], %928 {strides = array<i32>} : memref<2x2x16x512xf32, #tpu.memory_space<vmem>>, vector<2x1x1x32xf32>,
    %929 = vector.extract_strided_slice %924 {offsets = [0, 32], sizes = [2, 32], strides = [1, 1]} : vector<2x64xf32> to vector<2x32xf32>
    %c0_1353 = arith.constant 0 : index
    %c1_1354 = arith.constant 1 : index
    %c10_1355 = arith.constant 10 : index
    %c128_1356 = arith.constant 128 : index
    %930 = vector.load %arg3[%c0_1353, %c1_1354, %c10_1355, %c128_1356] : memref<2x2x16x512xf32, #tpu.memory_space<vmem>>, vector<2x1x1x32xf32>
    %931 = vector.shape_cast %930 : vector<2x1x1x32xf32> to vector<2x32xf32>
    %932 = vector.shape_cast %929 : vector<2x32xf32> to vector<2x1x1x32xf32>
    tpu.vector_store %arg3[%c0_1353, %c1_1354, %c10_1355, %c128_1356], %932 {strides = array<i32>} : memref<2x2x16x512xf32, #tpu.memory_space<vmem>>, vector<2x1x1x32xf32>,
    %c0_1357 = arith.constant 0 : index
    %c0_1358 = arith.constant 0 : index
    %c10_1359 = arith.constant 10 : index
    %c160_1360 = arith.constant 160 : index
    %933 = vector.load %arg1[%c0_1357, %c0_1358, %c10_1359, %c160_1360] : memref<2x2x16x512xf32, #tpu.memory_space<vmem>>, vector<2x1x1x32xf32>
    %934 = vector.shape_cast %933 : vector<2x1x1x32xf32> to vector<2x32xf32>
    %c0_1361 = arith.constant 0 : index
    %c1_1362 = arith.constant 1 : index
    %c10_1363 = arith.constant 10 : index
    %c160_1364 = arith.constant 160 : index
    %935 = vector.load %arg1[%c0_1361, %c1_1362, %c10_1363, %c160_1364] : memref<2x2x16x512xf32, #tpu.memory_space<vmem>>, vector<2x1x1x32xf32>
    %936 = vector.shape_cast %935 : vector<2x1x1x32xf32> to vector<2x32xf32>
    %c6_1365 = arith.constant 6 : index
    %c1_1366 = arith.constant 1 : index
    %c0_1367 = arith.constant 0 : index
    %c0_1368 = arith.constant 0 : index
    %c0_1369 = arith.constant 0 : index
    %937 = vector.load %arg2[%c6_1365, %c1_1366, %c0_1367, %c0_1368, %c0_1369] : memref<8x8x2x32x64xf32, #tpu.memory_space<vmem>>, vector<1x1x1x32x64xf32>
    %938 = vector.shape_cast %937 : vector<1x1x1x32x64xf32> to vector<32x64xf32>
    %cst_1370 = arith.constant dense<0.000000e+00> : vector<2x64xf32>
    %939 = tpu.matmul %934, %938, %cst_1370 {dimension_numbers = #tpu.dot_dimension_numbers<[1], [0], [0], [1], [0, 0, 1, 1], [], []>} : vector<2x32xf32>, vector<32x64xf32>, vector<2x64xf32> -> vector<2x64xf32>
    %c6_1371 = arith.constant 6 : index
    %c1_1372 = arith.constant 1 : index
    %c1_1373 = arith.constant 1 : index
    %c0_1374 = arith.constant 0 : index
    %c0_1375 = arith.constant 0 : index
    %940 = vector.load %arg2[%c6_1371, %c1_1372, %c1_1373, %c0_1374, %c0_1375] : memref<8x8x2x32x64xf32, #tpu.memory_space<vmem>>, vector<1x1x1x32x64xf32>
    %941 = vector.shape_cast %940 : vector<1x1x1x32x64xf32> to vector<32x64xf32>
    %cst_1376 = arith.constant dense<0.000000e+00> : vector<2x64xf32>
    %942 = tpu.matmul %936, %941, %cst_1376 {dimension_numbers = #tpu.dot_dimension_numbers<[1], [0], [0], [1], [0, 0, 1, 1], [], []>} : vector<2x32xf32>, vector<32x64xf32>, vector<2x64xf32> -> vector<2x64xf32>
    %943 = arith.addf %939, %942 : vector<2x64xf32>
    %944 = vector.extract_strided_slice %943 {offsets = [0, 0], sizes = [2, 32], strides = [1, 1]} : vector<2x64xf32> to vector<2x32xf32>
    %c0_1377 = arith.constant 0 : index
    %c0_1378 = arith.constant 0 : index
    %c10_1379 = arith.constant 10 : index
    %c160_1380 = arith.constant 160 : index
    %945 = vector.load %arg3[%c0_1377, %c0_1378, %c10_1379, %c160_1380] : memref<2x2x16x512xf32, #tpu.memory_space<vmem>>, vector<2x1x1x32xf32>
    %946 = vector.shape_cast %945 : vector<2x1x1x32xf32> to vector<2x32xf32>
    %947 = vector.shape_cast %944 : vector<2x32xf32> to vector<2x1x1x32xf32>
    tpu.vector_store %arg3[%c0_1377, %c0_1378, %c10_1379, %c160_1380], %947 {strides = array<i32>} : memref<2x2x16x512xf32, #tpu.memory_space<vmem>>, vector<2x1x1x32xf32>,
    %948 = vector.extract_strided_slice %943 {offsets = [0, 32], sizes = [2, 32], strides = [1, 1]} : vector<2x64xf32> to vector<2x32xf32>
    %c0_1381 = arith.constant 0 : index
    %c1_1382 = arith.constant 1 : index
    %c10_1383 = arith.constant 10 : index
    %c160_1384 = arith.constant 160 : index
    %949 = vector.load %arg3[%c0_1381, %c1_1382, %c10_1383, %c160_1384] : memref<2x2x16x512xf32, #tpu.memory_space<vmem>>, vector<2x1x1x32xf32>
    %950 = vector.shape_cast %949 : vector<2x1x1x32xf32> to vector<2x32xf32>
    %951 = vector.shape_cast %948 : vector<2x32xf32> to vector<2x1x1x32xf32>
    tpu.vector_store %arg3[%c0_1381, %c1_1382, %c10_1383, %c160_1384], %951 {strides = array<i32>} : memref<2x2x16x512xf32, #tpu.memory_space<vmem>>, vector<2x1x1x32xf32>,
    %c0_1385 = arith.constant 0 : index
    %c0_1386 = arith.constant 0 : index
    %c10_1387 = arith.constant 10 : index
    %c192_1388 = arith.constant 192 : index
    %952 = vector.load %arg1[%c0_1385, %c0_1386, %c10_1387, %c192_1388] : memref<2x2x16x512xf32, #tpu.memory_space<vmem>>, vector<2x1x1x32xf32>
    %953 = vector.shape_cast %952 : vector<2x1x1x32xf32> to vector<2x32xf32>
    %c0_1389 = arith.constant 0 : index
    %c1_1390 = arith.constant 1 : index
    %c10_1391 = arith.constant 10 : index
    %c192_1392 = arith.constant 192 : index
    %954 = vector.load %arg1[%c0_1389, %c1_1390, %c10_1391, %c192_1392] : memref<2x2x16x512xf32, #tpu.memory_space<vmem>>, vector<2x1x1x32xf32>
    %955 = vector.shape_cast %954 : vector<2x1x1x32xf32> to vector<2x32xf32>
    %c6_1393 = arith.constant 6 : index
    %c2_1394 = arith.constant 2 : index
    %c0_1395 = arith.constant 0 : index
    %c0_1396 = arith.constant 0 : index
    %c0_1397 = arith.constant 0 : index
    %956 = vector.load %arg2[%c6_1393, %c2_1394, %c0_1395, %c0_1396, %c0_1397] : memref<8x8x2x32x64xf32, #tpu.memory_space<vmem>>, vector<1x1x1x32x64xf32>
    %957 = vector.shape_cast %956 : vector<1x1x1x32x64xf32> to vector<32x64xf32>
    %cst_1398 = arith.constant dense<0.000000e+00> : vector<2x64xf32>
    %958 = tpu.matmul %953, %957, %cst_1398 {dimension_numbers = #tpu.dot_dimension_numbers<[1], [0], [0], [1], [0, 0, 1, 1], [], []>} : vector<2x32xf32>, vector<32x64xf32>, vector<2x64xf32> -> vector<2x64xf32>
    %c6_1399 = arith.constant 6 : index
    %c2_1400 = arith.constant 2 : index
    %c1_1401 = arith.constant 1 : index
    %c0_1402 = arith.constant 0 : index
    %c0_1403 = arith.constant 0 : index
    %959 = vector.load %arg2[%c6_1399, %c2_1400, %c1_1401, %c0_1402, %c0_1403] : memref<8x8x2x32x64xf32, #tpu.memory_space<vmem>>, vector<1x1x1x32x64xf32>
    %960 = vector.shape_cast %959 : vector<1x1x1x32x64xf32> to vector<32x64xf32>
    %cst_1404 = arith.constant dense<0.000000e+00> : vector<2x64xf32>
    %961 = tpu.matmul %955, %960, %cst_1404 {dimension_numbers = #tpu.dot_dimension_numbers<[1], [0], [0], [1], [0, 0, 1, 1], [], []>} : vector<2x32xf32>, vector<32x64xf32>, vector<2x64xf32> -> vector<2x64xf32>
    %962 = arith.addf %958, %961 : vector<2x64xf32>
    %963 = vector.extract_strided_slice %962 {offsets = [0, 0], sizes = [2, 32], strides = [1, 1]} : vector<2x64xf32> to vector<2x32xf32>
    %c0_1405 = arith.constant 0 : index
    %c0_1406 = arith.constant 0 : index
    %c10_1407 = arith.constant 10 : index
    %c192_1408 = arith.constant 192 : index
    %964 = vector.load %arg3[%c0_1405, %c0_1406, %c10_1407, %c192_1408] : memref<2x2x16x512xf32, #tpu.memory_space<vmem>>, vector<2x1x1x32xf32>
    %965 = vector.shape_cast %964 : vector<2x1x1x32xf32> to vector<2x32xf32>
    %966 = vector.shape_cast %963 : vector<2x32xf32> to vector<2x1x1x32xf32>
    tpu.vector_store %arg3[%c0_1405, %c0_1406, %c10_1407, %c192_1408], %966 {strides = array<i32>} : memref<2x2x16x512xf32, #tpu.memory_space<vmem>>, vector<2x1x1x32xf32>,
    %967 = vector.extract_strided_slice %962 {offsets = [0, 32], sizes = [2, 32], strides = [1, 1]} : vector<2x64xf32> to vector<2x32xf32>
    %c0_1409 = arith.constant 0 : index
    %c1_1410 = arith.constant 1 : index
    %c10_1411 = arith.constant 10 : index
    %c192_1412 = arith.constant 192 : index
    %968 = vector.load %arg3[%c0_1409, %c1_1410, %c10_1411, %c192_1412] : memref<2x2x16x512xf32, #tpu.memory_space<vmem>>, vector<2x1x1x32xf32>
    %969 = vector.shape_cast %968 : vector<2x1x1x32xf32> to vector<2x32xf32>
    %970 = vector.shape_cast %967 : vector<2x32xf32> to vector<2x1x1x32xf32>
    tpu.vector_store %arg3[%c0_1409, %c1_1410, %c10_1411, %c192_1412], %970 {strides = array<i32>} : memref<2x2x16x512xf32, #tpu.memory_space<vmem>>, vector<2x1x1x32xf32>,
    %c0_1413 = arith.constant 0 : index
    %c0_1414 = arith.constant 0 : index
    %c10_1415 = arith.constant 10 : index
    %c224_1416 = arith.constant 224 : index
    %971 = vector.load %arg1[%c0_1413, %c0_1414, %c10_1415, %c224_1416] : memref<2x2x16x512xf32, #tpu.memory_space<vmem>>, vector<2x1x1x32xf32>
    %972 = vector.shape_cast %971 : vector<2x1x1x32xf32> to vector<2x32xf32>
    %c0_1417 = arith.constant 0 : index
    %c1_1418 = arith.constant 1 : index
    %c10_1419 = arith.constant 10 : index
    %c224_1420 = arith.constant 224 : index
    %973 = vector.load %arg1[%c0_1417, %c1_1418, %c10_1419, %c224_1420] : memref<2x2x16x512xf32, #tpu.memory_space<vmem>>, vector<2x1x1x32xf32>
    %974 = vector.shape_cast %973 : vector<2x1x1x32xf32> to vector<2x32xf32>
    %c6_1421 = arith.constant 6 : index
    %c3_1422 = arith.constant 3 : index
    %c0_1423 = arith.constant 0 : index
    %c0_1424 = arith.constant 0 : index
    %c0_1425 = arith.constant 0 : index
    %975 = vector.load %arg2[%c6_1421, %c3_1422, %c0_1423, %c0_1424, %c0_1425] : memref<8x8x2x32x64xf32, #tpu.memory_space<vmem>>, vector<1x1x1x32x64xf32>
    %976 = vector.shape_cast %975 : vector<1x1x1x32x64xf32> to vector<32x64xf32>
    %cst_1426 = arith.constant dense<0.000000e+00> : vector<2x64xf32>
    %977 = tpu.matmul %972, %976, %cst_1426 {dimension_numbers = #tpu.dot_dimension_numbers<[1], [0], [0], [1], [0, 0, 1, 1], [], []>} : vector<2x32xf32>, vector<32x64xf32>, vector<2x64xf32> -> vector<2x64xf32>
    %c6_1427 = arith.constant 6 : index
    %c3_1428 = arith.constant 3 : index
    %c1_1429 = arith.constant 1 : index
    %c0_1430 = arith.constant 0 : index
    %c0_1431 = arith.constant 0 : index
    %978 = vector.load %arg2[%c6_1427, %c3_1428, %c1_1429, %c0_1430, %c0_1431] : memref<8x8x2x32x64xf32, #tpu.memory_space<vmem>>, vector<1x1x1x32x64xf32>
    %979 = vector.shape_cast %978 : vector<1x1x1x32x64xf32> to vector<32x64xf32>
    %cst_1432 = arith.constant dense<0.000000e+00> : vector<2x64xf32>
    %980 = tpu.matmul %974, %979, %cst_1432 {dimension_numbers = #tpu.dot_dimension_numbers<[1], [0], [0], [1], [0, 0, 1, 1], [], []>} : vector<2x32xf32>, vector<32x64xf32>, vector<2x64xf32> -> vector<2x64xf32>
    %981 = arith.addf %977, %980 : vector<2x64xf32>
    %982 = vector.extract_strided_slice %981 {offsets = [0, 0], sizes = [2, 32], strides = [1, 1]} : vector<2x64xf32> to vector<2x32xf32>
    %c0_1433 = arith.constant 0 : index
    %c0_1434 = arith.constant 0 : index
    %c10_1435 = arith.constant 10 : index
    %c224_1436 = arith.constant 224 : index
    %983 = vector.load %arg3[%c0_1433, %c0_1434, %c10_1435, %c224_1436] : memref<2x2x16x512xf32, #tpu.memory_space<vmem>>, vector<2x1x1x32xf32>
    %984 = vector.shape_cast %983 : vector<2x1x1x32xf32> to vector<2x32xf32>
    %985 = vector.shape_cast %982 : vector<2x32xf32> to vector<2x1x1x32xf32>
    tpu.vector_store %arg3[%c0_1433, %c0_1434, %c10_1435, %c224_1436], %985 {strides = array<i32>} : memref<2x2x16x512xf32, #tpu.memory_space<vmem>>, vector<2x1x1x32xf32>,
    %986 = vector.extract_strided_slice %981 {offsets = [0, 32], sizes = [2, 32], strides = [1, 1]} : vector<2x64xf32> to vector<2x32xf32>
    %c0_1437 = arith.constant 0 : index
    %c1_1438 = arith.constant 1 : index
    %c10_1439 = arith.constant 10 : index
    %c224_1440 = arith.constant 224 : index
    %987 = vector.load %arg3[%c0_1437, %c1_1438, %c10_1439, %c224_1440] : memref<2x2x16x512xf32, #tpu.memory_space<vmem>>, vector<2x1x1x32xf32>
    %988 = vector.shape_cast %987 : vector<2x1x1x32xf32> to vector<2x32xf32>
    %989 = vector.shape_cast %986 : vector<2x32xf32> to vector<2x1x1x32xf32>
    tpu.vector_store %arg3[%c0_1437, %c1_1438, %c10_1439, %c224_1440], %989 {strides = array<i32>} : memref<2x2x16x512xf32, #tpu.memory_space<vmem>>, vector<2x1x1x32xf32>,
    %c0_1441 = arith.constant 0 : index
    %c0_1442 = arith.constant 0 : index
    %c10_1443 = arith.constant 10 : index
    %c256_1444 = arith.constant 256 : index
    %990 = vector.load %arg1[%c0_1441, %c0_1442, %c10_1443, %c256_1444] : memref<2x2x16x512xf32, #tpu.memory_space<vmem>>, vector<2x1x1x32xf32>
    %991 = vector.shape_cast %990 : vector<2x1x1x32xf32> to vector<2x32xf32>
    %c0_1445 = arith.constant 0 : index
    %c1_1446 = arith.constant 1 : index
    %c10_1447 = arith.constant 10 : index
    %c256_1448 = arith.constant 256 : index
    %992 = vector.load %arg1[%c0_1445, %c1_1446, %c10_1447, %c256_1448] : memref<2x2x16x512xf32, #tpu.memory_space<vmem>>, vector<2x1x1x32xf32>
    %993 = vector.shape_cast %992 : vector<2x1x1x32xf32> to vector<2x32xf32>
    %c6_1449 = arith.constant 6 : index
    %c4_1450 = arith.constant 4 : index
    %c0_1451 = arith.constant 0 : index
    %c0_1452 = arith.constant 0 : index
    %c0_1453 = arith.constant 0 : index
    %994 = vector.load %arg2[%c6_1449, %c4_1450, %c0_1451, %c0_1452, %c0_1453] : memref<8x8x2x32x64xf32, #tpu.memory_space<vmem>>, vector<1x1x1x32x64xf32>
    %995 = vector.shape_cast %994 : vector<1x1x1x32x64xf32> to vector<32x64xf32>
    %cst_1454 = arith.constant dense<0.000000e+00> : vector<2x64xf32>
    %996 = tpu.matmul %991, %995, %cst_1454 {dimension_numbers = #tpu.dot_dimension_numbers<[1], [0], [0], [1], [0, 0, 1, 1], [], []>} : vector<2x32xf32>, vector<32x64xf32>, vector<2x64xf32> -> vector<2x64xf32>
    %c6_1455 = arith.constant 6 : index
    %c4_1456 = arith.constant 4 : index
    %c1_1457 = arith.constant 1 : index
    %c0_1458 = arith.constant 0 : index
    %c0_1459 = arith.constant 0 : index
    %997 = vector.load %arg2[%c6_1455, %c4_1456, %c1_1457, %c0_1458, %c0_1459] : memref<8x8x2x32x64xf32, #tpu.memory_space<vmem>>, vector<1x1x1x32x64xf32>
    %998 = vector.shape_cast %997 : vector<1x1x1x32x64xf32> to vector<32x64xf32>
    %cst_1460 = arith.constant dense<0.000000e+00> : vector<2x64xf32>
    %999 = tpu.matmul %993, %998, %cst_1460 {dimension_numbers = #tpu.dot_dimension_numbers<[1], [0], [0], [1], [0, 0, 1, 1], [], []>} : vector<2x32xf32>, vector<32x64xf32>, vector<2x64xf32> -> vector<2x64xf32>
    %1000 = arith.addf %996, %999 : vector<2x64xf32>
    %1001 = vector.extract_strided_slice %1000 {offsets = [0, 0], sizes = [2, 32], strides = [1, 1]} : vector<2x64xf32> to vector<2x32xf32>
    %c0_1461 = arith.constant 0 : index
    %c0_1462 = arith.constant 0 : index
    %c10_1463 = arith.constant 10 : index
    %c256_1464 = arith.constant 256 : index
    %1002 = vector.load %arg3[%c0_1461, %c0_1462, %c10_1463, %c256_1464] : memref<2x2x16x512xf32, #tpu.memory_space<vmem>>, vector<2x1x1x32xf32>
    %1003 = vector.shape_cast %1002 : vector<2x1x1x32xf32> to vector<2x32xf32>
    %1004 = vector.shape_cast %1001 : vector<2x32xf32> to vector<2x1x1x32xf32>
    tpu.vector_store %arg3[%c0_1461, %c0_1462, %c10_1463, %c256_1464], %1004 {strides = array<i32>} : memref<2x2x16x512xf32, #tpu.memory_space<vmem>>, vector<2x1x1x32xf32>,
    %1005 = vector.extract_strided_slice %1000 {offsets = [0, 32], sizes = [2, 32], strides = [1, 1]} : vector<2x64xf32> to vector<2x32xf32>
    %c0_1465 = arith.constant 0 : index
    %c1_1466 = arith.constant 1 : index
    %c10_1467 = arith.constant 10 : index
    %c256_1468 = arith.constant 256 : index
    %1006 = vector.load %arg3[%c0_1465, %c1_1466, %c10_1467, %c256_1468] : memref<2x2x16x512xf32, #tpu.memory_space<vmem>>, vector<2x1x1x32xf32>
    %1007 = vector.shape_cast %1006 : vector<2x1x1x32xf32> to vector<2x32xf32>
    %1008 = vector.shape_cast %1005 : vector<2x32xf32> to vector<2x1x1x32xf32>
    tpu.vector_store %arg3[%c0_1465, %c1_1466, %c10_1467, %c256_1468], %1008 {strides = array<i32>} : memref<2x2x16x512xf32, #tpu.memory_space<vmem>>, vector<2x1x1x32xf32>,
    %c0_1469 = arith.constant 0 : index
    %c0_1470 = arith.constant 0 : index
    %c10_1471 = arith.constant 10 : index
    %c288_1472 = arith.constant 288 : index
    %1009 = vector.load %arg1[%c0_1469, %c0_1470, %c10_1471, %c288_1472] : memref<2x2x16x512xf32, #tpu.memory_space<vmem>>, vector<2x1x1x32xf32>
    %1010 = vector.shape_cast %1009 : vector<2x1x1x32xf32> to vector<2x32xf32>
    %c0_1473 = arith.constant 0 : index
    %c1_1474 = arith.constant 1 : index
    %c10_1475 = arith.constant 10 : index
    %c288_1476 = arith.constant 288 : index
    %1011 = vector.load %arg1[%c0_1473, %c1_1474, %c10_1475, %c288_1476] : memref<2x2x16x512xf32, #tpu.memory_space<vmem>>, vector<2x1x1x32xf32>
    %1012 = vector.shape_cast %1011 : vector<2x1x1x32xf32> to vector<2x32xf32>
    %c6_1477 = arith.constant 6 : index
    %c5_1478 = arith.constant 5 : index
    %c0_1479 = arith.constant 0 : index
    %c0_1480 = arith.constant 0 : index
    %c0_1481 = arith.constant 0 : index
    %1013 = vector.load %arg2[%c6_1477, %c5_1478, %c0_1479, %c0_1480, %c0_1481] : memref<8x8x2x32x64xf32, #tpu.memory_space<vmem>>, vector<1x1x1x32x64xf32>
    %1014 = vector.shape_cast %1013 : vector<1x1x1x32x64xf32> to vector<32x64xf32>
    %cst_1482 = arith.constant dense<0.000000e+00> : vector<2x64xf32>
    %1015 = tpu.matmul %1010, %1014, %cst_1482 {dimension_numbers = #tpu.dot_dimension_numbers<[1], [0], [0], [1], [0, 0, 1, 1], [], []>} : vector<2x32xf32>, vector<32x64xf32>, vector<2x64xf32> -> vector<2x64xf32>
    %c6_1483 = arith.constant 6 : index
    %c5_1484 = arith.constant 5 : index
    %c1_1485 = arith.constant 1 : index
    %c0_1486 = arith.constant 0 : index
    %c0_1487 = arith.constant 0 : index
    %1016 = vector.load %arg2[%c6_1483, %c5_1484, %c1_1485, %c0_1486, %c0_1487] : memref<8x8x2x32x64xf32, #tpu.memory_space<vmem>>, vector<1x1x1x32x64xf32>
    %1017 = vector.shape_cast %1016 : vector<1x1x1x32x64xf32> to vector<32x64xf32>
    %cst_1488 = arith.constant dense<0.000000e+00> : vector<2x64xf32>
    %1018 = tpu.matmul %1012, %1017, %cst_1488 {dimension_numbers = #tpu.dot_dimension_numbers<[1], [0], [0], [1], [0, 0, 1, 1], [], []>} : vector<2x32xf32>, vector<32x64xf32>, vector<2x64xf32> -> vector<2x64xf32>
    %1019 = arith.addf %1015, %1018 : vector<2x64xf32>
    %1020 = vector.extract_strided_slice %1019 {offsets = [0, 0], sizes = [2, 32], strides = [1, 1]} : vector<2x64xf32> to vector<2x32xf32>
    %c0_1489 = arith.constant 0 : index
    %c0_1490 = arith.constant 0 : index
    %c10_1491 = arith.constant 10 : index
    %c288_1492 = arith.constant 288 : index
    %1021 = vector.load %arg3[%c0_1489, %c0_1490, %c10_1491, %c288_1492] : memref<2x2x16x512xf32, #tpu.memory_space<vmem>>, vector<2x1x1x32xf32>
    %1022 = vector.shape_cast %1021 : vector<2x1x1x32xf32> to vector<2x32xf32>
    %1023 = vector.shape_cast %1020 : vector<2x32xf32> to vector<2x1x1x32xf32>
    tpu.vector_store %arg3[%c0_1489, %c0_1490, %c10_1491, %c288_1492], %1023 {strides = array<i32>} : memref<2x2x16x512xf32, #tpu.memory_space<vmem>>, vector<2x1x1x32xf32>,
    %1024 = vector.extract_strided_slice %1019 {offsets = [0, 32], sizes = [2, 32], strides = [1, 1]} : vector<2x64xf32> to vector<2x32xf32>
    %c0_1493 = arith.constant 0 : index
    %c1_1494 = arith.constant 1 : index
    %c10_1495 = arith.constant 10 : index
    %c288_1496 = arith.constant 288 : index
    %1025 = vector.load %arg3[%c0_1493, %c1_1494, %c10_1495, %c288_1496] : memref<2x2x16x512xf32, #tpu.memory_space<vmem>>, vector<2x1x1x32xf32>
    %1026 = vector.shape_cast %1025 : vector<2x1x1x32xf32> to vector<2x32xf32>
    %1027 = vector.shape_cast %1024 : vector<2x32xf32> to vector<2x1x1x32xf32>
    tpu.vector_store %arg3[%c0_1493, %c1_1494, %c10_1495, %c288_1496], %1027 {strides = array<i32>} : memref<2x2x16x512xf32, #tpu.memory_space<vmem>>, vector<2x1x1x32xf32>,
    %c0_1497 = arith.constant 0 : index
    %c0_1498 = arith.constant 0 : index
    %c10_1499 = arith.constant 10 : index
    %c320_1500 = arith.constant 320 : index
    %1028 = vector.load %arg1[%c0_1497, %c0_1498, %c10_1499, %c320_1500] : memref<2x2x16x512xf32, #tpu.memory_space<vmem>>, vector<2x1x1x32xf32>
    %1029 = vector.shape_cast %1028 : vector<2x1x1x32xf32> to vector<2x32xf32>
    %c0_1501 = arith.constant 0 : index
    %c1_1502 = arith.constant 1 : index
    %c10_1503 = arith.constant 10 : index
    %c320_1504 = arith.constant 320 : index
    %1030 = vector.load %arg1[%c0_1501, %c1_1502, %c10_1503, %c320_1504] : memref<2x2x16x512xf32, #tpu.memory_space<vmem>>, vector<2x1x1x32xf32>
    %1031 = vector.shape_cast %1030 : vector<2x1x1x32xf32> to vector<2x32xf32>
    %c6_1505 = arith.constant 6 : index
    %c6_1506 = arith.constant 6 : index
    %c0_1507 = arith.constant 0 : index
    %c0_1508 = arith.constant 0 : index
    %c0_1509 = arith.constant 0 : index
    %1032 = vector.load %arg2[%c6_1505, %c6_1506, %c0_1507, %c0_1508, %c0_1509] : memref<8x8x2x32x64xf32, #tpu.memory_space<vmem>>, vector<1x1x1x32x64xf32>
    %1033 = vector.shape_cast %1032 : vector<1x1x1x32x64xf32> to vector<32x64xf32>
    %cst_1510 = arith.constant dense<0.000000e+00> : vector<2x64xf32>
    %1034 = tpu.matmul %1029, %1033, %cst_1510 {dimension_numbers = #tpu.dot_dimension_numbers<[1], [0], [0], [1], [0, 0, 1, 1], [], []>} : vector<2x32xf32>, vector<32x64xf32>, vector<2x64xf32> -> vector<2x64xf32>
    %c6_1511 = arith.constant 6 : index
    %c6_1512 = arith.constant 6 : index
    %c1_1513 = arith.constant 1 : index
    %c0_1514 = arith.constant 0 : index
    %c0_1515 = arith.constant 0 : index
    %1035 = vector.load %arg2[%c6_1511, %c6_1512, %c1_1513, %c0_1514, %c0_1515] : memref<8x8x2x32x64xf32, #tpu.memory_space<vmem>>, vector<1x1x1x32x64xf32>
    %1036 = vector.shape_cast %1035 : vector<1x1x1x32x64xf32> to vector<32x64xf32>
    %cst_1516 = arith.constant dense<0.000000e+00> : vector<2x64xf32>
    %1037 = tpu.matmul %1031, %1036, %cst_1516 {dimension_numbers = #tpu.dot_dimension_numbers<[1], [0], [0], [1], [0, 0, 1, 1], [], []>} : vector<2x32xf32>, vector<32x64xf32>, vector<2x64xf32> -> vector<2x64xf32>
    %1038 = arith.addf %1034, %1037 : vector<2x64xf32>
    %1039 = vector.extract_strided_slice %1038 {offsets = [0, 0], sizes = [2, 32], strides = [1, 1]} : vector<2x64xf32> to vector<2x32xf32>
    %c0_1517 = arith.constant 0 : index
    %c0_1518 = arith.constant 0 : index
    %c10_1519 = arith.constant 10 : index
    %c320_1520 = arith.constant 320 : index
    %1040 = vector.load %arg3[%c0_1517, %c0_1518, %c10_1519, %c320_1520] : memref<2x2x16x512xf32, #tpu.memory_space<vmem>>, vector<2x1x1x32xf32>
    %1041 = vector.shape_cast %1040 : vector<2x1x1x32xf32> to vector<2x32xf32>
    %1042 = vector.shape_cast %1039 : vector<2x32xf32> to vector<2x1x1x32xf32>
    tpu.vector_store %arg3[%c0_1517, %c0_1518, %c10_1519, %c320_1520], %1042 {strides = array<i32>} : memref<2x2x16x512xf32, #tpu.memory_space<vmem>>, vector<2x1x1x32xf32>,
    %1043 = vector.extract_strided_slice %1038 {offsets = [0, 32], sizes = [2, 32], strides = [1, 1]} : vector<2x64xf32> to vector<2x32xf32>
    %c0_1521 = arith.constant 0 : index
    %c1_1522 = arith.constant 1 : index
    %c10_1523 = arith.constant 10 : index
    %c320_1524 = arith.constant 320 : index
    %1044 = vector.load %arg3[%c0_1521, %c1_1522, %c10_1523, %c320_1524] : memref<2x2x16x512xf32, #tpu.memory_space<vmem>>, vector<2x1x1x32xf32>
    %1045 = vector.shape_cast %1044 : vector<2x1x1x32xf32> to vector<2x32xf32>
    %1046 = vector.shape_cast %1043 : vector<2x32xf32> to vector<2x1x1x32xf32>
    tpu.vector_store %arg3[%c0_1521, %c1_1522, %c10_1523, %c320_1524], %1046 {strides = array<i32>} : memref<2x2x16x512xf32, #tpu.memory_space<vmem>>, vector<2x1x1x32xf32>,
    %c0_1525 = arith.constant 0 : index
    %c0_1526 = arith.constant 0 : index
    %c10_1527 = arith.constant 10 : index
    %c352_1528 = arith.constant 352 : index
    %1047 = vector.load %arg1[%c0_1525, %c0_1526, %c10_1527, %c352_1528] : memref<2x2x16x512xf32, #tpu.memory_space<vmem>>, vector<2x1x1x32xf32>
    %1048 = vector.shape_cast %1047 : vector<2x1x1x32xf32> to vector<2x32xf32>
    %c0_1529 = arith.constant 0 : index
    %c1_1530 = arith.constant 1 : index
    %c10_1531 = arith.constant 10 : index
    %c352_1532 = arith.constant 352 : index
    %1049 = vector.load %arg1[%c0_1529, %c1_1530, %c10_1531, %c352_1532] : memref<2x2x16x512xf32, #tpu.memory_space<vmem>>, vector<2x1x1x32xf32>
    %1050 = vector.shape_cast %1049 : vector<2x1x1x32xf32> to vector<2x32xf32>
    %c6_1533 = arith.constant 6 : index
    %c7_1534 = arith.constant 7 : index
    %c0_1535 = arith.constant 0 : index
    %c0_1536 = arith.constant 0 : index
    %c0_1537 = arith.constant 0 : index
    %1051 = vector.load %arg2[%c6_1533, %c7_1534, %c0_1535, %c0_1536, %c0_1537] : memref<8x8x2x32x64xf32, #tpu.memory_space<vmem>>, vector<1x1x1x32x64xf32>
    %1052 = vector.shape_cast %1051 : vector<1x1x1x32x64xf32> to vector<32x64xf32>
    %cst_1538 = arith.constant dense<0.000000e+00> : vector<2x64xf32>
    %1053 = tpu.matmul %1048, %1052, %cst_1538 {dimension_numbers = #tpu.dot_dimension_numbers<[1], [0], [0], [1], [0, 0, 1, 1], [], []>} : vector<2x32xf32>, vector<32x64xf32>, vector<2x64xf32> -> vector<2x64xf32>
    %c6_1539 = arith.constant 6 : index
    %c7_1540 = arith.constant 7 : index
    %c1_1541 = arith.constant 1 : index
    %c0_1542 = arith.constant 0 : index
    %c0_1543 = arith.constant 0 : index
    %1054 = vector.load %arg2[%c6_1539, %c7_1540, %c1_1541, %c0_1542, %c0_1543] : memref<8x8x2x32x64xf32, #tpu.memory_space<vmem>>, vector<1x1x1x32x64xf32>
    %1055 = vector.shape_cast %1054 : vector<1x1x1x32x64xf32> to vector<32x64xf32>
    %cst_1544 = arith.constant dense<0.000000e+00> : vector<2x64xf32>
    %1056 = tpu.matmul %1050, %1055, %cst_1544 {dimension_numbers = #tpu.dot_dimension_numbers<[1], [0], [0], [1], [0, 0, 1, 1], [], []>} : vector<2x32xf32>, vector<32x64xf32>, vector<2x64xf32> -> vector<2x64xf32>
    %1057 = arith.addf %1053, %1056 : vector<2x64xf32>
    %1058 = vector.extract_strided_slice %1057 {offsets = [0, 0], sizes = [2, 32], strides = [1, 1]} : vector<2x64xf32> to vector<2x32xf32>
    %c0_1545 = arith.constant 0 : index
    %c0_1546 = arith.constant 0 : index
    %c10_1547 = arith.constant 10 : index
    %c352_1548 = arith.constant 352 : index
    %1059 = vector.load %arg3[%c0_1545, %c0_1546, %c10_1547, %c352_1548] : memref<2x2x16x512xf32, #tpu.memory_space<vmem>>, vector<2x1x1x32xf32>
    %1060 = vector.shape_cast %1059 : vector<2x1x1x32xf32> to vector<2x32xf32>
    %1061 = vector.shape_cast %1058 : vector<2x32xf32> to vector<2x1x1x32xf32>
    tpu.vector_store %arg3[%c0_1545, %c0_1546, %c10_1547, %c352_1548], %1061 {strides = array<i32>} : memref<2x2x16x512xf32, #tpu.memory_space<vmem>>, vector<2x1x1x32xf32>,
    %1062 = vector.extract_strided_slice %1057 {offsets = [0, 32], sizes = [2, 32], strides = [1, 1]} : vector<2x64xf32> to vector<2x32xf32>
    %c0_1549 = arith.constant 0 : index
    %c1_1550 = arith.constant 1 : index
    %c10_1551 = arith.constant 10 : index
    %c352_1552 = arith.constant 352 : index
    %1063 = vector.load %arg3[%c0_1549, %c1_1550, %c10_1551, %c352_1552] : memref<2x2x16x512xf32, #tpu.memory_space<vmem>>, vector<2x1x1x32xf32>
    %1064 = vector.shape_cast %1063 : vector<2x1x1x32xf32> to vector<2x32xf32>
    %1065 = vector.shape_cast %1062 : vector<2x32xf32> to vector<2x1x1x32xf32>
    tpu.vector_store %arg3[%c0_1549, %c1_1550, %c10_1551, %c352_1552], %1065 {strides = array<i32>} : memref<2x2x16x512xf32, #tpu.memory_space<vmem>>, vector<2x1x1x32xf32>,
    %c0_1553 = arith.constant 0 : index
    %c0_1554 = arith.constant 0 : index
    %c11 = arith.constant 11 : index
    %c128_1555 = arith.constant 128 : index
    %1066 = vector.load %arg1[%c0_1553, %c0_1554, %c11, %c128_1555] : memref<2x2x16x512xf32, #tpu.memory_space<vmem>>, vector<2x1x1x32xf32>
    %1067 = vector.shape_cast %1066 : vector<2x1x1x32xf32> to vector<2x32xf32>
    %c0_1556 = arith.constant 0 : index
    %c1_1557 = arith.constant 1 : index
    %c11_1558 = arith.constant 11 : index
    %c128_1559 = arith.constant 128 : index
    %1068 = vector.load %arg1[%c0_1556, %c1_1557, %c11_1558, %c128_1559] : memref<2x2x16x512xf32, #tpu.memory_space<vmem>>, vector<2x1x1x32xf32>
    %1069 = vector.shape_cast %1068 : vector<2x1x1x32xf32> to vector<2x32xf32>
    %c7_1560 = arith.constant 7 : index
    %c0_1561 = arith.constant 0 : index
    %c0_1562 = arith.constant 0 : index
    %c0_1563 = arith.constant 0 : index
    %c0_1564 = arith.constant 0 : index
    %1070 = vector.load %arg2[%c7_1560, %c0_1561, %c0_1562, %c0_1563, %c0_1564] : memref<8x8x2x32x64xf32, #tpu.memory_space<vmem>>, vector<1x1x1x32x64xf32>
    %1071 = vector.shape_cast %1070 : vector<1x1x1x32x64xf32> to vector<32x64xf32>
    %cst_1565 = arith.constant dense<0.000000e+00> : vector<2x64xf32>
    %1072 = tpu.matmul %1067, %1071, %cst_1565 {dimension_numbers = #tpu.dot_dimension_numbers<[1], [0], [0], [1], [0, 0, 1, 1], [], []>} : vector<2x32xf32>, vector<32x64xf32>, vector<2x64xf32> -> vector<2x64xf32>
    %c7_1566 = arith.constant 7 : index
    %c0_1567 = arith.constant 0 : index
    %c1_1568 = arith.constant 1 : index
    %c0_1569 = arith.constant 0 : index
    %c0_1570 = arith.constant 0 : index
    %1073 = vector.load %arg2[%c7_1566, %c0_1567, %c1_1568, %c0_1569, %c0_1570] : memref<8x8x2x32x64xf32, #tpu.memory_space<vmem>>, vector<1x1x1x32x64xf32>
    %1074 = vector.shape_cast %1073 : vector<1x1x1x32x64xf32> to vector<32x64xf32>
    %cst_1571 = arith.constant dense<0.000000e+00> : vector<2x64xf32>
    %1075 = tpu.matmul %1069, %1074, %cst_1571 {dimension_numbers = #tpu.dot_dimension_numbers<[1], [0], [0], [1], [0, 0, 1, 1], [], []>} : vector<2x32xf32>, vector<32x64xf32>, vector<2x64xf32> -> vector<2x64xf32>
    %1076 = arith.addf %1072, %1075 : vector<2x64xf32>
    %1077 = vector.extract_strided_slice %1076 {offsets = [0, 0], sizes = [2, 32], strides = [1, 1]} : vector<2x64xf32> to vector<2x32xf32>
    %c0_1572 = arith.constant 0 : index
    %c0_1573 = arith.constant 0 : index
    %c11_1574 = arith.constant 11 : index
    %c128_1575 = arith.constant 128 : index
    %1078 = vector.load %arg3[%c0_1572, %c0_1573, %c11_1574, %c128_1575] : memref<2x2x16x512xf32, #tpu.memory_space<vmem>>, vector<2x1x1x32xf32>
    %1079 = vector.shape_cast %1078 : vector<2x1x1x32xf32> to vector<2x32xf32>
    %1080 = vector.shape_cast %1077 : vector<2x32xf32> to vector<2x1x1x32xf32>
    tpu.vector_store %arg3[%c0_1572, %c0_1573, %c11_1574, %c128_1575], %1080 {strides = array<i32>} : memref<2x2x16x512xf32, #tpu.memory_space<vmem>>, vector<2x1x1x32xf32>,
    %1081 = vector.extract_strided_slice %1076 {offsets = [0, 32], sizes = [2, 32], strides = [1, 1]} : vector<2x64xf32> to vector<2x32xf32>
    %c0_1576 = arith.constant 0 : index
    %c1_1577 = arith.constant 1 : index
    %c11_1578 = arith.constant 11 : index
    %c128_1579 = arith.constant 128 : index
    %1082 = vector.load %arg3[%c0_1576, %c1_1577, %c11_1578, %c128_1579] : memref<2x2x16x512xf32, #tpu.memory_space<vmem>>, vector<2x1x1x32xf32>
    %1083 = vector.shape_cast %1082 : vector<2x1x1x32xf32> to vector<2x32xf32>
    %1084 = vector.shape_cast %1081 : vector<2x32xf32> to vector<2x1x1x32xf32>
    tpu.vector_store %arg3[%c0_1576, %c1_1577, %c11_1578, %c128_1579], %1084 {strides = array<i32>} : memref<2x2x16x512xf32, #tpu.memory_space<vmem>>, vector<2x1x1x32xf32>,
    %c0_1580 = arith.constant 0 : index
    %c0_1581 = arith.constant 0 : index
    %c11_1582 = arith.constant 11 : index
    %c160_1583 = arith.constant 160 : index
    %1085 = vector.load %arg1[%c0_1580, %c0_1581, %c11_1582, %c160_1583] : memref<2x2x16x512xf32, #tpu.memory_space<vmem>>, vector<2x1x1x32xf32>
    %1086 = vector.shape_cast %1085 : vector<2x1x1x32xf32> to vector<2x32xf32>
    %c0_1584 = arith.constant 0 : index
    %c1_1585 = arith.constant 1 : index
    %c11_1586 = arith.constant 11 : index
    %c160_1587 = arith.constant 160 : index
    %1087 = vector.load %arg1[%c0_1584, %c1_1585, %c11_1586, %c160_1587] : memref<2x2x16x512xf32, #tpu.memory_space<vmem>>, vector<2x1x1x32xf32>
    %1088 = vector.shape_cast %1087 : vector<2x1x1x32xf32> to vector<2x32xf32>
    %c7_1588 = arith.constant 7 : index
    %c1_1589 = arith.constant 1 : index
    %c0_1590 = arith.constant 0 : index
    %c0_1591 = arith.constant 0 : index
    %c0_1592 = arith.constant 0 : index
    %1089 = vector.load %arg2[%c7_1588, %c1_1589, %c0_1590, %c0_1591, %c0_1592] : memref<8x8x2x32x64xf32, #tpu.memory_space<vmem>>, vector<1x1x1x32x64xf32>
    %1090 = vector.shape_cast %1089 : vector<1x1x1x32x64xf32> to vector<32x64xf32>
    %cst_1593 = arith.constant dense<0.000000e+00> : vector<2x64xf32>
    %1091 = tpu.matmul %1086, %1090, %cst_1593 {dimension_numbers = #tpu.dot_dimension_numbers<[1], [0], [0], [1], [0, 0, 1, 1], [], []>} : vector<2x32xf32>, vector<32x64xf32>, vector<2x64xf32> -> vector<2x64xf32>
    %c7_1594 = arith.constant 7 : index
    %c1_1595 = arith.constant 1 : index
    %c1_1596 = arith.constant 1 : index
    %c0_1597 = arith.constant 0 : index
    %c0_1598 = arith.constant 0 : index
    %1092 = vector.load %arg2[%c7_1594, %c1_1595, %c1_1596, %c0_1597, %c0_1598] : memref<8x8x2x32x64xf32, #tpu.memory_space<vmem>>, vector<1x1x1x32x64xf32>
    %1093 = vector.shape_cast %1092 : vector<1x1x1x32x64xf32> to vector<32x64xf32>
    %cst_1599 = arith.constant dense<0.000000e+00> : vector<2x64xf32>
    %1094 = tpu.matmul %1088, %1093, %cst_1599 {dimension_numbers = #tpu.dot_dimension_numbers<[1], [0], [0], [1], [0, 0, 1, 1], [], []>} : vector<2x32xf32>, vector<32x64xf32>, vector<2x64xf32> -> vector<2x64xf32>
    %1095 = arith.addf %1091, %1094 : vector<2x64xf32>
    %1096 = vector.extract_strided_slice %1095 {offsets = [0, 0], sizes = [2, 32], strides = [1, 1]} : vector<2x64xf32> to vector<2x32xf32>
    %c0_1600 = arith.constant 0 : index
    %c0_1601 = arith.constant 0 : index
    %c11_1602 = arith.constant 11 : index
    %c160_1603 = arith.constant 160 : index
    %1097 = vector.load %arg3[%c0_1600, %c0_1601, %c11_1602, %c160_1603] : memref<2x2x16x512xf32, #tpu.memory_space<vmem>>, vector<2x1x1x32xf32>
    %1098 = vector.shape_cast %1097 : vector<2x1x1x32xf32> to vector<2x32xf32>
    %1099 = vector.shape_cast %1096 : vector<2x32xf32> to vector<2x1x1x32xf32>
    tpu.vector_store %arg3[%c0_1600, %c0_1601, %c11_1602, %c160_1603], %1099 {strides = array<i32>} : memref<2x2x16x512xf32, #tpu.memory_space<vmem>>, vector<2x1x1x32xf32>,
    %1100 = vector.extract_strided_slice %1095 {offsets = [0, 32], sizes = [2, 32], strides = [1, 1]} : vector<2x64xf32> to vector<2x32xf32>
    %c0_1604 = arith.constant 0 : index
    %c1_1605 = arith.constant 1 : index
    %c11_1606 = arith.constant 11 : index
    %c160_1607 = arith.constant 160 : index
    %1101 = vector.load %arg3[%c0_1604, %c1_1605, %c11_1606, %c160_1607] : memref<2x2x16x512xf32, #tpu.memory_space<vmem>>, vector<2x1x1x32xf32>
    %1102 = vector.shape_cast %1101 : vector<2x1x1x32xf32> to vector<2x32xf32>
    %1103 = vector.shape_cast %1100 : vector<2x32xf32> to vector<2x1x1x32xf32>
    tpu.vector_store %arg3[%c0_1604, %c1_1605, %c11_1606, %c160_1607], %1103 {strides = array<i32>} : memref<2x2x16x512xf32, #tpu.memory_space<vmem>>, vector<2x1x1x32xf32>,
    %c0_1608 = arith.constant 0 : index
    %c0_1609 = arith.constant 0 : index
    %c11_1610 = arith.constant 11 : index
    %c192_1611 = arith.constant 192 : index
    %1104 = vector.load %arg1[%c0_1608, %c0_1609, %c11_1610, %c192_1611] : memref<2x2x16x512xf32, #tpu.memory_space<vmem>>, vector<2x1x1x32xf32>
    %1105 = vector.shape_cast %1104 : vector<2x1x1x32xf32> to vector<2x32xf32>
    %c0_1612 = arith.constant 0 : index
    %c1_1613 = arith.constant 1 : index
    %c11_1614 = arith.constant 11 : index
    %c192_1615 = arith.constant 192 : index
    %1106 = vector.load %arg1[%c0_1612, %c1_1613, %c11_1614, %c192_1615] : memref<2x2x16x512xf32, #tpu.memory_space<vmem>>, vector<2x1x1x32xf32>
    %1107 = vector.shape_cast %1106 : vector<2x1x1x32xf32> to vector<2x32xf32>
    %c7_1616 = arith.constant 7 : index
    %c2_1617 = arith.constant 2 : index
    %c0_1618 = arith.constant 0 : index
    %c0_1619 = arith.constant 0 : index
    %c0_1620 = arith.constant 0 : index
    %1108 = vector.load %arg2[%c7_1616, %c2_1617, %c0_1618, %c0_1619, %c0_1620] : memref<8x8x2x32x64xf32, #tpu.memory_space<vmem>>, vector<1x1x1x32x64xf32>
    %1109 = vector.shape_cast %1108 : vector<1x1x1x32x64xf32> to vector<32x64xf32>
    %cst_1621 = arith.constant dense<0.000000e+00> : vector<2x64xf32>
    %1110 = tpu.matmul %1105, %1109, %cst_1621 {dimension_numbers = #tpu.dot_dimension_numbers<[1], [0], [0], [1], [0, 0, 1, 1], [], []>} : vector<2x32xf32>, vector<32x64xf32>, vector<2x64xf32> -> vector<2x64xf32>
    %c7_1622 = arith.constant 7 : index
    %c2_1623 = arith.constant 2 : index
    %c1_1624 = arith.constant 1 : index
    %c0_1625 = arith.constant 0 : index
    %c0_1626 = arith.constant 0 : index
    %1111 = vector.load %arg2[%c7_1622, %c2_1623, %c1_1624, %c0_1625, %c0_1626] : memref<8x8x2x32x64xf32, #tpu.memory_space<vmem>>, vector<1x1x1x32x64xf32>
    %1112 = vector.shape_cast %1111 : vector<1x1x1x32x64xf32> to vector<32x64xf32>
    %cst_1627 = arith.constant dense<0.000000e+00> : vector<2x64xf32>
    %1113 = tpu.matmul %1107, %1112, %cst_1627 {dimension_numbers = #tpu.dot_dimension_numbers<[1], [0], [0], [1], [0, 0, 1, 1], [], []>} : vector<2x32xf32>, vector<32x64xf32>, vector<2x64xf32> -> vector<2x64xf32>
    %1114 = arith.addf %1110, %1113 : vector<2x64xf32>
    %1115 = vector.extract_strided_slice %1114 {offsets = [0, 0], sizes = [2, 32], strides = [1, 1]} : vector<2x64xf32> to vector<2x32xf32>
    %c0_1628 = arith.constant 0 : index
    %c0_1629 = arith.constant 0 : index
    %c11_1630 = arith.constant 11 : index
    %c192_1631 = arith.constant 192 : index
    %1116 = vector.load %arg3[%c0_1628, %c0_1629, %c11_1630, %c192_1631] : memref<2x2x16x512xf32, #tpu.memory_space<vmem>>, vector<2x1x1x32xf32>
    %1117 = vector.shape_cast %1116 : vector<2x1x1x32xf32> to vector<2x32xf32>
    %1118 = vector.shape_cast %1115 : vector<2x32xf32> to vector<2x1x1x32xf32>
    tpu.vector_store %arg3[%c0_1628, %c0_1629, %c11_1630, %c192_1631], %1118 {strides = array<i32>} : memref<2x2x16x512xf32, #tpu.memory_space<vmem>>, vector<2x1x1x32xf32>,
    %1119 = vector.extract_strided_slice %1114 {offsets = [0, 32], sizes = [2, 32], strides = [1, 1]} : vector<2x64xf32> to vector<2x32xf32>
    %c0_1632 = arith.constant 0 : index
    %c1_1633 = arith.constant 1 : index
    %c11_1634 = arith.constant 11 : index
    %c192_1635 = arith.constant 192 : index
    %1120 = vector.load %arg3[%c0_1632, %c1_1633, %c11_1634, %c192_1635] : memref<2x2x16x512xf32, #tpu.memory_space<vmem>>, vector<2x1x1x32xf32>
    %1121 = vector.shape_cast %1120 : vector<2x1x1x32xf32> to vector<2x32xf32>
    %1122 = vector.shape_cast %1119 : vector<2x32xf32> to vector<2x1x1x32xf32>
    tpu.vector_store %arg3[%c0_1632, %c1_1633, %c11_1634, %c192_1635], %1122 {strides = array<i32>} : memref<2x2x16x512xf32, #tpu.memory_space<vmem>>, vector<2x1x1x32xf32>,
    %c0_1636 = arith.constant 0 : index
    %c0_1637 = arith.constant 0 : index
    %c11_1638 = arith.constant 11 : index
    %c224_1639 = arith.constant 224 : index
    %1123 = vector.load %arg1[%c0_1636, %c0_1637, %c11_1638, %c224_1639] : memref<2x2x16x512xf32, #tpu.memory_space<vmem>>, vector<2x1x1x32xf32>
    %1124 = vector.shape_cast %1123 : vector<2x1x1x32xf32> to vector<2x32xf32>
    %c0_1640 = arith.constant 0 : index
    %c1_1641 = arith.constant 1 : index
    %c11_1642 = arith.constant 11 : index
    %c224_1643 = arith.constant 224 : index
    %1125 = vector.load %arg1[%c0_1640, %c1_1641, %c11_1642, %c224_1643] : memref<2x2x16x512xf32, #tpu.memory_space<vmem>>, vector<2x1x1x32xf32>
    %1126 = vector.shape_cast %1125 : vector<2x1x1x32xf32> to vector<2x32xf32>
    %c7_1644 = arith.constant 7 : index
    %c3_1645 = arith.constant 3 : index
    %c0_1646 = arith.constant 0 : index
    %c0_1647 = arith.constant 0 : index
    %c0_1648 = arith.constant 0 : index
    %1127 = vector.load %arg2[%c7_1644, %c3_1645, %c0_1646, %c0_1647, %c0_1648] : memref<8x8x2x32x64xf32, #tpu.memory_space<vmem>>, vector<1x1x1x32x64xf32>
    %1128 = vector.shape_cast %1127 : vector<1x1x1x32x64xf32> to vector<32x64xf32>
    %cst_1649 = arith.constant dense<0.000000e+00> : vector<2x64xf32>
    %1129 = tpu.matmul %1124, %1128, %cst_1649 {dimension_numbers = #tpu.dot_dimension_numbers<[1], [0], [0], [1], [0, 0, 1, 1], [], []>} : vector<2x32xf32>, vector<32x64xf32>, vector<2x64xf32> -> vector<2x64xf32>
    %c7_1650 = arith.constant 7 : index
    %c3_1651 = arith.constant 3 : index
    %c1_1652 = arith.constant 1 : index
    %c0_1653 = arith.constant 0 : index
    %c0_1654 = arith.constant 0 : index
    %1130 = vector.load %arg2[%c7_1650, %c3_1651, %c1_1652, %c0_1653, %c0_1654] : memref<8x8x2x32x64xf32, #tpu.memory_space<vmem>>, vector<1x1x1x32x64xf32>
    %1131 = vector.shape_cast %1130 : vector<1x1x1x32x64xf32> to vector<32x64xf32>
    %cst_1655 = arith.constant dense<0.000000e+00> : vector<2x64xf32>
    %1132 = tpu.matmul %1126, %1131, %cst_1655 {dimension_numbers = #tpu.dot_dimension_numbers<[1], [0], [0], [1], [0, 0, 1, 1], [], []>} : vector<2x32xf32>, vector<32x64xf32>, vector<2x64xf32> -> vector<2x64xf32>
    %1133 = arith.addf %1129, %1132 : vector<2x64xf32>
    %1134 = vector.extract_strided_slice %1133 {offsets = [0, 0], sizes = [2, 32], strides = [1, 1]} : vector<2x64xf32> to vector<2x32xf32>
    %c0_1656 = arith.constant 0 : index
    %c0_1657 = arith.constant 0 : index
    %c11_1658 = arith.constant 11 : index
    %c224_1659 = arith.constant 224 : index
    %1135 = vector.load %arg3[%c0_1656, %c0_1657, %c11_1658, %c224_1659] : memref<2x2x16x512xf32, #tpu.memory_space<vmem>>, vector<2x1x1x32xf32>
    %1136 = vector.shape_cast %1135 : vector<2x1x1x32xf32> to vector<2x32xf32>
    %1137 = vector.shape_cast %1134 : vector<2x32xf32> to vector<2x1x1x32xf32>
    tpu.vector_store %arg3[%c0_1656, %c0_1657, %c11_1658, %c224_1659], %1137 {strides = array<i32>} : memref<2x2x16x512xf32, #tpu.memory_space<vmem>>, vector<2x1x1x32xf32>,
    %1138 = vector.extract_strided_slice %1133 {offsets = [0, 32], sizes = [2, 32], strides = [1, 1]} : vector<2x64xf32> to vector<2x32xf32>
    %c0_1660 = arith.constant 0 : index
    %c1_1661 = arith.constant 1 : index
    %c11_1662 = arith.constant 11 : index
    %c224_1663 = arith.constant 224 : index
    %1139 = vector.load %arg3[%c0_1660, %c1_1661, %c11_1662, %c224_1663] : memref<2x2x16x512xf32, #tpu.memory_space<vmem>>, vector<2x1x1x32xf32>
    %1140 = vector.shape_cast %1139 : vector<2x1x1x32xf32> to vector<2x32xf32>
    %1141 = vector.shape_cast %1138 : vector<2x32xf32> to vector<2x1x1x32xf32>
    tpu.vector_store %arg3[%c0_1660, %c1_1661, %c11_1662, %c224_1663], %1141 {strides = array<i32>} : memref<2x2x16x512xf32, #tpu.memory_space<vmem>>, vector<2x1x1x32xf32>,
    %c0_1664 = arith.constant 0 : index
    %c0_1665 = arith.constant 0 : index
    %c11_1666 = arith.constant 11 : index
    %c256_1667 = arith.constant 256 : index
    %1142 = vector.load %arg1[%c0_1664, %c0_1665, %c11_1666, %c256_1667] : memref<2x2x16x512xf32, #tpu.memory_space<vmem>>, vector<2x1x1x32xf32>
    %1143 = vector.shape_cast %1142 : vector<2x1x1x32xf32> to vector<2x32xf32>
    %c0_1668 = arith.constant 0 : index
    %c1_1669 = arith.constant 1 : index
    %c11_1670 = arith.constant 11 : index
    %c256_1671 = arith.constant 256 : index
    %1144 = vector.load %arg1[%c0_1668, %c1_1669, %c11_1670, %c256_1671] : memref<2x2x16x512xf32, #tpu.memory_space<vmem>>, vector<2x1x1x32xf32>
    %1145 = vector.shape_cast %1144 : vector<2x1x1x32xf32> to vector<2x32xf32>
    %c7_1672 = arith.constant 7 : index
    %c4_1673 = arith.constant 4 : index
    %c0_1674 = arith.constant 0 : index
    %c0_1675 = arith.constant 0 : index
    %c0_1676 = arith.constant 0 : index
    %1146 = vector.load %arg2[%c7_1672, %c4_1673, %c0_1674, %c0_1675, %c0_1676] : memref<8x8x2x32x64xf32, #tpu.memory_space<vmem>>, vector<1x1x1x32x64xf32>
    %1147 = vector.shape_cast %1146 : vector<1x1x1x32x64xf32> to vector<32x64xf32>
    %cst_1677 = arith.constant dense<0.000000e+00> : vector<2x64xf32>
    %1148 = tpu.matmul %1143, %1147, %cst_1677 {dimension_numbers = #tpu.dot_dimension_numbers<[1], [0], [0], [1], [0, 0, 1, 1], [], []>} : vector<2x32xf32>, vector<32x64xf32>, vector<2x64xf32> -> vector<2x64xf32>
    %c7_1678 = arith.constant 7 : index
    %c4_1679 = arith.constant 4 : index
    %c1_1680 = arith.constant 1 : index
    %c0_1681 = arith.constant 0 : index
    %c0_1682 = arith.constant 0 : index
    %1149 = vector.load %arg2[%c7_1678, %c4_1679, %c1_1680, %c0_1681, %c0_1682] : memref<8x8x2x32x64xf32, #tpu.memory_space<vmem>>, vector<1x1x1x32x64xf32>
    %1150 = vector.shape_cast %1149 : vector<1x1x1x32x64xf32> to vector<32x64xf32>
    %cst_1683 = arith.constant dense<0.000000e+00> : vector<2x64xf32>
    %1151 = tpu.matmul %1145, %1150, %cst_1683 {dimension_numbers = #tpu.dot_dimension_numbers<[1], [0], [0], [1], [0, 0, 1, 1], [], []>} : vector<2x32xf32>, vector<32x64xf32>, vector<2x64xf32> -> vector<2x64xf32>
    %1152 = arith.addf %1148, %1151 : vector<2x64xf32>
    %1153 = vector.extract_strided_slice %1152 {offsets = [0, 0], sizes = [2, 32], strides = [1, 1]} : vector<2x64xf32> to vector<2x32xf32>
    %c0_1684 = arith.constant 0 : index
    %c0_1685 = arith.constant 0 : index
    %c11_1686 = arith.constant 11 : index
    %c256_1687 = arith.constant 256 : index
    %1154 = vector.load %arg3[%c0_1684, %c0_1685, %c11_1686, %c256_1687] : memref<2x2x16x512xf32, #tpu.memory_space<vmem>>, vector<2x1x1x32xf32>
    %1155 = vector.shape_cast %1154 : vector<2x1x1x32xf32> to vector<2x32xf32>
    %1156 = vector.shape_cast %1153 : vector<2x32xf32> to vector<2x1x1x32xf32>
    tpu.vector_store %arg3[%c0_1684, %c0_1685, %c11_1686, %c256_1687], %1156 {strides = array<i32>} : memref<2x2x16x512xf32, #tpu.memory_space<vmem>>, vector<2x1x1x32xf32>,
    %1157 = vector.extract_strided_slice %1152 {offsets = [0, 32], sizes = [2, 32], strides = [1, 1]} : vector<2x64xf32> to vector<2x32xf32>
    %c0_1688 = arith.constant 0 : index
    %c1_1689 = arith.constant 1 : index
    %c11_1690 = arith.constant 11 : index
    %c256_1691 = arith.constant 256 : index
    %1158 = vector.load %arg3[%c0_1688, %c1_1689, %c11_1690, %c256_1691] : memref<2x2x16x512xf32, #tpu.memory_space<vmem>>, vector<2x1x1x32xf32>
    %1159 = vector.shape_cast %1158 : vector<2x1x1x32xf32> to vector<2x32xf32>
    %1160 = vector.shape_cast %1157 : vector<2x32xf32> to vector<2x1x1x32xf32>
    tpu.vector_store %arg3[%c0_1688, %c1_1689, %c11_1690, %c256_1691], %1160 {strides = array<i32>} : memref<2x2x16x512xf32, #tpu.memory_space<vmem>>, vector<2x1x1x32xf32>,
    %c0_1692 = arith.constant 0 : index
    %c0_1693 = arith.constant 0 : index
    %c11_1694 = arith.constant 11 : index
    %c288_1695 = arith.constant 288 : index
    %1161 = vector.load %arg1[%c0_1692, %c0_1693, %c11_1694, %c288_1695] : memref<2x2x16x512xf32, #tpu.memory_space<vmem>>, vector<2x1x1x32xf32>
    %1162 = vector.shape_cast %1161 : vector<2x1x1x32xf32> to vector<2x32xf32>
    %c0_1696 = arith.constant 0 : index
    %c1_1697 = arith.constant 1 : index
    %c11_1698 = arith.constant 11 : index
    %c288_1699 = arith.constant 288 : index
    %1163 = vector.load %arg1[%c0_1696, %c1_1697, %c11_1698, %c288_1699] : memref<2x2x16x512xf32, #tpu.memory_space<vmem>>, vector<2x1x1x32xf32>
    %1164 = vector.shape_cast %1163 : vector<2x1x1x32xf32> to vector<2x32xf32>
    %c7_1700 = arith.constant 7 : index
    %c5_1701 = arith.constant 5 : index
    %c0_1702 = arith.constant 0 : index
    %c0_1703 = arith.constant 0 : index
    %c0_1704 = arith.constant 0 : index
    %1165 = vector.load %arg2[%c7_1700, %c5_1701, %c0_1702, %c0_1703, %c0_1704] : memref<8x8x2x32x64xf32, #tpu.memory_space<vmem>>, vector<1x1x1x32x64xf32>
    %1166 = vector.shape_cast %1165 : vector<1x1x1x32x64xf32> to vector<32x64xf32>
    %cst_1705 = arith.constant dense<0.000000e+00> : vector<2x64xf32>
    %1167 = tpu.matmul %1162, %1166, %cst_1705 {dimension_numbers = #tpu.dot_dimension_numbers<[1], [0], [0], [1], [0, 0, 1, 1], [], []>} : vector<2x32xf32>, vector<32x64xf32>, vector<2x64xf32> -> vector<2x64xf32>
    %c7_1706 = arith.constant 7 : index
    %c5_1707 = arith.constant 5 : index
    %c1_1708 = arith.constant 1 : index
    %c0_1709 = arith.constant 0 : index
    %c0_1710 = arith.constant 0 : index
    %1168 = vector.load %arg2[%c7_1706, %c5_1707, %c1_1708, %c0_1709, %c0_1710] : memref<8x8x2x32x64xf32, #tpu.memory_space<vmem>>, vector<1x1x1x32x64xf32>
    %1169 = vector.shape_cast %1168 : vector<1x1x1x32x64xf32> to vector<32x64xf32>
    %cst_1711 = arith.constant dense<0.000000e+00> : vector<2x64xf32>
    %1170 = tpu.matmul %1164, %1169, %cst_1711 {dimension_numbers = #tpu.dot_dimension_numbers<[1], [0], [0], [1], [0, 0, 1, 1], [], []>} : vector<2x32xf32>, vector<32x64xf32>, vector<2x64xf32> -> vector<2x64xf32>
    %1171 = arith.addf %1167, %1170 : vector<2x64xf32>
    %1172 = vector.extract_strided_slice %1171 {offsets = [0, 0], sizes = [2, 32], strides = [1, 1]} : vector<2x64xf32> to vector<2x32xf32>
    %c0_1712 = arith.constant 0 : index
    %c0_1713 = arith.constant 0 : index
    %c11_1714 = arith.constant 11 : index
    %c288_1715 = arith.constant 288 : index
    %1173 = vector.load %arg3[%c0_1712, %c0_1713, %c11_1714, %c288_1715] : memref<2x2x16x512xf32, #tpu.memory_space<vmem>>, vector<2x1x1x32xf32>
    %1174 = vector.shape_cast %1173 : vector<2x1x1x32xf32> to vector<2x32xf32>
    %1175 = vector.shape_cast %1172 : vector<2x32xf32> to vector<2x1x1x32xf32>
    tpu.vector_store %arg3[%c0_1712, %c0_1713, %c11_1714, %c288_1715], %1175 {strides = array<i32>} : memref<2x2x16x512xf32, #tpu.memory_space<vmem>>, vector<2x1x1x32xf32>,
    %1176 = vector.extract_strided_slice %1171 {offsets = [0, 32], sizes = [2, 32], strides = [1, 1]} : vector<2x64xf32> to vector<2x32xf32>
    %c0_1716 = arith.constant 0 : index
    %c1_1717 = arith.constant 1 : index
    %c11_1718 = arith.constant 11 : index
    %c288_1719 = arith.constant 288 : index
    %1177 = vector.load %arg3[%c0_1716, %c1_1717, %c11_1718, %c288_1719] : memref<2x2x16x512xf32, #tpu.memory_space<vmem>>, vector<2x1x1x32xf32>
    %1178 = vector.shape_cast %1177 : vector<2x1x1x32xf32> to vector<2x32xf32>
    %1179 = vector.shape_cast %1176 : vector<2x32xf32> to vector<2x1x1x32xf32>
    tpu.vector_store %arg3[%c0_1716, %c1_1717, %c11_1718, %c288_1719], %1179 {strides = array<i32>} : memref<2x2x16x512xf32, #tpu.memory_space<vmem>>, vector<2x1x1x32xf32>,
    %c0_1720 = arith.constant 0 : index
    %c0_1721 = arith.constant 0 : index
    %c11_1722 = arith.constant 11 : index
    %c320_1723 = arith.constant 320 : index
    %1180 = vector.load %arg1[%c0_1720, %c0_1721, %c11_1722, %c320_1723] : memref<2x2x16x512xf32, #tpu.memory_space<vmem>>, vector<2x1x1x32xf32>
    %1181 = vector.shape_cast %1180 : vector<2x1x1x32xf32> to vector<2x32xf32>
    %c0_1724 = arith.constant 0 : index
    %c1_1725 = arith.constant 1 : index
    %c11_1726 = arith.constant 11 : index
    %c320_1727 = arith.constant 320 : index
    %1182 = vector.load %arg1[%c0_1724, %c1_1725, %c11_1726, %c320_1727] : memref<2x2x16x512xf32, #tpu.memory_space<vmem>>, vector<2x1x1x32xf32>
    %1183 = vector.shape_cast %1182 : vector<2x1x1x32xf32> to vector<2x32xf32>
    %c7_1728 = arith.constant 7 : index
    %c6_1729 = arith.constant 6 : index
    %c0_1730 = arith.constant 0 : index
    %c0_1731 = arith.constant 0 : index
    %c0_1732 = arith.constant 0 : index
    %1184 = vector.load %arg2[%c7_1728, %c6_1729, %c0_1730, %c0_1731, %c0_1732] : memref<8x8x2x32x64xf32, #tpu.memory_space<vmem>>, vector<1x1x1x32x64xf32>
    %1185 = vector.shape_cast %1184 : vector<1x1x1x32x64xf32> to vector<32x64xf32>
    %cst_1733 = arith.constant dense<0.000000e+00> : vector<2x64xf32>
    %1186 = tpu.matmul %1181, %1185, %cst_1733 {dimension_numbers = #tpu.dot_dimension_numbers<[1], [0], [0], [1], [0, 0, 1, 1], [], []>} : vector<2x32xf32>, vector<32x64xf32>, vector<2x64xf32> -> vector<2x64xf32>
    %c7_1734 = arith.constant 7 : index
    %c6_1735 = arith.constant 6 : index
    %c1_1736 = arith.constant 1 : index
    %c0_1737 = arith.constant 0 : index
    %c0_1738 = arith.constant 0 : index
    %1187 = vector.load %arg2[%c7_1734, %c6_1735, %c1_1736, %c0_1737, %c0_1738] : memref<8x8x2x32x64xf32, #tpu.memory_space<vmem>>, vector<1x1x1x32x64xf32>
    %1188 = vector.shape_cast %1187 : vector<1x1x1x32x64xf32> to vector<32x64xf32>
    %cst_1739 = arith.constant dense<0.000000e+00> : vector<2x64xf32>
    %1189 = tpu.matmul %1183, %1188, %cst_1739 {dimension_numbers = #tpu.dot_dimension_numbers<[1], [0], [0], [1], [0, 0, 1, 1], [], []>} : vector<2x32xf32>, vector<32x64xf32>, vector<2x64xf32> -> vector<2x64xf32>
    %1190 = arith.addf %1186, %1189 : vector<2x64xf32>
    %1191 = vector.extract_strided_slice %1190 {offsets = [0, 0], sizes = [2, 32], strides = [1, 1]} : vector<2x64xf32> to vector<2x32xf32>
    %c0_1740 = arith.constant 0 : index
    %c0_1741 = arith.constant 0 : index
    %c11_1742 = arith.constant 11 : index
    %c320_1743 = arith.constant 320 : index
    %1192 = vector.load %arg3[%c0_1740, %c0_1741, %c11_1742, %c320_1743] : memref<2x2x16x512xf32, #tpu.memory_space<vmem>>, vector<2x1x1x32xf32>
    %1193 = vector.shape_cast %1192 : vector<2x1x1x32xf32> to vector<2x32xf32>
    %1194 = vector.shape_cast %1191 : vector<2x32xf32> to vector<2x1x1x32xf32>
    tpu.vector_store %arg3[%c0_1740, %c0_1741, %c11_1742, %c320_1743], %1194 {strides = array<i32>} : memref<2x2x16x512xf32, #tpu.memory_space<vmem>>, vector<2x1x1x32xf32>,
    %1195 = vector.extract_strided_slice %1190 {offsets = [0, 32], sizes = [2, 32], strides = [1, 1]} : vector<2x64xf32> to vector<2x32xf32>
    %c0_1744 = arith.constant 0 : index
    %c1_1745 = arith.constant 1 : index
    %c11_1746 = arith.constant 11 : index
    %c320_1747 = arith.constant 320 : index
    %1196 = vector.load %arg3[%c0_1744, %c1_1745, %c11_1746, %c320_1747] : memref<2x2x16x512xf32, #tpu.memory_space<vmem>>, vector<2x1x1x32xf32>
    %1197 = vector.shape_cast %1196 : vector<2x1x1x32xf32> to vector<2x32xf32>
    %1198 = vector.shape_cast %1195 : vector<2x32xf32> to vector<2x1x1x32xf32>
    tpu.vector_store %arg3[%c0_1744, %c1_1745, %c11_1746, %c320_1747], %1198 {strides = array<i32>} : memref<2x2x16x512xf32, #tpu.memory_space<vmem>>, vector<2x1x1x32xf32>,
    %c0_1748 = arith.constant 0 : index
    %c0_1749 = arith.constant 0 : index
    %c11_1750 = arith.constant 11 : index
    %c352_1751 = arith.constant 352 : index
    %1199 = vector.load %arg1[%c0_1748, %c0_1749, %c11_1750, %c352_1751] : memref<2x2x16x512xf32, #tpu.memory_space<vmem>>, vector<2x1x1x32xf32>
    %1200 = vector.shape_cast %1199 : vector<2x1x1x32xf32> to vector<2x32xf32>
    %c0_1752 = arith.constant 0 : index
    %c1_1753 = arith.constant 1 : index
    %c11_1754 = arith.constant 11 : index
    %c352_1755 = arith.constant 352 : index
    %1201 = vector.load %arg1[%c0_1752, %c1_1753, %c11_1754, %c352_1755] : memref<2x2x16x512xf32, #tpu.memory_space<vmem>>, vector<2x1x1x32xf32>
    %1202 = vector.shape_cast %1201 : vector<2x1x1x32xf32> to vector<2x32xf32>
    %c7_1756 = arith.constant 7 : index
    %c7_1757 = arith.constant 7 : index
    %c0_1758 = arith.constant 0 : index
    %c0_1759 = arith.constant 0 : index
    %c0_1760 = arith.constant 0 : index
    %1203 = vector.load %arg2[%c7_1756, %c7_1757, %c0_1758, %c0_1759, %c0_1760] : memref<8x8x2x32x64xf32, #tpu.memory_space<vmem>>, vector<1x1x1x32x64xf32>
    %1204 = vector.shape_cast %1203 : vector<1x1x1x32x64xf32> to vector<32x64xf32>
    %cst_1761 = arith.constant dense<0.000000e+00> : vector<2x64xf32>
    %1205 = tpu.matmul %1200, %1204, %cst_1761 {dimension_numbers = #tpu.dot_dimension_numbers<[1], [0], [0], [1], [0, 0, 1, 1], [], []>} : vector<2x32xf32>, vector<32x64xf32>, vector<2x64xf32> -> vector<2x64xf32>
    %c7_1762 = arith.constant 7 : index
    %c7_1763 = arith.constant 7 : index
    %c1_1764 = arith.constant 1 : index
    %c0_1765 = arith.constant 0 : index
    %c0_1766 = arith.constant 0 : index
    %1206 = vector.load %arg2[%c7_1762, %c7_1763, %c1_1764, %c0_1765, %c0_1766] : memref<8x8x2x32x64xf32, #tpu.memory_space<vmem>>, vector<1x1x1x32x64xf32>
    %1207 = vector.shape_cast %1206 : vector<1x1x1x32x64xf32> to vector<32x64xf32>
    %cst_1767 = arith.constant dense<0.000000e+00> : vector<2x64xf32>
    %1208 = tpu.matmul %1202, %1207, %cst_1767 {dimension_numbers = #tpu.dot_dimension_numbers<[1], [0], [0], [1], [0, 0, 1, 1], [], []>} : vector<2x32xf32>, vector<32x64xf32>, vector<2x64xf32> -> vector<2x64xf32>
    %1209 = arith.addf %1205, %1208 : vector<2x64xf32>
    %1210 = vector.extract_strided_slice %1209 {offsets = [0, 0], sizes = [2, 32], strides = [1, 1]} : vector<2x64xf32> to vector<2x32xf32>
    %c0_1768 = arith.constant 0 : index
    %c0_1769 = arith.constant 0 : index
    %c11_1770 = arith.constant 11 : index
    %c352_1771 = arith.constant 352 : index
    %1211 = vector.load %arg3[%c0_1768, %c0_1769, %c11_1770, %c352_1771] : memref<2x2x16x512xf32, #tpu.memory_space<vmem>>, vector<2x1x1x32xf32>
    %1212 = vector.shape_cast %1211 : vector<2x1x1x32xf32> to vector<2x32xf32>
    %1213 = vector.shape_cast %1210 : vector<2x32xf32> to vector<2x1x1x32xf32>
    tpu.vector_store %arg3[%c0_1768, %c0_1769, %c11_1770, %c352_1771], %1213 {strides = array<i32>} : memref<2x2x16x512xf32, #tpu.memory_space<vmem>>, vector<2x1x1x32xf32>,
    %1214 = vector.extract_strided_slice %1209 {offsets = [0, 32], sizes = [2, 32], strides = [1, 1]} : vector<2x64xf32> to vector<2x32xf32>
    %c0_1772 = arith.constant 0 : index
    %c1_1773 = arith.constant 1 : index
    %c11_1774 = arith.constant 11 : index
    %c352_1775 = arith.constant 352 : index
    %1215 = vector.load %arg3[%c0_1772, %c1_1773, %c11_1774, %c352_1775] : memref<2x2x16x512xf32, #tpu.memory_space<vmem>>, vector<2x1x1x32xf32>
    %1216 = vector.shape_cast %1215 : vector<2x1x1x32xf32> to vector<2x32xf32>
    %1217 = vector.shape_cast %1214 : vector<2x32xf32> to vector<2x1x1x32xf32>
    tpu.vector_store %arg3[%c0_1772, %c1_1773, %c11_1774, %c352_1775], %1217 {strides = array<i32>} : memref<2x2x16x512xf32, #tpu.memory_space<vmem>>, vector<2x1x1x32xf32>,
    return
  }
  func.func @transform_0(%arg0: i32) -> (i32, i32, i32, i32) {
    %c0_i32 = arith.constant 0 : i32
    %c0_i32_0 = arith.constant 0 : i32
    %c0_i32_1 = arith.constant 0 : i32
    %c0_i32_2 = arith.constant 0 : i32
    %c0_i32_3 = arith.constant 0 : i32
    return %c0_i32, %c0_i32_0, %c0_i32_1, %c0_i32_2 : i32, i32, i32, i32
  }
  func.func @transform_1(%arg0: i32) -> (i32, i32, i32, i32, i32) {
    %c0_i32 = arith.constant 0 : i32
    %c0_i32_0 = arith.constant 0 : i32
    %c0_i32_1 = arith.constant 0 : i32
    %c0_i32_2 = arith.constant 0 : i32
    %c0_i32_3 = arith.constant 0 : i32
    %c0_i32_4 = arith.constant 0 : i32
    return %c0_i32, %c0_i32_0, %c0_i32_1, %c0_i32_2, %c0_i32_3 : i32, i32, i32, i32, i32
  }
  func.func @transform_2(%arg0: i32) -> (i32, i32, i32, i32) {
    %c0_i32 = arith.constant 0 : i32
    %c0_i32_0 = arith.constant 0 : i32
    %c0_i32_1 = arith.constant 0 : i32
    %c0_i32_2 = arith.constant 0 : i32
    %c0_i32_3 = arith.constant 0 : i32
    return %c0_i32, %c0_i32_0, %c0_i32_1, %c0_i32_2 : i32, i32, i32, i32
  }
}

</mosaic_0001>

<bundles_post_ra>
// kernel: _controlled_ode_av.1
= control target key start
LH: loop header
LB: loop body
LE: loop exit
PB: predicated region body
PF: predicated region fallthrough
CT: control target
= control target key end

     0   :  { %7 = vsyncpa [#allocation3], 0  ;;  %s17003_s9 = smov [#allocation2]   ;;  %s20366_s0 = inlined_call_operand.vmem [shape: f32[2,2,16,512], index: 0, kind: input, shape index: {}]   ;;  %s20367_s1 = inlined_call_operand.hbm [shape: f32[8,8,2,32,64], index: 1, kind: input, shape index: {}]   ;;  %s20368_s2 = inlined_call_operand.vmem [shape: f32[2,2,16,512], index: 2, kind: output, shape index: {}]  }
   0x1   :  { %s15_s10 = sshll.u32 %s17003_s9, 4  ;;  %s16979_s13 = scalar_lea.hbm %s20367_s1, 65536  ;;  %s16_s10 = int_to_ptr.vmem [resolvable:$true] %s15_s10 }
   0x2   :  { %p16980_p0 = scmp.ne.s32.totalorder %s20367_s1, %s16979_s13  ;;  %p16983_p1 = scmp.lt.u32.totalorder %s16979_s13, %s20367_s1 }
   0x4   :  { %p16985_p2 = pnand %p16983_p1, %p16980_p0 }
   0x6   :  { %16988 = shalt.err (!%p16985_p2)
}
   0x7   :  { %s16989_s18 = scalar_lea.vmem %s16_s10, 65536  ;;  %p16994_p4 = scmp.lt.s32.totalorder %s16_s10, %s16_s10 }
   0x8   :  { %p16990_p3 = scmp.ne.s32.totalorder %s16_s10, %s16989_s18  ;;  %p16995_p5 = scmp.lt.s32.totalorder %s16989_s18, %s16989_s18 }
   0xa   :  { %p16996_p6 = por %p16995_p5, %p16994_p4 }
   0xc   :  { %p16997_p7 = pnand %p16996_p6, %p16990_p3 }
   0xe   :  { %17000 = shalt.err (!%p16997_p7)
}
   0xf   :  { %s17004_s19 = smov 128   ;;  %s17005_s20 = smov 8  }
  0x10   :  { %21 = dma.hbm_to_vmem [thread:$0]  %s20367_s1, 65536, %s16_s10, [#allocation3], %s17004_s19, %s17004_s19, %s17005_s20  }
  0x11   :  { %17001 = dma.done.wait [#allocation3], 65536  }
  0x12   :  { %17002 = vsyncadd [#allocation3], 4294901760  ;;  %v17006_v0 = vmov 0.0   ;;  %v20369_v1 = vmov 0.0|0.0   ;;  %vm17008_vm0 = vmmov 0   ;;  %vm73_vm1 = vcmask 1041409  }
  0x13   :  { %25 = vst [vmem:[%s20368_s2] sm:$0xff] %v17006_v0  ;;  %28 = vst [vmem:[%s20368_s2 + $0x18] sm:$0xff] %v17006_v0  ;;  %16069 = vmatprep.subr.bf16.mxu0 %v20369_v1  ;;  %16081 = vmatprep.subr.bf16.mxu1 %v20369_v1  ;;  %v13649_v2 = vld [vmem:[%s20366_s0 + $0x4c] ss:$0 sm:$0xff]  ;;  %v67_v4 = vld [vmem:[#allocation2 + $0x20] sm:$0xff]  ;;  %s17009_s8 = smov 64   ;;  %s17010_s9 = smov 96  }
  0x14   :  { %29 = vst [vmem:[%s20368_s2 + $0x20] sm:$0xff] %v17006_v0  ;;  %32 = vst [vmem:[%s20368_s2 + $0x38] sm:$0xff] %v17006_v0  ;;  %14669 = vmatprep.mubr.msk.f32.mxu0 %vm17008_vm0, %v17006_v0  ;;  %14691 = vmatprep.mubr.msk.f32.mxu1 %vm17008_vm0, %v17006_v0  ;;  %v13650_v3 = vld [vmem:[%s20366_s0 + $0xcc] ss:$0 sm:$0xff]  ;;  %v69_v10 = vld [vmem:[#allocation2 + $0x30] sm:$0xff]  ;;  %s17011_s10 = smov 32  }
  0x15   :  { %33 = vst [vmem:[%s20368_s2 + $0x40] sm:$0xff] %v17006_v0  ;;  %36 = vst [vmem:[%s20368_s2 + $0x58] sm:$0xff] %v17006_v0  ;;  %v496_v5 = vsel %vm73_vm1, %v13650_v3, %v13649_v2  ;;  %v68_v6 = vld [vmem:[#allocation2 + $0x28] sm:$0xff]  ;;  %v70_v11 = vld [vmem:[#allocation2 + $0x38] sm:$0xff]  ;;  %vm75_vm2 = vcmask 261120   ;;  %vm248_vm3 = vcmask 253952  }
  0x16   :  { %37 = vst [vmem:[%s20368_s2 + $0x60] sm:$0xff] %v17006_v0  ;;  %40 = vst [vmem:[%s20368_s2 + $0x78] sm:$0xff] %v17006_v0  ;;  %v268_v7 = vld [vmem:[%s20366_s0 + $0xc] ss:$0 sm:$0xff]  ;;  %497 = vrot.lane.b32.xlu1 %v496_v5, %s17009_s8  ;;  %v16070_v9 = vpack.c.bf16 %v68_v6, %v67_v4  ;;  %v16073_v13 = vpack.c.bf16 %v70_v11, %v69_v10  ;;  %v62_v14 = vld [vmem:[#allocation2] sm:$0xff]  ;;  %vm473_vm4 = vcmask 516352  }
  0x17   :  { %41 = vst [vmem:[%s20368_s2 + $0x80] sm:$0xff] %v17006_v0  ;;  %44 = vst [vmem:[%s20368_s2 + $0x98] sm:$0xff] %v17006_v0  ;;  %v269_v8 = vld [vmem:[%s20366_s0 + $0x8c] ss:$0 sm:$0xff]  ;;  %285 = vrot.lane.b32.xlu0 %v496_v5, %s17010_s9  ;;  %v278_v21 = vld [vmem:[#allocation2 + $0x60] sm:$0xff]  ;;  %vm685_vm5 = vcmask 778752  }
  0x18   :  { %45 = vst [vmem:[%s20368_s2 + $0xa0] sm:$0xff] %v17006_v0  ;;  %48 = vst [vmem:[%s20368_s2 + $0xb8] sm:$0xff] %v17006_v0  ;;  %v361_v12 = vsel %vm73_vm1, %v269_v8, %v268_v7  ;;  %16071 = vmatpush3.bf16.msra.mxu0 %v16070_v9  ;;  %v63_v15 = vld [vmem:[#allocation2 + $0x8] sm:$0xff]  ;;  %v13667_v16 = vld [vmem:[%s20366_s0 + $0x54] ss:$0 sm:$0xff]  ;;  %vm901_vm6 = vcmask 1041152  }
  0x19   :  { %49 = vst [vmem:[%s20368_s2 + $0xc0] sm:$0xff] %v17006_v0  ;;  %52 = vst [vmem:[%s20368_s2 + $0xd8] sm:$0xff] %v17006_v0  ;;  %16072 = vmatprep.subr.bf16.mxu0 %v20369_v1  ;;  %v13668_v17 = vld [vmem:[%s20366_s0 + $0xd4] ss:$0 sm:$0xff]  ;;  %v16076_v18 = vpack.c.bf16 %v63_v15, %v62_v14  ;;  %v65_v23 = vld [vmem:[#allocation2 + $0x18] sm:$0xff] }
  0x1a   :  { %53 = vst [vmem:[%s20368_s2 + $0xe0] sm:$0xff] %v17006_v0  ;;  %56 = vst [vmem:[%s20368_s2 + $0xf8] sm:$0xff] %v17006_v0  ;;  %713 = vrot.lane.b32.xlu1 %v496_v5, %s17011_s10  ;;  %v1119_v19 = vld [vmem:[%s20366_s0 + $0x14] ss:$0 sm:$0xff]  ;;  %v279_v24 = vld [vmem:[#allocation2 + $0x68] sm:$0xff]  ;;  %v17210_v25 = vsel %vm73_vm1, %v13668_v17, %v13667_v16 }
  0x1b   :  { %26 = vst [vmem:[%s20368_s2 + $0x8] sm:$0xff] %v17006_v0  ;;  %27 = vst [vmem:[%s20368_s2 + $0x10] sm:$0xff] %v17006_v0  ;;  %362 = vrot.lane.b32.xlu0 %v361_v12, %s17010_s9  ;;  %v1120_v20 = vld [vmem:[%s20366_s0 + $0x94] ss:$0 sm:$0xff]  ;;  %v16082_v27 = vpack.c.bf16 %v279_v24, %v278_v21  ;;  %v490_v29 = vld [vmem:[#allocation2 + $0xa0] sm:$0xff] }
  0x1c   :  { %30 = vst [vmem:[%s20368_s2 + $0x28] sm:$0xff] %v17006_v0  ;;  %31 = vst [vmem:[%s20368_s2 + $0x30] sm:$0xff] %v17006_v0  ;;  %16074 = vmatpush3.bf16.msra.mxu0 %v16073_v13  ;;  %v64_v22 = vld [vmem:[#allocation2 + $0x10] sm:$0xff]  ;;  %v17213_v26 = vsel %vm73_vm1, %v1120_v20, %v1119_v19  ;;  %v491_v30 = vld [vmem:[#allocation2 + $0xa8] sm:$0xff] }
  0x1d   :  { %34 = vst [vmem:[%s20368_s2 + $0x48] sm:$0xff] %v17006_v0  ;;  %35 = vst [vmem:[%s20368_s2 + $0x50] sm:$0xff] %v17006_v0  ;;  %16075 = vmatprep.subr.bf16.mxu0 %v20369_v1  ;;  %v16079_v28 = vpack.c.bf16 %v65_v23, %v64_v22  ;;  %16083 = vmatpush3.bf16.msra.mxu1 %v16082_v27  ;;  %v280_v31 = vld [vmem:[#allocation2 + $0x70] sm:$0xff]  ;;  %v281_v32 = vld [vmem:[#allocation2 + $0x78] sm:$0xff]  ;;  %v16094_v34 = vpack.c.bf16 %v491_v30, %v490_v29 }
  0x1e   :  { %38 = vst [vmem:[%s20368_s2 + $0x68] sm:$0xff] %v17006_v0  ;;  %39 = vst [vmem:[%s20368_s2 + $0x70] sm:$0xff] %v17006_v0  ;;  %790 = vrot.lane.b32.xlu1 %v361_v12, %s17011_s10  ;;  %v16085_v33 = vpack.c.bf16 %v281_v32, %v280_v31  ;;  %16084 = vmatprep.subr.bf16.mxu1 %v20369_v1  ;;  %v492_v35 = vld [vmem:[#allocation2 + $0xb0] sm:$0xff]  ;;  %v493_v36 = vld [vmem:[#allocation2 + $0xb8] sm:$0xff] }
  0x1f   :  { %42 = vst [vmem:[%s20368_s2 + $0x88] sm:$0xff] %v17006_v0  ;;  %43 = vst [vmem:[%s20368_s2 + $0x90] sm:$0xff] %v17006_v0  ;;  %574 = vrot.lane.b32.xlu0 %v361_v12, %s17009_s8  ;;  %14670 = vmatmul.mubr.msk.f32.vlgmr.msra.gmra.mrb[0].mxu0 %vm75_vm2, %v496_v5  ;;  %v1967_v37 = vld [vmem:[%s20366_s0 + $0xd] ss:$0 sm:$0xff]  ;;  %v16097_v41 = vpack.c.bf16 %v493_v36, %v492_v35  ;;  %v273_v24 = vld [vmem:[#allocation2 + $0x40] sm:$0xff] }
  0x20   :  { %46 = vst [vmem:[%s20368_s2 + $0xa8] sm:$0xff] %v17006_v0  ;;  %47 = vst [vmem:[%s20368_s2 + $0xb0] sm:$0xff] %v17006_v0  ;;  %16077 = vmatpush3.bf16.msra.mxu0 %v16076_v18  ;;  %14680 = vmatprep.mubr.msk.f32.mxu0 %vm17008_vm0, %v17006_v0  ;;  %v1968_v38 = vld [vmem:[%s20366_s0 + $0x8d] ss:$0 sm:$0xff]  ;;  %v2815_v44 = vld [vmem:[%s20366_s0 + $0x15] ss:$0 sm:$0xff] }
  0x21   :  { %50 = vst [vmem:[%s20368_s2 + $0xc8] sm:$0xff] %v17006_v0  ;;  %51 = vst [vmem:[%s20368_s2 + $0xd0] sm:$0xff] %v17006_v0  ;;  %16078 = vmatprep.subr.bf16.mxu0 %v20369_v1  ;;  %16086 = vmatpush3.bf16.msra.mxu1 %v16085_v33  ;;  %v13691_v39 = vld [vmem:[%s20366_s0 + $0x4d] ss:$0 sm:$0xff]  ;;  %v17250_v42 = vsel %vm73_vm1, %v1968_v38, %v1967_v37  ;;  %v2816_v45 = vld [vmem:[%s20366_s0 + $0x95] ss:$0 sm:$0xff] }
  0x22   :  { %54 = vst [vmem:[%s20368_s2 + $0xe8] sm:$0xff] %v17006_v0  ;;  %55 = vst [vmem:[%s20368_s2 + $0xf0] sm:$0xff] %v17006_v0  ;;  %1213 = vrot.lane.b32.xlu1 %v17213_v26, %s17010_s9  ;;  %16087 = vmatprep.subr.bf16.mxu1 %v20369_v1  ;;  %v13692_v40 = vld [vmem:[%s20366_s0 + $0xcd] ss:$0 sm:$0xff]  ;;  %v2908_v48 = vsel %vm73_vm1, %v2816_v45, %v2815_v44  ;;  %v275_v32 = vld [vmem:[#allocation2 + $0x50] sm:$0xff] }
  0x23   :  { %1136 = vrot.lane.b32.xlu0 %v17210_v25, %s17010_s9  ;;  %v17253_v43 = vsel %vm73_vm1, %v13692_v40, %v13691_v39  ;;  %v13727_v46 = vld [vmem:[%s20366_s0 + $0x55] ss:$0 sm:$0xff]  ;;  %v3663_v50 = vld [vmem:[%s20366_s0 + $0xe] ss:$0 sm:$0xff]  ;;  %v4511_v56 = vld [vmem:[%s20366_s0 + $0x16] ss:$0 sm:$0xff] }
  0x24   :  { %16080 = vmatpush3.bf16.msra.mxu0 %v16079_v28  ;;  %v13728_v47 = vld [vmem:[%s20366_s0 + $0xd5] ss:$0 sm:$0xff]  ;;  %v3664_v51 = vld [vmem:[%s20366_s0 + $0x8e] ss:$0 sm:$0xff]  ;;  %v4512_v57 = vld [vmem:[%s20366_s0 + $0x96] ss:$0 sm:$0xff] }
  0x25   :  { %16093 = vmatprep.subr.bf16.mxu0 %v20369_v1  ;;  %v3257_v49 = vsel %vm73_vm1, %v13728_v47, %v13727_v46  ;;  %v13751_v52 = vld [vmem:[%s20366_s0 + $0x4e] ss:$0 sm:$0xff]  ;;  %v3756_v54 = vsel %vm73_vm1, %v3664_v51, %v3663_v50  ;;  %v13775_v58 = vld [vmem:[%s20366_s0 + $0x56] ss:$0 sm:$0xff]  ;;  %v4604_v60 = vsel %vm73_vm1, %v4512_v57, %v4511_v56  ;;  %v5359_v62 = vld [vmem:[%s20366_s0 + $0xf] ss:$0 sm:$0xff] }
  0x26   :  { %1562 = vrot.lane.b32.xlu1 %v17210_v25, %s17011_s10  ;;  %v13752_v53 = vld [vmem:[%s20366_s0 + $0xce] ss:$0 sm:$0xff]  ;;  %v13776_v59 = vld [vmem:[%s20366_s0 + $0xd6] ss:$0 sm:$0xff]  ;;  %v5360_v63 = vld [vmem:[%s20366_s0 + $0x8f] ss:$0 sm:$0xff] }
  0x27   :  { %1347 = vrot.lane.b32.xlu0 %v17210_v25, %s17009_s8  ;;  %14681 = vmatmul.mubr.msk.f32.vlgmr.msra.gmra.mrb[0].mxu0 %vm75_vm2, %v361_v12  ;;  %v4105_v55 = vsel %vm73_vm1, %v13752_v53, %v13751_v52  ;;  %v4953_v61 = vsel %vm73_vm1, %v13776_v59, %v13775_v58  ;;  %v13799_v2 = vld [vmem:[%s20366_s0 + $0x4f] ss:$0 sm:$0xff]  ;;  %v5452_v4 = vsel %vm73_vm1, %v5360_v63, %v5359_v62  ;;  %v6207_v6 = vld [vmem:[%s20366_s0 + $0x17] ss:$0 sm:$0xff]  ;;  %v7055_v12 = vld [vmem:[%s20366_s0 + $0x28] ss:$0 sm:$0xff] }
  0x28   :  { %16095 = vmatpush3.bf16.msra.mxu0 %v16094_v34  ;;  %14713 = vmatprep.mubr.msk.f32.mxu0 %vm17008_vm0, %v17006_v0  ;;  %v13800_v3 = vld [vmem:[%s20366_s0 + $0xcf] ss:$0 sm:$0xff]  ;;  %v6208_v7 = vld [vmem:[%s20366_s0 + $0x97] ss:$0 sm:$0xff]  ;;  %v7056_v13 = vld [vmem:[%s20366_s0 + $0xa8] ss:$0 sm:$0xff] }
  0x29   :  { %16096 = vmatprep.subr.bf16.mxu0 %v20369_v1  ;;  %v5801_v5 = vsel %vm73_vm1, %v13800_v3, %v13799_v2  ;;  %v13823_v8 = vld [vmem:[%s20366_s0 + $0x57] ss:$0 sm:$0xff]  ;;  %v6300_v10 = vsel %vm73_vm1, %v6208_v7, %v6207_v6  ;;  %v13847_v14 = vld [vmem:[%s20366_s0 + $0x68] ss:$0 sm:$0xff]  ;;  %v7148_v16 = vsel %vm73_vm1, %v7056_v13, %v7055_v12  ;;  %v7903_v18 = vld [vmem:[%s20366_s0 + $0x30] ss:$0 sm:$0xff] }
  0x2a   :  { %1639 = vrot.lane.b32.xlu1 %v17213_v26, %s17011_s10  ;;  %v13824_v9 = vld [vmem:[%s20366_s0 + $0xd7] ss:$0 sm:$0xff]  ;;  %v13848_v15 = vld [vmem:[%s20366_s0 + $0xe8] ss:$0 sm:$0xff]  ;;  %v7904_v19 = vld [vmem:[%s20366_s0 + $0xb0] ss:$0 sm:$0xff] }
  0x2b   :  { %1424 = vrot.lane.b32.xlu0 %v17213_v26, %s17009_s8  ;;  %v6649_v11 = vsel %vm73_vm1, %v13824_v9, %v13823_v8  ;;  %v7497_v17 = vsel %vm73_vm1, %v13848_v15, %v13847_v14  ;;  %v13871_v20 = vld [vmem:[%s20366_s0 + $0x70] ss:$0 sm:$0xff]  ;;  %v7996_v22 = vsel %vm73_vm1, %v7904_v19, %v7903_v18  ;;  %v274_v27 = vld [vmem:[#allocation2 + $0x48] sm:$0xff]  ;;  %v485_v28 = vld [vmem:[#allocation2 + $0x80] sm:$0xff] }
  0x2c   :  { %16098 = vmatpush3.bf16.msra.mxu0 %v16097_v41  ;;  %v13872_v21 = vld [vmem:[%s20366_s0 + $0xf0] ss:$0 sm:$0xff]  ;;  %v486_v29 = vld [vmem:[#allocation2 + $0x88] sm:$0xff]  ;;  %v16088_v30 = vpack.c.bf16 %v274_v27, %v273_v24  ;;  %v276_v33 = vld [vmem:[#allocation2 + $0x58] sm:$0xff] }
  0x2d   :  { %16099 = vmatprep.subr.bf16.mxu0 %v20369_v1  ;;  %v8345_v23 = vsel %vm73_vm1, %v13872_v21, %v13871_v20  ;;  %v16100_v31 = vpack.c.bf16 %v486_v29, %v485_v28  ;;  %v487_v34 = vld [vmem:[#allocation2 + $0x90] sm:$0xff]  ;;  %v488_v35 = vld [vmem:[#allocation2 + $0x98] sm:$0xff]  ;;  %v16091_v38 = vpack.c.bf16 %v276_v33, %v275_v32  ;;  %v706_v40 = vld [vmem:[#allocation2 + $0xe0] sm:$0xff] }
  0x2e   :  { %2061 = vrot.lane.b32.xlu1 %v17250_v42, %s17010_s9  ;;  %v16103_v39 = vpack.c.bf16 %v488_v35, %v487_v34  ;;  %v707_v41 = vld [vmem:[#allocation2 + $0xe8] sm:$0xff]  ;;  %v922_v44 = vld [vmem:[#allocation2 + $0x120] sm:$0xff]  ;;  %v708_v50 = vld [vmem:[#allocation2 + $0xf0] sm:$0xff] }
  0x2f   :  { %1984 = vrot.lane.b32.xlu0 %v17253_v43, %s17010_s9  ;;  %v923_v45 = vld [vmem:[#allocation2 + $0x128] sm:$0xff]  ;;  %v709_v51 = vld [vmem:[#allocation2 + $0xf8] sm:$0xff]  ;;  %v924_v52 = vld [vmem:[#allocation2 + $0x130] sm:$0xff] }
  0x30   :  { %v925_v53 = vld [vmem:[#allocation2 + $0x138] sm:$0xff]  ;;  %v13895_v58 = vld [vmem:[%s20366_s0 + $0x69] ss:$0 sm:$0xff]  ;;  %v701_v62 = vld [vmem:[#allocation2 + $0xc0] sm:$0xff] }
  0x31   :  { %v13896_v59 = vld [vmem:[%s20366_s0 + $0xe9] ss:$0 sm:$0xff]  ;;  %v917_v3 = vld [vmem:[#allocation2 + $0x100] sm:$0xff]  ;;  %v919_v12 = vld [vmem:[#allocation2 + $0x110] sm:$0xff] }
  0x32   :  { %2410 = vrot.lane.b32.xlu1 %v17253_v43, %s17011_s10  ;;  %v702_v2 = vld [vmem:[#allocation2 + $0xc8] sm:$0xff]  ;;  %v9193_v7 = vsel %vm73_vm1, %v13896_v59, %v13895_v58  ;;  %v920_v13 = vld [vmem:[#allocation2 + $0x118] sm:$0xff]  ;;  %v1129_v18 = vld [vmem:[#allocation2 + $0x160] sm:$0xff] }
  0x33   :  { %2195 = vrot.lane.b32.xlu0 %v17253_v43, %s17009_s8  ;;  %v16112_v8 = vpack.c.bf16 %v702_v2, %v701_v62  ;;  %v1130_v19 = vld [vmem:[#allocation2 + $0x168] sm:$0xff]  ;;  %v1340_v20 = vld [vmem:[#allocation2 + $0x1a0] sm:$0xff]  ;;  %v1131_v27 = vld [vmem:[#allocation2 + $0x170] sm:$0xff] }
  0x34   :  { %v1341_v21 = vld [vmem:[#allocation2 + $0x1a8] sm:$0xff]  ;;  %v1132_v28 = vld [vmem:[#allocation2 + $0x178] sm:$0xff]  ;;  %v1342_v29 = vld [vmem:[#allocation2 + $0x1b0] sm:$0xff] }
  0x35   :  { %v16142_v24 = vpack.c.bf16 %v1341_v21, %v1340_v20  ;;  %v16133_v33 = vpack.c.bf16 %v1132_v28, %v1131_v27  ;;  %v1124_v35 = vld [vmem:[#allocation2 + $0x140] sm:$0xff]  ;;  %v1556_v58 = vld [vmem:[#allocation2 + $0x1e8] sm:$0xff]  ;;  %v1552_v21 = vld [vmem:[#allocation2 + $0x1d0] sm:$0xff] }
  0x36   :  { %2487 = vrot.lane.b32.xlu1 %v17250_v42, %s17011_s10  ;;  %v1770_v59 = vld [vmem:[#allocation2 + $0x220] sm:$0xff] }
  0x37   :  { %2272 = vrot.lane.b32.xlu0 %v17250_v42, %s17009_s8 }
  0x3a   :  { %2909 = vrot.lane.b32.xlu1 %v2908_v48, %s17010_s9 }
  0x3b   :  { %2832 = vrot.lane.b32.xlu0 %v3257_v49, %s17010_s9 }
  0x3e   :  { %3258 = vrot.lane.b32.xlu1 %v3257_v49, %s17011_s10 }
  0x3f   :  { %3043 = vrot.lane.b32.xlu0 %v3257_v49, %s17009_s8  ;;  %v16118_v49 = vpack.c.bf16 %v923_v45, %v922_v44  ;;  %v1126_v44 = vld [vmem:[#allocation2 + $0x150] sm:$0xff]  ;;  %v1127_v45 = vld [vmem:[#allocation2 + $0x158] sm:$0xff] }
  0x42   :  { %3335 = vrot.lane.b32.xlu1 %v2908_v48, %s17011_s10 }
  0x43   :  { %3120 = vrot.lane.b32.xlu0 %v2908_v48, %s17009_s8  ;;  %v16106_v48 = vpack.c.bf16 %v707_v41, %v706_v40 }
  0x46   :  { %3757 = vrot.lane.b32.xlu1 %v3756_v54, %s17010_s9 }
  0x47   :  { %3680 = vrot.lane.b32.xlu0 %v4105_v55, %s17010_s9 }
  0x4a   :  { %4106 = vrot.lane.b32.xlu1 %v4105_v55, %s17011_s10 }
  0x4b   :  { %3891 = vrot.lane.b32.xlu0 %v4105_v55, %s17009_s8  ;;  %v8752_v55 = vld [vmem:[%s20366_s0 + $0xa9] ss:$0 sm:$0xff] }
  0x4e   :  { %4183 = vrot.lane.b32.xlu1 %v3756_v54, %s17011_s10 }
  0x4f   :  { %3968 = vrot.lane.b32.xlu0 %v3756_v54, %s17009_s8  ;;  %v8751_v54 = vld [vmem:[%s20366_s0 + $0x29] ss:$0 sm:$0xff] }
  0x50   :  { %v17435_v63 = vsel %vm73_vm1, %v8752_v55, %v8751_v54  ;;  %v16139_v54 = vpack.c.bf16 %v1127_v45, %v1126_v44  ;;  %v2190_v44 = vld [vmem:[#allocation2 + $0x2b0] sm:$0xff]  ;;  %v2191_v45 = vld [vmem:[#allocation2 + $0x2b8] sm:$0xff] }
  0x52   :  { %4605 = vrot.lane.b32.xlu1 %v4604_v60, %s17010_s9 }
  0x53   :  { %4528 = vrot.lane.b32.xlu0 %v4953_v61, %s17010_s9 }
  0x56   :  { %4954 = vrot.lane.b32.xlu1 %v4953_v61, %s17011_s10 }
  0x57   :  { %4739 = vrot.lane.b32.xlu0 %v4953_v61, %s17009_s8  ;;  %v16121_v61 = vpack.c.bf16 %v925_v53, %v924_v52  ;;  %v13919_v52 = vld [vmem:[%s20366_s0 + $0x71] ss:$0 sm:$0xff] }
  0x58   :  { %v13920_v53 = vld [vmem:[%s20366_s0 + $0xf1] ss:$0 sm:$0xff] }
  0x5a   :  { %5031 = vrot.lane.b32.xlu1 %v4604_v60, %s17011_s10 }
  0x5b   :  { %4816 = vrot.lane.b32.xlu0 %v4604_v60, %s17009_s8  ;;  %v16109_v60 = vpack.c.bf16 %v709_v51, %v708_v50 }
  0x5e   :  { %5453 = vrot.lane.b32.xlu1 %v5452_v4, %s17010_s9 }
  0x5f   :  { %5376 = vrot.lane.b32.xlu0 %v5801_v5, %s17010_s9 }
  0x62   :  { %5802 = vrot.lane.b32.xlu1 %v5801_v5, %s17011_s10 }
  0x63   :  { %5587 = vrot.lane.b32.xlu0 %v5801_v5, %s17009_s8 }
  0x66   :  { %5879 = vrot.lane.b32.xlu1 %v5452_v4, %s17011_s10 }
  0x67   :  { %5664 = vrot.lane.b32.xlu0 %v5452_v4, %s17009_s8  ;;  %v918_v4 = vld [vmem:[#allocation2 + $0x108] sm:$0xff] }
  0x68   :  { %v16124_v9 = vpack.c.bf16 %v918_v4, %v917_v3  ;;  %v1557_v4 = vld [vmem:[#allocation2 + $0x1f0] sm:$0xff] }
  0x6a   :  { %6301 = vrot.lane.b32.xlu1 %v6300_v10, %s17010_s9 }
  0x6b   :  { %6224 = vrot.lane.b32.xlu0 %v6649_v11, %s17010_s9 }
  0x6e   :  { %6650 = vrot.lane.b32.xlu1 %v6649_v11, %s17011_s10 }
  0x6f   :  { %6435 = vrot.lane.b32.xlu0 %v6649_v11, %s17009_s8  ;;  %v704_v11 = vld [vmem:[#allocation2 + $0xd8] sm:$0xff] }
  0x72   :  { %6727 = vrot.lane.b32.xlu1 %v6300_v10, %s17011_s10 }
  0x73   :  { %6512 = vrot.lane.b32.xlu0 %v6300_v10, %s17009_s8  ;;  %v703_v10 = vld [vmem:[#allocation2 + $0xd0] sm:$0xff] }
  0x76   :  { %7149 = vrot.lane.b32.xlu1 %v7148_v16, %s17010_s9 }
  0x77   :  { %7072 = vrot.lane.b32.xlu0 %v7497_v17, %s17010_s9 }
  0x7a   :  { %7498 = vrot.lane.b32.xlu1 %v7497_v17, %s17011_s10 }
  0x7b   :  { %7283 = vrot.lane.b32.xlu0 %v7497_v17, %s17009_s8  ;;  %v16127_v17 = vpack.c.bf16 %v920_v13, %v919_v12  ;;  %v1550_v13 = vld [vmem:[#allocation2 + $0x1c0] sm:$0xff] }
  0x7e   :  { %7575 = vrot.lane.b32.xlu1 %v7148_v16, %s17011_s10 }
  0x7f   :  { %7360 = vrot.lane.b32.xlu0 %v7148_v16, %s17009_s8  ;;  %v16115_v16 = vpack.c.bf16 %v704_v11, %v703_v10 }
  0x82   :  { %7997 = vrot.lane.b32.xlu1 %v7996_v22, %s17010_s9 }
  0x83   :  { %7920 = vrot.lane.b32.xlu0 %v8345_v23, %s17010_s9 }
  0x86   :  { %8346 = vrot.lane.b32.xlu1 %v8345_v23, %s17011_s10 }
  0x87   :  { %8131 = vrot.lane.b32.xlu0 %v8345_v23, %s17009_s8  ;;  %v16130_v23 = vpack.c.bf16 %v1130_v19, %v1129_v18 }
  0x88   :  { %v498_v36 = vpop.permute.xlu1 %497 }
  0x89   :  { %v286_v37 = vpop.permute.xlu0 %285  ;;  %14714 = vmatmul.mubr.msk.f32.vlgmr.msra.gmra.mrb[2].mxu0 %vm75_vm2, %v498_v36  ;;  %v1125_v36 = vld [vmem:[#allocation2 + $0x148] sm:$0xff] }
  0x8a   :  { %14692 = vmatmul.mubr.msk.f32.vlgmr.msra.gmra.mrb[0].mxu1 %vm75_vm2, %v286_v37  ;;  %16101 = vmatpush3.bf16.msra.mxu0 %v16100_v31  ;;  %v1335_v37 = vld [vmem:[#allocation2 + $0x180] sm:$0xff]  ;;  %v16136_v40 = vpack.c.bf16 %v1125_v36, %v1124_v35  ;;  %v2189_v36 = vld [vmem:[#allocation2 + $0x2a8] sm:$0xff] }
  0x8b   :  { %16089 = vmatpush3.bf16.msra.mxu1 %v16088_v30  ;;  %16102 = vmatprep.subr.bf16.mxu0 %v20369_v1  ;;  %v1343_v30 = vld [vmem:[#allocation2 + $0x1b8] sm:$0xff]  ;;  %v2188_v35 = vld [vmem:[#allocation2 + $0x2a0] sm:$0xff] }
  0x8c   :  { %16090 = vmatprep.subr.bf16.mxu1 %v20369_v1  ;;  %14702 = vmatprep.mubr.msk.f32.mxu1 %vm17008_vm0, %v17006_v0  ;;  %v714_v47 = vpop.permute.xlu1 %713  ;;  %v16145_v34 = vpack.c.bf16 %v1343_v30, %v1342_v29 }
  0x8d   :  { %v363_v46 = vpop.permute.xlu0 %362  ;;  %14724 = vmatprep.mubr.msk.f32.mxu0 %vm17008_vm0, %v17006_v0  ;;  %8423 = vrot.lane.b32.xlu1 %v7996_v22, %s17011_s10 }
  0x8e   :  { %8208 = vrot.lane.b32.xlu0 %v7996_v22, %s17009_s8  ;;  %16104 = vmatpush3.bf16.msra.mxu0 %v16103_v39 }
  0x8f   :  { %16092 = vmatpush3.bf16.msra.mxu1 %v16091_v38  ;;  %16117 = vmatprep.subr.bf16.mxu0 %v20369_v1  ;;  %v1336_v38 = vld [vmem:[#allocation2 + $0x188] sm:$0xff] }
  0x90   :  { %16105 = vmatprep.subr.bf16.mxu1 %v20369_v1  ;;  %v17424_v57 = vpop.permute.xlu1 %790  ;;  %v16148_v41 = vpack.c.bf16 %v1336_v38, %v1335_v37  ;;  %v16190_v38 = vpack.c.bf16 %v2189_v36, %v2188_v35  ;;  %v13967_v36 = vld [vmem:[%s20366_s0 + $0x72] ss:$0 sm:$0xff] }
  0x91   :  { %v575_v56 = vpop.permute.xlu0 %574  ;;  %8845 = vrot.lane.b32.xlu1 %v17435_v63, %s17010_s9 }
  0x92   :  { %14703 = vmatmul.mubr.msk.f32.vlgmr.msra.gmra.mrb[0].mxu1 %vm75_vm2, %v363_v46  ;;  %14725 = vmatmul.mubr.msk.f32.vlgmr.msra.gmra.mrb[2].mxu0 %vm75_vm2, %v575_v56  ;;  %v1337_v46 = vld [vmem:[#allocation2 + $0x190] sm:$0xff]  ;;  %v1555_v56 = vld [vmem:[#allocation2 + $0x1e0] sm:$0xff] }
  0x93   :  { %16107 = vmatpush3.bf16.msra.mxu1 %v16106_v48  ;;  %16119 = vmatpush3.bf16.msra.mxu0 %v16118_v49  ;;  %v9599_v48 = vld [vmem:[%s20366_s0 + $0x31] ss:$0 sm:$0xff]  ;;  %v16154_v2 = vpack.c.bf16 %v1556_v58, %v1555_v56  ;;  %v2184_v58 = vld [vmem:[#allocation2 + $0x288] sm:$0xff] }
  0x94   :  { %16108 = vmatprep.subr.bf16.mxu1 %v20369_v1  ;;  %16120 = vmatprep.subr.bf16.mxu0 %v20369_v1  ;;  %v17445_v6 = vpop.permute.xlu1 %1213  ;;  %v9600_v49 = vld [vmem:[%s20366_s0 + $0xb1] ss:$0 sm:$0xff] }
  0x95   :  { %14735 = vmatprep.mubr.msk.f32.mxu1 %vm17008_vm0, %v17006_v0  ;;  %14757 = vmatprep.mubr.msk.f32.mxu0 %vm17008_vm0, %v17006_v0  ;;  %v17443_v5 = vpop.permute.xlu0 %1136 }
  0x96   :  { %8768 = vrot.lane.b32.xlu0 %v9193_v7, %s17010_s9  ;;  %9194 = vrot.lane.b32.xlu1 %v9193_v7, %s17011_s10 }
  0x97   :  { %16110 = vmatpush3.bf16.msra.mxu1 %v16109_v60  ;;  %16122 = vmatpush3.bf16.msra.mxu0 %v16121_v61  ;;  %v1771_v60 = vld [vmem:[#allocation2 + $0x228] sm:$0xff]  ;;  %v10041_v61 = vsel %vm73_vm1, %v13920_v53, %v13919_v52 }
  0x98   :  { %16111 = vmatprep.subr.bf16.mxu1 %v20369_v1  ;;  %16123 = vmatprep.subr.bf16.mxu0 %v20369_v1  ;;  %v17455_v15 = vpop.permute.xlu1 %1562  ;;  %v16166_v3 = vpack.c.bf16 %v1771_v60, %v1770_v59  ;;  %v13943_v52 = vld [vmem:[%s20366_s0 + $0x6a] ss:$0 sm:$0xff] }
  0x99   :  { %v17453_v14 = vpop.permute.xlu0 %1347  ;;  %v13944_v53 = vld [vmem:[%s20366_s0 + $0xea] ss:$0 sm:$0xff] }
  0x9a   :  { %14736 = vmatmul.mubr.msk.f32.vlgmr.msra.gmra.mrb[2].mxu1 %vm75_vm2, %v714_v47  ;;  %14758 = vmatmul.mubr.msk.f32.vlgmr.msra.gmra.mrb[4].mxu0 %vm75_vm2, %v17210_v25  ;;  %v1338_v47 = vld [vmem:[#allocation2 + $0x198] sm:$0xff]  ;;  %v10889_v59 = vsel %vm73_vm1, %v13944_v53, %v13943_v52 }
  0x9b   :  { %16113 = vmatpush3.bf16.msra.mxu1 %v16112_v8  ;;  %16125 = vmatpush3.bf16.msra.mxu0 %v16124_v9  ;;  %v16151_v55 = vpack.c.bf16 %v1338_v47, %v1337_v46  ;;  %v1773_v8 = vld [vmem:[#allocation2 + $0x238] sm:$0xff]  ;;  %v10447_v46 = vld [vmem:[%s20366_s0 + $0x2a] ss:$0 sm:$0xff] }
  0x9c   :  { %16114 = vmatprep.subr.bf16.mxu1 %v20369_v1  ;;  %16126 = vmatprep.subr.bf16.mxu0 %v20369_v1  ;;  %v17468_v25 = vpop.permute.xlu1 %1639  ;;  %v10448_v47 = vld [vmem:[%s20366_s0 + $0xaa] ss:$0 sm:$0xff] }
  0x9d   :  { %14746 = vmatprep.mubr.msk.f32.mxu1 %vm17008_vm0, %v17006_v0  ;;  %14768 = vmatprep.mubr.msk.f32.mxu0 %vm17008_vm0, %v17006_v0  ;;  %v17466_v22 = vpop.permute.xlu0 %1424  ;;  %v17604_v56 = vsel %vm73_vm1, %v10448_v47, %v10447_v46  ;;  %v2614_v46 = vld [vmem:[#allocation2 + $0x308] sm:$0xff]  ;;  %v17680_v47 = vld [vmem:[%s20368_s2] sm:$0xff] }
  0x9e   :  { %8979 = vrot.lane.b32.xlu0 %v9193_v7, %s17009_s8  ;;  %9271 = vrot.lane.b32.xlu1 %v17435_v63, %s17011_s10  ;;  %v1772_v7 = vld [vmem:[#allocation2 + $0x230] sm:$0xff] }
  0x9f   :  { %16116 = vmatpush3.bf16.msra.mxu1 %v16115_v16  ;;  %16128 = vmatpush3.bf16.msra.mxu0 %v16127_v17  ;;  %v16169_v12 = vpack.c.bf16 %v1773_v8, %v1772_v7  ;;  %v1765_v16 = vld [vmem:[#allocation2 + $0x200] sm:$0xff]  ;;  %v1766_v17 = vld [vmem:[#allocation2 + $0x208] sm:$0xff]  ;;  %v2185_v7 = vld [vmem:[#allocation2 + $0x290] sm:$0xff] }
  0xa0   :  { %16129 = vmatprep.subr.bf16.mxu1 %v20369_v1  ;;  %16141 = vmatprep.subr.bf16.mxu0 %v20369_v1  ;;  %v17474_v31 = vpop.permute.xlu1 %2061  ;;  %v16172_v20 = vpack.c.bf16 %v1766_v17, %v1765_v16  ;;  %v2186_v8 = vld [vmem:[#allocation2 + $0x298] sm:$0xff]  ;;  %v2403_v16 = vld [vmem:[#allocation2 + $0x2e0] sm:$0xff]  ;;  %v2404_v17 = vld [vmem:[#allocation2 + $0x2e8] sm:$0xff] }
  0xa1   :  { %v17476_v32 = vpop.permute.xlu0 %1984 }
  0xa2   :  { %14747 = vmatmul.mubr.msk.f32.vlgmr.msra.gmra.mrb[2].mxu1 %vm75_vm2, %v17424_v57  ;;  %14769 = vmatmul.mubr.msk.f32.vlgmr.msra.gmra.mrb[4].mxu0 %vm75_vm2, %v17213_v26  ;;  %v17519_v57 = vsel %vm73_vm1, %v9600_v49, %v9599_v48 }
  0xa3   :  { %16131 = vmatpush3.bf16.msra.mxu1 %v16130_v23  ;;  %16143 = vmatpush3.bf16.msra.mxu0 %v16142_v24  ;;  %v1767_v23 = vld [vmem:[#allocation2 + $0x210] sm:$0xff]  ;;  %v1768_v24 = vld [vmem:[#allocation2 + $0x218] sm:$0xff] }
  0xa4   :  { %16132 = vmatprep.subr.bf16.mxu1 %v20369_v1  ;;  %16144 = vmatprep.subr.bf16.mxu0 %v20369_v1  ;;  %v17488_v39 = vpop.permute.xlu1 %2410  ;;  %v16175_v30 = vpack.c.bf16 %v1768_v24, %v1767_v23  ;;  %v2405_v24 = vld [vmem:[#allocation2 + $0x2f0] sm:$0xff] }
  0xa5   :  { %14779 = vmatprep.mubr.msk.f32.mxu1 %vm17008_vm0, %v17006_v0  ;;  %14801 = vmatprep.mubr.msk.f32.mxu0 %vm17008_vm0, %v17006_v0  ;;  %v17490_v26 = vpop.permute.xlu0 %2195 }
  0xa6   :  { %9056 = vrot.lane.b32.xlu0 %v17435_v63, %s17009_s8  ;;  %9693 = vrot.lane.b32.xlu1 %v17519_v57, %s17010_s9 }
  0xa7   :  { %16134 = vmatpush3.bf16.msra.mxu1 %v16133_v33  ;;  %16146 = vmatpush3.bf16.msra.mxu0 %v16145_v34  ;;  %v1977_v33 = vld [vmem:[#allocation2 + $0x260] sm:$0xff]  ;;  %v1978_v34 = vld [vmem:[#allocation2 + $0x268] sm:$0xff] }
  0xa8   :  { %16135 = vmatprep.subr.bf16.mxu1 %v20369_v1  ;;  %16147 = vmatprep.subr.bf16.mxu0 %v20369_v1  ;;  %v17504_v50 = vpop.permute.xlu1 %2487  ;;  %v16178_v37 = vpack.c.bf16 %v1978_v34, %v1977_v33  ;;  %v2621_v33 = vld [vmem:[#allocation2 + $0x338] sm:$0xff] }
  0xa9   :  { %v17506_v51 = vpop.permute.xlu0 %2272 }
  0xaa   :  { %14780 = vmatmul.mubr.msk.f32.vlgmr.msra.gmra.mrb[4].mxu1 %vm75_vm2, %v17443_v5  ;;  %14802 = vmatmul.mubr.msk.f32.vlgmr.msra.gmra.mrb[6].mxu0 %vm75_vm2, %v17453_v14  ;;  %v1558_v5 = vld [vmem:[#allocation2 + $0x1f8] sm:$0xff]  ;;  %v1551_v14 = vld [vmem:[#allocation2 + $0x1c8] sm:$0xff] }
  0xab   :  { %16137 = vmatpush3.bf16.msra.mxu1 %v16136_v40  ;;  %16149 = vmatpush3.bf16.msra.mxu0 %v16148_v41  ;;  %v16157_v11 = vpack.c.bf16 %v1558_v5, %v1557_v4  ;;  %v16160_v19 = vpack.c.bf16 %v1551_v14, %v1550_v13  ;;  %v1979_v40 = vld [vmem:[#allocation2 + $0x270] sm:$0xff]  ;;  %v1980_v41 = vld [vmem:[#allocation2 + $0x278] sm:$0xff]  ;;  %v16199_v14 = vpack.c.bf16 %v2186_v8, %v2185_v7 }
  0xac   :  { %16138 = vmatprep.subr.bf16.mxu1 %v20369_v1  ;;  %16150 = vmatprep.subr.bf16.mxu0 %v20369_v1  ;;  %v17528_v62 = vpop.permute.xlu1 %2909  ;;  %v1974_v4 = vld [vmem:[#allocation2 + $0x250] sm:$0xff]  ;;  %v1975_v5 = vld [vmem:[#allocation2 + $0x258] sm:$0xff] }
  0xad   :  { %14790 = vmatprep.mubr.msk.f32.mxu1 %vm17008_vm0, %v17006_v0  ;;  %14812 = vmatprep.mubr.msk.f32.mxu0 %vm17008_vm0, %v17006_v0  ;;  %v17530_v63 = vpop.permute.xlu0 %2832  ;;  %v16187_v13 = vpack.c.bf16 %v1975_v5, %v1974_v4  ;;  %v13980_v4 = vld [vmem:[%s20366_s0 + $0xeb] ss:$0 sm:$0xff]  ;;  %v2608_v8 = vld [vmem:[%s20366_s0 + $0x15] ss:$0 sm:$0xff] }
  0xae   :  { %9616 = vrot.lane.b32.xlu0 %v10041_v61, %s17010_s9  ;;  %10042 = vrot.lane.b32.xlu1 %v10041_v61, %s17011_s10 }
  0xaf   :  { %16140 = vmatpush3.bf16.msra.mxu1 %v16139_v54  ;;  %16152 = vmatpush3.bf16.msra.mxu0 %v16151_v55  ;;  %v16181_v54 = vpack.c.bf16 %v1980_v41, %v1979_v40  ;;  %v16193_v55 = vpack.c.bf16 %v2191_v45, %v2190_v44  ;;  %v13709_v41 = vld [vmem:[%s20366_s0 + $0x55] ss:$0 sm:$0xff]  ;;  %v2399_v44 = vld [vmem:[#allocation2 + $0x2c8] sm:$0xff]  ;;  %v2613_v45 = vld [vmem:[#allocation2 + $0x300] sm:$0xff] }
  0xb0   :  { %16153 = vmatprep.subr.bf16.mxu1 %v20369_v1  ;;  %16165 = vmatprep.subr.bf16.mxu0 %v20369_v1  ;;  %v17537_v9 = vpop.permute.xlu1 %3258 }
  0xb1   :  { %v17539_v10 = vpop.permute.xlu0 %3043 }
  0xb2   :  { %14791 = vmatmul.mubr.msk.f32.vlgmr.msra.gmra.mrb[4].mxu1 %vm75_vm2, %v17445_v6  ;;  %14813 = vmatmul.mubr.msk.f32.vlgmr.msra.gmra.mrb[6].mxu0 %vm75_vm2, %v17466_v22  ;;  %v1553_v22 = vld [vmem:[#allocation2 + $0x1d8] sm:$0xff] }
  0xb3   :  { %16155 = vmatpush3.bf16.msra.mxu1 %v16154_v2  ;;  %16167 = vmatpush3.bf16.msra.mxu0 %v16166_v3  ;;  %v16163_v29 = vpack.c.bf16 %v1553_v22, %v1552_v21  ;;  %v11296_v21 = vld [vmem:[%s20366_s0 + $0xb2] ss:$0 sm:$0xff]  ;;  %v16202_v22 = vpack.c.bf16 %v2404_v17, %v2403_v16  ;;  %v2826_v16 = vld [vmem:[#allocation2 + $0x368] sm:$0xff]  ;;  %v3036_v17 = vld [vmem:[#allocation2 + $0x3a0] sm:$0xff] }
  0xb4   :  { %16156 = vmatprep.subr.bf16.mxu1 %v20369_v1  ;;  %16168 = vmatprep.subr.bf16.mxu0 %v20369_v1  ;;  %v17551_v6 = vpop.permute.xlu1 %3335 }
  0xb5   :  { %14823 = vmatprep.mubr.msk.f32.mxu1 %vm17008_vm0, %v17006_v0  ;;  %14845 = vmatprep.mubr.msk.f32.mxu0 %vm17008_vm0, %v17006_v0  ;;  %v17553_v18 = vpop.permute.xlu0 %3120 }
  0xb6   :  { %9827 = vrot.lane.b32.xlu0 %v10041_v61, %s17009_s8  ;;  %10119 = vrot.lane.b32.xlu1 %v17519_v57, %s17011_s10 }
  0xb7   :  { %16158 = vmatpush3.bf16.msra.mxu1 %v16157_v11  ;;  %16170 = vmatpush3.bf16.msra.mxu0 %v16169_v12 }
  0xb8   :  { %16159 = vmatprep.subr.bf16.mxu1 %v20369_v1  ;;  %16171 = vmatprep.subr.bf16.mxu0 %v20369_v1  ;;  %v17559_v27 = vpop.permute.xlu1 %3757 }
  0xb9   :  { %v17561_v28 = vpop.permute.xlu0 %3680 }
  0xba   :  { %14824 = vmatmul.mubr.msk.f32.vlgmr.msra.gmra.mrb[6].mxu1 %vm75_vm2, %v17455_v15  ;;  %14846 = vmatmul.mubr.msk.f32.vlgmr.msra.gmra.mrb[8].mxu0 %vm75_vm2, %v17253_v43 }
  0xbb   :  { %16161 = vmatpush3.bf16.msra.mxu1 %v16160_v19  ;;  %16173 = vmatpush3.bf16.msra.mxu0 %v16172_v20  ;;  %v2618_v19 = vld [vmem:[#allocation2 + $0x320] sm:$0xff]  ;;  %v2619_v20 = vld [vmem:[#allocation2 + $0x328] sm:$0xff] }
  0xbc   :  { %16162 = vmatprep.subr.bf16.mxu1 %v20369_v1  ;;  %16174 = vmatprep.subr.bf16.mxu0 %v20369_v1  ;;  %v17573_v15 = vpop.permute.xlu1 %4106  ;;  %v16214_v23 = vpack.c.bf16 %v2619_v20, %v2618_v19  ;;  %v3037_v19 = vld [vmem:[#allocation2 + $0x3a8] sm:$0xff] }
  0xbd   :  { %14834 = vmatprep.mubr.msk.f32.mxu1 %vm17008_vm0, %v17006_v0  ;;  %14856 = vmatprep.mubr.msk.f32.mxu0 %vm17008_vm0, %v17006_v0  ;;  %v17575_v43 = vpop.permute.xlu0 %3891 }
  0xbe   :  { %9904 = vrot.lane.b32.xlu0 %v17519_v57, %s17009_s8  ;;  %v1972_v57 = vld [vmem:[#allocation2 + $0x240] sm:$0xff]  ;;  %10541 = vrot.lane.b32.xlu1 %v17604_v56, %s17010_s9 }
  0xbf   :  { %16164 = vmatpush3.bf16.msra.mxu1 %v16163_v29  ;;  %16176 = vmatpush3.bf16.msra.mxu0 %v16175_v30  ;;  %v2620_v30 = vld [vmem:[#allocation2 + $0x330] sm:$0xff] }
  0xc0   :  { %16177 = vmatprep.subr.bf16.mxu1 %v20369_v1  ;;  %16189 = vmatprep.subr.bf16.mxu0 %v20369_v1  ;;  %v17589_v48 = vpop.permute.xlu1 %4183  ;;  %v16217_v40 = vpack.c.bf16 %v2621_v33, %v2620_v30  ;;  %v2827_v30 = vld [vmem:[#allocation2 + $0x370] sm:$0xff]  ;;  %v2828_v33 = vld [vmem:[#allocation2 + $0x378] sm:$0xff] }
  0xc1   :  { %v17591_v49 = vpop.permute.xlu0 %3968 }
  0xc2   :  { %14835 = vmatmul.mubr.msk.f32.vlgmr.msra.gmra.mrb[6].mxu1 %vm75_vm2, %v17468_v25  ;;  %14857 = vmatmul.mubr.msk.f32.vlgmr.msra.gmra.mrb[8].mxu0 %vm75_vm2, %v17250_v42  ;;  %v1973_v42 = vld [vmem:[#allocation2 + $0x248] sm:$0xff]  ;;  %v2183_v25 = vld [vmem:[#allocation2 + $0x280] sm:$0xff] }
  0xc3   :  { %16179 = vmatpush3.bf16.msra.mxu1 %v16178_v37  ;;  %16191 = vmatpush3.bf16.msra.mxu0 %v16190_v38  ;;  %v16184_v2 = vpack.c.bf16 %v1973_v42, %v1972_v57  ;;  %v16196_v3 = vpack.c.bf16 %v2184_v58, %v2183_v25  ;;  %v13968_v37 = vld [vmem:[%s20366_s0 + $0xf2] ss:$0 sm:$0xff]  ;;  %v16220_v42 = vpack.c.bf16 %v2614_v46, %v2613_v45  ;;  %v2401_v58 = vld [vmem:[#allocation2 + $0x2d8] sm:$0xff]  ;;  %v3031_v45 = vld [vmem:[#allocation2 + $0x380] sm:$0xff] }
  0xc4   :  { %16180 = vmatprep.subr.bf16.mxu1 %v20369_v1  ;;  %16192 = vmatprep.subr.bf16.mxu0 %v20369_v1  ;;  %v17613_v60 = vpop.permute.xlu1 %4605  ;;  %v17685_v52 = vsel %vm73_vm1, %v13968_v37, %v13967_v36  ;;  %v2400_v25 = vld [vmem:[#allocation2 + $0x2d0] sm:$0xff]  ;;  %v3039_v37 = vld [vmem:[#allocation2 + $0x3b8] sm:$0xff]  ;;  %v3032_v46 = vld [vmem:[#allocation2 + $0x388] sm:$0xff] }
  0xc5   :  { %14867 = vmatprep.mubr.msk.f32.mxu1 %vm17008_vm0, %v17006_v0  ;;  %14889 = vmatprep.mubr.msk.f32.mxu0 %vm17008_vm0, %v17006_v0  ;;  %v17615_v61 = vpop.permute.xlu0 %4528  ;;  %v16211_v5 = vpack.c.bf16 %v2401_v58, %v2400_v25  ;;  %v3038_v36 = vld [vmem:[#allocation2 + $0x3b0] sm:$0xff]  ;;  %v2823_v58 = vld [vmem:[#allocation2 + $0x358] sm:$0xff] }
  0xc6   :  { %10464 = vrot.lane.b32.xlu0 %v10889_v59, %s17010_s9  ;;  %10890 = vrot.lane.b32.xlu1 %v10889_v59, %s17011_s10 }
  0xc7   :  { %16182 = vmatpush3.bf16.msra.mxu1 %v16181_v54  ;;  %16194 = vmatpush3.bf16.msra.mxu0 %v16193_v55 }
  0xc8   :  { %16183 = vmatprep.subr.bf16.mxu1 %v20369_v1  ;;  %16195 = vmatprep.subr.bf16.mxu0 %v20369_v1  ;;  %v17622_v11 = vpop.permute.xlu1 %4954 }
  0xc9   :  { %v17624_v12 = vpop.permute.xlu0 %4739 }
  0xca   :  { %14868 = vmatmul.mubr.msk.f32.vlgmr.msra.gmra.mrb[8].mxu1 %vm75_vm2, %v17476_v32  ;;  %14890 = vmatmul.mubr.msk.f32.vlgmr.msra.gmra.mrb[10].mxu0 %vm75_vm2, %v17490_v26  ;;  %v11295_v26 = vld [vmem:[%s20366_s0 + $0x32] ss:$0 sm:$0xff] }
  0xcb   :  { %16185 = vmatpush3.bf16.msra.mxu1 %v16184_v2  ;;  %16197 = vmatpush3.bf16.msra.mxu0 %v16196_v3  ;;  %v17653_v34 = vsel %vm73_vm1, %v11296_v21, %v11295_v26  ;;  %v2616_v2 = vld [vmem:[#allocation2 + $0x318] sm:$0xff]  ;;  %v12143_v26 = vld [vmem:[%s20366_s0 + $0x2b] ss:$0 sm:$0xff] }
  0xcc   :  { %16186 = vmatprep.subr.bf16.mxu1 %v20369_v1  ;;  %16198 = vmatprep.subr.bf16.mxu0 %v20369_v1  ;;  %v17635_v32 = vpop.permute.xlu1 %5031  ;;  %v12144_v21 = vld [vmem:[%s20366_s0 + $0xab] ss:$0 sm:$0xff] }
  0xcd   :  { %14878 = vmatprep.mubr.msk.f32.mxu1 %vm17008_vm0, %v17006_v0  ;;  %14900 = vmatprep.mubr.msk.f32.mxu0 %vm17008_vm0, %v17006_v0  ;;  %v17646_v29 = vpop.permute.xlu0 %4816  ;;  %v2406_v0 = vld [vmem:[#allocation2 + $0x2f8] sm:$0xff] }
  0xce   :  { %10675 = vrot.lane.b32.xlu0 %v10889_v59, %s17009_s8  ;;  %10967 = vrot.lane.b32.xlu1 %v17604_v56, %s17011_s10  ;;  %v16205_v38 = vpack.c.bf16 %v2406_v0, %v2405_v24  ;;  %v2615_v59 = vld [vmem:[#allocation2 + $0x310] sm:$0xff]  ;;  %v16238_v0 = vpack.c.bf16 %v3037_v19, %v3036_v17 }
  0xcf   :  { %16188 = vmatpush3.bf16.msra.mxu1 %v16187_v13  ;;  %16200 = vmatpush3.bf16.msra.mxu0 %v16199_v14  ;;  %v16223_v7 = vpack.c.bf16 %v2616_v2, %v2615_v59  ;;  %v2825_v13 = vld [vmem:[#allocation2 + $0x360] sm:$0xff]  ;;  %v3033_v59 = vld [vmem:[#allocation2 + $0x390] sm:$0xff]  ;;  %v3034_v2 = vld [vmem:[#allocation2 + $0x398] sm:$0xff] }
  0xd0   :  { %16201 = vmatprep.subr.bf16.mxu1 %v20369_v1  ;;  %16213 = vmatprep.subr.bf16.mxu0 %v20369_v1  ;;  %v17655_v35 = vpop.permute.xlu1 %5453  ;;  %v16226_v24 = vpack.c.bf16 %v2826_v16, %v2825_v13  ;;  %v12991_v17 = vld [vmem:[%s20366_s0 + $0x33] ss:$0 sm:$0xff] }
  0xd1   :  { %v17689_v54 = vpop.permute.xlu0 %5376  ;;  %v12992_v19 = vld [vmem:[%s20366_s0 + $0xb3] ss:$0 sm:$0xff] }
  0xd2   :  { %14879 = vmatmul.mubr.msk.f32.vlgmr.msra.gmra.mrb[8].mxu1 %vm75_vm2, %v17474_v31  ;;  %14901 = vmatmul.mubr.msk.f32.vlgmr.msra.gmra.mrb[10].mxu0 %vm75_vm2, %v17506_v51  ;;  %v13710_v31 = vld [vmem:[%s20366_s0 + $0xd5] ss:$0 sm:$0xff]  ;;  %v2398_v51 = vld [vmem:[#allocation2 + $0x2c0] sm:$0xff] }
  0xd3   :  { %16203 = vmatpush3.bf16.msra.mxu1 %v16202_v22  ;;  %16215 = vmatpush3.bf16.msra.mxu0 %v16214_v23  ;;  %v2624_v55 = vsel %vm73_vm1, %v13710_v31, %v13709_v41  ;;  %v16208_v57 = vpack.c.bf16 %v2399_v44, %v2398_v51  ;;  %v16229_v41 = vpack.c.bf16 %v2828_v33, %v2827_v30  ;;  %v2820_v51 = vld [vmem:[#allocation2 + $0x340] sm:$0xff]  ;;  %v2821_v44 = vld [vmem:[#allocation2 + $0x348] sm:$0xff]  ;;  %v17012_v30 = vmov 1966171168  }
  0xd4   :  { %11389 = vrot.lane.b32.xlu1 %v17653_v34, %s17010_s9  ;;  %16204 = vmatprep.subr.bf16.mxu1 %v20369_v1  ;;  %v17687_v53 = vpop.permute.xlu1 %5802  ;;  %v16241_v31 = vpack.c.bf16 %v3039_v37, %v3038_v36  ;;  %v225_v33 = vunpack.c.l.s4 %v17012_v30  ;;  %v227_v36 = vlaneseq  ;;  %v3885_v30 = vld [vmem:[#allocation2 + $0x4a8] sm:$0xff] }
  0xd5   :  { %16216 = vmatprep.subr.bf16.mxu0 %v20369_v1  ;;  %14911 = vmatprep.mubr.msk.f32.mxu1 %vm17008_vm0, %v17680_v47  ;;  %v17717_v14 = vpop.permute.xlu0 %5587 }
  0xd6   :  { %14933 = vmatprep.mubr.msk.f32.mxu0 %vm17008_vm0, %v17680_v47  ;;  %10752 = vrot.lane.b32.xlu0 %v17604_v56, %s17009_s8  ;;  %v13979_v56 = vld [vmem:[%s20366_s0 + $0x6b] ss:$0 sm:$0xff] }
  0xd7   :  { %16206 = vmatpush3.bf16.msra.mxu1 %v16205_v38  ;;  %16218 = vmatpush3.bf16.msra.mxu0 %v16217_v40  ;;  %v17726_v20 = vsel %vm73_vm1, %v13980_v4, %v13979_v56  ;;  %v17746_v38 = vsel %vm73_vm1, %v12144_v21, %v12143_v26  ;;  %v14004_v56 = vld [vmem:[%s20366_s0 + $0xf3] ss:$0 sm:$0xff] }
  0xd8   :  { %11738 = vrot.lane.b32.xlu1 %v17685_v52, %s17011_s10  ;;  %16207 = vmatprep.subr.bf16.mxu1 %v20369_v1  ;;  %v17700_v3 = vpop.permute.xlu1 %5879  ;;  %v3253_v21 = vld [vmem:[#allocation2 + $0x3f0] sm:$0xff] }
  0xd9   :  { %16219 = vmatprep.subr.bf16.mxu0 %v20369_v1  ;;  %v17748_v40 = vpop.permute.xlu0 %5664 }
  0xda   :  { %14912 = vmatmul.mubr.msk.f32.vlgmr.msra.gmra.mrb[10].mxu1 %vm75_vm2, %v17488_v39  ;;  %14934 = vmatmul.mubr.msk.f32.vlgmr.msra.gmra.mrb[12].mxu0 %vm75_vm2, %v2624_v55  ;;  %v2609_v39 = vld [vmem:[%s20366_s0 + $0x95] ss:$0 sm:$0xff] }
  0xdb   :  { %16209 = vmatpush3.bf16.msra.mxu1 %v16208_v57  ;;  %16221 = vmatpush3.bf16.msra.mxu0 %v16220_v42  ;;  %v2699_v23 = vsel %vm73_vm1, %v2609_v39, %v2608_v8  ;;  %v16244_v57 = vpack.c.bf16 %v3032_v46, %v3031_v45  ;;  %v2822_v42 = vld [vmem:[#allocation2 + $0x350] sm:$0xff]  ;;  %v3251_v8 = vld [vmem:[#allocation2 + $0x3e0] sm:$0xff]  ;;  %v3467_v39 = vld [vmem:[#allocation2 + $0x428] sm:$0xff] }
  0xdc   :  { %11815 = vrot.lane.b32.xlu1 %v17653_v34, %s17011_s10  ;;  %16210 = vmatprep.subr.bf16.mxu1 %v20369_v1  ;;  %v17738_v22 = vpop.permute.xlu1 %6301  ;;  %v3246_v45 = vld [vmem:[#allocation2 + $0x3c0] sm:$0xff] }
  0xdd   :  { %16222 = vmatprep.subr.bf16.mxu0 %v20369_v1  ;;  %14922 = vmatprep.mubr.msk.f32.mxu1 %vm17008_vm0, %v17680_v47  ;;  %v17765_v25 = vpop.permute.xlu0 %6224 }
  0xde   :  { %14944 = vmatprep.mubr.msk.f32.mxu0 %vm17008_vm0, %v17680_v47  ;;  %11312 = vrot.lane.b32.xlu0 %v17685_v52, %s17010_s9 }
  0xdf   :  { %16212 = vmatpush3.bf16.msra.mxu1 %v16211_v5  ;;  %16224 = vmatpush3.bf16.msra.mxu0 %v16223_v7  ;;  %v16235_v5 = vpack.c.bf16 %v2823_v58, %v2822_v42  ;;  %v16247_v7 = vpack.c.bf16 %v3034_v2, %v3033_v59  ;;  %v3462_v42 = vld [vmem:[#allocation2 + $0x408] sm:$0xff] }
  0xe0   :  { %12160 = vrot.lane.b32.xlu1 %v17726_v20, %s17010_s9  ;;  %16225 = vmatprep.subr.bf16.mxu1 %v20369_v1  ;;  %v17756_v55 = vpop.permute.xlu1 %6650 }
  0xe1   :  { %16237 = vmatprep.subr.bf16.mxu0 %v20369_v1  ;;  %v17790_v16 = vpop.permute.xlu0 %6435 }
  0xe2   :  { %14923 = vmatmul.mubr.msk.f32.vlgmr.msra.gmra.mrb[10].mxu1 %vm75_vm2, %v17504_v50  ;;  %14945 = vmatmul.mubr.msk.f32.vlgmr.msra.gmra.mrb[12].mxu0 %vm75_vm2, %v2699_v23  ;;  %v16232_v50 = vpack.c.bf16 %v2821_v44, %v2820_v51  ;;  %v3254_v23 = vld [vmem:[#allocation2 + $0x3f8] sm:$0xff]  ;;  %v13733_v44 = vld [vmem:[%s20366_s0 + $0x4e] ss:$0 sm:$0xff] }
  0xe3   :  { %16227 = vmatpush3.bf16.msra.mxu1 %v16226_v24  ;;  %16239 = vmatpush3.bf16.msra.mxu0 %v16238_v0  ;;  %v3468_v24 = vld [vmem:[#allocation2 + $0x430] sm:$0xff]  ;;  %v3469_v0 = vld [vmem:[#allocation2 + $0x438] sm:$0xff] }
  0xe4   :  { %12237 = vrot.lane.b32.xlu1 %v17746_v38, %s17010_s9  ;;  %16228 = vmatprep.subr.bf16.mxu1 %v20369_v1  ;;  %v17781_v4 = vpop.permute.xlu1 %6727  ;;  %v16265_v51 = vpack.c.bf16 %v3469_v0, %v3468_v24  ;;  %v3884_v0 = vld [vmem:[#allocation2 + $0x4a0] sm:$0xff] }
  0xe5   :  { %16240 = vmatprep.subr.bf16.mxu0 %v20369_v1  ;;  %14955 = vmatprep.mubr.msk.f32.mxu1 %vm17008_vm0, %v17680_v47  ;;  %v17820_v46 = vpop.permute.xlu0 %6512 }
  0xe6   :  { %14977 = vmatprep.mubr.msk.f32.mxu0 %vm17008_vm0, %v17680_v47  ;;  %11523 = vrot.lane.b32.xlu0 %v17685_v52, %s17009_s8  ;;  %v14003_v52 = vld [vmem:[%s20366_s0 + $0x73] ss:$0 sm:$0xff] }
  0xe7   :  { %16230 = vmatpush3.bf16.msra.mxu1 %v16229_v41  ;;  %16242 = vmatpush3.bf16.msra.mxu0 %v16241_v31  ;;  %v13007_v13 = vsel %vm73_vm1, %v14004_v56, %v14003_v52  ;;  %v13084_v41 = vsel %vm73_vm1, %v12992_v19, %v12991_v17  ;;  %v16253_v31 = vpack.c.bf16 %v3254_v23, %v3253_v21  ;;  %v3248_v56 = vld [vmem:[#allocation2 + $0x3d0] sm:$0xff]  ;;  %v3456_v19 = vld [vmem:[%s20366_s0 + $0xe] ss:$0 sm:$0xff] }
  0xe8   :  { %12586 = vrot.lane.b32.xlu1 %v17726_v20, %s17011_s10  ;;  %16231 = vmatprep.subr.bf16.mxu1 %v20369_v1  ;;  %v17804_v37 = vpop.permute.xlu1 %7149  ;;  %v3674_v21 = vld [vmem:[#allocation2 + $0x468] sm:$0xff] }
  0xe9   :  { %16243 = vmatprep.subr.bf16.mxu0 %v20369_v1 }
  0xea   :  { %14956 = vmatmul.mubr.msk.f32.vlgmr.msra.gmra.mrb[12].mxu1 %vm75_vm2, %v17530_v63  ;;  %14978 = vmatmul.mubr.msk.f32.vlgmr.msra.gmra.mrb[14].mxu0 %vm75_vm2, %v17539_v10  ;;  %v3252_v63 = vld [vmem:[#allocation2 + $0x3e8] sm:$0xff]  ;;  %v3466_v10 = vld [vmem:[#allocation2 + $0x420] sm:$0xff] }
  0xeb   :  { %16233 = vmatpush3.bf16.msra.mxu1 %v16232_v50  ;;  %16245 = vmatpush3.bf16.msra.mxu0 %v16244_v57  ;;  %v16262_v26 = vpack.c.bf16 %v3467_v39, %v3466_v10  ;;  %v3247_v50 = vld [vmem:[#allocation2 + $0x3c8] sm:$0xff]  ;;  %v3461_v57 = vld [vmem:[#allocation2 + $0x400] sm:$0xff] }
  0xec   :  { %12663 = vrot.lane.b32.xlu1 %v17746_v38, %s17011_s10  ;;  %16234 = vmatprep.subr.bf16.mxu1 %v20369_v1  ;;  %v17831_v58 = vpop.permute.xlu1 %7498  ;;  %v16256_v2 = vpack.c.bf16 %v3247_v50, %v3246_v45  ;;  %v16268_v52 = vpack.c.bf16 %v3462_v42, %v3461_v57  ;;  %v16286_v45 = vpack.c.bf16 %v3885_v30, %v3884_v0  ;;  %v3886_v50 = vld [vmem:[#allocation2 + $0x4b0] sm:$0xff]  ;;  %v3887_v57 = vld [vmem:[#allocation2 + $0x4b8] sm:$0xff]  ;;  %v4099_v30 = vld [vmem:[#allocation2 + $0x4e0] sm:$0xff] }
  0xed   :  { %16246 = vmatprep.subr.bf16.mxu0 %v20369_v1  ;;  %11600 = vrot.lane.b32.xlu0 %v17653_v34, %s17009_s8  ;;  %v16250_v34 = vpack.c.bf16 %v3252_v63, %v3251_v8  ;;  %v3464_v8 = vld [vmem:[#allocation2 + $0x418] sm:$0xff]  ;;  %v17840_v63 = vpop.permute.xlu0 %7072 }
  0xee   :  { %14966 = vmatprep.mubr.msk.f32.mxu1 %vm17008_vm0, %v17680_v47  ;;  %14988 = vmatprep.mubr.msk.f32.mxu0 %vm17008_vm0, %v17680_v47 }
  0xef   :  { %16236 = vmatpush3.bf16.msra.mxu1 %v16235_v5  ;;  %16248 = vmatpush3.bf16.msra.mxu0 %v16247_v7  ;;  %v3249_v5 = vld [vmem:[#allocation2 + $0x3d8] sm:$0xff]  ;;  %v3463_v7 = vld [vmem:[#allocation2 + $0x410] sm:$0xff] }
  0xf0   :  { %13008 = vrot.lane.b32.xlu1 %v13007_v13, %s17010_s9  ;;  %16249 = vmatprep.subr.bf16.mxu1 %v20369_v1  ;;  %v16259_v39 = vpack.c.bf16 %v3249_v5, %v3248_v56  ;;  %v16271_v17 = vpack.c.bf16 %v3464_v8, %v3463_v7  ;;  %v17856_v23 = vpop.permute.xlu1 %7575  ;;  %v3669_v56 = vld [vmem:[#allocation2 + $0x448] sm:$0xff]  ;;  %v3879_v5 = vld [vmem:[#allocation2 + $0x480] sm:$0xff] }
  0xf1   :  { %16261 = vmatprep.subr.bf16.mxu0 %v20369_v1  ;;  %12371 = vrot.lane.b32.xlu0 %v17726_v20, %s17009_s8  ;;  %v13734_v20 = vld [vmem:[%s20366_s0 + $0xce] ss:$0 sm:$0xff] }
  0xf2   :  { %14967 = vmatmul.mubr.msk.f32.vlgmr.msra.gmra.mrb[12].mxu1 %vm75_vm2, %v17528_v62  ;;  %14989 = vmatmul.mubr.msk.f32.vlgmr.msra.gmra.mrb[14].mxu0 %vm75_vm2, %v17553_v18  ;;  %v226_v62 = vunpack.c.0.s8 %v225_v33  ;;  %v228_v18 = vshrl.u32 %v227_v36, 7  ;;  %v3472_v59 = vsel %vm73_vm1, %v13734_v20, %v13733_v44  ;;  %v17866_v44 = vpop.permute.xlu0 %7283  ;;  %v3880_v7 = vld [vmem:[#allocation2 + $0x488] sm:$0xff] }
  0xf3   :  { %16251 = vmatpush3.bf16.msra.mxu1 %v16250_v34  ;;  %16263 = vmatpush3.bf16.msra.mxu0 %v16262_v26 }
  0xf4   :  { %13085 = vrot.lane.b32.xlu1 %v13084_v41, %s17010_s9  ;;  %16252 = vmatprep.subr.bf16.mxu1 %v20369_v1  ;;  %v17849_v26 = vsub.s32 0, %v228_v18 }
  0xf5   :  { %16264 = vmatprep.subr.bf16.mxu0 %v20369_v1  ;;  %12448 = vrot.lane.b32.xlu0 %v17746_v38, %s17009_s8  ;;  %v17836_v38 = vsub.s32 %v226_v62, %v228_v18  ;;  %v3675_v62 = vld [vmem:[#allocation2 + $0x470] sm:$0xff]  ;;  %v3676_v18 = vld [vmem:[#allocation2 + $0x478] sm:$0xff] }
  0xf6   :  { %14999 = vmatprep.mubr.msk.f32.mxu1 %vm17008_vm0, %v17680_v47  ;;  %15021 = vmatprep.mubr.msk.f32.mxu0 %vm17008_vm0, %v17680_v47  ;;  %v17890_v8 = vpop.permute.xlu0 %7360 }
  0xf7   :  { %16254 = vmatpush3.bf16.msra.mxu1 %v16253_v31  ;;  %16266 = vmatpush3.bf16.msra.mxu0 %v16265_v51 }
  0xf8   :  { %13434 = vrot.lane.b32.xlu1 %v13007_v13, %s17011_s10  ;;  %16255 = vmatprep.subr.bf16.mxu1 %v20369_v1 }
  0xf9   :  { %16267 = vmatprep.subr.bf16.mxu0 %v20369_v1  ;;  %13219 = vrot.lane.b32.xlu0 %v13007_v13, %s17009_s8  ;;  %v3673_v13 = vld [vmem:[#allocation2 + $0x460] sm:$0xff] }
  0xfa   :  { %15000 = vmatmul.mubr.msk.f32.vlgmr.msra.gmra.mrb[14].mxu1 %vm75_vm2, %v17537_v9  ;;  %15022 = vmatmul.mubr.msk.f32.vlgmr.msra.gmra.mrb[16].mxu0 %vm75_vm2, %v3472_v59  ;;  %v219_v10 = vpop.f32.mrb[0].mxu0  ;;  %v3457_v9 = vld [vmem:[%s20366_s0 + $0x8e] ss:$0 sm:$0xff]  ;;  %v16274_v51 = vpack.c.bf16 %v3674_v21, %v3673_v13  ;;  %v17880_v59 = vpop.permute.xlu1 %7997  ;;  %v3882_v13 = vld [vmem:[#allocation2 + $0x498] sm:$0xff] }
  0xfb   :  { %16257 = vmatpush3.bf16.msra.mxu1 %v16256_v2  ;;  %16269 = vmatpush3.bf16.msra.mxu0 %v16268_v52  ;;  %v230_v34 = vrot.slane %v219_v10, %v17836_v38  ;;  %v14682_v24 = vpop.f32.mrb[1].mxu0  ;;  %v3547_v31 = vsel %vm73_vm1, %v3457_v9, %v3456_v19  ;;  %v16277_v2 = vpack.c.bf16 %v3676_v18, %v3675_v62  ;;  %v3671_v19 = vld [vmem:[#allocation2 + $0x458] sm:$0xff]  ;;  %v3881_v9 = vld [vmem:[#allocation2 + $0x490] sm:$0xff] }
  0xfc   :  { %13511 = vrot.lane.b32.xlu1 %v13084_v41, %s17011_s10  ;;  %16258 = vmatprep.subr.bf16.mxu1 %v20369_v1  ;;  %v16289_v52 = vpack.c.bf16 %v3887_v57, %v3886_v50  ;;  %v17904_v24 = vpop.permute.xlu0 %7920  ;;  %v16295_v0 = vpack.c.bf16 %v3882_v13, %v3881_v9  ;;  %v4317_v62 = vld [vmem:[#allocation2 + $0x538] sm:$0xff]  ;;  %v4311_v9 = vld [vmem:[#allocation2 + $0x510] sm:$0xff] }
  0xfd   :  { %16270 = vmatprep.subr.bf16.mxu0 %v20369_v1  ;;  %13296 = vrot.lane.b32.xlu0 %v13084_v41, %s17009_s8  ;;  %v231_v33 = vcombine.high %v230_v34, %v230_v34  ;;  %v238_v36 = vrot.slane %v230_v34, %v17836_v38  ;;  %v4312_v13 = vld [vmem:[#allocation2 + $0x518] sm:$0xff] }
  0xfe   :  { %15010 = vmatprep.mubr.msk.f32.mxu1 %vm17008_vm0, %v17680_v47  ;;  %15032 = vmatprep.mubr.msk.f32.mxu0 %vm17008_vm0, %v17680_v47  ;;  %v17897_v34 = vpop.permute.xlu1 %8346 }
  0xff   :  { %16260 = vmatpush3.bf16.msra.mxu1 %v16259_v39  ;;  %16272 = vmatpush3.bf16.msra.mxu0 %v16271_v17  ;;  %v245_v41 = vrot.slane %v231_v33, %v17836_v38  ;;  %v254_v20 = vrot.slane %v238_v36, %v17849_v26  ;;  %249 = vst.msk [vmem:[%s20368_s2 + $0xc] sm:$0x1] %vm248_vm3, %v238_v36  ;;  %v3670_v17 = vld [vmem:[#allocation2 + $0x450] sm:$0xff]  ;;  %v4100_v33 = vld [vmem:[#allocation2 + $0x4e8] sm:$0xff]  ;;  %v4314_v36 = vld [vmem:[#allocation2 + $0x520] sm:$0xff] }
 0x100   :  { %16273 = vmatprep.subr.bf16.mxu1 %v20369_v1  ;;  %16285 = vmatprep.subr.bf16.mxu0 %v20369_v1  ;;  %v16292_v39 = vpack.c.bf16 %v3880_v7, %v3879_v5  ;;  %v16283_v21 = vpack.c.bf16 %v3671_v19, %v3670_v17  ;;  %v17916_v18 = vpop.permute.xlu0 %8131  ;;  %v4096_v17 = vld [vmem:[#allocation2 + $0x4d0] sm:$0xff]  ;;  %v4097_v19 = vld [vmem:[#allocation2 + $0x4d8] sm:$0xff] }
 0x101   :  { %v258_v42 = vrot.slane %v245_v41, %v17849_v26  ;;  %250 = vst.msk [vmem:[%s20368_s2 + $0x8c] sm:$0x1] %vm248_vm3, %v245_v41  ;;  %259 = vrot.lane.b32.xlu1 %v254_v20, %s17010_s9  ;;  %v4101_v41 = vld [vmem:[#allocation2 + $0x4f0] sm:$0xff]  ;;  %v4102_v20 = vld [vmem:[#allocation2 + $0x4f8] sm:$0xff] }
 0x102   :  { %15011 = vmatmul.mubr.msk.f32.vlgmr.msra.gmra.mrb[14].mxu1 %vm75_vm2, %v17551_v6  ;;  %15033 = vmatmul.mubr.msk.f32.vlgmr.msra.gmra.mrb[16].mxu0 %vm75_vm2, %v3547_v31  ;;  %v3668_v6 = vld [vmem:[#allocation2 + $0x440] sm:$0xff]  ;;  %v16298_v31 = vpack.c.bf16 %v4100_v33, %v4099_v30  ;;  %v16301_v50 = vpack.c.bf16 %v4102_v20, %v4101_v41  ;;  %v16319_v30 = vpack.c.bf16 %v4312_v13, %v4311_v9  ;;  %v4304_v33 = vld [vmem:[%s20366_s0 + $0x16] ss:$0 sm:$0xff] }
 0x103   :  { %16275 = vmatpush3.bf16.msra.mxu1 %v16274_v51  ;;  %16287 = vmatpush3.bf16.msra.mxu0 %v16286_v45  ;;  %v16280_v10 = vpack.c.bf16 %v3669_v56, %v3668_v6  ;;  %v4316_v45 = vld [vmem:[#allocation2 + $0x530] sm:$0xff]  ;;  %v4310_v56 = vld [vmem:[#allocation2 + $0x508] sm:$0xff] }
 0x104   :  { %261 = vrot.lane.b32.xlu0 %v258_v42, %s17010_s9  ;;  %16276 = vmatprep.subr.bf16.mxu1 %v20369_v1  ;;  %v16313_v57 = vpack.c.bf16 %v4317_v62, %v4316_v45  ;;  %v13757_v42 = vld [vmem:[%s20366_s0 + $0x56] ss:$0 sm:$0xff]  ;;  %v17936_v7 = vpop.permute.xlu0 %8208 }
 0x105   :  { %16288 = vmatprep.subr.bf16.mxu0 %v20369_v1  ;;  %15043 = vmatprep.mubr.msk.f32.mxu1 %vm17008_vm0, %v17680_v47  ;;  %v4518_v13 = vld [vmem:[#allocation2 + $0x550] sm:$0xff] }
 0x106   :  { %15065 = vmatprep.mubr.msk.f32.mxu0 %vm17008_vm0, %v17680_v47 }
 0x107   :  { %16278 = vmatpush3.bf16.msra.mxu1 %v16277_v2  ;;  %16290 = vmatpush3.bf16.msra.mxu0 %v16289_v52  ;;  %v4094_v2 = vld [vmem:[#allocation2 + $0x4c0] sm:$0xff]  ;;  %v4095_v52 = vld [vmem:[#allocation2 + $0x4c8] sm:$0xff] }
 0x108   :  { %16279 = vmatprep.subr.bf16.mxu1 %v20369_v1  ;;  %16291 = vmatprep.subr.bf16.mxu0 %v20369_v1  ;;  %v16304_v5 = vpack.c.bf16 %v4095_v52, %v4094_v2  ;;  %v17956_v41 = vpop.permute.xlu0 %8768  ;;  %v4734_v2 = vld [vmem:[#allocation2 + $0x5b0] sm:$0xff]  ;;  %v4735_v52 = vld [vmem:[#allocation2 + $0x5b8] sm:$0xff] }
 0x10a   :  { %15044 = vmatmul.mubr.msk.f32.vlgmr.msra.gmra.mrb[16].mxu1 %vm75_vm2, %v17561_v28  ;;  %15066 = vmatmul.mubr.msk.f32.vlgmr.msra.gmra.mrb[18].mxu0 %vm75_vm2, %v17575_v43  ;;  %v4315_v28 = vld [vmem:[#allocation2 + $0x528] sm:$0xff]  ;;  %v17912_v43 = vpop.permute.xlu1 %8423 }
 0x10b   :  { %16281 = vmatpush3.bf16.msra.mxu1 %v16280_v10  ;;  %16293 = vmatpush3.bf16.msra.mxu0 %v16292_v39  ;;  %v16310_v51 = vpack.c.bf16 %v4315_v28, %v4314_v36  ;;  %v4521_v36 = vld [vmem:[#allocation2 + $0x560] sm:$0xff]  ;;  %v4522_v28 = vld [vmem:[#allocation2 + $0x568] sm:$0xff] }
 0x10c   :  { %16282 = vmatprep.subr.bf16.mxu1 %v20369_v1  ;;  %16294 = vmatprep.subr.bf16.mxu0 %v20369_v1  ;;  %v16322_v20 = vpack.c.bf16 %v4522_v28, %v4521_v36 }
 0x10d   :  { %15054 = vmatprep.mubr.msk.f32.mxu1 %vm17008_vm0, %v17680_v47  ;;  %15076 = vmatprep.mubr.msk.f32.mxu0 %vm17008_vm0, %v17680_v47 }
 0x10e   :  { %v17926_v6 = vpop.permute.xlu1 %8845 }
 0x10f   :  { %16284 = vmatpush3.bf16.msra.mxu1 %v16283_v21  ;;  %16296 = vmatpush3.bf16.msra.mxu0 %v16295_v0  ;;  %v16307_v0 = vpack.c.bf16 %v4097_v19, %v4096_v17  ;;  %v4728_v17 = vld [vmem:[#allocation2 + $0x588] sm:$0xff] }
 0x110   :  { %16297 = vmatprep.subr.bf16.mxu1 %v20369_v1  ;;  %16309 = vmatprep.subr.bf16.mxu0 %v20369_v1 }
 0x112   :  { %15055 = vmatmul.mubr.msk.f32.vlgmr.msra.gmra.mrb[16].mxu1 %vm75_vm2, %v17559_v27  ;;  %15077 = vmatmul.mubr.msk.f32.vlgmr.msra.gmra.mrb[18].mxu0 %vm75_vm2, %v17591_v49  ;;  %v13758_v27 = vld [vmem:[%s20366_s0 + $0xd6] ss:$0 sm:$0xff]  ;;  %v4309_v49 = vld [vmem:[#allocation2 + $0x500] sm:$0xff]  ;;  %v17943_v21 = vpop.permute.xlu1 %9194 }
 0x113   :  { %16299 = vmatpush3.bf16.msra.mxu1 %v16298_v31  ;;  %16311 = vmatpush3.bf16.msra.mxu0 %v16310_v51  ;;  %v4320_v10 = vsel %vm73_vm1, %v13758_v27, %v13757_v42  ;;  %v16316_v39 = vpack.c.bf16 %v4310_v56, %v4309_v49  ;;  %v4732_v31 = vld [vmem:[#allocation2 + $0x5a0] sm:$0xff]  ;;  %v4733_v51 = vld [vmem:[#allocation2 + $0x5a8] sm:$0xff]  ;;  %v17968_v49 = vpop.permute.xlu0 %8979  ;;  %v16337_v56 = vpack.c.bf16 %v4735_v52, %v4734_v2  ;;  %v4950_v2 = vld [vmem:[#allocation2 + $0x5f8] sm:$0xff] }
 0x114   :  { %16300 = vmatprep.subr.bf16.mxu1 %v20369_v1  ;;  %16312 = vmatprep.subr.bf16.mxu0 %v20369_v1  ;;  %v16334_v62 = vpack.c.bf16 %v4733_v51, %v4732_v31  ;;  %v4947_v31 = vld [vmem:[#allocation2 + $0x5e0] sm:$0xff]  ;;  %v4948_v51 = vld [vmem:[#allocation2 + $0x5e8] sm:$0xff]  ;;  %v5164_v52 = vld [vmem:[#allocation2 + $0x630] sm:$0xff] }
 0x115   :  { %15087 = vmatprep.mubr.msk.f32.mxu1 %vm17008_vm0, %v17680_v47  ;;  %15109 = vmatprep.mubr.msk.f32.mxu0 %vm17008_vm0, %v17680_v47 }
 0x116   :  { %v17962_v42 = vpop.permute.xlu1 %9271 }
 0x117   :  { %16302 = vmatpush3.bf16.msra.mxu1 %v16301_v50  ;;  %16314 = vmatpush3.bf16.msra.mxu0 %v16313_v57  ;;  %v4523_v50 = vld [vmem:[#allocation2 + $0x570] sm:$0xff]  ;;  %v4524_v57 = vld [vmem:[#allocation2 + $0x578] sm:$0xff] }
 0x118   :  { %16303 = vmatprep.subr.bf16.mxu1 %v20369_v1  ;;  %16315 = vmatprep.subr.bf16.mxu0 %v20369_v1  ;;  %v16325_v27 = vpack.c.bf16 %v4524_v57, %v4523_v50  ;;  %v17980_v36 = vpop.permute.xlu0 %9056  ;;  %v4949_v57 = vld [vmem:[#allocation2 + $0x5f0] sm:$0xff] }
 0x11a   :  { %15088 = vmatmul.mubr.msk.f32.vlgmr.msra.gmra.mrb[18].mxu1 %vm75_vm2, %v17573_v15  ;;  %15110 = vmatmul.mubr.msk.f32.vlgmr.msra.gmra.mrb[20].mxu0 %vm75_vm2, %v4320_v10  ;;  %v4305_v15 = vld [vmem:[%s20366_s0 + $0x96] ss:$0 sm:$0xff]  ;;  %v4517_v10 = vld [vmem:[#allocation2 + $0x548] sm:$0xff] }
 0x11b   :  { %16305 = vmatpush3.bf16.msra.mxu1 %v16304_v5  ;;  %16317 = vmatpush3.bf16.msra.mxu0 %v16316_v39  ;;  %v4395_v45 = vsel %vm73_vm1, %v4305_v15, %v4304_v33  ;;  %v4516_v5 = vld [vmem:[#allocation2 + $0x540] sm:$0xff]  ;;  %v4730_v33 = vld [vmem:[#allocation2 + $0x598] sm:$0xff] }
 0x11c   :  { %16306 = vmatprep.subr.bf16.mxu1 %v20369_v1  ;;  %16318 = vmatprep.subr.bf16.mxu0 %v20369_v1  ;;  %v4727_v39 = vld [vmem:[#allocation2 + $0x580] sm:$0xff]  ;;  %v16328_v19 = vpack.c.bf16 %v4517_v10, %v4516_v5  ;;  %v16349_v5 = vpack.c.bf16 %v4950_v2, %v4949_v57  ;;  %v5152_v57 = vld [vmem:[%s20366_s0 + $0xf] ss:$0 sm:$0xff] }
 0x11d   :  { %15098 = vmatprep.mubr.msk.f32.mxu1 %vm17008_vm0, %v17680_v47  ;;  %15120 = vmatprep.mubr.msk.f32.mxu0 %vm17008_vm0, %v17680_v47  ;;  %v16340_v9 = vpack.c.bf16 %v4728_v17, %v4727_v39  ;;  %v13781_v39 = vld [vmem:[%s20366_s0 + $0x4f] ss:$0 sm:$0xff]  ;;  %v4942_v17 = vld [vmem:[#allocation2 + $0x5c0] sm:$0xff] }
 0x11e   :  { %v5369_v2 = vld [vmem:[#allocation2 + $0x660] sm:$0xff] }
 0x11f   :  { %16308 = vmatpush3.bf16.msra.mxu1 %v16307_v0  ;;  %16320 = vmatpush3.bf16.msra.mxu0 %v16319_v30  ;;  %v4519_v0 = vld [vmem:[#allocation2 + $0x558] sm:$0xff]  ;;  %v4729_v30 = vld [vmem:[#allocation2 + $0x590] sm:$0xff] }
 0x120   :  { %16321 = vmatprep.subr.bf16.mxu1 %v20369_v1  ;;  %16333 = vmatprep.subr.bf16.mxu0 %v20369_v1  ;;  %v16331_v28 = vpack.c.bf16 %v4519_v0, %v4518_v13  ;;  %v16343_v15 = vpack.c.bf16 %v4730_v33, %v4729_v30 }
 0x122   :  { %15099 = vmatmul.mubr.msk.f32.vlgmr.msra.gmra.mrb[18].mxu1 %vm75_vm2, %v17589_v48  ;;  %15121 = vmatmul.mubr.msk.f32.vlgmr.msra.gmra.mrb[20].mxu0 %vm75_vm2, %v4395_v45  ;;  %v17976_v48 = vpop.permute.xlu1 %9693  ;;  %v5162_v45 = vld [vmem:[#allocation2 + $0x620] sm:$0xff] }
 0x123   :  { %16323 = vmatpush3.bf16.msra.mxu1 %v16322_v20  ;;  %16335 = vmatpush3.bf16.msra.mxu0 %v16334_v62  ;;  %v17994_v62 = vpop.permute.xlu0 %9616 }
 0x124   :  { %16324 = vmatprep.subr.bf16.mxu1 %v20369_v1  ;;  %16336 = vmatprep.subr.bf16.mxu0 %v20369_v1 }
 0x125   :  { %15131 = vmatprep.mubr.msk.f32.mxu1 %vm17008_vm0, %v17680_v47  ;;  %15153 = vmatprep.mubr.msk.f32.mxu0 %vm17008_vm0, %v17680_v47 }
 0x126   :  { %v17987_v20 = vpop.permute.xlu1 %10042 }
 0x127   :  { %16326 = vmatpush3.bf16.msra.mxu1 %v16325_v27  ;;  %16338 = vmatpush3.bf16.msra.mxu0 %v16337_v56  ;;  %v5165_v27 = vld [vmem:[#allocation2 + $0x638] sm:$0xff] }
 0x128   :  { %16327 = vmatprep.subr.bf16.mxu1 %v20369_v1  ;;  %16339 = vmatprep.subr.bf16.mxu0 %v20369_v1  ;;  %v16361_v10 = vpack.c.bf16 %v5165_v27, %v5164_v52  ;;  %v18014_v13 = vpop.permute.xlu0 %9827  ;;  %v5370_v52 = vld [vmem:[#allocation2 + $0x668] sm:$0xff]  ;;  %v5580_v27 = vld [vmem:[#allocation2 + $0x6a0] sm:$0xff] }
 0x12a   :  { %15132 = vmatmul.mubr.msk.f32.vlgmr.msra.gmra.mrb[20].mxu1 %vm75_vm2, %v17615_v61  ;;  %15154 = vmatmul.mubr.msk.f32.vlgmr.msra.gmra.mrb[22].mxu0 %vm75_vm2, %v17624_v12  ;;  %v5163_v61 = vld [vmem:[#allocation2 + $0x628] sm:$0xff]  ;;  %v16346_v12 = vpack.c.bf16 %v4948_v51, %v4947_v31  ;;  %v18000_v56 = vpop.permute.xlu1 %10119  ;;  %v4945_v31 = vld [vmem:[#allocation2 + $0x5d8] sm:$0xff]  ;;  %v5159_v51 = vld [vmem:[#allocation2 + $0x610] sm:$0xff] }
 0x12b   :  { %16329 = vmatpush3.bf16.msra.mxu1 %v16328_v19  ;;  %16341 = vmatpush3.bf16.msra.mxu0 %v16340_v9  ;;  %v16358_v50 = vpack.c.bf16 %v5163_v61, %v5162_v45  ;;  %v4943_v19 = vld [vmem:[#allocation2 + $0x5c8] sm:$0xff]  ;;  %v5160_v45 = vld [vmem:[#allocation2 + $0x618] sm:$0xff] }
 0x12c   :  { %16330 = vmatprep.subr.bf16.mxu1 %v20369_v1  ;;  %16342 = vmatprep.subr.bf16.mxu0 %v20369_v1  ;;  %v5158_v9 = vld [vmem:[#allocation2 + $0x608] sm:$0xff]  ;;  %v16352_v0 = vpack.c.bf16 %v4943_v19, %v4942_v17 }
 0x12d   :  { %15142 = vmatprep.mubr.msk.f32.mxu1 %vm17008_vm0, %v17680_v47  ;;  %15164 = vmatprep.mubr.msk.f32.mxu0 %vm17008_vm0, %v17680_v47 }
 0x12f   :  { %16332 = vmatpush3.bf16.msra.mxu1 %v16331_v28  ;;  %16344 = vmatpush3.bf16.msra.mxu0 %v16343_v15  ;;  %v4944_v15 = vld [vmem:[#allocation2 + $0x5d0] sm:$0xff] }
 0x130   :  { %16345 = vmatprep.subr.bf16.mxu1 %v20369_v1  ;;  %16357 = vmatprep.subr.bf16.mxu0 %v20369_v1  ;;  %v18020_v28 = vpop.permute.xlu1 %10541  ;;  %v16355_v61 = vpack.c.bf16 %v4945_v31, %v4944_v15 }
 0x132   :  { %15143 = vmatmul.mubr.msk.f32.vlgmr.msra.gmra.mrb[20].mxu1 %vm75_vm2, %v17613_v60  ;;  %15165 = vmatmul.mubr.msk.f32.vlgmr.msra.gmra.mrb[22].mxu0 %vm75_vm2, %v17646_v29  ;;  %v13782_v60 = vld [vmem:[%s20366_s0 + $0xcf] ss:$0 sm:$0xff]  ;;  %v5157_v29 = vld [vmem:[#allocation2 + $0x600] sm:$0xff] }
 0x133   :  { %16347 = vmatpush3.bf16.msra.mxu1 %v16346_v12  ;;  %16359 = vmatpush3.bf16.msra.mxu0 %v16358_v50  ;;  %v5168_v30 = vsel %vm73_vm1, %v13782_v60, %v13781_v39  ;;  %v16364_v33 = vpack.c.bf16 %v5158_v9, %v5157_v29  ;;  %v18026_v12 = vpop.permute.xlu0 %9904  ;;  %v16367_v50 = vpack.c.bf16 %v5160_v45, %v5159_v51  ;;  %v5371_v60 = vld [vmem:[#allocation2 + $0x670] sm:$0xff]  ;;  %v5372_v29 = vld [vmem:[#allocation2 + $0x678] sm:$0xff]  ;;  %v5364_v51 = vld [vmem:[#allocation2 + $0x640] sm:$0xff] }
 0x134   :  { %16348 = vmatprep.subr.bf16.mxu1 %v20369_v1  ;;  %16360 = vmatprep.subr.bf16.mxu0 %v20369_v1  ;;  %v16370_v39 = vpack.c.bf16 %v5370_v52, %v5369_v2  ;;  %v5582_v9 = vld [vmem:[#allocation2 + $0x6b0] sm:$0xff]  ;;  %v16373_v15 = vpack.c.bf16 %v5372_v29, %v5371_v60  ;;  %v5365_v45 = vld [vmem:[#allocation2 + $0x648] sm:$0xff]  ;;  %v5795_v29 = vld [vmem:[#allocation2 + $0x6e0] sm:$0xff] }
 0x135   :  { %15175 = vmatprep.mubr.msk.f32.mxu1 %vm17008_vm0, %v17680_v47  ;;  %15197 = vmatprep.mubr.msk.f32.mxu0 %vm17008_vm0, %v17680_v47 }
 0x137   :  { %16350 = vmatpush3.bf16.msra.mxu1 %v16349_v5  ;;  %16362 = vmatpush3.bf16.msra.mxu0 %v16361_v10  ;;  %v5581_v5 = vld [vmem:[#allocation2 + $0x6a8] sm:$0xff] }
 0x138   :  { %16351 = vmatprep.subr.bf16.mxu1 %v20369_v1  ;;  %16363 = vmatprep.subr.bf16.mxu0 %v20369_v1  ;;  %v18038_v10 = vpop.permute.xlu1 %10890  ;;  %v16382_v19 = vpack.c.bf16 %v5581_v5, %v5580_v27  ;;  %v5367_v27 = vld [vmem:[#allocation2 + $0x658] sm:$0xff]  ;;  %v5577_v5 = vld [vmem:[#allocation2 + $0x690] sm:$0xff] }
 0x13a   :  { %15176 = vmatmul.mubr.msk.f32.vlgmr.msra.gmra.mrb[22].mxu1 %vm75_vm2, %v17622_v11  ;;  %15198 = vmatmul.mubr.msk.f32.vlgmr.msra.gmra.mrb[24].mxu0 %vm75_vm2, %v5168_v30  ;;  %v5153_v11 = vld [vmem:[%s20366_s0 + $0x8f] ss:$0 sm:$0xff]  ;;  %v18045_v30 = vpop.permute.xlu0 %10464 }
 0x13b   :  { %16353 = vmatpush3.bf16.msra.mxu1 %v16352_v0  ;;  %16365 = vmatpush3.bf16.msra.mxu0 %v16364_v33  ;;  %v5243_v17 = vsel %vm73_vm1, %v5153_v11, %v5152_v57  ;;  %v5583_v0 = vld [vmem:[#allocation2 + $0x6b8] sm:$0xff]  ;;  %v16376_v57 = vpack.c.bf16 %v5365_v45, %v5364_v51  ;;  %v5366_v11 = vld [vmem:[#allocation2 + $0x650] sm:$0xff] }
 0x13c   :  { %16354 = vmatprep.subr.bf16.mxu1 %v20369_v1  ;;  %16366 = vmatprep.subr.bf16.mxu0 %v20369_v1  ;;  %v16385_v31 = vpack.c.bf16 %v5583_v0, %v5582_v9  ;;  %v5796_v9 = vld [vmem:[#allocation2 + $0x6e8] sm:$0xff]  ;;  %v6010_v0 = vld [vmem:[#allocation2 + $0x720] sm:$0xff]  ;;  %v5797_v45 = vld [vmem:[#allocation2 + $0x6f0] sm:$0xff] }
 0x13d   :  { %15186 = vmatprep.mubr.msk.f32.mxu1 %vm17008_vm0, %v17680_v47  ;;  %15208 = vmatprep.mubr.msk.f32.mxu0 %vm17008_vm0, %v17680_v47 }
 0x13f   :  { %16356 = vmatpush3.bf16.msra.mxu1 %v16355_v61  ;;  %16368 = vmatpush3.bf16.msra.mxu0 %v16367_v50  ;;  %v5575_v61 = vld [vmem:[#allocation2 + $0x680] sm:$0xff]  ;;  %v5576_v50 = vld [vmem:[#allocation2 + $0x688] sm:$0xff] }
 0x140   :  { %16369 = vmatprep.subr.bf16.mxu1 %v20369_v1  ;;  %16381 = vmatprep.subr.bf16.mxu0 %v20369_v1  ;;  %v18049_v33 = vpop.permute.xlu1 %10967  ;;  %v18060_v2 = vpop.permute.xlu0 %10675  ;;  %v16388_v52 = vpack.c.bf16 %v5576_v50, %v5575_v61  ;;  %v5798_v61 = vld [vmem:[#allocation2 + $0x6f8] sm:$0xff]  ;;  %v6012_v50 = vld [vmem:[#allocation2 + $0x730] sm:$0xff] }
 0x142   :  { %15187 = vmatmul.mubr.msk.f32.vlgmr.msra.gmra.mrb[22].mxu1 %vm75_vm2, %v17635_v32  ;;  %15209 = vmatmul.mubr.msk.f32.vlgmr.msra.gmra.mrb[24].mxu0 %vm75_vm2, %v5243_v17 }
 0x143   :  { %16371 = vmatpush3.bf16.msra.mxu1 %v16370_v39  ;;  %16383 = vmatpush3.bf16.msra.mxu0 %v16382_v19  ;;  %v5578_v39 = vld [vmem:[#allocation2 + $0x698] sm:$0xff]  ;;  %v16379_v19 = vpack.c.bf16 %v5367_v27, %v5366_v11  ;;  %v16397_v11 = vpack.c.bf16 %v5798_v61, %v5797_v45 }
 0x144   :  { %16372 = vmatprep.subr.bf16.mxu1 %v20369_v1  ;;  %16384 = vmatprep.subr.bf16.mxu0 %v20369_v1  ;;  %v16391_v60 = vpack.c.bf16 %v5578_v39, %v5577_v5  ;;  %v13805_v39 = vld [vmem:[%s20366_s0 + $0x57] ss:$0 sm:$0xff]  ;;  %v5793_v45 = vld [vmem:[#allocation2 + $0x6d8] sm:$0xff] }
 0x145   :  { %15219 = vmatprep.mubr.msk.f32.mxu1 %vm17008_vm0, %v17680_v47  ;;  %15241 = vmatprep.mubr.msk.f32.mxu0 %vm17008_vm0, %v17680_v47 }
 0x146   :  { %v18056_v32 = vpop.permute.xlu1 %11389 }
 0x147   :  { %16374 = vmatpush3.bf16.msra.mxu1 %v16373_v15  ;;  %16386 = vmatpush3.bf16.msra.mxu0 %v16385_v31 }
 0x148   :  { %16375 = vmatprep.subr.bf16.mxu1 %v20369_v1  ;;  %16387 = vmatprep.subr.bf16.mxu0 %v20369_v1  ;;  %v18074_v15 = vpop.permute.xlu0 %10752 }
 0x14a   :  { %15220 = vmatmul.mubr.msk.f32.vlgmr.msra.gmra.mrb[24].mxu1 %vm75_vm2, %v17689_v54  ;;  %v18066_v17 = vpop.permute.xlu1 %11738  ;;  %15242 = vmatmul.mubr.msk.f32.vlgmr.msra.gmra.mrb[26].mxu0 %vm75_vm2, %v17717_v14  ;;  %v6011_v54 = vld [vmem:[#allocation2 + $0x728] sm:$0xff]  ;;  %v16394_v14 = vpack.c.bf16 %v5796_v9, %v5795_v29 }
 0x14b   :  { %16377 = vmatpush3.bf16.msra.mxu1 %v16376_v57  ;;  %16389 = vmatpush3.bf16.msra.mxu0 %v16388_v52  ;;  %v16406_v51 = vpack.c.bf16 %v6011_v54, %v6010_v0  ;;  %v6013_v57 = vld [vmem:[#allocation2 + $0x738] sm:$0xff]  ;;  %v6006_v29 = vld [vmem:[#allocation2 + $0x708] sm:$0xff] }
 0x14c   :  { %16378 = vmatprep.subr.bf16.mxu1 %v20369_v1  ;;  %16390 = vmatprep.subr.bf16.mxu0 %v20369_v1  ;;  %v16409_v5 = vpack.c.bf16 %v6013_v57, %v6012_v50  ;;  %v6007_v50 = vld [vmem:[#allocation2 + $0x710] sm:$0xff]  ;;  %v6008_v57 = vld [vmem:[#allocation2 + $0x718] sm:$0xff] }
 0x14d   :  { %15230 = vmatprep.mubr.msk.f32.mxu1 %vm17008_vm0, %v17680_v47  ;;  %15252 = vmatprep.mubr.msk.f32.mxu0 %vm17008_vm0, %v17680_v47 }
 0x14e   :  { %v18076_v31 = vpop.permute.xlu1 %11815 }
 0x14f   :  { %16380 = vmatpush3.bf16.msra.mxu1 %v16379_v19  ;;  %16392 = vmatpush3.bf16.msra.mxu0 %v16391_v60  ;;  %v5790_v19 = vld [vmem:[#allocation2 + $0x6c0] sm:$0xff]  ;;  %v5791_v60 = vld [vmem:[#allocation2 + $0x6c8] sm:$0xff] }
 0x150   :  { %16393 = vmatprep.subr.bf16.mxu1 %v20369_v1  ;;  %16405 = vmatprep.subr.bf16.mxu0 %v20369_v1  ;;  %v18088_v27 = vpop.permute.xlu0 %11312  ;;  %v16400_v0 = vpack.c.bf16 %v5791_v60, %v5790_v19  ;;  %v6217_v19 = vld [vmem:[#allocation2 + $0x760] sm:$0xff]  ;;  %v6218_v60 = vld [vmem:[#allocation2 + $0x768] sm:$0xff] }
 0x152   :  { %15231 = vmatmul.mubr.msk.f32.vlgmr.msra.gmra.mrb[24].mxu1 %vm75_vm2, %v17655_v35  ;;  %v18084_v52 = vpop.permute.xlu1 %12160  ;;  %15253 = vmatmul.mubr.msk.f32.vlgmr.msra.gmra.mrb[26].mxu0 %vm75_vm2, %v17748_v40  ;;  %v13806_v35 = vld [vmem:[%s20366_s0 + $0xd7] ss:$0 sm:$0xff]  ;;  %v6005_v40 = vld [vmem:[#allocation2 + $0x700] sm:$0xff] }
 0x153   :  { %20371 = vst [vmem:[#allocation5_spill] sm:$0xff] %v18084_v52  ;;  %16395 = vmatpush3.bf16.msra.mxu1 %v16394_v14  ;;  %16407 = vmatpush3.bf16.msra.mxu0 %v16406_v51  ;;  %v6016_v54 = vsel %vm73_vm1, %v13806_v35, %v13805_v39  ;;  %v16412_v14 = vpack.c.bf16 %v6006_v29, %v6005_v40  ;;  %v5792_v51 = vld [vmem:[#allocation2 + $0x6d0] sm:$0xff]  ;;  %v6428_v40 = vld [vmem:[#allocation2 + $0x7a0] sm:$0xff]  ;;  %v6429_v29 = vld [vmem:[#allocation2 + $0x7a8] sm:$0xff] }
 0x154   :  { %16396 = vmatprep.subr.bf16.mxu1 %v20369_v1  ;;  %16408 = vmatprep.subr.bf16.mxu0 %v20369_v1  ;;  %v6000_v39 = vld [vmem:[%s20366_s0 + $0x17] ss:$0 sm:$0xff] }
 0x155   :  { %15263 = vmatprep.mubr.msk.f32.mxu1 %vm17008_vm0, %v17680_v47  ;;  %15285 = vmatprep.mubr.msk.f32.mxu0 %vm17008_vm0, %v17680_v47  ;;  %v6001_v35 = vld [vmem:[%s20366_s0 + $0x97] ss:$0 sm:$0xff] }
 0x156   :  { %v18100_v9 = vpop.permute.xlu1 %12237  ;;  %v6214_v52 = vld [vmem:[#allocation2 + $0x750] sm:$0xff] }
 0x157   :  { %20372 = vst [vmem:[#allocation6_spill] sm:$0xff] %v18100_v9  ;;  %16398 = vmatpush3.bf16.msra.mxu1 %v16397_v11  ;;  %16410 = vmatpush3.bf16.msra.mxu0 %v16409_v5  ;;  %v16403_v11 = vpack.c.bf16 %v5793_v45, %v5792_v51  ;;  %v16415_v5 = vpack.c.bf16 %v6008_v57, %v6007_v50  ;;  %v6219_v50 = vld [vmem:[#allocation2 + $0x770] sm:$0xff]  ;;  %v6220_v57 = vld [vmem:[#allocation2 + $0x778] sm:$0xff] }
 0x158   :  { %16399 = vmatprep.subr.bf16.mxu1 %v20369_v1  ;;  %16411 = vmatprep.subr.bf16.mxu0 %v20369_v1  ;;  %v18107_v61 = vpop.permute.xlu0 %11523  ;;  %v6091_v51 = vsel %vm73_vm1, %v6001_v35, %v6000_v39  ;;  %v16430_v45 = vpack.c.bf16 %v6429_v29, %v6428_v40  ;;  %v6431_v9 = vld [vmem:[#allocation2 + $0x7b8] sm:$0xff]  ;;  %v6424_v29 = vld [vmem:[#allocation2 + $0x788] sm:$0xff] }
 0x15a   :  { %15264 = vmatmul.mubr.msk.f32.vlgmr.msra.gmra.mrb[26].mxu1 %vm75_vm2, %v17687_v53  ;;  %v18111_v47 = vpop.permute.xlu1 %12586  ;;  %15286 = vmatmul.mubr.msk.f32.vlgmr.msra.gmra.mrb[28].mxu0 %vm75_vm2, %v6016_v54  ;;  %v18122_v53 = vld [vmem:[%s20368_s2] sm:$0xff] }
 0x15b   :  { %20373 = vst [vmem:[#allocation7_spill] sm:$0xff] %v18111_v47  ;;  %16401 = vmatpush3.bf16.msra.mxu1 %v16400_v0  ;;  %16413 = vmatpush3.bf16.msra.mxu0 %v16412_v14  ;;  %v16418_v14 = vpack.c.bf16 %v6218_v60, %v6217_v19  ;;  %v6430_v47 = vld [vmem:[#allocation2 + $0x7b0] sm:$0xff]  ;;  %v6212_v19 = vld [vmem:[#allocation2 + $0x740] sm:$0xff]  ;;  %v6213_v60 = vld [vmem:[#allocation2 + $0x748] sm:$0xff] }
 0x15c   :  { %16402 = vmatprep.subr.bf16.mxu1 %v20369_v1  ;;  %16414 = vmatprep.subr.bf16.mxu0 %v20369_v1  ;;  %v16433_v39 = vpack.c.bf16 %v6431_v9, %v6430_v47 }
 0x15d   :  { %15274 = vmatprep.mubr.msk.f32.mxu1 %vm17008_vm0, %v18122_v53  ;;  %15296 = vmatprep.mubr.msk.f32.mxu0 %vm17008_vm0, %v18122_v53 }
 0x15e   :  { %v18129_v0 = vpop.permute.xlu1 %12663 }
 0x15f   :  { %20374 = vst [vmem:[#allocation8_spill] sm:$0xff] %v18129_v0  ;;  %16404 = vmatpush3.bf16.msra.mxu1 %v16403_v11  ;;  %v18133_v54 = vpop.permute.xlu0 %11600  ;;  %16416 = vmatpush3.bf16.msra.mxu0 %v16415_v5  ;;  %v16421_v5 = vpack.c.bf16 %v6220_v57, %v6219_v50  ;;  %v16424_v57 = vpack.c.bf16 %v6213_v60, %v6212_v19 }
 0x160   :  { %16417 = vmatprep.subr.bf16.mxu1 %v20369_v1  ;;  %16429 = vmatprep.subr.bf16.mxu0 %v20369_v1 }
 0x162   :  { %15275 = vmatmul.mubr.msk.f32.vlgmr.msra.gmra.mrb[26].mxu1 %vm75_vm2, %v17700_v3  ;;  %v18140_v0 = vpop.permute.xlu1 %13008  ;;  %15297 = vmatmul.mubr.msk.f32.vlgmr.msra.gmra.mrb[28].mxu0 %vm75_vm2, %v6091_v51  ;;  %v6423_v3 = vld [vmem:[#allocation2 + $0x780] sm:$0xff] }
 0x163   :  { %20375 = vst [vmem:[#allocation9_spill] sm:$0xff] %v18140_v0  ;;  %16419 = vmatpush3.bf16.msra.mxu1 %v16418_v14  ;;  %v18143_v11 = vpop.permute.xlu0 %12371  ;;  %16431 = vmatpush3.bf16.msra.mxu0 %v16430_v45 }
 0x164   :  { %20376 = vst [vmem:[#allocation10_spill] sm:$0xff] %v18143_v11  ;;  %16420 = vmatprep.subr.bf16.mxu1 %v20369_v1  ;;  %16432 = vmatprep.subr.bf16.mxu0 %v20369_v1 }
 0x165   :  { %v432_v35 = vpop.f32.mrb[0].mxu1  ;;  %v644_v40 = vpop.f32.mrb[2].mxu0  ;;  %15307 = vmatprep.mubr.msk.f32.mxu1 %vm17008_vm0, %v18122_v53  ;;  %15329 = vmatprep.mubr.msk.f32.mxu0 %vm17008_vm0, %v18122_v53 }
 0x166   :  { %v443_v14 = vrot.slane %v432_v35, %v17836_v38  ;;  %v655_v51 = vrot.slane %v644_v40, %v17836_v38  ;;  %v14704_v50 = vpop.f32.mrb[1].mxu1  ;;  %v14726_v45 = vpop.f32.mrb[3].mxu0  ;;  %v16436_v35 = vpack.c.bf16 %v6424_v29, %v6423_v3  ;;  %v6215_v40 = vld [vmem:[#allocation2 + $0x758] sm:$0xff] }
 0x167   :  { %16422 = vmatpush3.bf16.msra.mxu1 %v16421_v5  ;;  %v18153_v9 = vpop.permute.xlu1 %13085  ;;  %v18155_v47 = vpop.permute.xlu0 %12448  ;;  %16434 = vmatpush3.bf16.msra.mxu0 %v16433_v39  ;;  %v20379_v50 = vmov 0.0|0.0   ;;  %v6425_v45 = vld [vmem:[#allocation2 + $0x790] sm:$0xff]  ;;  %v6426_v5 = vld [vmem:[#allocation2 + $0x798] sm:$0xff]  ;;  %v16427_v29 = vpack.c.bf16 %v6215_v40, %v6214_v52 }
 0x168   :  { %20377 = vst [vmem:[#allocation11_spill] sm:$0xff] %v18153_v9  ;;  %20378 = vst [vmem:[#allocation12_spill] sm:$0xff] %v18155_v47  ;;  %v444_v1 = vcombine.high %v443_v14, %v443_v14  ;;  %v18158_v0 = vrot.slane %v443_v14, %v17836_v38  ;;  %v656_v11 = vcombine.high %v655_v51, %v655_v51  ;;  %16423 = vmatprep.subr.bf16.mxu1 %v20379_v50  ;;  %v6644_v47 = vld [vmem:[#allocation2 + $0x7e8] sm:$0xff] }
 0x169   :  { %16435 = vmatprep.subr.bf16.mxu0 %v20379_v50  ;;  %v663_v19 = vrot.slane %v655_v51, %v17836_v38  ;;  %v6643_v51 = vld [vmem:[#allocation2 + $0x7e0] sm:$0xff] }
 0x16a   :  { %v18163_v9 = vrot.slane %v444_v1, %v17836_v38  ;;  %15308 = vmatmul.mubr.msk.f32.vlgmr.msra.gmra.mrb[28].mxu1 %vm75_vm2, %v17765_v25  ;;  %v462_v39 = vrot.slane %v18158_v0, %v17849_v26  ;;  %15330 = vmatmul.mubr.msk.f32.vlgmr.msra.gmra.mrb[30].mxu0 %vm75_vm2, %v17790_v16  ;;  %v670_v14 = vrot.slane %v656_v11, %v17836_v38  ;;  %v6858_v16 = vld [vmem:[#allocation2 + $0x820] sm:$0xff] }
 0x16b   :  { %16425 = vmatpush3.bf16.msra.mxu1 %v16424_v57  ;;  %v18172_v60 = vpop.permute.xlu1 %13434  ;;  %v18174_v3 = vpop.permute.xlu0 %13219  ;;  %16437 = vmatpush3.bf16.msra.mxu0 %v16436_v35  ;;  %v16439_v25 = vpack.c.bf16 %v6426_v5, %v6425_v45  ;;  %v6859_v57 = vld [vmem:[#allocation2 + $0x828] sm:$0xff]  ;;  %v674_v52 = vrot.slane %v663_v19, %v17849_v26  ;;  %v16442_v35 = vpack.c.bf16 %v6644_v47, %v6643_v51  ;;  %v6645_v5 = vld [vmem:[#allocation2 + $0x7f0] sm:$0xff]  ;;  %v6638_v51 = vld [vmem:[#allocation2 + $0x7c0] sm:$0xff] }
 0x16c   :  { %20380 = vst [vmem:[#allocation13_spill] sm:$0xff] %v18172_v60  ;;  %v466_v1 = vrot.slane %v18163_v9, %v17849_v26  ;;  %467 = vrot.lane.b32.xlu0 %v462_v39, %s17011_s10  ;;  %16426 = vmatprep.subr.bf16.mxu1 %v20379_v50  ;;  %v678_v40 = vrot.slane %v670_v14, %v17849_v26  ;;  %v6646_v39 = vld [vmem:[#allocation2 + $0x7f8] sm:$0xff]  ;;  %v6860_v19 = vld [vmem:[#allocation2 + $0x830] sm:$0xff] }
 0x16d   :  { %16438 = vmatprep.subr.bf16.mxu0 %v20379_v50  ;;  %15318 = vmatprep.mubr.msk.f32.mxu1 %vm17008_vm0, %v18122_v53  ;;  %v16454_v45 = vpack.c.bf16 %v6859_v57, %v6858_v16  ;;  %v16445_v47 = vpack.c.bf16 %v6646_v39, %v6645_v5  ;;  %v6639_v16 = vld [vmem:[#allocation2 + $0x7c8] sm:$0xff] }
 0x16e   :  { %469 = vrot.lane.b32.xlu1 %v466_v1, %s17011_s10  ;;  %15340 = vmatprep.mubr.msk.f32.mxu0 %vm17008_vm0, %v18122_v53  ;;  %v16448_v60 = vpack.c.bf16 %v6639_v16, %v6638_v51  ;;  %v6640_v51 = vld [vmem:[#allocation2 + $0x7d0] sm:$0xff]  ;;  %v6641_v16 = vld [vmem:[#allocation2 + $0x7d8] sm:$0xff] }
 0x16f   :  { %16428 = vmatpush3.bf16.msra.mxu1 %v16427_v29  ;;  %v18186_v11 = vpop.permute.xlu1 %13511  ;;  %16440 = vmatpush3.bf16.msra.mxu0 %v16439_v25  ;;  %v18193_v1 = vpop.permute.xlu0 %13296  ;;  %v6861_v29 = vld [vmem:[#allocation2 + $0x838] sm:$0xff]  ;;  %v13829_v25 = vld [vmem:[%s20366_s0 + $0x68] ss:$0 sm:$0xff] }
 0x170   :  { %20381 = vst [vmem:[#allocation14_spill] sm:$0xff] %v18186_v11  ;;  %679 = vrot.lane.b32.xlu0 %v674_v52, %s17009_s8  ;;  %16441 = vmatprep.subr.bf16.mxu1 %v20379_v50  ;;  %v16457_v14 = vpack.c.bf16 %v6861_v29, %v6860_v19 }
 0x171   :  { %16453 = vmatprep.subr.bf16.mxu0 %v20379_v50 }
 0x172   :  { %15319 = vmatmul.mubr.msk.f32.vlgmr.msra.gmra.mrb[28].mxu1 %vm75_vm2, %v17738_v22  ;;  %681 = vrot.lane.b32.xlu1 %v678_v40, %s17009_s8 }
 0x173   :  { %15341 = vmatmul.mubr.msk.f32.vlgmr.msra.gmra.mrb[30].mxu0 %vm75_vm2, %v17820_v46  ;;  %16443 = vmatpush3.bf16.msra.mxu1 %v16442_v35  ;;  %v260_v57 = vpop.permute.xlu1 %259  ;;  %v13830_v46 = vld [vmem:[%s20366_s0 + $0xe8] ss:$0 sm:$0xff]  ;;  %v6853_v35 = vld [vmem:[#allocation2 + $0x800] sm:$0xff] }
 0x174   :  { %16455 = vmatpush3.bf16.msra.mxu0 %v16454_v45  ;;  %688 = vrot.lane.b32.xlu0 %v674_v52, %s17011_s10  ;;  %v6854_v52 = vld [vmem:[#allocation2 + $0x808] sm:$0xff]  ;;  %13641 = vst.msk [vmem:[%s20368_s2 + $0x4c] sm:$0x1] %vm248_vm3, %v260_v57 }
 0x175   :  { %v860_v22 = vpop.f32.mrb[2].mxu1  ;;  %16444 = vmatprep.subr.bf16.mxu1 %v20379_v50  ;;  %16456 = vmatprep.subr.bf16.mxu0 %v20379_v50  ;;  %v1072_v5 = vpop.f32.mrb[4].mxu0  ;;  %13647 = vst.msk [vmem:[%s20368_s2 + $0x4c] sm:$0x1] %vm473_vm4, %v18158_v0  ;;  %v6855_v0 = vld [vmem:[#allocation2 + $0x810] sm:$0xff] }
 0x176   :  { %v871_v45 = vrot.slane %v860_v22, %v17836_v38  ;;  %v14748_v39 = vpop.f32.mrb[3].mxu1  ;;  %690 = vrot.lane.b32.xlu1 %v678_v40, %s17011_s10  ;;  %15351 = vmatprep.mubr.msk.f32.mxu1 %vm17008_vm0, %v18122_v53  ;;  %v1083_v19 = vrot.slane %v1072_v5, %v17836_v38  ;;  %v262_v29 = vpop.permute.xlu0 %261  ;;  %v6856_v5 = vld [vmem:[#allocation2 + $0x818] sm:$0xff] }
 0x177   :  { %v14770_v11 = vpop.f32.mrb[5].mxu0  ;;  %16446 = vmatpush3.bf16.msra.mxu1 %v16445_v47  ;;  %15373 = vmatprep.mubr.msk.f32.mxu0 %vm17008_vm0, %v18122_v53  ;;  %13642 = vst.msk [vmem:[%s20368_s2 + $0xcc] sm:$0x1] %vm248_vm3, %v262_v29  ;;  %v16460_v47 = vpack.c.bf16 %v6854_v52, %v6853_v35  ;;  %v6848_v35 = vld [vmem:[%s20366_s0 + $0x28] ss:$0 sm:$0xff] }
 0x178   :  { %v879_v40 = vrot.slane %v871_v45, %v17836_v38  ;;  %16458 = vmatpush3.bf16.msra.mxu0 %v16457_v14  ;;  %16447 = vmatprep.subr.bf16.mxu1 %v20379_v50  ;;  %v6864_v11 = vsel %vm73_vm1, %v13830_v46, %v13829_v25  ;;  %v1084_v57 = vcombine.high %v1083_v19, %v1083_v19  ;;  %v7066_v52 = vld [vmem:[#allocation2 + $0x868] sm:$0xff] }
 0x179   :  { %v1091_v22 = vrot.slane %v1083_v19, %v17836_v38  ;;  %16459 = vmatprep.subr.bf16.mxu0 %v20379_v50  ;;  %13648 = vst.msk [vmem:[%s20368_s2 + $0xcc] sm:$0x1] %vm473_vm4, %v18163_v9  ;;  %v872_v14 = vcombine.high %v871_v45, %v871_v45  ;;  %v16451_v46 = vpack.c.bf16 %v6641_v16, %v6640_v51  ;;  %v7276_v19 = vld [vmem:[#allocation2 + $0x8a0] sm:$0xff]  ;;  %v7277_v29 = vld [vmem:[#allocation2 + $0x8a8] sm:$0xff] }
 0x17a   :  { %v890_v39 = vrot.slane %v879_v40, %v17849_v26  ;;  %15352 = vmatmul.mubr.msk.f32.vlgmr.msra.gmra.mrb[30].mxu1 %vm75_vm2, %v17756_v55  ;;  %v1098_v25 = vrot.slane %v1084_v57, %v17836_v38  ;;  %v16463_v9 = vpack.c.bf16 %v6856_v5, %v6855_v0  ;;  %v7065_v55 = vld [vmem:[#allocation2 + $0x860] sm:$0xff]  ;;  %v16478_v16 = vpack.c.bf16 %v7277_v29, %v7276_v19  ;;  %v7067_v57 = vld [vmem:[#allocation2 + $0x870] sm:$0xff]  ;;  %v7068_v0 = vld [vmem:[#allocation2 + $0x878] sm:$0xff] }
 0x17b   :  { %1101 = vst.msk [vmem:[%s20368_s2 + $0x14] sm:$0x1] %vm248_vm3, %v1091_v22  ;;  %15374 = vmatmul.mubr.msk.f32.vlgmr.msra.gmra.mrb[32].mxu0 %vm75_vm2, %v6864_v11  ;;  %16449 = vmatpush3.bf16.msra.mxu1 %v16448_v60  ;;  %v6849_v60 = vld [vmem:[%s20366_s0 + $0xa8] ss:$0 sm:$0xff]  ;;  %v886_v40 = vrot.slane %v872_v14, %v17836_v38  ;;  %v1106_v11 = vrot.slane %v1091_v22, %v17849_v26  ;;  %v7278_v22 = vld [vmem:[#allocation2 + $0x8b0] sm:$0xff]  ;;  %v7279_v5 = vld [vmem:[#allocation2 + $0x8b8] sm:$0xff] }
 0x17c   :  { %16461 = vmatpush3.bf16.msra.mxu0 %v16460_v47  ;;  %895 = vrot.lane.b32.xlu0 %v890_v39, %s17010_s9  ;;  %v1110_v45 = vrot.slane %v1098_v25, %v17849_v26  ;;  %1102 = vst.msk [vmem:[%s20368_s2 + $0x94] sm:$0x1] %vm248_vm3, %v1098_v25  ;;  %v16466_v47 = vpack.c.bf16 %v7066_v52, %v7065_v55  ;;  %v7271_v52 = vld [vmem:[#allocation2 + $0x880] sm:$0xff] }
 0x17d   :  { %904 = vrot.lane.b32.xlu1 %v890_v39, %s17009_s8  ;;  %16450 = vmatprep.subr.bf16.mxu1 %v20379_v50  ;;  %v6939_v51 = vsel %vm73_vm1, %v6849_v60, %v6848_v35  ;;  %v894_v14 = vrot.slane %v886_v40, %v17849_v26  ;;  %v16469_v39 = vpack.c.bf16 %v7068_v0, %v7067_v57  ;;  %v7062_v57 = vld [vmem:[#allocation2 + $0x850] sm:$0xff]  ;;  %v7063_v0 = vld [vmem:[#allocation2 + $0x858] sm:$0xff] }
 0x17e   :  { %16462 = vmatprep.subr.bf16.mxu0 %v20379_v50  ;;  %15362 = vmatprep.mubr.msk.f32.mxu1 %vm17008_vm0, %v18122_v53  ;;  %v16481_v25 = vpack.c.bf16 %v7279_v5, %v7278_v22  ;;  %v7273_v22 = vld [vmem:[#allocation2 + $0x890] sm:$0xff]  ;;  %v7274_v5 = vld [vmem:[#allocation2 + $0x898] sm:$0xff] }
 0x17f   :  { %16452 = vmatpush3.bf16.msra.mxu1 %v16451_v46  ;;  %15384 = vmatprep.mubr.msk.f32.mxu0 %vm17008_vm0, %v18122_v53  ;;  %v7060_v46 = vld [vmem:[#allocation2 + $0x840] sm:$0xff] }
 0x180   :  { %16464 = vmatpush3.bf16.msra.mxu0 %v16463_v9  ;;  %1111 = vrot.lane.b32.xlu0 %v1106_v11, %s17010_s9  ;;  %v7061_v9 = vld [vmem:[#allocation2 + $0x848] sm:$0xff] }
 0x181   :  { %1113 = vrot.lane.b32.xlu1 %v1110_v45, %s17010_s9  ;;  %16465 = vmatprep.subr.bf16.mxu1 %v20379_v50  ;;  %v16472_v40 = vpack.c.bf16 %v7061_v9, %v7060_v46 }
 0x182   :  { %15363 = vmatmul.mubr.msk.f32.vlgmr.msra.gmra.mrb[30].mxu1 %vm75_vm2, %v17781_v4  ;;  %16477 = vmatprep.subr.bf16.mxu0 %v20379_v50  ;;  %v7272_v4 = vld [vmem:[#allocation2 + $0x888] sm:$0xff] }
 0x183   :  { %15385 = vmatmul.mubr.msk.f32.vlgmr.msra.gmra.mrb[32].mxu0 %vm75_vm2, %v6939_v51  ;;  %16467 = vmatpush3.bf16.msra.mxu1 %v16466_v47 }
 0x184   :  { %16479 = vmatpush3.bf16.msra.mxu0 %v16478_v16  ;;  %897 = vrot.lane.b32.xlu0 %v894_v14, %s17010_s9  ;;  %v16484_v16 = vpack.c.bf16 %v7272_v4, %v7271_v52  ;;  %v7491_v52 = vld [vmem:[#allocation2 + $0x8e0] sm:$0xff] }
 0x185   :  { %v1283_v35 = vpop.f32.mrb[4].mxu1  ;;  %v1494_v55 = vpop.f32.mrb[6].mxu0  ;;  %16468 = vmatprep.subr.bf16.mxu1 %v20379_v50  ;;  %16480 = vmatprep.subr.bf16.mxu0 %v20379_v50  ;;  %v7706_v4 = vld [vmem:[#allocation2 + $0x920] sm:$0xff] }
 0x186   :  { %v1294_v45 = vrot.slane %v1283_v35, %v17836_v38  ;;  %v1505_v60 = vrot.slane %v1494_v55, %v17836_v38  ;;  %v14792_v19 = vpop.f32.mrb[5].mxu1  ;;  %v14814_v29 = vpop.f32.mrb[7].mxu0  ;;  %15395 = vmatprep.mubr.msk.f32.mxu1 %vm17008_vm0, %v18122_v53  ;;  %15417 = vmatprep.mubr.msk.f32.mxu0 %vm17008_vm0, %v18122_v53  ;;  %v16487_v55 = vpack.c.bf16 %v7274_v5, %v7273_v22  ;;  %v7487_v22 = vld [vmem:[#allocation2 + $0x8c8] sm:$0xff] }
 0x187   :  { %16470 = vmatpush3.bf16.msra.mxu1 %v16469_v39 }
 0x188   :  { %v1295_v11 = vcombine.high %v1294_v45, %v1294_v45  ;;  %v18289_v47 = vrot.slane %v1294_v45, %v17836_v38  ;;  %v1506_v51 = vcombine.high %v1505_v60, %v1505_v60  ;;  %16482 = vmatpush3.bf16.msra.mxu0 %v16481_v25  ;;  %906 = vrot.lane.b32.xlu0 %v894_v14, %s17009_s8  ;;  %v7707_v45 = vld [vmem:[#allocation2 + $0x928] sm:$0xff] }
 0x189   :  { %16471 = vmatprep.subr.bf16.mxu1 %v20379_v50  ;;  %v1513_v25 = vrot.slane %v1505_v60, %v17836_v38  ;;  %16483 = vmatprep.subr.bf16.mxu0 %v20379_v50  ;;  %v16475_v14 = vpack.c.bf16 %v7063_v0, %v7062_v57  ;;  %v16502_v29 = vpack.c.bf16 %v7707_v45, %v7706_v4  ;;  %v7486_v0 = vld [vmem:[#allocation2 + $0x8c0] sm:$0xff] }
 0x18a   :  { %v18294_v35 = vrot.slane %v1295_v11, %v17836_v38  ;;  %v1313_v39 = vrot.slane %v18289_v47, %v17849_v26  ;;  %15396 = vmatmul.mubr.msk.f32.vlgmr.msra.gmra.mrb[32].mxu1 %vm75_vm2, %v17840_v63  ;;  %v1520_v9 = vrot.slane %v1506_v51, %v17836_v38  ;;  %v7492_v63 = vld [vmem:[#allocation2 + $0x8e8] sm:$0xff]  ;;  %v7494_v11 = vld [vmem:[#allocation2 + $0x8f8] sm:$0xff]  ;;  %v7708_v51 = vld [vmem:[#allocation2 + $0x930] sm:$0xff]  ;;  %v16496_v4 = vpack.c.bf16 %v7487_v22, %v7486_v0 }
 0x18b   :  { %15418 = vmatmul.mubr.msk.f32.vlgmr.msra.gmra.mrb[34].mxu0 %vm75_vm2, %v17866_v44  ;;  %16473 = vmatpush3.bf16.msra.mxu1 %v16472_v40  ;;  %v1524_v44 = vrot.slane %v1513_v25, %v17849_v26  ;;  %v16490_v19 = vpack.c.bf16 %v7492_v63, %v7491_v52  ;;  %v7493_v40 = vld [vmem:[#allocation2 + $0x8f0] sm:$0xff]  ;;  %v7701_v52 = vld [vmem:[#allocation2 + $0x900] sm:$0xff]  ;;  %v7702_v63 = vld [vmem:[#allocation2 + $0x908] sm:$0xff] }
 0x18c   :  { %v1317_v46 = vrot.slane %v18294_v35, %v17849_v26  ;;  %16485 = vmatpush3.bf16.msra.mxu0 %v16484_v16  ;;  %1318 = vrot.lane.b32.xlu0 %v1313_v39, %s17011_s10  ;;  %v1528_v60 = vrot.slane %v1520_v9, %v17849_v26  ;;  %v7709_v16 = vld [vmem:[#allocation2 + $0x938] sm:$0xff]  ;;  %v16493_v57 = vpack.c.bf16 %v7494_v11, %v7493_v40 }
 0x18d   :  { %16474 = vmatprep.subr.bf16.mxu1 %v20379_v50  ;;  %16486 = vmatprep.subr.bf16.mxu0 %v20379_v50  ;;  %v16505_v25 = vpack.c.bf16 %v7709_v16, %v7708_v51  ;;  %v16508_v11 = vpack.c.bf16 %v7702_v63, %v7701_v52  ;;  %v7488_v51 = vld [vmem:[#allocation2 + $0x8d0] sm:$0xff]  ;;  %v7489_v16 = vld [vmem:[#allocation2 + $0x8d8] sm:$0xff] }
 0x18e   :  { %1320 = vrot.lane.b32.xlu1 %v1317_v46, %s17011_s10  ;;  %15406 = vmatprep.mubr.msk.f32.mxu1 %vm17008_vm0, %v18122_v53  ;;  %v7704_v0 = vld [vmem:[#allocation2 + $0x918] sm:$0xff]  ;;  %v16499_v22 = vpack.c.bf16 %v7489_v16, %v7488_v51 }
 0x18f   :  { %15428 = vmatprep.mubr.msk.f32.mxu0 %vm17008_vm0, %v18122_v53  ;;  %16476 = vmatpush3.bf16.msra.mxu1 %v16475_v14  ;;  %v13853_v14 = vld [vmem:[%s20366_s0 + $0x70] ss:$0 sm:$0xff] }
 0x190   :  { %16488 = vmatpush3.bf16.msra.mxu0 %v16487_v55  ;;  %1529 = vrot.lane.b32.xlu0 %v1524_v44, %s17009_s8  ;;  %v13854_v55 = vld [vmem:[%s20366_s0 + $0xf0] ss:$0 sm:$0xff] }
 0x191   :  { %16489 = vmatprep.subr.bf16.mxu1 %v20379_v50  ;;  %16501 = vmatprep.subr.bf16.mxu0 %v20379_v50  ;;  %v7712_v40 = vsel %vm73_vm1, %v13854_v55, %v13853_v14  ;;  %v7913_v14 = vld [vmem:[#allocation2 + $0x960] sm:$0xff] }
 0x192   :  { %1531 = vrot.lane.b32.xlu1 %v1528_v60, %s17009_s8  ;;  %15407 = vmatmul.mubr.msk.f32.vlgmr.msra.gmra.mrb[32].mxu1 %vm75_vm2, %v17804_v37 }
 0x193   :  { %15429 = vmatmul.mubr.msk.f32.vlgmr.msra.gmra.mrb[34].mxu0 %vm75_vm2, %v17890_v8  ;;  %16491 = vmatpush3.bf16.msra.mxu1 %v16490_v19 }
 0x194   :  { %16503 = vmatpush3.bf16.msra.mxu0 %v16502_v29  ;;  %1537 = vrot.lane.b32.xlu0 %v1524_v44, %s17011_s10 }
 0x195   :  { %v1709_v5 = vpop.f32.mrb[6].mxu1  ;;  %v1920_v39 = vpop.f32.mrb[8].mxu0  ;;  %16492 = vmatprep.subr.bf16.mxu1 %v20379_v50  ;;  %16504 = vmatprep.subr.bf16.mxu0 %v20379_v50 }
 0x196   :  { %v1720_v37 = vrot.slane %v1709_v5, %v17836_v38  ;;  %v1931_v8 = vrot.slane %v1920_v39, %v17836_v38  ;;  %v14836_v46 = vpop.f32.mrb[7].mxu1  ;;  %v14858_v9 = vpop.f32.mrb[9].mxu0  ;;  %15439 = vmatprep.mubr.msk.f32.mxu1 %vm17008_vm0, %v18122_v53  ;;  %15461 = vmatprep.mubr.msk.f32.mxu0 %vm17008_vm0, %v18122_v53 }
 0x197   :  { %16494 = vmatpush3.bf16.msra.mxu1 %v16493_v57  ;;  %v7703_v57 = vld [vmem:[#allocation2 + $0x910] sm:$0xff]  ;;  %v8124_v46 = vld [vmem:[#allocation2 + $0x9a0] sm:$0xff]  ;;  %v8125_v9 = vld [vmem:[#allocation2 + $0x9a8] sm:$0xff] }
 0x198   :  { %v1721_v45 = vcombine.high %v1720_v37, %v1720_v37  ;;  %v1728_v44 = vrot.slane %v1720_v37, %v17836_v38  ;;  %v1932_v19 = vcombine.high %v1931_v8, %v1931_v8  ;;  %v1939_v29 = vrot.slane %v1931_v8, %v17836_v38  ;;  %16506 = vmatpush3.bf16.msra.mxu0 %v16505_v25  ;;  %v7914_v37 = vld [vmem:[#allocation2 + $0x968] sm:$0xff]  ;;  %v7697_v8 = vld [vmem:[%s20366_s0 + $0xb0] ss:$0 sm:$0xff] }
 0x199   :  { %1539 = vrot.lane.b32.xlu0 %v1528_v60, %s17011_s10  ;;  %16495 = vmatprep.subr.bf16.mxu1 %v20379_v50  ;;  %v16511_v25 = vpack.c.bf16 %v7704_v0, %v7703_v57  ;;  %v16514_v63 = vpack.c.bf16 %v7914_v37, %v7913_v14  ;;  %v7908_v0 = vld [vmem:[#allocation2 + $0x940] sm:$0xff]  ;;  %v8120_v14 = vld [vmem:[#allocation2 + $0x988] sm:$0xff] }
 0x19a   :  { %v1739_v5 = vrot.slane %v1728_v44, %v17849_v26  ;;  %v1946_v39 = vrot.slane %v1932_v19, %v17836_v38  ;;  %1949 = vst.msk [vmem:[%s20368_s2 + $0xd] sm:$0x1] %vm248_vm3, %v1939_v29  ;;  %15440 = vmatmul.mubr.msk.f32.vlgmr.msra.gmra.mrb[34].mxu1 %vm75_vm2, %v17831_v58  ;;  %16507 = vmatprep.subr.bf16.mxu0 %v20379_v50  ;;  %v7696_v58 = vld [vmem:[%s20366_s0 + $0x30] ss:$0 sm:$0xff]  ;;  %v7916_v19 = vld [vmem:[#allocation2 + $0x978] sm:$0xff] }
 0x19b   :  { %v1735_v60 = vrot.slane %v1721_v45, %v17836_v38  ;;  %15462 = vmatmul.mubr.msk.f32.vlgmr.msra.gmra.mrb[36].mxu0 %vm75_vm2, %v7712_v40  ;;  %16497 = vmatpush3.bf16.msra.mxu1 %v16496_v4  ;;  %v1954_v55 = vrot.slane %v1939_v29, %v17849_v26  ;;  %v7787_v4 = vsel %vm73_vm1, %v7697_v8, %v7696_v58  ;;  %v7915_v44 = vld [vmem:[#allocation2 + $0x970] sm:$0xff]  ;;  %v8127_v40 = vld [vmem:[#allocation2 + $0x9b8] sm:$0xff]  ;;  %v8119_v58 = vld [vmem:[#allocation2 + $0x980] sm:$0xff] }
 0x19c   :  { %1950 = vst.msk [vmem:[%s20368_s2 + $0x8d] sm:$0x1] %vm248_vm3, %v1946_v39  ;;  %16509 = vmatpush3.bf16.msra.mxu0 %v16508_v11  ;;  %1744 = vrot.lane.b32.xlu1 %v1739_v5, %s17010_s9  ;;  %v16526_v45 = vpack.c.bf16 %v8125_v9, %v8124_v46  ;;  %v8126_v29 = vld [vmem:[#allocation2 + $0x9b0] sm:$0xff]  ;;  %v1958_v11 = vrot.slane %v1946_v39, %v17849_v26 }
 0x19d   :  { %1752 = vrot.lane.b32.xlu0 %v1739_v5, %s17009_s8  ;;  %16498 = vmatprep.subr.bf16.mxu1 %v20379_v50  ;;  %v1743_v52 = vrot.slane %v1735_v60, %v17849_v26  ;;  %v16517_v51 = vpack.c.bf16 %v7916_v19, %v7915_v44  ;;  %v16529_v57 = vpack.c.bf16 %v8127_v40, %v8126_v29  ;;  %v7909_v60 = vld [vmem:[#allocation2 + $0x948] sm:$0xff]  ;;  %v8121_v44 = vld [vmem:[#allocation2 + $0x990] sm:$0xff]  ;;  %v8122_v19 = vld [vmem:[#allocation2 + $0x998] sm:$0xff] }
 0x19e   :  { %16510 = vmatprep.subr.bf16.mxu0 %v20379_v50  ;;  %15450 = vmatprep.mubr.msk.f32.mxu1 %vm17008_vm0, %v18122_v53  ;;  %v16520_v46 = vpack.c.bf16 %v7909_v60, %v7908_v0  ;;  %v8555_v0 = vld [vmem:[#allocation2 + $0xa28] sm:$0xff] }
 0x19f   :  { %16500 = vmatpush3.bf16.msra.mxu1 %v16499_v22  ;;  %15472 = vmatprep.mubr.msk.f32.mxu0 %vm17008_vm0, %v18122_v53 }
 0x1a0   :  { %16512 = vmatpush3.bf16.msra.mxu0 %v16511_v25  ;;  %1754 = vrot.lane.b32.xlu1 %v1743_v52, %s17009_s8 }
 0x1a1   :  { %1959 = vrot.lane.b32.xlu0 %v1954_v55, %s17010_s9  ;;  %16513 = vmatprep.subr.bf16.mxu1 %v20379_v50  ;;  %v16532_v55 = vpack.c.bf16 %v8120_v14, %v8119_v58  ;;  %v8556_v58 = vld [vmem:[#allocation2 + $0xa30] sm:$0xff]  ;;  %v8557_v14 = vld [vmem:[#allocation2 + $0xa38] sm:$0xff] }
 0x1a2   :  { %15451 = vmatmul.mubr.msk.f32.vlgmr.msra.gmra.mrb[34].mxu1 %vm75_vm2, %v17856_v23  ;;  %16525 = vmatprep.subr.bf16.mxu0 %v20379_v50 }
 0x1a3   :  { %15473 = vmatmul.mubr.msk.f32.vlgmr.msra.gmra.mrb[36].mxu0 %vm75_vm2, %v7787_v4  ;;  %16515 = vmatpush3.bf16.msra.mxu1 %v16514_v63  ;;  %v7911_v63 = vld [vmem:[#allocation2 + $0x958] sm:$0xff] }
 0x1a4   :  { %16527 = vmatpush3.bf16.msra.mxu0 %v16526_v45  ;;  %1961 = vrot.lane.b32.xlu1 %v1958_v11, %s17010_s9 }
 0x1a5   :  { %1746 = vrot.lane.b32.xlu0 %v1743_v52, %s17010_s9  ;;  %v2131_v16 = vpop.f32.mrb[8].mxu1  ;;  %v2342_v5 = vpop.f32.mrb[10].mxu0  ;;  %16516 = vmatprep.subr.bf16.mxu1 %v20379_v50  ;;  %v7910_v52 = vld [vmem:[#allocation2 + $0x950] sm:$0xff] }
 0x1a6   :  { %v2142_v23 = vrot.slane %v2131_v16, %v17836_v38  ;;  %v2353_v22 = vrot.slane %v2342_v5, %v17836_v38  ;;  %v14880_v25 = vpop.f32.mrb[9].mxu1  ;;  %v14902_v39 = vpop.f32.mrb[11].mxu0  ;;  %16528 = vmatprep.subr.bf16.mxu0 %v20379_v50  ;;  %15483 = vmatprep.mubr.msk.f32.mxu1 %vm17008_vm0, %v18122_v53  ;;  %v16523_v11 = vpack.c.bf16 %v7911_v63, %v7910_v52  ;;  %v8339_v5 = vld [vmem:[#allocation2 + $0x9e0] sm:$0xff] }
 0x1a7   :  { %16518 = vmatpush3.bf16.msra.mxu1 %v16517_v51  ;;  %15505 = vmatprep.mubr.msk.f32.mxu0 %vm17008_vm0, %v18122_v53  ;;  %v16535_v16 = vpack.c.bf16 %v8122_v19, %v8121_v44  ;;  %v8341_v25 = vld [vmem:[#allocation2 + $0x9f0] sm:$0xff]  ;;  %v8342_v39 = vld [vmem:[#allocation2 + $0x9f8] sm:$0xff]  ;;  %v16553_v63 = vpack.c.bf16 %v8557_v14, %v8556_v58 }
 0x1a8   :  { %v2143_v37 = vcombine.high %v2142_v23, %v2142_v23  ;;  %v18394_v8 = vrot.slane %v2142_v23, %v17836_v38  ;;  %v2354_v9 = vcombine.high %v2353_v22, %v2353_v22  ;;  %16530 = vmatpush3.bf16.msra.mxu0 %v16529_v57  ;;  %16519 = vmatprep.subr.bf16.mxu1 %v20379_v50  ;;  %v8340_v57 = vld [vmem:[#allocation2 + $0x9e8] sm:$0xff]  ;;  %v8551_v58 = vld [vmem:[#allocation2 + $0xa10] sm:$0xff]  ;;  %v8552_v14 = vld [vmem:[#allocation2 + $0xa18] sm:$0xff] }
 0x1a9   :  { %v2361_v29 = vrot.slane %v2353_v22, %v17836_v38  ;;  %16531 = vmatprep.subr.bf16.mxu0 %v20379_v50 }
 0x1aa   :  { %v18399_v4 = vrot.slane %v2143_v37, %v17836_v38  ;;  %v2161_v45 = vrot.slane %v18394_v8, %v17849_v26  ;;  %15484 = vmatmul.mubr.msk.f32.vlgmr.msra.gmra.mrb[36].mxu1 %vm75_vm2, %v17904_v24  ;;  %v2368_v51 = vrot.slane %v2354_v9, %v17836_v38  ;;  %v8554_v24 = vld [vmem:[#allocation2 + $0xa20] sm:$0xff]  ;;  %v16541_v37 = vpack.c.bf16 %v8342_v39, %v8341_v25  ;;  %v8335_v9 = vld [vmem:[#allocation2 + $0x9c8] sm:$0xff] }
 0x1ab   :  { %15506 = vmatmul.mubr.msk.f32.vlgmr.msra.gmra.mrb[38].mxu0 %vm75_vm2, %v17916_v18  ;;  %16521 = vmatpush3.bf16.msra.mxu1 %v16520_v46  ;;  %v2372_v60 = vrot.slane %v2361_v29, %v17849_v26  ;;  %v16538_v18 = vpack.c.bf16 %v8340_v57, %v8339_v5  ;;  %v16550_v22 = vpack.c.bf16 %v8555_v0, %v8554_v24  ;;  %v8334_v46 = vld [vmem:[#allocation2 + $0x9c0] sm:$0xff]  ;;  %v13878_v29 = vld [vmem:[%s20366_s0 + $0xe9] ss:$0 sm:$0xff] }
 0x1ac   :  { %v2165_v40 = vrot.slane %v18399_v4, %v17849_v26  ;;  %16533 = vmatpush3.bf16.msra.mxu0 %v16532_v55  ;;  %2166 = vrot.lane.b32.xlu0 %v2161_v45, %s17011_s10  ;;  %v2376_v23 = vrot.slane %v2368_v51, %v17849_v26  ;;  %v13877_v45 = vld [vmem:[%s20366_s0 + $0x69] ss:$0 sm:$0xff]  ;;  %v16544_v51 = vpack.c.bf16 %v8335_v9, %v8334_v46 }
 0x1ad   :  { %16522 = vmatprep.subr.bf16.mxu1 %v20379_v50  ;;  %16534 = vmatprep.subr.bf16.mxu0 %v20379_v50  ;;  %v8560_v0 = vsel %vm73_vm1, %v13878_v29, %v13877_v45  ;;  %v16559_v9 = vpack.c.bf16 %v8552_v14, %v8551_v58  ;;  %v8972_v45 = vld [vmem:[#allocation2 + $0xaa0] sm:$0xff]  ;;  %v8763_v29 = vld [vmem:[#allocation2 + $0xa70] sm:$0xff] }
 0x1ae   :  { %2168 = vrot.lane.b32.xlu1 %v2165_v40, %s17011_s10  ;;  %15494 = vmatprep.mubr.msk.f32.mxu1 %vm17008_vm0, %v18122_v53  ;;  %v8549_v40 = vld [vmem:[#allocation2 + $0xa00] sm:$0xff] }
 0x1af   :  { %16524 = vmatpush3.bf16.msra.mxu1 %v16523_v11  ;;  %15516 = vmatprep.mubr.msk.f32.mxu0 %vm17008_vm0, %v18122_v53  ;;  %v8550_v11 = vld [vmem:[#allocation2 + $0xa08] sm:$0xff]  ;;  %v8967_v14 = vld [vmem:[#allocation2 + $0xa80] sm:$0xff] }
 0x1b0   :  { %16536 = vmatpush3.bf16.msra.mxu0 %v16535_v16  ;;  %2377 = vrot.lane.b32.xlu0 %v2372_v60, %s17009_s8 }
 0x1b1   :  { %16537 = vmatprep.subr.bf16.mxu1 %v20379_v50  ;;  %16549 = vmatprep.subr.bf16.mxu0 %v20379_v50 }
 0x1b2   :  { %15495 = vmatmul.mubr.msk.f32.vlgmr.msra.gmra.mrb[36].mxu1 %vm75_vm2, %v17880_v59  ;;  %2379 = vrot.lane.b32.xlu1 %v2376_v23, %s17009_s8 }
 0x1b3   :  { %15517 = vmatmul.mubr.msk.f32.vlgmr.msra.gmra.mrb[38].mxu0 %vm75_vm2, %v17936_v7  ;;  %16539 = vmatpush3.bf16.msra.mxu1 %v16538_v18  ;;  %v8336_v18 = vld [vmem:[#allocation2 + $0x9d0] sm:$0xff] }
 0x1b4   :  { %16551 = vmatpush3.bf16.msra.mxu0 %v16550_v22  ;;  %2385 = vrot.lane.b32.xlu0 %v2372_v60, %s17011_s10  ;;  %v16556_v60 = vpack.c.bf16 %v8550_v11, %v8549_v40  ;;  %v8764_v40 = vld [vmem:[#allocation2 + $0xa78] sm:$0xff]  ;;  %v8974_v11 = vld [vmem:[#allocation2 + $0xab0] sm:$0xff] }
 0x1b5   :  { %v2557_v55 = vpop.f32.mrb[10].mxu1  ;;  %v2768_v52 = vpop.f32.mrb[12].mxu0  ;;  %16540 = vmatprep.subr.bf16.mxu1 %v20379_v50  ;;  %16552 = vmatprep.subr.bf16.mxu0 %v20379_v50 }
 0x1b6   :  { %v2568_v59 = vrot.slane %v2557_v55, %v17836_v38  ;;  %v2779_v44 = vrot.slane %v2768_v52, %v17836_v38  ;;  %v14924_v19 = vpop.f32.mrb[11].mxu1  ;;  %v14946_v7 = vpop.f32.mrb[13].mxu0  ;;  %2387 = vrot.lane.b32.xlu1 %v2376_v23, %s17011_s10  ;;  %15527 = vmatprep.mubr.msk.f32.mxu1 %vm17008_vm0, %v18122_v53  ;;  %v8337_v23 = vld [vmem:[#allocation2 + $0x9d8] sm:$0xff]  ;;  %v8761_v55 = vld [vmem:[#allocation2 + $0xa60] sm:$0xff]  ;;  %v8762_v52 = vld [vmem:[#allocation2 + $0xa68] sm:$0xff] }
 0x1b7   :  { %16542 = vmatpush3.bf16.msra.mxu1 %v16541_v37  ;;  %15549 = vmatprep.mubr.msk.f32.mxu0 %vm17008_vm0, %v18122_v53  ;;  %v16547_v46 = vpack.c.bf16 %v8337_v23, %v8336_v18  ;;  %v8756_v23 = vld [vmem:[#allocation2 + $0xa40] sm:$0xff] }
 0x1b8   :  { %v2569_v16 = vcombine.high %v2568_v59, %v2568_v59  ;;  %v2576_v5 = vrot.slane %v2568_v59, %v17836_v38  ;;  %v2780_v57 = vcombine.high %v2779_v44, %v2779_v44  ;;  %v2787_v24 = vrot.slane %v2779_v44, %v17836_v38  ;;  %16554 = vmatpush3.bf16.msra.mxu0 %v16553_v63  ;;  %v8545_v63 = vld [vmem:[%s20366_s0 + $0xa9] ss:$0 sm:$0xff] }
 0x1b9   :  { %16543 = vmatprep.subr.bf16.mxu1 %v20379_v50  ;;  %16555 = vmatprep.subr.bf16.mxu0 %v20379_v50  ;;  %v8973_v59 = vld [vmem:[#allocation2 + $0xaa8] sm:$0xff]  ;;  %v16562_v44 = vpack.c.bf16 %v8762_v52, %v8761_v55  ;;  %v8758_v52 = vld [vmem:[#allocation2 + $0xa50] sm:$0xff] }
 0x1ba   :  { %v2583_v22 = vrot.slane %v2569_v16, %v17836_v38  ;;  %v2587_v25 = vrot.slane %v2576_v5, %v17849_v26  ;;  %v2794_v39 = vrot.slane %v2780_v57, %v17836_v38  ;;  %2797 = vst.msk [vmem:[%s20368_s2 + $0x15] sm:$0x1] %vm248_vm3, %v2787_v24  ;;  %15528 = vmatmul.mubr.msk.f32.vlgmr.msra.gmra.mrb[38].mxu1 %vm75_vm2, %v17897_v34  ;;  %v8544_v34 = vld [vmem:[%s20366_s0 + $0x29] ss:$0 sm:$0xff] }
 0x1bb   :  { %15550 = vmatmul.mubr.msk.f32.vlgmr.msra.gmra.mrb[40].mxu0 %vm75_vm2, %v8560_v0  ;;  %16545 = vmatpush3.bf16.msra.mxu1 %v16544_v51  ;;  %v8635_v19 = vsel %vm73_vm1, %v8545_v63, %v8544_v34  ;;  %v16574_v7 = vpack.c.bf16 %v8973_v59, %v8972_v45  ;;  %v8975_v51 = vld [vmem:[#allocation2 + $0xab8] sm:$0xff]  ;;  %v2802_v16 = vrot.slane %v2787_v24, %v17849_v26 }
 0x1bc   :  { %v2591_v37 = vrot.slane %v2583_v22, %v17849_v26  ;;  %2798 = vst.msk [vmem:[%s20368_s2 + $0x95] sm:$0x1] %vm248_vm3, %v2794_v39  ;;  %16557 = vmatpush3.bf16.msra.mxu0 %v16556_v60  ;;  %2592 = vrot.lane.b32.xlu0 %v2587_v25, %s17010_s9  ;;  %v16565_v5 = vpack.c.bf16 %v8764_v40, %v8763_v29  ;;  %v8757_v22 = vld [vmem:[#allocation2 + $0xa48] sm:$0xff]  ;;  %v8759_v63 = vld [vmem:[#allocation2 + $0xa58] sm:$0xff] }
 0x1bd   :  { %16546 = vmatprep.subr.bf16.mxu1 %v20379_v50  ;;  %16558 = vmatprep.subr.bf16.mxu0 %v20379_v50  ;;  %v2806_v57 = vrot.slane %v2794_v39, %v17849_v26  ;;  %v16577_v18 = vpack.c.bf16 %v8975_v51, %v8974_v11  ;;  %v8968_v39 = vld [vmem:[#allocation2 + $0xa88] sm:$0xff]  ;;  %v16571_v29 = vpack.c.bf16 %v8759_v63, %v8758_v52  ;;  %v9187_v51 = vld [vmem:[#allocation2 + $0xae0] sm:$0xff]  ;;  %v13902_v63 = vld [vmem:[%s20366_s0 + $0xf1] ss:$0 sm:$0xff] }
 0x1be   :  { %2594 = vrot.lane.b32.xlu1 %v2591_v37, %s17010_s9  ;;  %15538 = vmatprep.mubr.msk.f32.mxu1 %vm17008_vm0, %v18122_v53  ;;  %v16580_v55 = vpack.c.bf16 %v8968_v39, %v8967_v14  ;;  %v9183_v14 = vld [vmem:[#allocation2 + $0xac8] sm:$0xff] }
 0x1bf   :  { %16548 = vmatpush3.bf16.msra.mxu1 %v16547_v46  ;;  %15560 = vmatprep.mubr.msk.f32.mxu0 %vm17008_vm0, %v18122_v53 }
 0x1c0   :  { %16560 = vmatpush3.bf16.msra.mxu0 %v16559_v9  ;;  %2600 = vrot.lane.b32.xlu0 %v2587_v25, %s17009_s8  ;;  %v16568_v9 = vpack.c.bf16 %v8757_v22, %v8756_v23  ;;  %v9189_v23 = vld [vmem:[#allocation2 + $0xaf0] sm:$0xff]  ;;  %v9190_v22 = vld [vmem:[#allocation2 + $0xaf8] sm:$0xff] }
 0x1c1   :  { %16561 = vmatprep.subr.bf16.mxu1 %v20379_v50  ;;  %16573 = vmatprep.subr.bf16.mxu0 %v20379_v50 }
 0x1c2   :  { %15539 = vmatmul.mubr.msk.f32.vlgmr.msra.gmra.mrb[38].mxu1 %vm75_vm2, %v17912_v43  ;;  %2602 = vrot.lane.b32.xlu1 %v2591_v37, %s17009_s8 }
 0x1c3   :  { %15561 = vmatmul.mubr.msk.f32.vlgmr.msra.gmra.mrb[40].mxu0 %vm75_vm2, %v8635_v19  ;;  %16563 = vmatpush3.bf16.msra.mxu1 %v16562_v44  ;;  %v8969_v44 = vld [vmem:[#allocation2 + $0xa90] sm:$0xff]  ;;  %v8970_v19 = vld [vmem:[#allocation2 + $0xa98] sm:$0xff] }
 0x1c4   :  { %16575 = vmatpush3.bf16.msra.mxu0 %v16574_v7  ;;  %2807 = vrot.lane.b32.xlu0 %v2802_v16, %s17010_s9  ;;  %v16583_v11 = vpack.c.bf16 %v8970_v19, %v8969_v44  ;;  %v9188_v16 = vld [vmem:[#allocation2 + $0xae8] sm:$0xff] }
 0x1c5   :  { %v2979_v0 = vpop.f32.mrb[12].mxu1  ;;  %v3190_v60 = vpop.f32.mrb[14].mxu0  ;;  %16564 = vmatprep.subr.bf16.mxu1 %v20379_v50  ;;  %16576 = vmatprep.subr.bf16.mxu0 %v20379_v50  ;;  %v9398_v44 = vld [vmem:[#allocation2 + $0xb08] sm:$0xff] }
 0x1c6   :  { %v2990_v24 = vrot.slane %v2979_v0, %v17836_v38  ;;  %v3201_v43 = vrot.slane %v3190_v60, %v17836_v38  ;;  %v14968_v25 = vpop.f32.mrb[13].mxu1  ;;  %v14990_v58 = vpop.f32.mrb[15].mxu0  ;;  %2809 = vrot.lane.b32.xlu1 %v2806_v57, %s17010_s9  ;;  %15571 = vmatprep.mubr.msk.f32.mxu1 %vm17008_vm0, %v18122_v53  ;;  %v16586_v0 = vpack.c.bf16 %v9188_v16, %v9187_v51  ;;  %v9184_v16 = vld [vmem:[#allocation2 + $0xad0] sm:$0xff] }
 0x1c7   :  { %16566 = vmatpush3.bf16.msra.mxu1 %v16565_v5  ;;  %15593 = vmatprep.mubr.msk.f32.mxu0 %vm17008_vm0, %v18122_v53  ;;  %v9403_v5 = vld [vmem:[#allocation2 + $0xb28] sm:$0xff]  ;;  %v16589_v25 = vpack.c.bf16 %v9190_v22, %v9189_v23  ;;  %v9182_v58 = vld [vmem:[#allocation2 + $0xac0] sm:$0xff] }
 0x1c8   :  { %v2991_v37 = vcombine.high %v2990_v24, %v2990_v24  ;;  %v18500_v46 = vrot.slane %v2990_v24, %v17836_v38  ;;  %v3202_v34 = vcombine.high %v3201_v43, %v3201_v43  ;;  %16578 = vmatpush3.bf16.msra.mxu0 %v16577_v18  ;;  %16567 = vmatprep.subr.bf16.mxu1 %v20379_v50  ;;  %v9404_v24 = vld [vmem:[#allocation2 + $0xb30] sm:$0xff] }
 0x1c9   :  { %v3209_v7 = vrot.slane %v3201_v43, %v17836_v38  ;;  %16579 = vmatprep.subr.bf16.mxu0 %v20379_v50  ;;  %v9405_v43 = vld [vmem:[#allocation2 + $0xb38] sm:$0xff]  ;;  %v16592_v19 = vpack.c.bf16 %v9183_v14, %v9182_v58  ;;  %v9393_v14 = vld [vmem:[%s20366_s0 + $0xb1] ss:$0 sm:$0xff] }
 0x1ca   :  { %v18505_v45 = vrot.slane %v2991_v37, %v17836_v38  ;;  %v3009_v59 = vrot.slane %v18500_v46, %v17849_v26  ;;  %15572 = vmatmul.mubr.msk.f32.vlgmr.msra.gmra.mrb[40].mxu1 %vm75_vm2, %v17956_v41  ;;  %v3216_v40 = vrot.slane %v3202_v34, %v17836_v38  ;;  %v9402_v41 = vld [vmem:[#allocation2 + $0xb20] sm:$0xff]  ;;  %v13901_v34 = vld [vmem:[%s20366_s0 + $0x71] ss:$0 sm:$0xff] }
 0x1cb   :  { %15594 = vmatmul.mubr.msk.f32.vlgmr.msra.gmra.mrb[42].mxu0 %vm75_vm2, %v17968_v49  ;;  %16569 = vmatpush3.bf16.msra.mxu1 %v16568_v9  ;;  %v3220_v57 = vrot.slane %v3209_v7, %v17849_v26  ;;  %v18527_v49 = vld [vmem:[%s20368_s2] sm:$0xff]  ;;  %v16598_v18 = vpack.c.bf16 %v9403_v5, %v9402_v41  ;;  %v16601_v9 = vpack.c.bf16 %v9405_v43, %v9404_v24  ;;  %v9185_v41 = vld [vmem:[#allocation2 + $0xad8] sm:$0xff] }
 0x1cc   :  { %v3013_v53 = vrot.slane %v18505_v45, %v17849_v26  ;;  %16581 = vmatpush3.bf16.msra.mxu0 %v16580_v55  ;;  %3014 = vrot.lane.b32.xlu0 %v3009_v59, %s17011_s10  ;;  %v3224_v60 = vrot.slane %v3216_v40, %v17849_v26  ;;  %v9397_v59 = vld [vmem:[#allocation2 + $0xb00] sm:$0xff]  ;;  %v16595_v22 = vpack.c.bf16 %v9185_v41, %v9184_v16 }
 0x1cd   :  { %16570 = vmatprep.subr.bf16.mxu1 %v20379_v50  ;;  %16582 = vmatprep.subr.bf16.mxu0 %v20379_v50  ;;  %v16604_v51 = vpack.c.bf16 %v9398_v44, %v9397_v59  ;;  %v9609_v43 = vld [vmem:[#allocation2 + $0xb60] sm:$0xff]  ;;  %v9822_v59 = vld [vmem:[#allocation2 + $0xbb0] sm:$0xff]  ;;  %v9823_v44 = vld [vmem:[#allocation2 + $0xbb8] sm:$0xff] }
 0x1ce   :  { %3016 = vrot.lane.b32.xlu1 %v3013_v53, %s17011_s10  ;;  %15582 = vmatprep.mubr.msk.f32.mxu1 %vm17008_vm0, %v18527_v49 }
 0x1cf   :  { %16572 = vmatpush3.bf16.msra.mxu1 %v16571_v29  ;;  %15604 = vmatprep.mubr.msk.f32.mxu0 %vm17008_vm0, %v18527_v49 }
 0x1d0   :  { %16584 = vmatpush3.bf16.msra.mxu0 %v16583_v11  ;;  %3225 = vrot.lane.b32.xlu0 %v3220_v57, %s17009_s8  ;;  %v9408_v11 = vsel %vm73_vm1, %v13902_v63, %v13901_v34 }
 0x1d1   :  { %16585 = vmatprep.subr.bf16.mxu1 %v20379_v50  ;;  %16597 = vmatprep.subr.bf16.mxu0 %v20379_v50 }
 0x1d2   :  { %15583 = vmatmul.mubr.msk.f32.vlgmr.msra.gmra.mrb[40].mxu1 %vm75_vm2, %v17926_v6  ;;  %3227 = vrot.lane.b32.xlu1 %v3224_v60, %s17009_s8 }
 0x1d3   :  { %15605 = vmatmul.mubr.msk.f32.vlgmr.msra.gmra.mrb[42].mxu0 %vm75_vm2, %v17980_v36  ;;  %16587 = vmatpush3.bf16.msra.mxu1 %v16586_v0 }
 0x1d4   :  { %16599 = vmatpush3.bf16.msra.mxu0 %v16598_v18  ;;  %3233 = vrot.lane.b32.xlu0 %v3220_v57, %s17011_s10  ;;  %v9400_v18 = vld [vmem:[#allocation2 + $0xb18] sm:$0xff] }
 0x1d5   :  { %v3405_v39 = vpop.f32.mrb[14].mxu1  ;;  %v3616_v37 = vpop.f32.mrb[16].mxu0  ;;  %16588 = vmatprep.subr.bf16.mxu1 %v20379_v50  ;;  %16600 = vmatprep.subr.bf16.mxu0 %v20379_v50 }
 0x1d6   :  { %v3416_v6 = vrot.slane %v3405_v39, %v17836_v38  ;;  %v3627_v55 = vrot.slane %v3616_v37, %v17836_v38  ;;  %v15012_v52 = vpop.f32.mrb[15].mxu1  ;;  %v15034_v36 = vpop.f32.mrb[17].mxu0  ;;  %3235 = vrot.lane.b32.xlu1 %v3224_v60, %s17011_s10  ;;  %15615 = vmatprep.mubr.msk.f32.mxu1 %vm17008_vm0, %v18527_v49  ;;  %v9399_v60 = vld [vmem:[#allocation2 + $0xb10] sm:$0xff]  ;;  %v9820_v39 = vld [vmem:[#allocation2 + $0xba0] sm:$0xff]  ;;  %v9821_v37 = vld [vmem:[#allocation2 + $0xba8] sm:$0xff] }
 0x1d7   :  { %16590 = vmatpush3.bf16.msra.mxu1 %v16589_v25  ;;  %15637 = vmatprep.mubr.msk.f32.mxu0 %vm17008_vm0, %v18527_v49  ;;  %v16607_v24 = vpack.c.bf16 %v9400_v18, %v9399_v60  ;;  %v9610_v25 = vld [vmem:[#allocation2 + $0xb68] sm:$0xff]  ;;  %v9611_v52 = vld [vmem:[#allocation2 + $0xb70] sm:$0xff]  ;;  %v9612_v36 = vld [vmem:[#allocation2 + $0xb78] sm:$0xff] }
 0x1d8   :  { %v3417_v7 = vcombine.high %v3416_v6, %v3416_v6  ;;  %v3424_v53 = vrot.slane %v3416_v6, %v17836_v38  ;;  %v3628_v29 = vcombine.high %v3627_v55, %v3627_v55  ;;  %v18558_v40 = vrot.slane %v3627_v55, %v17836_v38  ;;  %16602 = vmatpush3.bf16.msra.mxu0 %v16601_v9 }
 0x1d9   :  { %16591 = vmatprep.subr.bf16.mxu1 %v20379_v50  ;;  %16603 = vmatprep.subr.bf16.mxu0 %v20379_v50  ;;  %v16610_v34 = vpack.c.bf16 %v9610_v25, %v9609_v43  ;;  %v16622_v55 = vpack.c.bf16 %v9821_v37, %v9820_v39  ;;  %v9607_v39 = vld [vmem:[#allocation2 + $0xb58] sm:$0xff] }
 0x1da   :  { %v3431_v5 = vrot.slane %v3417_v7, %v17836_v38  ;;  %v3435_v57 = vrot.slane %v3424_v53, %v17849_v26  ;;  %v18566_v0 = vrot.slane %v3628_v29, %v17836_v38  ;;  %3645 = vst.msk [vmem:[%s20368_s2 + $0xe] sm:$0x1] %vm248_vm3, %v18558_v40  ;;  %15616 = vmatmul.mubr.msk.f32.vlgmr.msra.gmra.mrb[42].mxu1 %vm75_vm2, %v17943_v21  ;;  %v9392_v21 = vld [vmem:[%s20366_s0 + $0x31] ss:$0 sm:$0xff] }
 0x1db   :  { %15638 = vmatmul.mubr.msk.f32.vlgmr.msra.gmra.mrb[44].mxu0 %vm75_vm2, %v9408_v11  ;;  %16593 = vmatpush3.bf16.msra.mxu1 %v16592_v19  ;;  %v9483_v6 = vsel %vm73_vm1, %v9393_v14, %v9392_v21  ;;  %v3650_v19 = vrot.slane %v18558_v40, %v17849_v26  ;;  %v16613_v53 = vpack.c.bf16 %v9612_v36, %v9611_v52  ;;  %v9604_v11 = vld [vmem:[#allocation2 + $0xb40] sm:$0xff]  ;;  %v9606_v14 = vld [vmem:[#allocation2 + $0xb50] sm:$0xff] }
 0x1dc   :  { %v3439_v23 = vrot.slane %v3431_v5, %v17849_v26  ;;  %3646 = vst.msk [vmem:[%s20368_s2 + $0x8e] sm:$0x1] %vm248_vm3, %v18566_v0  ;;  %16605 = vmatpush3.bf16.msra.mxu0 %v16604_v51  ;;  %3440 = vrot.lane.b32.xlu0 %v3435_v57, %s17010_s9  ;;  %v3654_v29 = vrot.slane %v18566_v0, %v17849_v26  ;;  %v9605_v51 = vld [vmem:[#allocation2 + $0xb48] sm:$0xff] }
 0x1dd   :  { %16594 = vmatprep.subr.bf16.mxu1 %v20379_v50  ;;  %16606 = vmatprep.subr.bf16.mxu0 %v20379_v50  ;;  %v9816_v0 = vld [vmem:[#allocation2 + $0xb88] sm:$0xff]  ;;  %v16616_v43 = vpack.c.bf16 %v9605_v51, %v9604_v11  ;;  %v16619_v36 = vpack.c.bf16 %v9607_v39, %v9606_v14  ;;  %v10037_v51 = vld [vmem:[#allocation2 + $0xbf0] sm:$0xff] }
 0x1de   :  { %v468_v58 = vpop.permute.xlu0 %467  ;;  %3442 = vrot.lane.b32.xlu1 %v3439_v23, %s17010_s9  ;;  %15626 = vmatprep.mubr.msk.f32.mxu1 %vm17008_vm0, %v18527_v49  ;;  %v10246_v14 = vld [vmem:[#allocation2 + $0xc08] sm:$0xff] }
 0x1df   :  { %474 = vst.msk [vmem:[%s20368_s2 + $0xc] sm:$0x1] %vm473_vm4, %v468_v58  ;;  %16596 = vmatpush3.bf16.msra.mxu1 %v16595_v22  ;;  %15648 = vmatprep.mubr.msk.f32.mxu0 %vm17008_vm0, %v18527_v49 }
 0x1e0   :  { %v470_v9 = vpop.permute.xlu1 %469  ;;  %16608 = vmatpush3.bf16.msra.mxu0 %v16607_v24  ;;  %3448 = vrot.lane.b32.xlu0 %v3435_v57, %s17009_s8  ;;  %v9815_v57 = vld [vmem:[#allocation2 + $0xb80] sm:$0xff] }
 0x1e1   :  { %475 = vst.msk [vmem:[%s20368_s2 + $0x8c] sm:$0x1] %vm473_vm4, %v470_v9  ;;  %16609 = vmatprep.subr.bf16.mxu1 %v20379_v50  ;;  %16621 = vmatprep.subr.bf16.mxu0 %v20379_v50  ;;  %v16628_v58 = vpack.c.bf16 %v9816_v0, %v9815_v57  ;;  %v10253_v57 = vld [vmem:[#allocation2 + $0xc38] sm:$0xff] }
 0x1e2   :  { %v680_v63 = vpop.permute.xlu0 %679  ;;  %15627 = vmatmul.mubr.msk.f32.vlgmr.msra.gmra.mrb[42].mxu1 %vm75_vm2, %v17962_v42  ;;  %3450 = vrot.lane.b32.xlu1 %v3439_v23, %s17009_s8  ;;  %v16625_v42 = vpack.c.bf16 %v9823_v44, %v9822_v59  ;;  %v10035_v44 = vld [vmem:[#allocation2 + $0xbe0] sm:$0xff] }
 0x1e3   :  { %686 = vst.msk [vmem:[%s20368_s2 + $0xc] sm:$0x1] %vm685_vm5, %v680_v63  ;;  %15649 = vmatmul.mubr.msk.f32.vlgmr.msra.gmra.mrb[44].mxu0 %vm75_vm2, %v9483_v6  ;;  %16611 = vmatpush3.bf16.msra.mxu1 %v16610_v34  ;;  %v9817_v34 = vld [vmem:[#allocation2 + $0xb90] sm:$0xff]  ;;  %v9818_v6 = vld [vmem:[#allocation2 + $0xb98] sm:$0xff] }
 0x1e4   :  { %v682_v7 = vpop.permute.xlu1 %681  ;;  %16623 = vmatpush3.bf16.msra.mxu0 %v16622_v55  ;;  %3655 = vrot.lane.b32.xlu0 %v3650_v19, %s17010_s9  ;;  %v16631_v59 = vpack.c.bf16 %v9818_v6, %v9817_v34  ;;  %v10036_v19 = vld [vmem:[#allocation2 + $0xbe8] sm:$0xff] }
 0x1e5   :  { %v3827_v40 = vpop.f32.mrb[16].mxu1  ;;  %687 = vst.msk [vmem:[%s20368_s2 + $0x8c] sm:$0x1] %vm685_vm5, %v682_v7  ;;  %v4038_v41 = vpop.f32.mrb[18].mxu0  ;;  %16612 = vmatprep.subr.bf16.mxu1 %v20379_v50  ;;  %16624 = vmatprep.subr.bf16.mxu0 %v20379_v50  ;;  %v10250_v7 = vld [vmem:[#allocation2 + $0xc20] sm:$0xff] }
 0x1e6   :  { %v3838_v16 = vrot.slane %v3827_v40, %v17836_v38  ;;  %v15056_v5 = vpop.f32.mrb[17].mxu1  ;;  %v4049_v60 = vrot.slane %v4038_v41, %v17836_v38  ;;  %3657 = vrot.lane.b32.xlu1 %v3654_v29, %s17010_s9  ;;  %v15078_v18 = vpop.f32.mrb[19].mxu0  ;;  %15659 = vmatprep.mubr.msk.f32.mxu1 %vm17008_vm0, %v18527_v49  ;;  %v16634_v40 = vpack.c.bf16 %v10036_v19, %v10035_v44  ;;  %v10032_v44 = vld [vmem:[#allocation2 + $0xbd0] sm:$0xff]  ;;  %v10033_v19 = vld [vmem:[#allocation2 + $0xbd8] sm:$0xff] }
 0x1e7   :  { %v689_v23 = vpop.permute.xlu0 %688  ;;  %16614 = vmatpush3.bf16.msra.mxu1 %v16613_v53  ;;  %15681 = vmatprep.mubr.msk.f32.mxu0 %vm17008_vm0, %v18527_v49  ;;  %v10251_v53 = vld [vmem:[#allocation2 + $0xc28] sm:$0xff]  ;;  %v10252_v5 = vld [vmem:[#allocation2 + $0xc30] sm:$0xff] }
 0x1e8   :  { %v3839_v22 = vcombine.high %v3838_v16, %v3838_v16  ;;  %v18635_v24 = vrot.slane %v3838_v16, %v17836_v38  ;;  %13653 = vst.msk [vmem:[%s20368_s2 + $0x4c] sm:$0x1] %vm685_vm5, %v689_v23  ;;  %v691_v21 = vpop.permute.xlu1 %690  ;;  %v4050_v25 = vcombine.high %v4049_v60, %v4049_v60  ;;  %16626 = vmatpush3.bf16.msra.mxu0 %v16625_v42  ;;  %v10038_v16 = vld [vmem:[#allocation2 + $0xbf8] sm:$0xff]  ;;  %v10030_v23 = vld [vmem:[#allocation2 + $0xbc0] sm:$0xff] }
 0x1e9   :  { %13654 = vst.msk [vmem:[%s20368_s2 + $0xcc] sm:$0x1] %vm685_vm5, %v691_v21  ;;  %16615 = vmatprep.subr.bf16.mxu1 %v20379_v50  ;;  %16627 = vmatprep.subr.bf16.mxu0 %v20379_v50  ;;  %v4057_v55 = vrot.slane %v4049_v60, %v17836_v38  ;;  %v16646_v11 = vpack.c.bf16 %v10251_v53, %v10250_v7  ;;  %v13925_v60 = vld [vmem:[%s20366_s0 + $0x6a] ss:$0 sm:$0xff]  ;;  %v10247_v53 = vld [vmem:[#allocation2 + $0xc10] sm:$0xff] }
 0x1ea   :  { %v18649_v37 = vrot.slane %v3839_v22, %v17836_v38  ;;  %v3857_v9 = vrot.slane %v18635_v24, %v17849_v26  ;;  %15660 = vmatmul.mubr.msk.f32.vlgmr.msra.gmra.mrb[44].mxu1 %vm75_vm2, %v17994_v62  ;;  %v4064_v63 = vrot.slane %v4050_v25, %v17836_v38  ;;  %v16649_v18 = vpack.c.bf16 %v10253_v57, %v10252_v5  ;;  %v10031_v22 = vld [vmem:[#allocation2 + $0xbc8] sm:$0xff]  ;;  %v10668_v57 = vld [vmem:[#allocation2 + $0xca0] sm:$0xff] }
 0x1eb   :  { %15682 = vmatmul.mubr.msk.f32.vlgmr.msra.gmra.mrb[46].mxu0 %vm75_vm2, %v18014_v13  ;;  %16617 = vmatpush3.bf16.msra.mxu1 %v16616_v43  ;;  %v4068_v13 = vrot.slane %v4057_v55, %v17849_v26  ;;  %v10241_v5 = vld [vmem:[%s20366_s0 + $0xaa] ss:$0 sm:$0xff] }
 0x1ec   :  { %v3861_v52 = vrot.slane %v18649_v37, %v17849_v26  ;;  %16629 = vmatpush3.bf16.msra.mxu0 %v16628_v58  ;;  %3862 = vrot.lane.b32.xlu0 %v3857_v9, %s17011_s10  ;;  %v4072_v42 = vrot.slane %v4064_v63, %v17849_v26  ;;  %v10245_v58 = vld [vmem:[#allocation2 + $0xc00] sm:$0xff] }
 0x1ed   :  { %16618 = vmatprep.subr.bf16.mxu1 %v20379_v50  ;;  %16630 = vmatprep.subr.bf16.mxu0 %v20379_v50 }
 0x1ee   :  { %v896_v62 = vpop.permute.xlu0 %895  ;;  %3864 = vrot.lane.b32.xlu1 %v3861_v52, %s17011_s10  ;;  %15670 = vmatprep.mubr.msk.f32.mxu1 %vm17008_vm0, %v18527_v49  ;;  %v16640_v52 = vpack.c.bf16 %v10031_v22, %v10030_v23  ;;  %v10459_v23 = vld [vmem:[#allocation2 + $0xc70] sm:$0xff]  ;;  %v10460_v22 = vld [vmem:[#allocation2 + $0xc78] sm:$0xff] }
 0x1ef   :  { %902 = vst.msk [vmem:[%s20368_s2 + $0xc] sm:$0x1] %vm901_vm6, %v896_v62  ;;  %v905_v29 = vpop.permute.xlu1 %904  ;;  %16620 = vmatpush3.bf16.msra.mxu1 %v16619_v36  ;;  %15692 = vmatprep.mubr.msk.f32.mxu0 %vm17008_vm0, %v18527_v49 }
 0x1f0   :  { %13659 = vst.msk [vmem:[%s20368_s2 + $0x4c] sm:$0x1] %vm901_vm6, %v905_v29  ;;  %16632 = vmatpush3.bf16.msra.mxu0 %v16631_v59  ;;  %4073 = vrot.lane.b32.xlu0 %v4068_v13, %s17009_s8  ;;  %v16652_v59 = vpack.c.bf16 %v10246_v14, %v10245_v58 }
 0x1f1   :  { %16633 = vmatprep.subr.bf16.mxu1 %v20379_v50  ;;  %16645 = vmatprep.subr.bf16.mxu0 %v20379_v50 }
 0x1f2   :  { %v1112_v41 = vpop.permute.xlu0 %1111  ;;  %15671 = vmatmul.mubr.msk.f32.vlgmr.msra.gmra.mrb[44].mxu1 %vm75_vm2, %v17976_v48  ;;  %4075 = vrot.lane.b32.xlu1 %v4072_v42, %s17009_s8  ;;  %v16637_v48 = vpack.c.bf16 %v10038_v16, %v10037_v51  ;;  %v10240_v51 = vld [vmem:[%s20366_s0 + $0x2a] ss:$0 sm:$0xff]  ;;  %v10457_v16 = vld [vmem:[#allocation2 + $0xc60] sm:$0xff] }
 0x1f3   :  { %13665 = vst.msk [vmem:[%s20368_s2 + $0x54] sm:$0x1] %vm248_vm3, %v1112_v41  ;;  %v1114_v0 = vpop.permute.xlu1 %1113  ;;  %15693 = vmatmul.mubr.msk.f32.vlgmr.msra.gmra.mrb[46].mxu0 %vm75_vm2, %v18026_v12  ;;  %16635 = vmatpush3.bf16.msra.mxu1 %v16634_v40  ;;  %v13926_v12 = vld [vmem:[%s20366_s0 + $0xea] ss:$0 sm:$0xff] }
 0x1f4   :  { %13671 = vst.msk [vmem:[%s20368_s2 + $0x54] sm:$0x1] %vm473_vm4, %v18289_v47  ;;  %16647 = vmatpush3.bf16.msra.mxu0 %v16646_v11  ;;  %4081 = vrot.lane.b32.xlu0 %v4068_v13, %s17011_s10  ;;  %v10256_v34 = vsel %vm73_vm1, %v13926_v12, %v13925_v60  ;;  %v10248_v13 = vld [vmem:[#allocation2 + $0xc18] sm:$0xff]  ;;  %v16643_v11 = vpack.c.bf16 %v10033_v19, %v10032_v44  ;;  %v10458_v41 = vld [vmem:[#allocation2 + $0xc68] sm:$0xff] }
 0x1f5   :  { %13666 = vst.msk [vmem:[%s20368_s2 + $0xd4] sm:$0x1] %vm248_vm3, %v1114_v0  ;;  %v4253_v47 = vpop.f32.mrb[18].mxu1  ;;  %v4464_v43 = vpop.f32.mrb[20].mxu0  ;;  %16636 = vmatprep.subr.bf16.mxu1 %v20379_v50  ;;  %16648 = vmatprep.subr.bf16.mxu0 %v20379_v50  ;;  %v10669_v0 = vld [vmem:[#allocation2 + $0xca8] sm:$0xff]  ;;  %v16658_v12 = vpack.c.bf16 %v10458_v41, %v10457_v16  ;;  %v10665_v16 = vld [vmem:[#allocation2 + $0xc90] sm:$0xff] }
 0x1f6   :  { %13672 = vst.msk [vmem:[%s20368_s2 + $0xd4] sm:$0x1] %vm473_vm4, %v18294_v35  ;;  %v4264_v21 = vrot.slane %v4253_v47, %v17836_v38  ;;  %v15100_v25 = vpop.f32.mrb[19].mxu1  ;;  %v4475_v39 = vrot.slane %v4464_v43, %v17836_v38  ;;  %v898_v35 = vpop.permute.xlu0 %897  ;;  %4083 = vrot.lane.b32.xlu1 %v4072_v42, %s17011_s10  ;;  %15703 = vmatprep.mubr.msk.f32.mxu1 %vm17008_vm0, %v18527_v49  ;;  %v10671_v43 = vld [vmem:[#allocation2 + $0xcb8] sm:$0xff] }
 0x1f7   :  { %v15122_v9 = vpop.f32.mrb[21].mxu0  ;;  %903 = vst.msk [vmem:[%s20368_s2 + $0x8c] sm:$0x1] %vm901_vm6, %v898_v35  ;;  %16638 = vmatpush3.bf16.msra.mxu1 %v16637_v48  ;;  %15725 = vmatprep.mubr.msk.f32.mxu0 %vm17008_vm0, %v18527_v49  ;;  %v10331_v47 = vsel %vm73_vm1, %v10241_v5, %v10240_v51  ;;  %v10666_v41 = vld [vmem:[#allocation2 + $0xc98] sm:$0xff] }
 0x1f8   :  { %v4265_v6 = vcombine.high %v4264_v21, %v4264_v21  ;;  %v4272_v55 = vrot.slane %v4264_v21, %v17836_v38  ;;  %v4476_v36 = vcombine.high %v4475_v39, %v4475_v39  ;;  %v18729_v63 = vrot.slane %v4475_v39, %v17836_v38  ;;  %16650 = vmatpush3.bf16.msra.mxu0 %v16649_v18  ;;  %v10670_v21 = vld [vmem:[#allocation2 + $0xcb0] sm:$0xff] }
 0x1f9   :  { %16639 = vmatprep.subr.bf16.mxu1 %v20379_v50  ;;  %16651 = vmatprep.subr.bf16.mxu0 %v20379_v50  ;;  %v16670_v18 = vpack.c.bf16 %v10669_v0, %v10668_v57  ;;  %v16661_v39 = vpack.c.bf16 %v10460_v22, %v10459_v23  ;;  %v16673_v9 = vpack.c.bf16 %v10671_v43, %v10670_v21 }
 0x1fa   :  { %v4279_v62 = vrot.slane %v4265_v6, %v17836_v38  ;;  %v4283_v7 = vrot.slane %v4272_v55, %v17849_v26  ;;  %v18736_v29 = vrot.slane %v4476_v36, %v17836_v38  ;;  %4493 = vst.msk [vmem:[%s20368_s2 + $0x16] sm:$0x1] %vm248_vm3, %v18729_v63  ;;  %15704 = vmatmul.mubr.msk.f32.vlgmr.msra.gmra.mrb[46].mxu1 %vm75_vm2, %v17987_v20  ;;  %v907_v40 = vpop.permute.xlu0 %906  ;;  %v10453_v6 = vld [vmem:[#allocation2 + $0xc48] sm:$0xff] }
 0x1fb   :  { %15726 = vmatmul.mubr.msk.f32.vlgmr.msra.gmra.mrb[48].mxu0 %vm75_vm2, %v10256_v34  ;;  %13660 = vst.msk [vmem:[%s20368_s2 + $0xcc] sm:$0x1] %vm901_vm6, %v907_v40  ;;  %16641 = vmatpush3.bf16.msra.mxu1 %v16640_v52  ;;  %v16655_v20 = vpack.c.bf16 %v10248_v13, %v10247_v53  ;;  %v4498_v25 = vrot.slane %v18729_v63, %v17849_v26  ;;  %v10452_v34 = vld [vmem:[#allocation2 + $0xc40] sm:$0xff] }
 0x1fc   :  { %v4287_v42 = vrot.slane %v4279_v62, %v17849_v26  ;;  %4494 = vst.msk [vmem:[%s20368_s2 + $0x96] sm:$0x1] %vm248_vm3, %v18736_v29  ;;  %16653 = vmatpush3.bf16.msra.mxu0 %v16652_v59  ;;  %4288 = vrot.lane.b32.xlu0 %v4283_v7, %s17010_s9  ;;  %v4502_v35 = vrot.slane %v18736_v29, %v17849_v26  ;;  %v10663_v63 = vld [vmem:[#allocation2 + $0xc80] sm:$0xff]  ;;  %v10664_v59 = vld [vmem:[#allocation2 + $0xc88] sm:$0xff] }
 0x1fd   :  { %16642 = vmatprep.subr.bf16.mxu1 %v20379_v50  ;;  %16654 = vmatprep.subr.bf16.mxu0 %v20379_v50  ;;  %v16664_v13 = vpack.c.bf16 %v10453_v6, %v10452_v34  ;;  %v16676_v40 = vpack.c.bf16 %v10664_v59, %v10663_v63  ;;  %v10879_v63 = vld [vmem:[#allocation2 + $0xcc8] sm:$0xff] }
 0x1fe   :  { %v1319_v48 = vpop.permute.xlu0 %1318  ;;  %4290 = vrot.lane.b32.xlu1 %v4287_v42, %s17010_s9  ;;  %15714 = vmatprep.mubr.msk.f32.mxu1 %vm17008_vm0, %v18527_v49 }
 0x1ff   :  { %1324 = vst.msk [vmem:[%s20368_s2 + $0x14] sm:$0x1] %vm473_vm4, %v1319_v48  ;;  %16644 = vmatpush3.bf16.msra.mxu1 %v16643_v11  ;;  %15736 = vmatprep.mubr.msk.f32.mxu0 %vm17008_vm0, %v18527_v49  ;;  %v10455_v11 = vld [vmem:[#allocation2 + $0xc58] sm:$0xff] }
 0x200   :  { %v1321_v60 = vpop.permute.xlu1 %1320  ;;  %16656 = vmatpush3.bf16.msra.mxu0 %v16655_v20  ;;  %4296 = vrot.lane.b32.xlu0 %v4283_v7, %s17009_s8 }
 0x201   :  { %1325 = vst.msk [vmem:[%s20368_s2 + $0x94] sm:$0x1] %vm473_vm4, %v1321_v60  ;;  %16657 = vmatprep.subr.bf16.mxu1 %v20379_v50  ;;  %16669 = vmatprep.subr.bf16.mxu0 %v20379_v50 }
 0x202   :  { %15715 = vmatmul.mubr.msk.f32.vlgmr.msra.gmra.mrb[46].mxu1 %vm75_vm2, %v18000_v56  ;;  %v1530_v58 = vpop.permute.xlu0 %1529  ;;  %4298 = vrot.lane.b32.xlu1 %v4287_v42, %s17009_s8  ;;  %v10454_v42 = vld [vmem:[#allocation2 + $0xc50] sm:$0xff] }
 0x203   :  { %15737 = vmatmul.mubr.msk.f32.vlgmr.msra.gmra.mrb[48].mxu0 %vm75_vm2, %v10331_v47  ;;  %1535 = vst.msk [vmem:[%s20368_s2 + $0x14] sm:$0x1] %vm685_vm5, %v1530_v58  ;;  %16659 = vmatpush3.bf16.msra.mxu1 %v16658_v12  ;;  %v16667_v48 = vpack.c.bf16 %v10455_v11, %v10454_v42  ;;  %v10883_v12 = vld [vmem:[#allocation2 + $0xce0] sm:$0xff]  ;;  %v10884_v47 = vld [vmem:[#allocation2 + $0xce8] sm:$0xff] }
 0x204   :  { %v1532_v14 = vpop.permute.xlu1 %1531  ;;  %16671 = vmatpush3.bf16.msra.mxu0 %v16670_v18  ;;  %4503 = vrot.lane.b32.xlu0 %v4498_v25, %s17010_s9  ;;  %v11099_v18 = vld [vmem:[#allocation2 + $0xd28] sm:$0xff]  ;;  %v16682_v43 = vpack.c.bf16 %v10884_v47, %v10883_v12  ;;  %v11095_v12 = vld [vmem:[#allocation2 + $0xd10] sm:$0xff]  ;;  %v11096_v47 = vld [vmem:[#allocation2 + $0xd18] sm:$0xff] }
 0x205   :  { %1536 = vst.msk [vmem:[%s20368_s2 + $0x94] sm:$0x1] %vm685_vm5, %v1532_v14  ;;  %v4675_v56 = vpop.f32.mrb[20].mxu1  ;;  %v4886_v52 = vpop.f32.mrb[22].mxu0  ;;  %16660 = vmatprep.subr.bf16.mxu1 %v20379_v50  ;;  %16672 = vmatprep.subr.bf16.mxu0 %v20379_v50  ;;  %v10885_v14 = vld [vmem:[#allocation2 + $0xcf0] sm:$0xff] }
 0x206   :  { %v4686_v55 = vrot.slane %v4675_v56, %v17836_v38  ;;  %v15144_v36 = vpop.f32.mrb[21].mxu1  ;;  %v4897_v44 = vrot.slane %v4886_v52, %v17836_v38  ;;  %v1538_v19 = vpop.permute.xlu0 %1537  ;;  %4505 = vrot.lane.b32.xlu1 %v4502_v35, %s17010_s9  ;;  %15747 = vmatprep.mubr.msk.f32.mxu1 %vm17008_vm0, %v18527_v49  ;;  %v11100_v35 = vld [vmem:[#allocation2 + $0xd30] sm:$0xff]  ;;  %v11101_v56 = vld [vmem:[#allocation2 + $0xd38] sm:$0xff] }
 0x207   :  { %v15166_v62 = vpop.f32.mrb[23].mxu0  ;;  %13677 = vst.msk [vmem:[%s20368_s2 + $0x54] sm:$0x1] %vm685_vm5, %v1538_v19  ;;  %16662 = vmatpush3.bf16.msra.mxu1 %v16661_v39  ;;  %15769 = vmatprep.mubr.msk.f32.mxu0 %vm17008_vm0, %v18527_v49  ;;  %v10886_v39 = vld [vmem:[#allocation2 + $0xcf8] sm:$0xff]  ;;  %v16697_v52 = vpack.c.bf16 %v11101_v56, %v11100_v35  ;;  %v10878_v36 = vld [vmem:[#allocation2 + $0xcc0] sm:$0xff] }
 0x208   :  { %v4687_v7 = vcombine.high %v4686_v55, %v4686_v55  ;;  %v18807_v53 = vrot.slane %v4686_v55, %v17836_v38  ;;  %v4898_v29 = vcombine.high %v4897_v44, %v4897_v44  ;;  %16674 = vmatpush3.bf16.msra.mxu0 %v16673_v9  ;;  %16663 = vmatprep.subr.bf16.mxu1 %v20379_v50  ;;  %v13949_v55 = vld [vmem:[%s20366_s0 + $0x72] ss:$0 sm:$0xff]  ;;  %v11093_v62 = vld [vmem:[#allocation2 + $0xd00] sm:$0xff] }
 0x209   :  { %16675 = vmatprep.subr.bf16.mxu0 %v20379_v50  ;;  %v4905_v5 = vrot.slane %v4897_v44, %v17836_v38  ;;  %v16685_v6 = vpack.c.bf16 %v10886_v39, %v10885_v14 }
 0x20a   :  { %v18817_v20 = vrot.slane %v4687_v7, %v17836_v38  ;;  %v4705_v51 = vrot.slane %v18807_v53, %v17849_v26  ;;  %15748 = vmatmul.mubr.msk.f32.vlgmr.msra.gmra.mrb[48].mxu1 %vm75_vm2, %v18045_v30  ;;  %v4912_v60 = vrot.slane %v4898_v29, %v17836_v38  ;;  %v16679_v30 = vpack.c.bf16 %v10666_v41, %v10665_v16  ;;  %v11094_v7 = vld [vmem:[#allocation2 + $0xd08] sm:$0xff] }
 0x20b   :  { %v1540_v57 = vpop.permute.xlu0 %1539  ;;  %15770 = vmatmul.mubr.msk.f32.vlgmr.msra.gmra.mrb[50].mxu0 %vm75_vm2, %v18060_v2  ;;  %16665 = vmatpush3.bf16.msra.mxu1 %v16664_v13  ;;  %v11098_v2 = vld [vmem:[#allocation2 + $0xd20] sm:$0xff]  ;;  %v4916_v23 = vrot.slane %v4905_v5, %v17849_v26  ;;  %v16688_v16 = vpack.c.bf16 %v10879_v63, %v10878_v36 }
 0x20c   :  { %v4709_v0 = vrot.slane %v18817_v20, %v17849_v26  ;;  %13678 = vst.msk [vmem:[%s20368_s2 + $0xd4] sm:$0x1] %vm685_vm5, %v1540_v57  ;;  %16677 = vmatpush3.bf16.msra.mxu0 %v16676_v40  ;;  %4710 = vrot.lane.b32.xlu0 %v4705_v51, %s17011_s10  ;;  %v4920_v25 = vrot.slane %v4912_v60, %v17849_v26 }
 0x20d   :  { %16666 = vmatprep.subr.bf16.mxu1 %v20379_v50  ;;  %16678 = vmatprep.subr.bf16.mxu0 %v20379_v50  ;;  %v16694_v58 = vpack.c.bf16 %v11099_v18, %v11098_v2  ;;  %v16700_v57 = vpack.c.bf16 %v11094_v7, %v11093_v62  ;;  %v11301_v62 = vld [vmem:[#allocation2 + $0xd48] sm:$0xff] }
 0x20e   :  { %4712 = vrot.lane.b32.xlu1 %v4709_v0, %s17011_s10  ;;  %15758 = vmatprep.mubr.msk.f32.mxu1 %vm17008_vm0, %v18527_v49  ;;  %v1745_v21 = vpop.permute.xlu1 %1744  ;;  %v10880_v0 = vld [vmem:[#allocation2 + $0xcd0] sm:$0xff] }
 0x20f   :  { %v1753_v22 = vpop.permute.xlu0 %1752  ;;  %16668 = vmatpush3.bf16.msra.mxu1 %v16667_v48  ;;  %15780 = vmatprep.mubr.msk.f32.mxu0 %vm17008_vm0, %v18527_v49  ;;  %1750 = vst.msk [vmem:[%s20368_s2 + $0x14] sm:$0x1] %vm901_vm6, %v1745_v21  ;;  %v10881_v48 = vld [vmem:[#allocation2 + $0xcd8] sm:$0xff]  ;;  %v11306_v21 = vld [vmem:[#allocation2 + $0xd68] sm:$0xff] }
 0x210   :  { %13683 = vst.msk [vmem:[%s20368_s2 + $0x54] sm:$0x1] %vm901_vm6, %v1753_v22  ;;  %16680 = vmatpush3.bf16.msra.mxu0 %v16679_v30  ;;  %4921 = vrot.lane.b32.xlu0 %v4916_v23, %s17009_s8  ;;  %v11305_v22 = vld [vmem:[#allocation2 + $0xd60] sm:$0xff] }
 0x211   :  { %16681 = vmatprep.subr.bf16.mxu1 %v20379_v50  ;;  %16693 = vmatprep.subr.bf16.mxu0 %v20379_v50  ;;  %v16706_v39 = vpack.c.bf16 %v11306_v21, %v11305_v22 }
 0x212   :  { %15759 = vmatmul.mubr.msk.f32.vlgmr.msra.gmra.mrb[48].mxu1 %vm75_vm2, %v18020_v28  ;;  %4923 = vrot.lane.b32.xlu1 %v4920_v25, %s17009_s8  ;;  %v1755_v34 = vpop.permute.xlu1 %1754  ;;  %v13950_v28 = vld [vmem:[%s20366_s0 + $0xf2] ss:$0 sm:$0xff] }
 0x213   :  { %v1960_v9 = vpop.permute.xlu0 %1959  ;;  %15781 = vmatmul.mubr.msk.f32.vlgmr.msra.gmra.mrb[50].mxu0 %vm75_vm2, %v18074_v15  ;;  %16683 = vmatpush3.bf16.msra.mxu1 %v16682_v43  ;;  %13684 = vst.msk [vmem:[%s20368_s2 + $0xd4] sm:$0x1] %vm901_vm6, %v1755_v34  ;;  %v11104_v40 = vsel %vm73_vm1, %v13950_v28, %v13949_v55  ;;  %v11089_v43 = vld [vmem:[%s20366_s0 + $0xb2] ss:$0 sm:$0xff]  ;;  %v11519_v28 = vld [vmem:[#allocation2 + $0xdb8] sm:$0xff] }
 0x214   :  { %13689 = vst.msk [vmem:[%s20368_s2 + $0x4d] sm:$0x1] %vm248_vm3, %v1960_v9  ;;  %16695 = vmatpush3.bf16.msra.mxu0 %v16694_v58  ;;  %4929 = vrot.lane.b32.xlu0 %v4916_v23, %s17011_s10  ;;  %v16703_v23 = vpack.c.bf16 %v11096_v47, %v11095_v12  ;;  %v11517_v58 = vld [vmem:[#allocation2 + $0xda8] sm:$0xff]  ;;  %v11307_v34 = vld [vmem:[#allocation2 + $0xd70] sm:$0xff] }
 0x215   :  { %13695 = vst.msk [vmem:[%s20368_s2 + $0x4d] sm:$0x1] %vm473_vm4, %v18394_v8  ;;  %v5101_v15 = vpop.f32.mrb[22].mxu1  ;;  %v5312_v44 = vpop.f32.mrb[24].mxu0  ;;  %16684 = vmatprep.subr.bf16.mxu1 %v20379_v50  ;;  %16696 = vmatprep.subr.bf16.mxu0 %v20379_v50  ;;  %v11518_v55 = vld [vmem:[#allocation2 + $0xdb0] sm:$0xff] }
 0x216   :  { %v5112_v59 = vrot.slane %v5101_v15, %v17836_v38  ;;  %v15188_v19 = vpop.f32.mrb[23].mxu1  ;;  %v5323_v13 = vrot.slane %v5312_v44, %v17836_v38  ;;  %4931 = vrot.lane.b32.xlu1 %v4920_v25, %s17011_s10  ;;  %v15210_v29 = vpop.f32.mrb[25].mxu0  ;;  %15791 = vmatprep.mubr.msk.f32.mxu1 %vm17008_vm0, %v18527_v49  ;;  %v11516_v25 = vld [vmem:[#allocation2 + $0xda0] sm:$0xff]  ;;  %v16721_v44 = vpack.c.bf16 %v11519_v28, %v11518_v55  ;;  %v11948_v55 = vld [vmem:[#allocation2 + $0xe30] sm:$0xff]  ;;  %v11949_v28 = vld [vmem:[#allocation2 + $0xe38] sm:$0xff] }
 0x217   :  { %v1747_v8 = vpop.permute.xlu0 %1746  ;;  %v1962_v51 = vpop.permute.xlu1 %1961  ;;  %16686 = vmatpush3.bf16.msra.mxu1 %v16685_v6  ;;  %15813 = vmatprep.mubr.msk.f32.mxu0 %vm17008_vm0, %v18527_v49  ;;  %v16718_v9 = vpack.c.bf16 %v11517_v58, %v11516_v25  ;;  %v11308_v6 = vld [vmem:[#allocation2 + $0xd78] sm:$0xff]  ;;  %v11300_v19 = vld [vmem:[#allocation2 + $0xd40] sm:$0xff]  ;;  %v11732_v25 = vld [vmem:[#allocation2 + $0xde8] sm:$0xff] }
 0x218   :  { %v5113_v42 = vcombine.high %v5112_v59, %v5112_v59  ;;  %v5120_v11 = vrot.slane %v5112_v59, %v17836_v38  ;;  %1751 = vst.msk [vmem:[%s20368_s2 + $0x94] sm:$0x1] %vm901_vm6, %v1747_v8  ;;  %v5324_v41 = vcombine.high %v5323_v13, %v5323_v13  ;;  %v5331_v5 = vrot.slane %v5323_v13, %v17836_v38  ;;  %v11511_v29 = vld [vmem:[#allocation2 + $0xd80] sm:$0xff]  ;;  %v11947_v58 = vld [vmem:[#allocation2 + $0xe28] sm:$0xff] }
 0x219   :  { %13690 = vst.msk [vmem:[%s20368_s2 + $0xcd] sm:$0x1] %vm248_vm3, %v1962_v51  ;;  %16698 = vmatpush3.bf16.msra.mxu0 %v16697_v52  ;;  %16687 = vmatprep.subr.bf16.mxu1 %v20379_v50  ;;  %v16709_v36 = vpack.c.bf16 %v11308_v6, %v11307_v34  ;;  %v11733_v34 = vld [vmem:[#allocation2 + $0xdf0] sm:$0xff]  ;;  %v11734_v6 = vld [vmem:[#allocation2 + $0xdf8] sm:$0xff] }
 0x21a   :  { %v5127_v60 = vrot.slane %v5113_v42, %v17836_v38  ;;  %v5131_v30 = vrot.slane %v5120_v11, %v17849_v26  ;;  %13696 = vst.msk [vmem:[%s20368_s2 + $0xcd] sm:$0x1] %vm473_vm4, %v18399_v4  ;;  %16699 = vmatprep.subr.bf16.mxu0 %v20379_v50  ;;  %v18910_v2 = vrot.slane %v5324_v41, %v17836_v38 }
 0x21b   :  { %5341 = vst.msk [vmem:[%s20368_s2 + $0xf] sm:$0x1] %vm248_vm3, %v5331_v5  ;;  %15792 = vmatmul.mubr.msk.f32.vlgmr.msra.gmra.mrb[50].mxu1 %vm75_vm2, %v18038_v10  ;;  %v16691_v4 = vpack.c.bf16 %v10881_v48, %v10880_v0  ;;  %v11088_v10 = vld [vmem:[%s20366_s0 + $0x32] ss:$0 sm:$0xff]  ;;  %v5346_v15 = vrot.slane %v5331_v5, %v17849_v26  ;;  %v16712_v5 = vpack.c.bf16 %v11301_v62, %v11300_v19 }
 0x21c   :  { %v5135_v18 = vrot.slane %v5127_v60, %v17849_v26  ;;  %15814 = vmatmul.mubr.msk.f32.vlgmr.msra.gmra.mrb[52].mxu0 %vm75_vm2, %v11104_v40  ;;  %16689 = vmatpush3.bf16.msra.mxu1 %v16688_v16  ;;  %5342 = vst.msk [vmem:[%s20368_s2 + $0x8f] sm:$0x1] %vm248_vm3, %v18910_v2  ;;  %v11179_v56 = vsel %vm73_vm1, %v11089_v43, %v11088_v10  ;;  %v11512_v40 = vld [vmem:[#allocation2 + $0xd88] sm:$0xff]  ;;  %v11302_v60 = vld [vmem:[#allocation2 + $0xd50] sm:$0xff]  ;;  %v11731_v43 = vld [vmem:[#allocation2 + $0xde0] sm:$0xff] }
 0x21d   :  { %16701 = vmatpush3.bf16.msra.mxu0 %v16700_v57  ;;  %5136 = vrot.lane.b32.xlu0 %v5131_v30, %s17010_s9  ;;  %v5350_v63 = vrot.slane %v18910_v2, %v17849_v26  ;;  %v16724_v48 = vpack.c.bf16 %v11512_v40, %v11511_v29  ;;  %v11513_v2 = vld [vmem:[#allocation2 + $0xd90] sm:$0xff] }
 0x21e   :  { %16690 = vmatprep.subr.bf16.mxu1 %v20379_v50  ;;  %16702 = vmatprep.subr.bf16.mxu0 %v20379_v50  ;;  %v2167_v14 = vpop.permute.xlu0 %2166 }
 0x21f   :  { %5138 = vrot.lane.b32.xlu1 %v5135_v18, %s17010_s9  ;;  %15802 = vmatprep.mubr.msk.f32.mxu1 %vm17008_vm0, %v18527_v49  ;;  %2172 = vst.msk [vmem:[%s20368_s2 + $0xd] sm:$0x1] %vm473_vm4, %v2167_v14 }
 0x220   :  { %16692 = vmatpush3.bf16.msra.mxu1 %v16691_v4  ;;  %15824 = vmatprep.mubr.msk.f32.mxu0 %vm17008_vm0, %v18527_v49  ;;  %v2169_v35 = vpop.permute.xlu1 %2168 }
 0x221   :  { %16704 = vmatpush3.bf16.msra.mxu0 %v16703_v23  ;;  %5144 = vrot.lane.b32.xlu0 %v5131_v30, %s17009_s8  ;;  %2173 = vst.msk [vmem:[%s20368_s2 + $0x8d] sm:$0x1] %vm473_vm4, %v2169_v35  ;;  %v11303_v30 = vld [vmem:[#allocation2 + $0xd58] sm:$0xff]  ;;  %v16730_v35 = vpack.c.bf16 %v11732_v25, %v11731_v43  ;;  %v12154_v43 = vld [vmem:[#allocation2 + $0xe68] sm:$0xff] }
 0x222   :  { %16705 = vmatprep.subr.bf16.mxu1 %v20379_v50  ;;  %16717 = vmatprep.subr.bf16.mxu0 %v20379_v50  ;;  %v2378_v52 = vpop.permute.xlu0 %2377  ;;  %v16715_v10 = vpack.c.bf16 %v11303_v30, %v11302_v60  ;;  %v11728_v30 = vld [vmem:[#allocation2 + $0xdd0] sm:$0xff]  ;;  %v11937_v25 = vld [vmem:[%s20366_s0 + $0xab] ss:$0 sm:$0xff] }
 0x223   :  { %15803 = vmatmul.mubr.msk.f32.vlgmr.msra.gmra.mrb[50].mxu1 %vm75_vm2, %v18049_v33  ;;  %5146 = vrot.lane.b32.xlu1 %v5135_v18, %s17009_s8  ;;  %2383 = vst.msk [vmem:[%s20368_s2 + $0xd] sm:$0x1] %vm685_vm5, %v2378_v52  ;;  %v11514_v18 = vld [vmem:[#allocation2 + $0xd98] sm:$0xff]  ;;  %v16733_v52 = vpack.c.bf16 %v11734_v6, %v11733_v34  ;;  %v12366_v6 = vld [vmem:[#allocation2 + $0xeb0] sm:$0xff] }
 0x224   :  { %15825 = vmatmul.mubr.msk.f32.vlgmr.msra.gmra.mrb[52].mxu0 %vm75_vm2, %v11179_v56  ;;  %16707 = vmatpush3.bf16.msra.mxu1 %v16706_v39  ;;  %v2380_v59 = vpop.permute.xlu1 %2379  ;;  %v16727_v21 = vpack.c.bf16 %v11514_v18, %v11513_v2  ;;  %v12156_v34 = vld [vmem:[#allocation2 + $0xe78] sm:$0xff] }
 0x225   :  { %16719 = vmatpush3.bf16.msra.mxu0 %v16718_v9  ;;  %5351 = vrot.lane.b32.xlu0 %v5346_v15, %s17010_s9  ;;  %v5523_v33 = vpop.f32.mrb[24].mxu1  ;;  %2384 = vst.msk [vmem:[%s20368_s2 + $0x8d] sm:$0x1] %vm685_vm5, %v2380_v59  ;;  %v5734_v13 = vpop.f32.mrb[26].mxu0  ;;  %v16745_v59 = vpack.c.bf16 %v11949_v28, %v11948_v55  ;;  %v12367_v55 = vld [vmem:[#allocation2 + $0xeb8] sm:$0xff] }
 0x226   :  { %v5534_v7 = vrot.slane %v5523_v33, %v17836_v38  ;;  %v15232_v8 = vpop.f32.mrb[25].mxu1  ;;  %16708 = vmatprep.subr.bf16.mxu1 %v20379_v50  ;;  %16720 = vmatprep.subr.bf16.mxu0 %v20379_v50  ;;  %v5745_v42 = vrot.slane %v5734_v13, %v17836_v38  ;;  %v2386_v11 = vpop.permute.xlu0 %2385  ;;  %v11726_v33 = vld [vmem:[#allocation2 + $0xdc0] sm:$0xff] }
 0x227   :  { %5353 = vrot.lane.b32.xlu1 %v5350_v63, %s17010_s9  ;;  %v15254_v51 = vpop.f32.mrb[27].mxu0  ;;  %15835 = vmatprep.mubr.msk.f32.mxu1 %vm17008_vm0, %v18527_v49  ;;  %13701 = vst.msk [vmem:[%s20368_s2 + $0x4d] sm:$0x1] %vm685_vm5, %v2386_v11  ;;  %v11941_v13 = vld [vmem:[#allocation2 + $0xe00] sm:$0xff]  ;;  %v11942_v8 = vld [vmem:[#allocation2 + $0xe08] sm:$0xff] }
 0x228   :  { %v5535_v16 = vcombine.high %v5534_v7, %v5534_v7  ;;  %v18975_v41 = vrot.slane %v5534_v7, %v17836_v38  ;;  %16710 = vmatpush3.bf16.msra.mxu1 %v16709_v36  ;;  %15857 = vmatprep.mubr.msk.f32.mxu0 %vm17008_vm0, %v18527_v49  ;;  %v5746_v57 = vcombine.high %v5745_v42, %v5745_v42  ;;  %v2388_v0 = vpop.permute.xlu1 %2387  ;;  %v13973_v36 = vld [vmem:[%s20366_s0 + $0x6b] ss:$0 sm:$0xff] }
 0x229   :  { %16722 = vmatpush3.bf16.msra.mxu0 %v16721_v44  ;;  %16711 = vmatprep.subr.bf16.mxu1 %v20379_v50  ;;  %13702 = vst.msk [vmem:[%s20368_s2 + $0xcd] sm:$0x1] %vm685_vm5, %v2388_v0  ;;  %v5753_v4 = vrot.slane %v5745_v42, %v17836_v38  ;;  %v11727_v44 = vld [vmem:[#allocation2 + $0xdc8] sm:$0xff]  ;;  %v16748_v60 = vpack.c.bf16 %v11942_v8, %v11941_v13 }
 0x22a   :  { %v18985_v12 = vrot.slane %v5535_v16, %v17836_v38  ;;  %v5553_v47 = vrot.slane %v18975_v41, %v17849_v26  ;;  %16723 = vmatprep.subr.bf16.mxu0 %v20379_v50  ;;  %v5760_v22 = vrot.slane %v5746_v57, %v17836_v38 }
 0x22b   :  { %15836 = vmatmul.mubr.msk.f32.vlgmr.msra.gmra.mrb[52].mxu1 %vm75_vm2, %v18088_v27  ;;  %v11946_v27 = vld [vmem:[#allocation2 + $0xe20] sm:$0xff]  ;;  %v5764_v14 = vrot.slane %v5753_v4, %v17849_v26  ;;  %v11943_v4 = vld [vmem:[#allocation2 + $0xe10] sm:$0xff] }
 0x22c   :  { %v5557_v23 = vrot.slane %v18985_v12, %v17849_v26  ;;  %15858 = vmatmul.mubr.msk.f32.vlgmr.msra.gmra.mrb[54].mxu0 %vm75_vm2, %v18107_v61  ;;  %16713 = vmatpush3.bf16.msra.mxu1 %v16712_v5  ;;  %v19016_v61 = vld [vmem:[%s20368_s2] sm:$0xff]  ;;  %v5768_v56 = vrot.slane %v5760_v22, %v17849_v26  ;;  %v16736_v5 = vpack.c.bf16 %v11727_v44, %v11726_v33 }
 0x22d   :  { %16725 = vmatpush3.bf16.msra.mxu0 %v16724_v48  ;;  %5558 = vrot.lane.b32.xlu0 %v5553_v47, %s17011_s10  ;;  %v11729_v47 = vld [vmem:[#allocation2 + $0xdd8] sm:$0xff] }
 0x22e   :  { %16714 = vmatprep.subr.bf16.mxu1 %v20379_v50  ;;  %16726 = vmatprep.subr.bf16.mxu0 %v20379_v50  ;;  %v2593_v39 = vpop.permute.xlu0 %2592  ;;  %v16739_v22 = vpack.c.bf16 %v11729_v47, %v11728_v30  ;;  %v12361_v30 = vld [vmem:[#allocation2 + $0xe90] sm:$0xff]  ;;  %v12362_v47 = vld [vmem:[#allocation2 + $0xe98] sm:$0xff] }
 0x22f   :  { %5560 = vrot.lane.b32.xlu1 %v5557_v23, %s17011_s10  ;;  %15846 = vmatprep.mubr.msk.f32.mxu1 %vm17008_vm0, %v18527_v49  ;;  %2598 = vst.msk [vmem:[%s20368_s2 + $0xd] sm:$0x1] %vm901_vm6, %v2593_v39  ;;  %v16742_v49 = vpack.c.bf16 %v11947_v58, %v11946_v27  ;;  %v12364_v27 = vld [vmem:[#allocation2 + $0xea0] sm:$0xff]  ;;  %v12365_v58 = vld [vmem:[#allocation2 + $0xea8] sm:$0xff] }
 0x230   :  { %16716 = vmatpush3.bf16.msra.mxu1 %v16715_v10  ;;  %15868 = vmatprep.mubr.msk.f32.mxu0 %vm17008_vm0, %v19016_v61  ;;  %v2595_v9 = vpop.permute.xlu1 %2594 }
 0x231   :  { %16728 = vmatpush3.bf16.msra.mxu0 %v16727_v21  ;;  %5769 = vrot.lane.b32.xlu0 %v5764_v14, %s17009_s8  ;;  %2599 = vst.msk [vmem:[%s20368_s2 + $0x8d] sm:$0x1] %vm901_vm6, %v2595_v9  ;;  %v16766_v9 = vpack.c.bf16 %v12365_v58, %v12364_v27 }
 0x232   :  { %16729 = vmatprep.subr.bf16.mxu1 %v20379_v50  ;;  %16741 = vmatprep.subr.bf16.mxu0 %v20379_v50  ;;  %v2601_v15 = vpop.permute.xlu0 %2600 }
 0x233   :  { %15847 = vmatmul.mubr.msk.f32.vlgmr.msra.gmra.mrb[52].mxu1 %vm75_vm2, %v18056_v32  ;;  %5771 = vrot.lane.b32.xlu1 %v5768_v56, %s17009_s8  ;;  %13707 = vst.msk [vmem:[%s20368_s2 + $0x4d] sm:$0x1] %vm901_vm6, %v2601_v15  ;;  %v13974_v32 = vld [vmem:[%s20366_s0 + $0xeb] ss:$0 sm:$0xff] }
 0x234   :  { %15869 = vmatmul.mubr.msk.f32.vlgmr.msra.gmra.mrb[54].mxu0 %vm75_vm2, %v18133_v54  ;;  %16731 = vmatpush3.bf16.msra.mxu1 %v16730_v35  ;;  %v2603_v63 = vpop.permute.xlu1 %2602  ;;  %v11952_v11 = vsel %vm73_vm1, %v13974_v32, %v13973_v36 }
 0x235   :  { %16743 = vmatpush3.bf16.msra.mxu0 %v16742_v49  ;;  %5777 = vrot.lane.b32.xlu0 %v5764_v14, %s17011_s10  ;;  %v5949_v54 = vpop.f32.mrb[26].mxu1  ;;  %13708 = vst.msk [vmem:[%s20368_s2 + $0xcd] sm:$0x1] %vm901_vm6, %v2603_v63  ;;  %v6160_v62 = vpop.f32.mrb[28].mxu0  ;;  %v12155_v49 = vld [vmem:[#allocation2 + $0xe70] sm:$0xff]  ;;  %v16769_v63 = vpack.c.bf16 %v12367_v55, %v12366_v6  ;;  %v20384_v6 = vld [vmem:[#allocation6_spill] sm:$0xff] }
 0x236   :  { %v5960_v19 = vrot.slane %v5949_v54, %v17836_v38  ;;  %v15276_v7 = vpop.f32.mrb[27].mxu1  ;;  %16732 = vmatprep.subr.bf16.mxu1 %v20379_v50  ;;  %16744 = vmatprep.subr.bf16.mxu0 %v20379_v50  ;;  %v6171_v29 = vrot.slane %v6160_v62, %v17836_v38  ;;  %v2808_v40 = vpop.permute.xlu0 %2807  ;;  %v12148_v54 = vld [vmem:[#allocation2 + $0xe40] sm:$0xff] }
 0x237   :  { %5779 = vrot.lane.b32.xlu1 %v5768_v56, %s17011_s10  ;;  %v15298_v42 = vpop.f32.mrb[29].mxu0  ;;  %15879 = vmatprep.mubr.msk.f32.mxu1 %vm17008_vm0, %v19016_v61  ;;  %13713 = vst.msk [vmem:[%s20368_s2 + $0x55] sm:$0x1] %vm248_vm3, %v2808_v40  ;;  %v12359_v62 = vld [vmem:[#allocation2 + $0xe80] sm:$0xff]  ;;  %v12360_v7 = vld [vmem:[#allocation2 + $0xe88] sm:$0xff] }
 0x238   :  { %v5961_v51 = vcombine.high %v5960_v19, %v5960_v19  ;;  %v5968_v16 = vrot.slane %v5960_v19, %v17836_v38  ;;  %16734 = vmatpush3.bf16.msra.mxu1 %v16733_v52  ;;  %15901 = vmatprep.mubr.msk.f32.mxu0 %vm17008_vm0, %v19016_v61  ;;  %v6172_v57 = vcombine.high %v6171_v29, %v6171_v29  ;;  %v2810_v48 = vpop.permute.xlu1 %2809 }
 0x239   :  { %v19064_v0 = vrot.slane %v6171_v29, %v17836_v38  ;;  %13719 = vst.msk [vmem:[%s20368_s2 + $0x55] sm:$0x1] %vm473_vm4, %v18500_v46  ;;  %16746 = vmatpush3.bf16.msra.mxu0 %v16745_v59  ;;  %16735 = vmatprep.subr.bf16.mxu1 %v20379_v50  ;;  %v11944_v46 = vld [vmem:[#allocation2 + $0xe18] sm:$0xff]  ;;  %v16757_v52 = vpack.c.bf16 %v12156_v34, %v12155_v49  ;;  %v12149_v59 = vld [vmem:[#allocation2 + $0xe48] sm:$0xff]  ;;  %v12796_v49 = vld [vmem:[#allocation2 + $0xf30] sm:$0xff] }
 0x23a   :  { %v5975_v2 = vrot.slane %v5961_v51, %v17836_v38  ;;  %v5979_v18 = vrot.slane %v5968_v16, %v17849_v26  ;;  %13714 = vst.msk [vmem:[%s20368_s2 + $0xd5] sm:$0x1] %vm248_vm3, %v2810_v48  ;;  %16747 = vmatprep.subr.bf16.mxu0 %v20379_v50  ;;  %v19080_v23 = vrot.slane %v6172_v57, %v17836_v38  ;;  %v12150_v57 = vld [vmem:[#allocation2 + $0xe50] sm:$0xff]  ;;  %v12797_v34 = vld [vmem:[#allocation2 + $0xf38] sm:$0xff] }
 0x23b   :  { %6189 = vst.msk [vmem:[%s20368_s2 + $0x17] sm:$0x1] %vm248_vm3, %v19064_v0  ;;  %15880 = vmatmul.mubr.msk.f32.vlgmr.msra.gmra.mrb[54].mxu1 %vm75_vm2, %v18066_v17  ;;  %v16751_v21 = vpack.c.bf16 %v11944_v46, %v11943_v4  ;;  %v11936_v17 = vld [vmem:[%s20366_s0 + $0x2b] ss:$0 sm:$0xff]  ;;  %v6194_v28 = vrot.slane %v19064_v0, %v17849_v26  ;;  %v12151_v0 = vld [vmem:[#allocation2 + $0xe58] sm:$0xff] }
 0x23c   :  { %13720 = vst.msk [vmem:[%s20368_s2 + $0xd5] sm:$0x1] %vm473_vm4, %v18505_v45  ;;  %v5983_v10 = vrot.slane %v5975_v2, %v17849_v26  ;;  %15902 = vmatmul.mubr.msk.f32.vlgmr.msra.gmra.mrb[56].mxu0 %vm75_vm2, %v11952_v11  ;;  %16737 = vmatpush3.bf16.msra.mxu1 %v16736_v5  ;;  %v12153_v45 = vld [vmem:[#allocation2 + $0xe60] sm:$0xff]  ;;  %v12027_v56 = vsel %vm73_vm1, %v11937_v25, %v11936_v17  ;;  %v20383_v46 = vld [vmem:[#allocation10_spill] sm:$0xff] }
 0x23d   :  { %6190 = vst.msk [vmem:[%s20368_s2 + $0x97] sm:$0x1] %vm248_vm3, %v19080_v23  ;;  %16749 = vmatpush3.bf16.msra.mxu0 %v16748_v60  ;;  %5984 = vrot.lane.b32.xlu0 %v5979_v18, %s17010_s9  ;;  %v16754_v39 = vpack.c.bf16 %v12154_v43, %v12153_v45  ;;  %v6198_v36 = vrot.slane %v19080_v23, %v17849_v26  ;;  %v12580_v17 = vld [vmem:[#allocation2 + $0xee8] sm:$0xff]  ;;  %v12794_v45 = vld [vmem:[#allocation2 + $0xf20] sm:$0xff] }
 0x23e   :  { %16738 = vmatprep.subr.bf16.mxu1 %v20379_v50  ;;  %16750 = vmatprep.subr.bf16.mxu0 %v20379_v50  ;;  %v3015_v14 = vpop.permute.xlu0 %3014  ;;  %v16760_v11 = vpack.c.bf16 %v12149_v59, %v12148_v54  ;;  %v16772_v5 = vpack.c.bf16 %v12360_v7, %v12359_v62  ;;  %v16763_v23 = vpack.c.bf16 %v12151_v0, %v12150_v57  ;;  %v12795_v43 = vld [vmem:[#allocation2 + $0xf28] sm:$0xff]  ;;  %v12574_v54 = vld [vmem:[#allocation2 + $0xec0] sm:$0xff] }
 0x23f   :  { %5986 = vrot.lane.b32.xlu1 %v5983_v10, %s17010_s9  ;;  %15890 = vmatprep.mubr.msk.f32.mxu1 %vm17008_vm0, %v19016_v61  ;;  %3020 = vst.msk [vmem:[%s20368_s2 + $0x15] sm:$0x1] %vm473_vm4, %v3015_v14  ;;  %v12575_v59 = vld [vmem:[#allocation2 + $0xec8] sm:$0xff]  ;;  %v12789_v62 = vld [vmem:[#allocation2 + $0xf00] sm:$0xff] }
 0x240   :  { %16740 = vmatpush3.bf16.msra.mxu1 %v16739_v22  ;;  %15912 = vmatprep.mubr.msk.f32.mxu0 %vm17008_vm0, %v19016_v61  ;;  %v3017_v35 = vpop.permute.xlu1 %3016  ;;  %v16775_v22 = vpack.c.bf16 %v12362_v47, %v12361_v30  ;;  %v12790_v7 = vld [vmem:[#allocation2 + $0xf08] sm:$0xff]  ;;  %v12576_v30 = vld [vmem:[#allocation2 + $0xed0] sm:$0xff]  ;;  %v12577_v47 = vld [vmem:[#allocation2 + $0xed8] sm:$0xff] }
 0x241   :  { %16752 = vmatpush3.bf16.msra.mxu0 %v16751_v21  ;;  %5992 = vrot.lane.b32.xlu0 %v5979_v18, %s17009_s8  ;;  %3021 = vst.msk [vmem:[%s20368_s2 + $0x95] sm:$0x1] %vm473_vm4, %v3017_v35  ;;  %v20382_v18 = vld [vmem:[#allocation5_spill] sm:$0xff]  ;;  %v16790_v35 = vpack.c.bf16 %v12795_v43, %v12794_v45  ;;  %v13002_v45 = vld [vmem:[#allocation2 + $0xf68] sm:$0xff]  ;;  %v12785_v43 = vld [vmem:[%s20366_s0 + $0xb3] ss:$0 sm:$0xff] }
 0x242   :  { %16753 = vmatprep.subr.bf16.mxu1 %v20379_v50  ;;  %16765 = vmatprep.subr.bf16.mxu0 %v20379_v50  ;;  %v3226_v15 = vpop.permute.xlu0 %3225  ;;  %v12579_v21 = vld [vmem:[#allocation2 + $0xee0] sm:$0xff] }
 0x243   :  { %15891 = vmatmul.mubr.msk.f32.vlgmr.msra.gmra.mrb[54].mxu1 %vm75_vm2, %v18076_v31  ;;  %5994 = vrot.lane.b32.xlu1 %v5983_v10, %s17009_s8  ;;  %3231 = vst.msk [vmem:[%s20368_s2 + $0x15] sm:$0x1] %vm685_vm5, %v3226_v15  ;;  %v16778_v58 = vpack.c.bf16 %v12580_v17, %v12579_v21  ;;  %v13001_v17 = vld [vmem:[#allocation2 + $0xf60] sm:$0xff] }
 0x244   :  { %15913 = vmatmul.mubr.msk.f32.vlgmr.msra.gmra.mrb[56].mxu0 %vm75_vm2, %v12027_v56  ;;  %16755 = vmatpush3.bf16.msra.mxu1 %v16754_v39  ;;  %v3228_v32 = vpop.permute.xlu1 %3227  ;;  %v12581_v56 = vld [vmem:[#allocation2 + $0xef0] sm:$0xff] }
 0x245   :  { %16767 = vmatpush3.bf16.msra.mxu0 %v16766_v9  ;;  %6199 = vrot.lane.b32.xlu0 %v6194_v28, %s17010_s9  ;;  %v6371_v31 = vpop.f32.mrb[28].mxu1  ;;  %3232 = vst.msk [vmem:[%s20368_s2 + $0x95] sm:$0x1] %vm685_vm5, %v3228_v32  ;;  %v12582_v9 = vld [vmem:[#allocation2 + $0xef8] sm:$0xff] }
 0x246   :  { %v6382_v33 = vrot.slane %v6371_v31, %v17836_v38  ;;  %v6582_v44 = vpop.f32.mrb[30].mxu0  ;;  %v15320_v19 = vpop.f32.mrb[29].mxu1  ;;  %16756 = vmatprep.subr.bf16.mxu1 %v20379_v50  ;;  %16768 = vmatprep.subr.bf16.mxu0 %v20379_v50  ;;  %v20385_v28 = vld [vmem:[#allocation12_spill] sm:$0xff]  ;;  %v16781_v15 = vpack.c.bf16 %v12582_v9, %v12581_v56  ;;  %v13003_v9 = vld [vmem:[#allocation2 + $0xf70] sm:$0xff] }
 0x247   :  { %v6593_v13 = vrot.slane %v6582_v44, %v17836_v38  ;;  %v3234_v8 = vpop.permute.xlu0 %3233  ;;  %6201 = vrot.lane.b32.xlu1 %v6198_v36, %s17010_s9  ;;  %v15342_v29 = vpop.f32.mrb[31].mxu0  ;;  %15923 = vmatprep.mubr.msk.f32.mxu1 %vm17008_vm0, %v19016_v61  ;;  %v13998_v36 = vld [vmem:[%s20366_s0 + $0xf3] ss:$0 sm:$0xff] }
 0x248   :  { %v6383_v40 = vcombine.high %v6382_v33, %v6382_v33  ;;  %v19152_v42 = vrot.slane %v6382_v33, %v17836_v38  ;;  %13725 = vst.msk [vmem:[%s20368_s2 + $0x55] sm:$0x1] %vm685_vm5, %v3234_v8  ;;  %16758 = vmatpush3.bf16.msra.mxu1 %v16757_v52  ;;  %15945 = vmatprep.mubr.msk.f32.mxu0 %vm17008_vm0, %v19016_v61  ;;  %v3236_v16 = vpop.permute.xlu1 %3235  ;;  %v13997_v52 = vld [vmem:[%s20366_s0 + $0x73] ss:$0 sm:$0xff] }
 0x249   :  { %v6594_v51 = vcombine.high %v6593_v13, %v6593_v13  ;;  %16770 = vmatpush3.bf16.msra.mxu0 %v16769_v63  ;;  %16759 = vmatprep.subr.bf16.mxu1 %v20379_v50  ;;  %13726 = vst.msk [vmem:[%s20368_s2 + $0xd5] sm:$0x1] %vm685_vm5, %v3236_v16  ;;  %v6601_v2 = vrot.slane %v6593_v13, %v17836_v38 }
 0x24a   :  { %v19162_v48 = vrot.slane %v6383_v40, %v17836_v38  ;;  %v6401_v60 = vrot.slane %v19152_v42, %v17849_v26  ;;  %16771 = vmatprep.subr.bf16.mxu0 %v20379_v50  ;;  %v16793_v63 = vpack.c.bf16 %v12797_v34, %v12796_v49  ;;  %v12800_v40 = vsel %vm73_vm1, %v13998_v36, %v13997_v52  ;;  %v13004_v49 = vld [vmem:[#allocation2 + $0xf78] sm:$0xff]  ;;  %v13214_v34 = vld [vmem:[#allocation2 + $0xfb0] sm:$0xff] }
 0x24b   :  { %15924 = vmatmul.mubr.msk.f32.vlgmr.msra.gmra.mrb[56].mxu1 %vm75_vm2, %v20382_v18  ;;  %v6608_v10 = vrot.slane %v6594_v51, %v17836_v38  ;;  %v6612_v25 = vrot.slane %v6601_v2, %v17849_v26  ;;  %v16784_v16 = vpack.c.bf16 %v12575_v59, %v12574_v54  ;;  %v16805_v52 = vpack.c.bf16 %v13004_v49, %v13003_v9  ;;  %v12997_v54 = vld [vmem:[#allocation2 + $0xf48] sm:$0xff]  ;;  %v13422_v9 = vld [vmem:[#allocation2 + $0xfc0] sm:$0xff] }
 0x24c   :  { %v6405_v4 = vrot.slane %v19162_v48, %v17849_v26  ;;  %15946 = vmatmul.mubr.msk.f32.vlgmr.msra.gmra.mrb[58].mxu0 %vm75_vm2, %v20383_v46  ;;  %16761 = vmatpush3.bf16.msra.mxu1 %v16760_v11  ;;  %v13423_v49 = vld [vmem:[#allocation2 + $0xfc8] sm:$0xff] }
 0x24d   :  { %16773 = vmatpush3.bf16.msra.mxu0 %v16772_v5  ;;  %6406 = vrot.lane.b32.xlu0 %v6401_v60, %s17011_s10  ;;  %v6616_v14 = vrot.slane %v6608_v10, %v17849_v26  ;;  %v16796_v60 = vpack.c.bf16 %v12790_v7, %v12789_v62 }
 0x24e   :  { %16762 = vmatprep.subr.bf16.mxu1 %v20379_v50  ;;  %16774 = vmatprep.subr.bf16.mxu0 %v20379_v50  ;;  %v3441_v27 = vpop.permute.xlu0 %3440 }
 0x24f   :  { %6408 = vrot.lane.b32.xlu1 %v6405_v4, %s17011_s10  ;;  %15934 = vmatprep.mubr.msk.f32.mxu1 %vm17008_vm0, %v19016_v61  ;;  %3446 = vst.msk [vmem:[%s20368_s2 + $0x15] sm:$0x1] %vm901_vm6, %v3441_v27  ;;  %v12791_v4 = vld [vmem:[#allocation2 + $0xf10] sm:$0xff]  ;;  %v13213_v27 = vld [vmem:[#allocation2 + $0xfa8] sm:$0xff] }
 0x250   :  { %16764 = vmatpush3.bf16.msra.mxu1 %v16763_v23  ;;  %15956 = vmatprep.mubr.msk.f32.mxu0 %vm17008_vm0, %v19016_v61  ;;  %v3443_v39 = vpop.permute.xlu1 %3442  ;;  %v20386_v23 = vld [vmem:[#allocation7_spill] sm:$0xff] }
 0x251   :  { %16776 = vmatpush3.bf16.msra.mxu0 %v16775_v22  ;;  %6617 = vrot.lane.b32.xlu0 %v6612_v25, %s17009_s8  ;;  %3447 = vst.msk [vmem:[%s20368_s2 + $0x95] sm:$0x1] %vm901_vm6, %v3443_v39  ;;  %v16787_v22 = vpack.c.bf16 %v12577_v47, %v12576_v30  ;;  %v13209_v30 = vld [vmem:[#allocation2 + $0xf90] sm:$0xff]  ;;  %v13210_v47 = vld [vmem:[#allocation2 + $0xf98] sm:$0xff] }
 0x252   :  { %16777 = vmatprep.subr.bf16.mxu1 %v20379_v50  ;;  %16789 = vmatprep.subr.bf16.mxu0 %v20379_v50  ;;  %v3449_v55 = vpop.permute.xlu0 %3448 }
 0x253   :  { %15935 = vmatmul.mubr.msk.f32.vlgmr.msra.gmra.mrb[56].mxu1 %vm75_vm2, %v20384_v6  ;;  %6619 = vrot.lane.b32.xlu1 %v6616_v14, %s17009_s8  ;;  %13731 = vst.msk [vmem:[%s20368_s2 + $0x55] sm:$0x1] %vm901_vm6, %v3449_v55  ;;  %v13215_v6 = vld [vmem:[#allocation2 + $0xfb8] sm:$0xff] }
 0x254   :  { %15957 = vmatmul.mubr.msk.f32.vlgmr.msra.gmra.mrb[58].mxu0 %vm75_vm2, %v20385_v28  ;;  %16779 = vmatpush3.bf16.msra.mxu1 %v16778_v58  ;;  %v3451_v32 = vpop.permute.xlu1 %3450  ;;  %v20387_v28 = vld [vmem:[#allocation8_spill] sm:$0xff] }
 0x255   :  { %16791 = vmatpush3.bf16.msra.mxu0 %v16790_v35  ;;  %6625 = vrot.lane.b32.xlu0 %v6612_v25, %s17011_s10  ;;  %v6797_v31 = vpop.f32.mrb[30].mxu1  ;;  %13732 = vst.msk [vmem:[%s20368_s2 + $0xd5] sm:$0x1] %vm901_vm6, %v3451_v32  ;;  %v13212_v25 = vld [vmem:[#allocation2 + $0xfa0] sm:$0xff] }
 0x256   :  { %v6808_v33 = vrot.slane %v6797_v31, %v17836_v38  ;;  %v7008_v44 = vpop.f32.mrb[32].mxu0  ;;  %v15364_v19 = vpop.f32.mrb[31].mxu1  ;;  %16780 = vmatprep.subr.bf16.mxu1 %v20379_v50  ;;  %16792 = vmatprep.subr.bf16.mxu0 %v20379_v50  ;;  %v16814_v56 = vpack.c.bf16 %v13213_v27, %v13212_v25  ;;  %v16817_v31 = vpack.c.bf16 %v13215_v6, %v13214_v34  ;;  %v13429_v27 = vld [vmem:[#allocation2 + $0xff0] sm:$0xff] }
 0x257   :  { %v7019_v13 = vrot.slane %v7008_v44, %v17836_v38  ;;  %v3656_v8 = vpop.permute.xlu0 %3655  ;;  %6627 = vrot.lane.b32.xlu1 %v6616_v14, %s17011_s10  ;;  %v15386_v29 = vpop.f32.mrb[33].mxu0  ;;  %15967 = vmatprep.mubr.msk.f32.mxu1 %vm17008_vm0, %v19016_v61  ;;  %v16802_v14 = vpack.c.bf16 %v13002_v45, %v13001_v17  ;;  %v13207_v44 = vld [vmem:[#allocation2 + $0xf80] sm:$0xff]  ;;  %v13208_v19 = vld [vmem:[#allocation2 + $0xf88] sm:$0xff] }
 0x258   :  { %v6809_v11 = vcombine.high %v6808_v33, %v6808_v33  ;;  %v6816_v51 = vrot.slane %v6808_v33, %v17836_v38  ;;  %13737 = vst.msk [vmem:[%s20368_s2 + $0x4e] sm:$0x1] %vm248_vm3, %v3656_v8  ;;  %16782 = vmatpush3.bf16.msra.mxu1 %v16781_v15  ;;  %15989 = vmatprep.mubr.msk.f32.mxu0 %vm17008_vm0, %v19016_v61  ;;  %v3658_v0 = vpop.permute.xlu1 %3657 }
 0x259   :  { %v7020_v5 = vcombine.high %v7019_v13, %v7019_v13  ;;  %v19236_v57 = vrot.slane %v7019_v13, %v17836_v38  ;;  %13743 = vst.msk [vmem:[%s20368_s2 + $0x4e] sm:$0x1] %vm473_vm4, %v18635_v24  ;;  %16794 = vmatpush3.bf16.msra.mxu0 %v16793_v63  ;;  %16783 = vmatprep.subr.bf16.mxu1 %v20379_v50  ;;  %v12792_v24 = vld [vmem:[#allocation2 + $0xf18] sm:$0xff]  ;;  %v12996_v63 = vld [vmem:[#allocation2 + $0xf40] sm:$0xff] }
 0x25a   :  { %v6823_v2 = vrot.slane %v6809_v11, %v17836_v38  ;;  %v6827_v18 = vrot.slane %v6816_v51, %v17849_v26  ;;  %13738 = vst.msk [vmem:[%s20368_s2 + $0xce] sm:$0x1] %vm248_vm3, %v3658_v0  ;;  %16795 = vmatprep.subr.bf16.mxu0 %v20379_v50  ;;  %v16799_v21 = vpack.c.bf16 %v12792_v24, %v12791_v4  ;;  %v12998_v0 = vld [vmem:[#allocation2 + $0xf50] sm:$0xff]  ;;  %v20388_v24 = vld [vmem:[#allocation9_spill] sm:$0xff] }
 0x25b   :  { %v19252_v46 = vrot.slane %v7020_v5, %v17836_v38  ;;  %7037 = vst.msk [vmem:[%s20368_s2 + $0x28] sm:$0x1] %vm248_vm3, %v19236_v57  ;;  %15968 = vmatmul.mubr.msk.f32.vlgmr.msra.gmra.mrb[58].mxu1 %vm75_vm2, %v20386_v23  ;;  %v7042_v55 = vrot.slane %v19236_v57, %v17849_v26  ;;  %v16820_v57 = vpack.c.bf16 %v13208_v19, %v13207_v44 }
 0x25c   :  { %13744 = vst.msk [vmem:[%s20368_s2 + $0xce] sm:$0x1] %vm473_vm4, %v18649_v37  ;;  %v6831_v10 = vrot.slane %v6823_v2, %v17849_v26  ;;  %15990 = vmatmul.mubr.msk.f32.vlgmr.msra.gmra.mrb[60].mxu0 %vm75_vm2, %v12800_v40  ;;  %16785 = vmatpush3.bf16.msra.mxu1 %v16784_v16  ;;  %v12784_v37 = vld [vmem:[%s20366_s0 + $0x33] ss:$0 sm:$0xff]  ;;  %v16808_v40 = vpack.c.bf16 %v12997_v54, %v12996_v63 }
 0x25d   :  { %7038 = vst.msk [vmem:[%s20368_s2 + $0xa8] sm:$0x1] %vm248_vm3, %v19252_v46  ;;  %16797 = vmatpush3.bf16.msra.mxu0 %v16796_v60  ;;  %6832 = vrot.lane.b32.xlu0 %v6827_v18, %s17010_s9  ;;  %v12875_v35 = vsel %vm73_vm1, %v12785_v43, %v12784_v37  ;;  %v7046_v36 = vrot.slane %v19252_v46, %v17849_v26  ;;  %v12999_v60 = vld [vmem:[#allocation2 + $0xf58] sm:$0xff]  ;;  %v13428_v37 = vld [vmem:[#allocation2 + $0xfe8] sm:$0xff]  ;;  %v13424_v54 = vld [vmem:[#allocation2 + $0xfd0] sm:$0xff] }
 0x25e   :  { %16786 = vmatprep.subr.bf16.mxu1 %v20379_v50  ;;  %16798 = vmatprep.subr.bf16.mxu0 %v20379_v50  ;;  %v3863_v58 = vpop.permute.xlu0 %3862  ;;  %v16811_v46 = vpack.c.bf16 %v12999_v60, %v12998_v0 }
 0x25f   :  { %6834 = vrot.lane.b32.xlu1 %v6831_v10, %s17010_s9  ;;  %15978 = vmatprep.mubr.msk.f32.mxu1 %vm17008_vm0, %v19016_v61  ;;  %3868 = vst.msk [vmem:[%s20368_s2 + $0xe] sm:$0x1] %vm473_vm4, %v3863_v58  ;;  %v13430_v58 = vld [vmem:[#allocation2 + $0xff8] sm:$0xff] }
 0x260   :  { %16788 = vmatpush3.bf16.msra.mxu1 %v16787_v22  ;;  %16000 = vmatprep.mubr.msk.f32.mxu0 %vm17008_vm0, %v19016_v61  ;;  %v3865_v39 = vpop.permute.xlu1 %3864  ;;  %v16823_v22 = vpack.c.bf16 %v13210_v47, %v13209_v30 }
 0x261   :  { %16800 = vmatpush3.bf16.msra.mxu0 %v16799_v21  ;;  %6840 = vrot.lane.b32.xlu0 %v6827_v18, %s17009_s8  ;;  %3869 = vst.msk [vmem:[%s20368_s2 + $0x8e] sm:$0x1] %vm473_vm4, %v3865_v39  ;;  %v13427_v21 = vld [vmem:[#allocation2 + $0xfe0] sm:$0xff] }
 0x262   :  { %16801 = vmatprep.subr.bf16.mxu1 %v20379_v50  ;;  %16813 = vmatprep.subr.bf16.mxu0 %v20379_v50  ;;  %v4074_v15 = vpop.permute.xlu0 %4073  ;;  %v16826_v45 = vpack.c.bf16 %v13428_v37, %v13427_v21 }
 0x263   :  { %15979 = vmatmul.mubr.msk.f32.vlgmr.msra.gmra.mrb[58].mxu1 %vm75_vm2, %v20387_v28  ;;  %6842 = vrot.lane.b32.xlu1 %v6831_v10, %s17009_s8  ;;  %4079 = vst.msk [vmem:[%s20368_s2 + $0xe] sm:$0x1] %vm685_vm5, %v4074_v15 }
 0x264   :  { %16001 = vmatmul.mubr.msk.f32.vlgmr.msra.gmra.mrb[60].mxu0 %vm75_vm2, %v12875_v35  ;;  %16803 = vmatpush3.bf16.msra.mxu1 %v16802_v14  ;;  %v4076_v32 = vpop.permute.xlu1 %4075  ;;  %v20389_v14 = vld [vmem:[#allocation11_spill] sm:$0xff]  ;;  %v16829_v35 = vpack.c.bf16 %v13430_v58, %v13429_v27 }
 0x265   :  { %16815 = vmatpush3.bf16.msra.mxu0 %v16814_v56  ;;  %7047 = vrot.lane.b32.xlu0 %v7042_v55, %s17010_s9  ;;  %4080 = vst.msk [vmem:[%s20368_s2 + $0x8e] sm:$0x1] %vm685_vm5, %v4076_v32  ;;  %v7219_v59 = vpop.f32.mrb[32].mxu1 }
 0x266   :  { %v7430_v33 = vpop.f32.mrb[34].mxu0  ;;  %16804 = vmatprep.subr.bf16.mxu1 %v20379_v50  ;;  %16816 = vmatprep.subr.bf16.mxu0 %v20379_v50  ;;  %v7230_v62 = vrot.slane %v7219_v59, %v17836_v38  ;;  %v15408_v13 = vpop.f32.mrb[33].mxu1  ;;  %v13425_v59 = vld [vmem:[#allocation2 + $0xfd8] sm:$0xff] }
 0x267   :  { %v7441_v7 = vrot.slane %v7430_v33, %v17836_v38  ;;  %v4082_v8 = vpop.permute.xlu0 %4081  ;;  %7049 = vrot.lane.b32.xlu1 %v7046_v36, %s17010_s9  ;;  %16011 = vmatprep.mubr.msk.f32.mxu1 %vm17008_vm0, %v19016_v61  ;;  %v15430_v29 = vpop.f32.mrb[35].mxu0  ;;  %v16832_v36 = vpack.c.bf16 %v13423_v49, %v13422_v9  ;;  %v16835_v13 = vpack.c.bf16 %v13425_v59, %v13424_v54 }
 0x268   :  { %13749 = vst.msk [vmem:[%s20368_s2 + $0x4e] sm:$0x1] %vm685_vm5, %v4082_v8  ;;  %16806 = vmatpush3.bf16.msra.mxu1 %v16805_v52  ;;  %16033 = vmatprep.mubr.msk.f32.mxu0 %vm17008_vm0, %v19016_v61  ;;  %v7231_v11 = vcombine.high %v7230_v62, %v7230_v62  ;;  %v19330_v51 = vrot.slane %v7230_v62, %v17836_v38  ;;  %v4084_v5 = vpop.permute.xlu1 %4083  ;;  %v20391_v29 = vld [vmem:[#allocation14_spill] sm:$0xff] }
 0x269   :  { %v7442_v16 = vcombine.high %v7441_v7, %v7441_v7  ;;  %16818 = vmatpush3.bf16.msra.mxu0 %v16817_v31  ;;  %13750 = vst.msk [vmem:[%s20368_s2 + $0xce] sm:$0x1] %vm685_vm5, %v4084_v5  ;;  %16807 = vmatprep.subr.bf16.mxu1 %v20379_v50  ;;  %v7449_v4 = vrot.slane %v7441_v7, %v17836_v38  ;;  %v20390_v7 = vld [vmem:[#allocation13_spill] sm:$0xff] }
 0x26a   :  { %16819 = vmatprep.subr.bf16.mxu0 %v20379_v50  ;;  %v19339_v2 = vrot.slane %v7231_v11, %v17836_v38  ;;  %v7249_v18 = vrot.slane %v19330_v51, %v17849_v26 }
 0x26b   :  { %16012 = vmatmul.mubr.msk.f32.vlgmr.msra.gmra.mrb[60].mxu1 %vm75_vm2, %v20388_v24  ;;  %v7456_v10 = vrot.slane %v7442_v16, %v17836_v38  ;;  %v7460_v17 = vrot.slane %v7449_v4, %v17849_v26 }
 0x26c   :  { %16034 = vmatmul.mubr.msk.f32.vlgmr.msra.gmra.mrb[62].mxu0 %vm75_vm2, %v18174_v3  ;;  %16809 = vmatpush3.bf16.msra.mxu1 %v16808_v40  ;;  %v7253_v23 = vrot.slane %v19339_v2, %v17849_v26 }
 0x26d   :  { %16821 = vmatpush3.bf16.msra.mxu0 %v16820_v57  ;;  %7254 = vrot.lane.b32.xlu0 %v7249_v18, %s17011_s10  ;;  %v7464_v43 = vrot.slane %v7456_v10, %v17849_v26 }
 0x26e   :  { %16810 = vmatprep.subr.bf16.mxu1 %v20379_v50  ;;  %16822 = vmatprep.subr.bf16.mxu0 %v20379_v50  ;;  %v4289_v3 = vpop.permute.xlu0 %4288 }
 0x26f   :  { %7256 = vrot.lane.b32.xlu1 %v7253_v23, %s17011_s10  ;;  %16022 = vmatprep.mubr.msk.f32.mxu1 %vm17008_vm0, %v19016_v61  ;;  %4294 = vst.msk [vmem:[%s20368_s2 + $0xe] sm:$0x1] %vm901_vm6, %v4289_v3 }
 0x270   :  { %16812 = vmatpush3.bf16.msra.mxu1 %v16811_v46  ;;  %16044 = vmatprep.mubr.msk.f32.mxu0 %vm17008_vm0, %v19016_v61  ;;  %v4291_v25 = vpop.permute.xlu1 %4290 }
 0x271   :  { %16824 = vmatpush3.bf16.msra.mxu0 %v16823_v22  ;;  %7465 = vrot.lane.b32.xlu0 %v7460_v17, %s17009_s8  ;;  %4295 = vst.msk [vmem:[%s20368_s2 + $0x8e] sm:$0x1] %vm901_vm6, %v4291_v25 }
 0x272   :  { %16825 = vmatprep.subr.bf16.mxu1 %v20379_v50  ;;  %v4297_v39 = vpop.permute.xlu0 %4296 }
 0x273   :  { %16023 = vmatmul.mubr.msk.f32.vlgmr.msra.gmra.mrb[60].mxu1 %vm75_vm2, %v20389_v14  ;;  %7467 = vrot.lane.b32.xlu1 %v7464_v43, %s17009_s8  ;;  %13755 = vst.msk [vmem:[%s20368_s2 + $0x4e] sm:$0x1] %vm901_vm6, %v4297_v39 }
 0x274   :  { %16045 = vmatmul.mubr.msk.f32.vlgmr.msra.gmra.mrb[62].mxu0 %vm75_vm2, %v18193_v1  ;;  %16827 = vmatpush3.bf16.msra.mxu1 %v16826_v45  ;;  %v4299_v56 = vpop.permute.xlu1 %4298 }
 0x275   :  { %7473 = vrot.lane.b32.xlu0 %v7460_v17, %s17011_s10  ;;  %16828 = vmatprep.subr.bf16.mxu1 %v20379_v50  ;;  %13756 = vst.msk [vmem:[%s20368_s2 + $0xce] sm:$0x1] %vm901_vm6, %v4299_v56  ;;  %v7645_v1 = vpop.f32.mrb[34].mxu1 }
 0x276   :  { %16055 = vmatprep.mubr.msk.f32.mxu1 %vm17008_vm0, %v19016_v61  ;;  %v7656_v34 = vrot.slane %v7645_v1, %v17836_v38  ;;  %v7856_v6 = vpop.f32.mrb[36].mxu0  ;;  %v15452_v55 = vpop.f32.mrb[35].mxu1 }
 0x277   :  { %7475 = vrot.lane.b32.xlu1 %v7464_v43, %s17011_s10  ;;  %v7867_v28 = vrot.slane %v7856_v6, %v17836_v38  ;;  %v4504_v15 = vpop.permute.xlu0 %4503  ;;  %v15474_v52 = vpop.f32.mrb[37].mxu0 }
 0x278   :  { %16830 = vmatpush3.bf16.msra.mxu1 %v16829_v35  ;;  %v7657_v32 = vcombine.high %v7656_v34, %v7656_v34  ;;  %v7664_v31 = vrot.slane %v7656_v34, %v17836_v38  ;;  %13761 = vst.msk [vmem:[%s20368_s2 + $0x56] sm:$0x1] %vm248_vm3, %v4504_v15  ;;  %v4506_v63 = vpop.permute.xlu1 %4505 }
 0x279   :  { %16831 = vmatprep.subr.bf16.mxu1 %v20379_v50  ;;  %v7868_v33 = vcombine.high %v7867_v28, %v7867_v28  ;;  %v7875_v44 = vrot.slane %v7867_v28, %v17836_v38  ;;  %13767 = vst.msk [vmem:[%s20368_s2 + $0x56] sm:$0x1] %vm473_vm4, %v18807_v53 }
 0x27a   :  { %13762 = vst.msk [vmem:[%s20368_s2 + $0xd6] sm:$0x1] %vm248_vm3, %v4506_v63  ;;  %v7671_v19 = vrot.slane %v7657_v32, %v17836_v38  ;;  %v7675_v62 = vrot.slane %v7664_v31, %v17849_v26 }
 0x27b   :  { %13768 = vst.msk [vmem:[%s20368_s2 + $0xd6] sm:$0x1] %vm473_vm4, %v18817_v20  ;;  %16056 = vmatmul.mubr.msk.f32.vlgmr.msra.gmra.mrb[62].mxu1 %vm75_vm2, %v20390_v7  ;;  %v7882_v53 = vrot.slane %v7868_v33, %v17836_v38 }
 0x27c   :  { %7885 = vst.msk [vmem:[%s20368_s2 + $0x30] sm:$0x1] %vm248_vm3, %v7875_v44  ;;  %16833 = vmatpush3.bf16.msra.mxu1 %v16832_v36  ;;  %16066 = vmatprep.mubr.msk.f32.mxu1 %vm17008_vm0, %v19016_v61  ;;  %v7679_v8 = vrot.slane %v7671_v19, %v17849_v26 }
 0x27d   :  { %7680 = vrot.lane.b32.xlu0 %v7675_v62, %s17010_s9  ;;  %16834 = vmatprep.subr.bf16.mxu1 %v20379_v50  ;;  %7886 = vst.msk [vmem:[%s20368_s2 + $0xb0] sm:$0x1] %vm248_vm3, %v7882_v53  ;;  %v7890_v50 = vrot.slane %v7875_v44, %v17849_v26  ;;  %v7894_v11 = vrot.slane %v7882_v53, %v17849_v26 }
 0x27e   :  { %v4711_v20 = vpop.permute.xlu0 %4710  ;;  %7682 = vrot.lane.b32.xlu1 %v7679_v8, %s17010_s9 }
 0x27f   :  { %4716 = vst.msk [vmem:[%s20368_s2 + $0x16] sm:$0x1] %vm473_vm4, %v4711_v20 }
 0x280   :  { %16836 = vmatpush3.bf16.msra.mxu1 %v16835_v13  ;;  %v4713_v61 = vpop.permute.xlu1 %4712 }
 0x281   :  { %7688 = vrot.lane.b32.xlu0 %v7675_v62, %s17009_s8  ;;  %4717 = vst.msk [vmem:[%s20368_s2 + $0x96] sm:$0x1] %vm473_vm4, %v4713_v61 }
 0x282   :  { %v4922_v40 = vpop.permute.xlu0 %4921  ;;  %7690 = vrot.lane.b32.xlu1 %v7679_v8, %s17009_s8 }
 0x283   :  { %16067 = vmatmul.mubr.msk.f32.vlgmr.msra.gmra.mrb[62].mxu1 %vm75_vm2, %v20391_v29  ;;  %4927 = vst.msk [vmem:[%s20368_s2 + $0x16] sm:$0x1] %vm685_vm5, %v4922_v40 }
 0x284   :  { %v4924_v16 = vpop.permute.xlu1 %4923 }
 0x285   :  { %7895 = vrot.lane.b32.xlu0 %v7890_v50, %s17010_s9  ;;  %4928 = vst.msk [vmem:[%s20368_s2 + $0x96] sm:$0x1] %vm685_vm5, %v4924_v16  ;;  %v8067_v5 = vpop.f32.mrb[36].mxu1 }
 0x286   :  { %v8078_v57 = vrot.slane %v8067_v5, %v17836_v38  ;;  %v8278_v0 = vpop.f32.mrb[38].mxu0  ;;  %v15496_v60 = vpop.f32.mrb[37].mxu1  ;;  %7897 = vrot.lane.b32.xlu1 %v7894_v11, %s17010_s9 }
 0x287   :  { %v8289_v30 = vrot.slane %v8278_v0, %v17836_v38  ;;  %v4930_v47 = vpop.permute.xlu0 %4929  ;;  %v15518_v18 = vpop.f32.mrb[39].mxu0 }
 0x288   :  { %v8079_v4 = vcombine.high %v8078_v57, %v8078_v57  ;;  %v19458_v24 = vrot.slane %v8078_v57, %v17836_v38  ;;  %13773 = vst.msk [vmem:[%s20368_s2 + $0x56] sm:$0x1] %vm685_vm5, %v4930_v47  ;;  %v4932_v46 = vpop.permute.xlu1 %4931 }
 0x289   :  { %v8290_v23 = vcombine.high %v8289_v30, %v8289_v30  ;;  %13774 = vst.msk [vmem:[%s20368_s2 + $0xd6] sm:$0x1] %vm685_vm5, %v4932_v46  ;;  %v8297_v21 = vrot.slane %v8289_v30, %v17836_v38 }
 0x28a   :  { %v19469_v10 = vrot.slane %v8079_v4, %v17836_v38  ;;  %v8097_v22 = vrot.slane %v19458_v24, %v17849_v26 }
 0x28b   :  { %v8304_v17 = vrot.slane %v8290_v23, %v17836_v38  ;;  %v8308_v3 = vrot.slane %v8297_v21, %v17849_v26 }
 0x28c   :  { %v8101_v37 = vrot.slane %v19469_v10, %v17849_v26  ;;  %8102 = vrot.lane.b32.xlu0 %v8097_v22, %s17011_s10 }
 0x28d   :  { %v8312_v43 = vrot.slane %v8304_v17, %v17849_v26 }
 0x28e   :  { %8104 = vrot.lane.b32.xlu1 %v8101_v37, %s17011_s10 }
 0x28f   :  { %v5137_v45 = vpop.permute.xlu0 %5136 }
 0x290   :  { %5142 = vst.msk [vmem:[%s20368_s2 + $0x16] sm:$0x1] %vm901_vm6, %v5137_v45  ;;  %8313 = vrot.lane.b32.xlu0 %v8308_v3, %s17009_s8 }
 0x291   :  { %v5139_v25 = vpop.permute.xlu1 %5138 }
 0x292   :  { %5143 = vst.msk [vmem:[%s20368_s2 + $0x96] sm:$0x1] %vm901_vm6, %v5139_v25  ;;  %8315 = vrot.lane.b32.xlu1 %v8312_v43, %s17009_s8 }
 0x293   :  { %v5145_v27 = vpop.permute.xlu0 %5144 }
 0x294   :  { %13779 = vst.msk [vmem:[%s20368_s2 + $0x56] sm:$0x1] %vm901_vm6, %v5145_v27  ;;  %8321 = vrot.lane.b32.xlu0 %v8308_v3, %s17011_s10 }
 0x295   :  { %v5147_v58 = vpop.permute.xlu1 %5146  ;;  %v8493_v14 = vpop.f32.mrb[38].mxu1 }
 0x296   :  { %13780 = vst.msk [vmem:[%s20368_s2 + $0xd6] sm:$0x1] %vm901_vm6, %v5147_v58  ;;  %v8504_v39 = vrot.slane %v8493_v14, %v17836_v38  ;;  %v8704_v35 = vpop.f32.mrb[40].mxu0  ;;  %v15540_v56 = vpop.f32.mrb[39].mxu1  ;;  %8323 = vrot.lane.b32.xlu1 %v8312_v43, %s17011_s10 }
 0x297   :  { %v8715_v9 = vrot.slane %v8704_v35, %v17836_v38  ;;  %v5352_v49 = vpop.permute.xlu0 %5351  ;;  %v15562_v1 = vpop.f32.mrb[41].mxu0 }
 0x298   :  { %v8505_v34 = vcombine.high %v8504_v39, %v8504_v39  ;;  %v8512_v6 = vrot.slane %v8504_v39, %v17836_v38  ;;  %13785 = vst.msk [vmem:[%s20368_s2 + $0x4f] sm:$0x1] %vm248_vm3, %v5352_v49 }
 0x299   :  { %v5354_v55 = vpop.permute.xlu1 %5353  ;;  %v8716_v28 = vcombine.high %v8715_v9, %v8715_v9  ;;  %v8723_v15 = vrot.slane %v8715_v9, %v17836_v38  ;;  %13791 = vst.msk [vmem:[%s20368_s2 + $0x4f] sm:$0x1] %vm473_vm4, %v18975_v41 }
 0x29a   :  { %13786 = vst.msk [vmem:[%s20368_s2 + $0xcf] sm:$0x1] %vm248_vm3, %v5354_v55  ;;  %v8519_v52 = vrot.slane %v8505_v34, %v17836_v38  ;;  %v8523_v36 = vrot.slane %v8512_v6, %v17849_v26 }
 0x29b   :  { %13792 = vst.msk [vmem:[%s20368_s2 + $0xcf] sm:$0x1] %vm473_vm4, %v18985_v12  ;;  %v8730_v32 = vrot.slane %v8716_v28, %v17836_v38  ;;  %v8738_v63 = vrot.slane %v8723_v15, %v17849_v26 }
 0x29c   :  { %8733 = vst.msk [vmem:[%s20368_s2 + $0x29] sm:$0x1] %vm248_vm3, %v8723_v15  ;;  %v8527_v41 = vrot.slane %v8519_v52, %v17849_v26  ;;  %8528 = vrot.lane.b32.xlu0 %v8523_v36, %s17010_s9 }
 0x29d   :  { %8734 = vst.msk [vmem:[%s20368_s2 + $0xa9] sm:$0x1] %vm248_vm3, %v8730_v32  ;;  %v8742_v59 = vrot.slane %v8730_v32, %v17849_v26 }
 0x29e   :  { %8530 = vrot.lane.b32.xlu1 %v8527_v41, %s17010_s9 }
 0x29f   :  { %v5559_v31 = vpop.permute.xlu0 %5558 }
 0x2a0   :  { %5564 = vst.msk [vmem:[%s20368_s2 + $0xf] sm:$0x1] %vm473_vm4, %v5559_v31  ;;  %8536 = vrot.lane.b32.xlu0 %v8523_v36, %s17009_s8 }
 0x2a1   :  { %v5561_v12 = vpop.permute.xlu1 %5560 }
 0x2a2   :  { %5565 = vst.msk [vmem:[%s20368_s2 + $0x8f] sm:$0x1] %vm473_vm4, %v5561_v12  ;;  %8538 = vrot.lane.b32.xlu1 %v8527_v41, %s17009_s8 }
 0x2a3   :  { %v5770_v54 = vpop.permute.xlu0 %5769 }
 0x2a4   :  { %5775 = vst.msk [vmem:[%s20368_s2 + $0xf] sm:$0x1] %vm685_vm5, %v5770_v54  ;;  %8743 = vrot.lane.b32.xlu0 %v8738_v63, %s17010_s9 }
 0x2a5   :  { %v5772_v33 = vpop.permute.xlu1 %5771  ;;  %v8915_v44 = vpop.f32.mrb[40].mxu1 }
 0x2a6   :  { %5776 = vst.msk [vmem:[%s20368_s2 + $0x8f] sm:$0x1] %vm685_vm5, %v5772_v33  ;;  %v8926_v19 = vrot.slane %v8915_v44, %v17836_v38  ;;  %v9126_v62 = vpop.f32.mrb[42].mxu0  ;;  %v15584_v7 = vpop.f32.mrb[41].mxu1  ;;  %8745 = vrot.lane.b32.xlu1 %v8742_v59, %s17010_s9 }
 0x2a7   :  { %v9137_v53 = vrot.slane %v9126_v62, %v17836_v38  ;;  %v5778_v13 = vpop.permute.xlu0 %5777  ;;  %v15606_v8 = vpop.f32.mrb[43].mxu0 }
 0x2a8   :  { %v8927_v20 = vcombine.high %v8926_v19, %v8926_v19  ;;  %v19562_v61 = vrot.slane %v8926_v19, %v17836_v38  ;;  %13797 = vst.msk [vmem:[%s20368_s2 + $0x4f] sm:$0x1] %vm685_vm5, %v5778_v13 }
 0x2a9   :  { %v5780_v50 = vpop.permute.xlu1 %5779  ;;  %v9138_v29 = vcombine.high %v9137_v53, %v9137_v53  ;;  %v9145_v16 = vrot.slane %v9137_v53, %v17836_v38 }
 0x2aa   :  { %13798 = vst.msk [vmem:[%s20368_s2 + $0xcf] sm:$0x1] %vm685_vm5, %v5780_v50  ;;  %v19573_v40 = vrot.slane %v8927_v20, %v17836_v38  ;;  %v8945_v11 = vrot.slane %v19562_v61, %v17849_v26 }
 0x2ab   :  { %v9152_v57 = vrot.slane %v9138_v29, %v17836_v38  ;;  %v9156_v0 = vrot.slane %v9145_v16, %v17849_v26 }
 0x2ac   :  { %v8949_v5 = vrot.slane %v19573_v40, %v17849_v26  ;;  %8950 = vrot.lane.b32.xlu0 %v8945_v11, %s17011_s10 }
 0x2ad   :  { %v9160_v30 = vrot.slane %v9152_v57, %v17849_v26 }
 0x2ae   :  { %8952 = vrot.lane.b32.xlu1 %v8949_v5, %s17011_s10 }
 0x2af   :  { %v5985_v60 = vpop.permute.xlu0 %5984 }
 0x2b0   :  { %5990 = vst.msk [vmem:[%s20368_s2 + $0xf] sm:$0x1] %vm901_vm6, %v5985_v60  ;;  %9161 = vrot.lane.b32.xlu0 %v9156_v0, %s17009_s8 }
 0x2b1   :  { %v5987_v47 = vpop.permute.xlu1 %5986 }
 0x2b2   :  { %5991 = vst.msk [vmem:[%s20368_s2 + $0x8f] sm:$0x1] %vm901_vm6, %v5987_v47  ;;  %9163 = vrot.lane.b32.xlu1 %v9160_v30, %s17009_s8 }
 0x2b3   :  { %v5993_v18 = vpop.permute.xlu0 %5992 }
 0x2b4   :  { %13803 = vst.msk [vmem:[%s20368_s2 + $0x4f] sm:$0x1] %vm901_vm6, %v5993_v18  ;;  %9169 = vrot.lane.b32.xlu0 %v9156_v0, %s17011_s10 }
 0x2b5   :  { %v5995_v4 = vpop.permute.xlu1 %5994  ;;  %v9341_v46 = vpop.f32.mrb[42].mxu1 }
 0x2b6   :  { %13804 = vst.msk [vmem:[%s20368_s2 + $0xcf] sm:$0x1] %vm901_vm6, %v5995_v4  ;;  %v9352_v23 = vrot.slane %v9341_v46, %v17836_v38  ;;  %v9552_v22 = vpop.f32.mrb[44].mxu0  ;;  %v15628_v21 = vpop.f32.mrb[43].mxu1  ;;  %9171 = vrot.lane.b32.xlu1 %v9160_v30, %s17011_s10 }
 0x2b7   :  { %v9563_v37 = vrot.slane %v9552_v22, %v17836_v38  ;;  %v6200_v17 = vpop.permute.xlu0 %6199  ;;  %v15650_v3 = vpop.f32.mrb[45].mxu0 }
 0x2b8   :  { %v9353_v45 = vcombine.high %v9352_v23, %v9352_v23  ;;  %v9360_v43 = vrot.slane %v9352_v23, %v17836_v38  ;;  %13809 = vst.msk [vmem:[%s20368_s2 + $0x57] sm:$0x1] %vm248_vm3, %v6200_v17 }
 0x2b9   :  { %v6202_v25 = vpop.permute.xlu1 %6201  ;;  %v9564_v27 = vcombine.high %v9563_v37, %v9563_v37  ;;  %v9571_v58 = vrot.slane %v9563_v37, %v17836_v38  ;;  %13815 = vst.msk [vmem:[%s20368_s2 + $0x57] sm:$0x1] %vm473_vm4, %v19152_v42 }
 0x2ba   :  { %13810 = vst.msk [vmem:[%s20368_s2 + $0xd7] sm:$0x1] %vm248_vm3, %v6202_v25  ;;  %v9367_v14 = vrot.slane %v9353_v45, %v17836_v38  ;;  %v9371_v39 = vrot.slane %v9360_v43, %v17849_v26 }
 0x2bb   :  { %13816 = vst.msk [vmem:[%s20368_s2 + $0xd7] sm:$0x1] %vm473_vm4, %v19162_v48  ;;  %v9578_v35 = vrot.slane %v9564_v27, %v17836_v38  ;;  %v9586_v9 = vrot.slane %v9571_v58, %v17849_v26 }
 0x2bc   :  { %9581 = vst.msk [vmem:[%s20368_s2 + $0x31] sm:$0x1] %vm248_vm3, %v9571_v58  ;;  %v9375_v42 = vrot.slane %v9367_v14, %v17849_v26  ;;  %9376 = vrot.lane.b32.xlu0 %v9371_v39, %s17010_s9 }
 0x2bd   :  { %9582 = vst.msk [vmem:[%s20368_s2 + $0xb1] sm:$0x1] %vm248_vm3, %v9578_v35  ;;  %v9590_v1 = vrot.slane %v9578_v35, %v17849_v26 }
 0x2be   :  { %9378 = vrot.lane.b32.xlu1 %v9375_v42, %s17010_s9 }
 0x2bf   :  { %v6407_v56 = vpop.permute.xlu0 %6406 }
 0x2c0   :  { %6412 = vst.msk [vmem:[%s20368_s2 + $0x17] sm:$0x1] %vm473_vm4, %v6407_v56  ;;  %9384 = vrot.lane.b32.xlu0 %v9371_v39, %s17009_s8 }
 0x2c1   :  { %v6409_v48 = vpop.permute.xlu1 %6408 }
 0x2c2   :  { %6413 = vst.msk [vmem:[%s20368_s2 + $0x97] sm:$0x1] %vm473_vm4, %v6409_v48  ;;  %9386 = vrot.lane.b32.xlu1 %v9375_v42, %s17009_s8 }
 0x2c3   :  { %v6618_v49 = vpop.permute.xlu0 %6617 }
 0x2c4   :  { %6623 = vst.msk [vmem:[%s20368_s2 + $0x17] sm:$0x1] %vm685_vm5, %v6618_v49  ;;  %9591 = vrot.lane.b32.xlu0 %v9586_v9, %s17010_s9 }
 0x2c5   :  { %v6620_v34 = vpop.permute.xlu1 %6619  ;;  %v9763_v6 = vpop.f32.mrb[44].mxu1 }
 0x2c6   :  { %6624 = vst.msk [vmem:[%s20368_s2 + $0x97] sm:$0x1] %vm685_vm5, %v6620_v34  ;;  %v9774_v55 = vrot.slane %v9763_v6, %v17836_v38  ;;  %v9974_v28 = vpop.f32.mrb[46].mxu0  ;;  %v15672_v15 = vpop.f32.mrb[45].mxu1  ;;  %9593 = vrot.lane.b32.xlu1 %v9590_v1, %s17010_s9 }
 0x2c7   :  { %v9985_v52 = vrot.slane %v9974_v28, %v17836_v38  ;;  %v6626_v36 = vpop.permute.xlu0 %6625  ;;  %v15694_v32 = vpop.f32.mrb[47].mxu0 }
 0x2c8   :  { %v9775_v41 = vcombine.high %v9774_v55, %v9774_v55  ;;  %v19666_v31 = vrot.slane %v9774_v55, %v17836_v38  ;;  %13821 = vst.msk [vmem:[%s20368_s2 + $0x57] sm:$0x1] %vm685_vm5, %v6626_v36 }
 0x2c9   :  { %v6628_v12 = vpop.permute.xlu1 %6627  ;;  %v9986_v63 = vcombine.high %v9985_v52, %v9985_v52  ;;  %v9993_v33 = vrot.slane %v9985_v52, %v17836_v38 }
 0x2ca   :  { %13822 = vst.msk [vmem:[%s20368_s2 + $0xd7] sm:$0x1] %vm685_vm5, %v6628_v12  ;;  %v19677_v54 = vrot.slane %v9775_v41, %v17836_v38  ;;  %v9793_v59 = vrot.slane %v19666_v31, %v17849_v26 }
 0x2cb   :  { %v10000_v19 = vrot.slane %v9986_v63, %v17836_v38  ;;  %v10004_v62 = vrot.slane %v9993_v33, %v17849_v26 }
 0x2cc   :  { %v9797_v44 = vrot.slane %v19677_v54, %v17849_v26  ;;  %9798 = vrot.lane.b32.xlu0 %v9793_v59, %s17011_s10 }
 0x2cd   :  { %v10008_v53 = vrot.slane %v10000_v19, %v17849_v26 }
 0x2ce   :  { %9800 = vrot.lane.b32.xlu1 %v9797_v44, %s17011_s10 }
 0x2cf   :  { %v6833_v7 = vpop.permute.xlu0 %6832 }
 0x2d0   :  { %6838 = vst.msk [vmem:[%s20368_s2 + $0x17] sm:$0x1] %vm901_vm6, %v6833_v7  ;;  %10009 = vrot.lane.b32.xlu0 %v10004_v62, %s17009_s8 }
 0x2d1   :  { %v6835_v13 = vpop.permute.xlu1 %6834 }
 0x2d2   :  { %6839 = vst.msk [vmem:[%s20368_s2 + $0x97] sm:$0x1] %vm901_vm6, %v6835_v13  ;;  %10011 = vrot.lane.b32.xlu1 %v10008_v53, %s17009_s8 }
 0x2d3   :  { %v6841_v8 = vpop.permute.xlu0 %6840 }
 0x2d4   :  { %13827 = vst.msk [vmem:[%s20368_s2 + $0x57] sm:$0x1] %vm901_vm6, %v6841_v8  ;;  %10017 = vrot.lane.b32.xlu0 %v10004_v62, %s17011_s10 }
 0x2d5   :  { %v6843_v20 = vpop.permute.xlu1 %6842  ;;  %v10189_v50 = vpop.f32.mrb[46].mxu1 }
 0x2d6   :  { %13828 = vst.msk [vmem:[%s20368_s2 + $0xd7] sm:$0x1] %vm901_vm6, %v6843_v20  ;;  %v10200_v29 = vrot.slane %v10189_v50, %v17836_v38  ;;  %v10400_v11 = vpop.f32.mrb[48].mxu0  ;;  %v15716_v16 = vpop.f32.mrb[47].mxu1  ;;  %10019 = vrot.lane.b32.xlu1 %v10008_v53, %s17011_s10 }
 0x2d7   :  { %v10411_v5 = vrot.slane %v10400_v11, %v17836_v38  ;;  %v7048_v57 = vpop.permute.xlu0 %7047  ;;  %v15738_v0 = vpop.f32.mrb[49].mxu0 }
 0x2d8   :  { %v10201_v60 = vcombine.high %v10200_v29, %v10200_v29  ;;  %v10208_v30 = vrot.slane %v10200_v29, %v17836_v38  ;;  %13833 = vst.msk [vmem:[%s20368_s2 + $0x68] sm:$0x1] %vm248_vm3, %v7048_v57 }
 0x2d9   :  { %v7050_v47 = vpop.permute.xlu1 %7049  ;;  %v10412_v18 = vcombine.high %v10411_v5, %v10411_v5  ;;  %v10419_v4 = vrot.slane %v10411_v5, %v17836_v38  ;;  %13839 = vst.msk [vmem:[%s20368_s2 + $0x68] sm:$0x1] %vm473_vm4, %v19330_v51 }
 0x2da   :  { %13834 = vst.msk [vmem:[%s20368_s2 + $0xe8] sm:$0x1] %vm248_vm3, %v7050_v47  ;;  %v10215_v46 = vrot.slane %v10201_v60, %v17836_v38  ;;  %v10219_v23 = vrot.slane %v10208_v30, %v17849_v26 }
 0x2db   :  { %13840 = vst.msk [vmem:[%s20368_s2 + $0xe8] sm:$0x1] %vm473_vm4, %v19339_v2  ;;  %v10426_v22 = vrot.slane %v10412_v18, %v17836_v38  ;;  %v10434_v37 = vrot.slane %v10419_v4, %v17849_v26 }
 0x2dc   :  { %10429 = vst.msk [vmem:[%s20368_s2 + $0x2a] sm:$0x1] %vm248_vm3, %v10419_v4  ;;  %v10223_v51 = vrot.slane %v10215_v46, %v17849_v26  ;;  %10224 = vrot.lane.b32.xlu0 %v10219_v23, %s17010_s9 }
 0x2dd   :  { %10430 = vst.msk [vmem:[%s20368_s2 + $0xaa] sm:$0x1] %vm248_vm3, %v10426_v22  ;;  %v10438_v3 = vrot.slane %v10426_v22, %v17849_v26 }
 0x2de   :  { %10226 = vrot.lane.b32.xlu1 %v10223_v51, %s17010_s9 }
 0x2df   :  { %v7255_v21 = vpop.permute.xlu0 %7254 }
 0x2e0   :  { %7260 = vst.msk [vmem:[%s20368_s2 + $0x28] sm:$0x1] %vm473_vm4, %v7255_v21  ;;  %10232 = vrot.lane.b32.xlu0 %v10219_v23, %s17009_s8 }
 0x2e1   :  { %v7257_v2 = vpop.permute.xlu1 %7256 }
 0x2e2   :  { %7261 = vst.msk [vmem:[%s20368_s2 + $0xa8] sm:$0x1] %vm473_vm4, %v7257_v2  ;;  %10234 = vrot.lane.b32.xlu1 %v10223_v51, %s17009_s8 }
 0x2e3   :  { %v7466_v17 = vpop.permute.xlu0 %7465 }
 0x2e4   :  { %7471 = vst.msk [vmem:[%s20368_s2 + $0x28] sm:$0x1] %vm685_vm5, %v7466_v17  ;;  %10439 = vrot.lane.b32.xlu0 %v10434_v37, %s17010_s9 }
 0x2e5   :  { %v7468_v45 = vpop.permute.xlu1 %7467  ;;  %v10611_v43 = vpop.f32.mrb[48].mxu1 }
 0x2e6   :  { %7472 = vst.msk [vmem:[%s20368_s2 + $0xa8] sm:$0x1] %vm685_vm5, %v7468_v45  ;;  %v10622_v25 = vrot.slane %v10611_v43, %v17836_v38  ;;  %v10822_v27 = vpop.f32.mrb[50].mxu0  ;;  %v15760_v58 = vpop.f32.mrb[49].mxu1  ;;  %10441 = vrot.lane.b32.xlu1 %v10438_v3, %s17010_s9 }
 0x2e7   :  { %v10833_v14 = vrot.slane %v10822_v27, %v17836_v38  ;;  %v7474_v39 = vpop.permute.xlu0 %7473  ;;  %v15782_v35 = vpop.f32.mrb[51].mxu0 }
 0x2e8   :  { %v10623_v42 = vcombine.high %v10622_v25, %v10622_v25  ;;  %v19770_v56 = vrot.slane %v10622_v25, %v17836_v38  ;;  %13845 = vst.msk [vmem:[%s20368_s2 + $0x68] sm:$0x1] %vm685_vm5, %v7474_v39 }
 0x2e9   :  { %v7476_v48 = vpop.permute.xlu1 %7475  ;;  %v10834_v9 = vcombine.high %v10833_v14, %v10833_v14  ;;  %v10841_v34 = vrot.slane %v10833_v14, %v17836_v38 }
 0x2ea   :  { %13846 = vst.msk [vmem:[%s20368_s2 + $0xe8] sm:$0x1] %vm685_vm5, %v7476_v48  ;;  %v19781_v49 = vrot.slane %v10623_v42, %v17836_v38  ;;  %v10641_v1 = vrot.slane %v19770_v56, %v17849_v26 }
 0x2eb   :  { %v10848_v55 = vrot.slane %v10834_v9, %v17836_v38  ;;  %v10852_v28 = vrot.slane %v10841_v34, %v17849_v26 }
 0x2ec   :  { %v10645_v6 = vrot.slane %v19781_v49, %v17849_v26  ;;  %10646 = vrot.lane.b32.xlu0 %v10641_v1, %s17011_s10 }
 0x2ed   :  { %v10856_v52 = vrot.slane %v10848_v55, %v17849_v26 }
 0x2ee   :  { %10648 = vrot.lane.b32.xlu1 %v10645_v6, %s17011_s10 }
 0x2ef   :  { %v7681_v15 = vpop.permute.xlu0 %7680 }
 0x2f0   :  { %7686 = vst.msk [vmem:[%s20368_s2 + $0x28] sm:$0x1] %vm901_vm6, %v7681_v15  ;;  %v7683_v36 = vpop.permute.xlu1 %7682  ;;  %10857 = vrot.lane.b32.xlu0 %v10852_v28, %s17009_s8 }
 0x2f1   :  { %7687 = vst.msk [vmem:[%s20368_s2 + $0xa8] sm:$0x1] %vm901_vm6, %v7683_v36 }
 0x2f2   :  { %10859 = vrot.lane.b32.xlu1 %v10856_v52, %s17009_s8 }
 0x2f3   :  { %v7689_v32 = vpop.permute.xlu0 %7688 }
 0x2f4   :  { %13851 = vst.msk [vmem:[%s20368_s2 + $0x68] sm:$0x1] %vm901_vm6, %v7689_v32  ;;  %v7691_v41 = vpop.permute.xlu1 %7690  ;;  %10865 = vrot.lane.b32.xlu0 %v10852_v28, %s17011_s10 }
 0x2f5   :  { %13852 = vst.msk [vmem:[%s20368_s2 + $0xe8] sm:$0x1] %vm901_vm6, %v7691_v41 }
 0x2f6   :  { %v11037_v12 = vpop.f32.mrb[50].mxu1  ;;  %10867 = vrot.lane.b32.xlu1 %v10856_v52, %s17011_s10 }
 0x2f7   :  { %v11048_v63 = vrot.slane %v11037_v12, %v17836_v38  ;;  %v11248_v59 = vpop.f32.mrb[52].mxu0  ;;  %v15804_v33 = vpop.f32.mrb[51].mxu1 }
 0x2f8   :  { %v11259_v44 = vrot.slane %v11248_v59, %v17836_v38  ;;  %v7896_v19 = vpop.permute.xlu0 %7895  ;;  %v15826_v62 = vpop.f32.mrb[53].mxu0 }
 0x2f9   :  { %v11049_v7 = vcombine.high %v11048_v63, %v11048_v63  ;;  %v11056_v53 = vrot.slane %v11048_v63, %v17836_v38  ;;  %13857 = vst.msk [vmem:[%s20368_s2 + $0x70] sm:$0x1] %vm248_vm3, %v7896_v19  ;;  %v7898_v13 = vpop.permute.xlu1 %7897 }
 0x2fa   :  { %v11260_v8 = vcombine.high %v11259_v44, %v11259_v44  ;;  %v11267_v20 = vrot.slane %v11259_v44, %v17836_v38  ;;  %13863 = vst.msk [vmem:[%s20368_s2 + $0x70] sm:$0x1] %vm473_vm4, %v19458_v24 }
 0x2fb   :  { %13858 = vst.msk [vmem:[%s20368_s2 + $0xf0] sm:$0x1] %vm248_vm3, %v7898_v13  ;;  %v11063_v50 = vrot.slane %v11049_v7, %v17836_v38  ;;  %v11067_v29 = vrot.slane %v11056_v53, %v17849_v26 }
 0x2fc   :  { %13864 = vst.msk [vmem:[%s20368_s2 + $0xf0] sm:$0x1] %vm473_vm4, %v19469_v10  ;;  %v11274_v11 = vrot.slane %v11260_v8, %v17836_v38  ;;  %v11282_v5 = vrot.slane %v11267_v20, %v17849_v26 }
 0x2fd   :  { %11277 = vst.msk [vmem:[%s20368_s2 + $0x32] sm:$0x1] %vm248_vm3, %v11267_v20  ;;  %v11071_v24 = vrot.slane %v11063_v50, %v17849_v26  ;;  %11072 = vrot.lane.b32.xlu0 %v11067_v29, %s17010_s9 }
 0x2fe   :  { %11278 = vst.msk [vmem:[%s20368_s2 + $0xb2] sm:$0x1] %vm248_vm3, %v11274_v11  ;;  %v8103_v16 = vpop.permute.xlu0 %8102  ;;  %v11286_v0 = vrot.slane %v11274_v11, %v17849_v26 }
 0x2ff   :  { %11074 = vrot.lane.b32.xlu1 %v11071_v24, %s17010_s9  ;;  %8108 = vst.msk [vmem:[%s20368_s2 + $0x30] sm:$0x1] %vm473_vm4, %v8103_v16 }
 0x300   :  { %v8105_v10 = vpop.permute.xlu1 %8104 }
 0x301   :  { %11080 = vrot.lane.b32.xlu0 %v11067_v29, %s17009_s8  ;;  %8109 = vst.msk [vmem:[%s20368_s2 + $0xb0] sm:$0x1] %vm473_vm4, %v8105_v10 }
 0x302   :  { %v8314_v57 = vpop.permute.xlu0 %8313 }
 0x303   :  { %11082 = vrot.lane.b32.xlu1 %v11071_v24, %s17009_s8  ;;  %8319 = vst.msk [vmem:[%s20368_s2 + $0x30] sm:$0x1] %vm685_vm5, %v8314_v57 }
 0x304   :  { %v8316_v60 = vpop.permute.xlu1 %8315 }
 0x305   :  { %11287 = vrot.lane.b32.xlu0 %v11282_v5, %s17010_s9  ;;  %8320 = vst.msk [vmem:[%s20368_s2 + $0xb0] sm:$0x1] %vm685_vm5, %v8316_v60 }
 0x306   :  { %v11459_v30 = vpop.f32.mrb[52].mxu1  ;;  %v8322_v23 = vpop.permute.xlu0 %8321 }
 0x307   :  { %v11470_v47 = vrot.slane %v11459_v30, %v17836_v38  ;;  %v11670_v18 = vpop.f32.mrb[54].mxu0  ;;  %v15848_v4 = vpop.f32.mrb[53].mxu1  ;;  %11289 = vrot.lane.b32.xlu1 %v11286_v0, %s17010_s9  ;;  %13869 = vst.msk [vmem:[%s20368_s2 + $0x70] sm:$0x1] %vm685_vm5, %v8322_v23 }
 0x308   :  { %v11681_v46 = vrot.slane %v11670_v18, %v17836_v38  ;;  %v15870_v22 = vpop.f32.mrb[55].mxu0  ;;  %v8324_v2 = vpop.permute.xlu1 %8323 }
 0x309   :  { %v11471_v51 = vcombine.high %v11470_v47, %v11470_v47  ;;  %v19874_v21 = vrot.slane %v11470_v47, %v17836_v38  ;;  %13870 = vst.msk [vmem:[%s20368_s2 + $0xf0] sm:$0x1] %vm685_vm5, %v8324_v2 }
 0x30a   :  { %v11682_v37 = vcombine.high %v11681_v46, %v11681_v46  ;;  %v11689_v45 = vrot.slane %v11681_v46, %v17836_v38 }
 0x30b   :  { %v19885_v17 = vrot.slane %v11471_v51, %v17836_v38  ;;  %v11489_v3 = vrot.slane %v19874_v21, %v17849_v26 }
 0x30c   :  { %v11696_v25 = vrot.slane %v11682_v37, %v17836_v38  ;;  %v11700_v27 = vrot.slane %v11689_v45, %v17849_v26 }
 0x30d   :  { %v11493_v43 = vrot.slane %v19885_v17, %v17849_v26  ;;  %11494 = vrot.lane.b32.xlu0 %v11489_v3, %s17011_s10 }
 0x30e   :  { %v8529_v58 = vpop.permute.xlu0 %8528  ;;  %v11704_v14 = vrot.slane %v11696_v25, %v17849_v26 }
 0x30f   :  { %11496 = vrot.lane.b32.xlu1 %v11493_v43, %s17011_s10  ;;  %8534 = vst.msk [vmem:[%s20368_s2 + $0x30] sm:$0x1] %vm901_vm6, %v8529_v58 }
 0x310   :  { %v8531_v39 = vpop.permute.xlu1 %8530 }
 0x311   :  { %11705 = vrot.lane.b32.xlu0 %v11700_v27, %s17009_s8  ;;  %8535 = vst.msk [vmem:[%s20368_s2 + $0xb0] sm:$0x1] %vm901_vm6, %v8531_v39 }
 0x312   :  { %v8537_v35 = vpop.permute.xlu0 %8536 }
 0x313   :  { %11707 = vrot.lane.b32.xlu1 %v11704_v14, %s17009_s8  ;;  %13875 = vst.msk [vmem:[%s20368_s2 + $0x70] sm:$0x1] %vm901_vm6, %v8537_v35 }
 0x314   :  { %v8539_v42 = vpop.permute.xlu1 %8538 }
 0x315   :  { %11713 = vrot.lane.b32.xlu0 %v11700_v27, %s17011_s10  ;;  %13876 = vst.msk [vmem:[%s20368_s2 + $0xf0] sm:$0x1] %vm901_vm6, %v8539_v42 }
 0x316   :  { %v11885_v48 = vpop.f32.mrb[54].mxu1  ;;  %v8744_v55 = vpop.permute.xlu0 %8743 }
 0x317   :  { %v11896_v9 = vrot.slane %v11885_v48, %v17836_v38  ;;  %v12096_v1 = vpop.f32.mrb[56].mxu0  ;;  %v15892_v34 = vpop.f32.mrb[55].mxu1  ;;  %11715 = vrot.lane.b32.xlu1 %v11704_v14, %s17011_s10  ;;  %13881 = vst.msk [vmem:[%s20368_s2 + $0x69] sm:$0x1] %vm248_vm3, %v8744_v55 }
 0x318   :  { %v12107_v6 = vrot.slane %v12096_v1, %v17836_v38  ;;  %v15914_v28 = vpop.f32.mrb[57].mxu0  ;;  %v8746_v15 = vpop.permute.xlu1 %8745  ;;  %13887 = vst.msk [vmem:[%s20368_s2 + $0x69] sm:$0x1] %vm473_vm4, %v19562_v61 }
 0x319   :  { %v11897_v52 = vcombine.high %v11896_v9, %v11896_v9  ;;  %13882 = vst.msk [vmem:[%s20368_s2 + $0xe9] sm:$0x1] %vm248_vm3, %v8746_v15  ;;  %v11904_v41 = vrot.slane %v11896_v9, %v17836_v38 }
 0x31a   :  { %v12108_v36 = vcombine.high %v12107_v6, %v12107_v6  ;;  %v12115_v32 = vrot.slane %v12107_v6, %v17836_v38  ;;  %13888 = vst.msk [vmem:[%s20368_s2 + $0xe9] sm:$0x1] %vm473_vm4, %v19573_v40 }
 0x31b   :  { %v11911_v61 = vrot.slane %v11897_v52, %v17836_v38  ;;  %v11915_v33 = vrot.slane %v11904_v41, %v17849_v26 }
 0x31c   :  { %v12122_v12 = vrot.slane %v12108_v36, %v17836_v38  ;;  %v12130_v63 = vrot.slane %v12115_v32, %v17849_v26  ;;  %12125 = vst.msk [vmem:[%s20368_s2 + $0x2b] sm:$0x1] %vm248_vm3, %v12115_v32 }
 0x31d   :  { %v11919_v19 = vrot.slane %v11911_v61, %v17849_v26 }
 0x31e   :  { %v12134_v59 = vrot.slane %v12122_v12, %v17849_v26  ;;  %12126 = vst.msk [vmem:[%s20368_s2 + $0xab] sm:$0x1] %vm248_vm3, %v12122_v12  ;;  %12135 = vrot.lane.b32.xlu0 %v12130_v63, %s17010_s9  ;;  %v8951_v40 = vpop.permute.xlu0 %8950 }
 0x31f   :  { %8956 = vst.msk [vmem:[%s20368_s2 + $0x29] sm:$0x1] %vm473_vm4, %v8951_v40 }
 0x320   :  { %12137 = vrot.lane.b32.xlu1 %v12134_v59, %s17010_s9  ;;  %v8953_v44 = vpop.permute.xlu1 %8952 }
 0x321   :  { %8957 = vst.msk [vmem:[%s20368_s2 + $0xa9] sm:$0x1] %vm473_vm4, %v8953_v44 }
 0x322   :  { %11920 = vrot.lane.b32.xlu0 %v11915_v33, %s17010_s9  ;;  %v9162_v62 = vpop.permute.xlu0 %9161 }
 0x323   :  { %9167 = vst.msk [vmem:[%s20368_s2 + $0x29] sm:$0x1] %vm685_vm5, %v9162_v62 }
 0x324   :  { %11922 = vrot.lane.b32.xlu1 %v11919_v19, %s17010_s9  ;;  %v9164_v7 = vpop.permute.xlu1 %9163 }
 0x325   :  { %9168 = vst.msk [vmem:[%s20368_s2 + $0xa9] sm:$0x1] %vm685_vm5, %v9164_v7 }
 0x326   :  { %11928 = vrot.lane.b32.xlu0 %v11915_v33, %s17009_s8  ;;  %v12307_v53 = vpop.f32.mrb[56].mxu1  ;;  %v9170_v29 = vpop.permute.xlu0 %9169 }
 0x327   :  { %v12318_v13 = vrot.slane %v12307_v53, %v17836_v38  ;;  %v12518_v8 = vpop.f32.mrb[58].mxu0  ;;  %v15936_v20 = vpop.f32.mrb[57].mxu1  ;;  %13893 = vst.msk [vmem:[%s20368_s2 + $0x69] sm:$0x1] %vm685_vm5, %v9170_v29 }
 0x328   :  { %v12529_v50 = vrot.slane %v12518_v8, %v17836_v38  ;;  %11930 = vrot.lane.b32.xlu1 %v11919_v19, %s17009_s8  ;;  %v15958_v11 = vpop.f32.mrb[59].mxu0  ;;  %v9172_v10 = vpop.permute.xlu1 %9171 }
 0x329   :  { %v12319_v24 = vcombine.high %v12318_v13, %v12318_v13  ;;  %v19978_v16 = vrot.slane %v12318_v13, %v17836_v38  ;;  %13894 = vst.msk [vmem:[%s20368_s2 + $0xe9] sm:$0x1] %vm685_vm5, %v9172_v10 }
 0x32a   :  { %v12530_v5 = vcombine.high %v12529_v50, %v12529_v50  ;;  %v12537_v60 = vrot.slane %v12529_v50, %v17836_v38 }
 0x32b   :  { %v19989_v57 = vrot.slane %v12319_v24, %v17836_v38  ;;  %v12337_v0 = vrot.slane %v19978_v16, %v17849_v26 }
 0x32c   :  { %v12544_v47 = vrot.slane %v12530_v5, %v17836_v38  ;;  %v12548_v18 = vrot.slane %v12537_v60, %v17849_v26 }
 0x32d   :  { %v12341_v30 = vrot.slane %v19989_v57, %v17849_v26  ;;  %12342 = vrot.lane.b32.xlu0 %v12337_v0, %s17011_s10 }
 0x32e   :  { %v9377_v4 = vpop.permute.xlu0 %9376  ;;  %v12552_v46 = vrot.slane %v12544_v47, %v17849_v26 }
 0x32f   :  { %12344 = vrot.lane.b32.xlu1 %v12341_v30, %s17011_s10  ;;  %9382 = vst.msk [vmem:[%s20368_s2 + $0x29] sm:$0x1] %vm901_vm6, %v9377_v4 }
 0x330   :  { %v9379_v23 = vpop.permute.xlu1 %9378 }
 0x331   :  { %12553 = vrot.lane.b32.xlu0 %v12548_v18, %s17009_s8  ;;  %9383 = vst.msk [vmem:[%s20368_s2 + $0xa9] sm:$0x1] %vm901_vm6, %v9379_v23 }
 0x332   :  { %v9385_v22 = vpop.permute.xlu0 %9384 }
 0x333   :  { %12555 = vrot.lane.b32.xlu1 %v12552_v46, %s17009_s8  ;;  %13899 = vst.msk [vmem:[%s20368_s2 + $0x69] sm:$0x1] %vm901_vm6, %v9385_v22 }
 0x334   :  { %v9387_v51 = vpop.permute.xlu1 %9386 }
 0x335   :  { %12561 = vrot.lane.b32.xlu0 %v12548_v18, %s17011_s10  ;;  %13900 = vst.msk [vmem:[%s20368_s2 + $0xe9] sm:$0x1] %vm901_vm6, %v9387_v51 }
 0x336   :  { %v12733_v2 = vpop.f32.mrb[58].mxu1  ;;  %v9592_v25 = vpop.permute.xlu0 %9591 }
 0x337   :  { %v12744_v37 = vrot.slane %v12733_v2, %v17836_v38  ;;  %v12944_v3 = vpop.f32.mrb[60].mxu0  ;;  %v15980_v45 = vpop.f32.mrb[59].mxu1  ;;  %12563 = vrot.lane.b32.xlu1 %v12552_v46, %s17011_s10  ;;  %13905 = vst.msk [vmem:[%s20368_s2 + $0x71] sm:$0x1] %vm248_vm3, %v9592_v25 }
 0x338   :  { %v12955_v43 = vrot.slane %v12944_v3, %v17836_v38  ;;  %v16002_v27 = vpop.f32.mrb[61].mxu0  ;;  %v9594_v58 = vpop.permute.xlu1 %9593  ;;  %13911 = vst.msk [vmem:[%s20368_s2 + $0x71] sm:$0x1] %vm473_vm4, %v19666_v31 }
 0x339   :  { %v12745_v14 = vcombine.high %v12744_v37, %v12744_v37  ;;  %13906 = vst.msk [vmem:[%s20368_s2 + $0xf1] sm:$0x1] %vm248_vm3, %v9594_v58  ;;  %v12752_v42 = vrot.slane %v12744_v37, %v17836_v38 }
 0x33a   :  { %v12956_v39 = vcombine.high %v12955_v43, %v12955_v43  ;;  %v12963_v35 = vrot.slane %v12955_v43, %v17836_v38  ;;  %13912 = vst.msk [vmem:[%s20368_s2 + $0xf1] sm:$0x1] %vm473_vm4, %v19677_v54 }
 0x33b   :  { %v12759_v31 = vrot.slane %v12745_v14, %v17836_v38  ;;  %v12763_v34 = vrot.slane %v12752_v42, %v17849_v26 }
 0x33c   :  { %v12970_v48 = vrot.slane %v12956_v39, %v17836_v38  ;;  %v12978_v9 = vrot.slane %v12963_v35, %v17849_v26  ;;  %12973 = vst.msk [vmem:[%s20368_s2 + $0x33] sm:$0x1] %vm248_vm3, %v12963_v35 }
 0x33d   :  { %v12767_v55 = vrot.slane %v12759_v31, %v17849_v26 }
 0x33e   :  { %v12982_v1 = vrot.slane %v12970_v48, %v17849_v26  ;;  %12974 = vst.msk [vmem:[%s20368_s2 + $0xb3] sm:$0x1] %vm248_vm3, %v12970_v48  ;;  %12983 = vrot.lane.b32.xlu0 %v12978_v9, %s17010_s9  ;;  %v9799_v54 = vpop.permute.xlu0 %9798 }
 0x33f   :  { %9804 = vst.msk [vmem:[%s20368_s2 + $0x31] sm:$0x1] %vm473_vm4, %v9799_v54 }
 0x340   :  { %12985 = vrot.lane.b32.xlu1 %v12982_v1, %s17010_s9  ;;  %v9801_v6 = vpop.permute.xlu1 %9800 }
 0x341   :  { %9805 = vst.msk [vmem:[%s20368_s2 + $0xb1] sm:$0x1] %vm473_vm4, %v9801_v6 }
 0x342   :  { %12768 = vrot.lane.b32.xlu0 %v12763_v34, %s17010_s9  ;;  %v10010_v28 = vpop.permute.xlu0 %10009 }
 0x343   :  { %10015 = vst.msk [vmem:[%s20368_s2 + $0x31] sm:$0x1] %vm685_vm5, %v10010_v28 }
 0x344   :  { %12770 = vrot.lane.b32.xlu1 %v12767_v55, %s17010_s9  ;;  %v10012_v15 = vpop.permute.xlu1 %10011 }
 0x345   :  { %10016 = vst.msk [vmem:[%s20368_s2 + $0xb1] sm:$0x1] %vm685_vm5, %v10012_v15 }
 0x346   :  { %12776 = vrot.lane.b32.xlu0 %v12763_v34, %s17009_s8  ;;  %v13155_v52 = vpop.f32.mrb[60].mxu1  ;;  %v10018_v63 = vpop.permute.xlu0 %10017 }
 0x347   :  { %v13166_v36 = vrot.slane %v13155_v52, %v17836_v38  ;;  %v13366_v32 = vpop.f32.mrb[62].mxu0  ;;  %v16024_v41 = vpop.f32.mrb[61].mxu1  ;;  %13917 = vst.msk [vmem:[%s20368_s2 + $0x71] sm:$0x1] %vm685_vm5, %v10018_v63 }
 0x348   :  { %v13377_v12 = vrot.slane %v13366_v32, %v17836_v38  ;;  %12778 = vrot.lane.b32.xlu1 %v12767_v55, %s17009_s8  ;;  %v16046_v61 = vpop.f32.mrb[63].mxu0  ;;  %v10020_v33 = vpop.permute.xlu1 %10019 }
 0x349   :  { %v13167_v59 = vcombine.high %v13166_v36, %v13166_v36  ;;  %v20082_v40 = vrot.slane %v13166_v36, %v17836_v38  ;;  %13918 = vst.msk [vmem:[%s20368_s2 + $0xf1] sm:$0x1] %vm685_vm5, %v10020_v33 }
 0x34a   :  { %v13378_v44 = vcombine.high %v13377_v12, %v13377_v12  ;;  %v13385_v7 = vrot.slane %v13377_v12, %v17836_v38 }
 0x34b   :  { %v20093_v19 = vrot.slane %v13167_v59, %v17836_v38  ;;  %v13185_v62 = vrot.slane %v20082_v40, %v17849_v26 }
 0x34c   :  { %v13392_v13 = vrot.slane %v13378_v44, %v17836_v38  ;;  %v13396_v8 = vrot.slane %v13385_v7, %v17849_v26 }
 0x34d   :  { %v13189_v53 = vrot.slane %v20093_v19, %v17849_v26  ;;  %13190 = vrot.lane.b32.xlu0 %v13185_v62, %s17011_s10 }
 0x34e   :  { %v10225_v20 = vpop.permute.xlu0 %10224  ;;  %v13400_v50 = vrot.slane %v13392_v13, %v17849_v26 }
 0x34f   :  { %13192 = vrot.lane.b32.xlu1 %v13189_v53, %s17011_s10  ;;  %10230 = vst.msk [vmem:[%s20368_s2 + $0x31] sm:$0x1] %vm901_vm6, %v10225_v20 }
 0x350   :  { %v10227_v29 = vpop.permute.xlu1 %10226 }
 0x351   :  { %13401 = vrot.lane.b32.xlu0 %v13396_v8, %s17009_s8  ;;  %10231 = vst.msk [vmem:[%s20368_s2 + $0xb1] sm:$0x1] %vm901_vm6, %v10227_v29 }
 0x352   :  { %v10233_v11 = vpop.permute.xlu0 %10232 }
 0x353   :  { %13403 = vrot.lane.b32.xlu1 %v13400_v50, %s17009_s8  ;;  %13923 = vst.msk [vmem:[%s20368_s2 + $0x71] sm:$0x1] %vm901_vm6, %v10233_v11 }
 0x354   :  { %v10235_v24 = vpop.permute.xlu1 %10234 }
 0x355   :  { %13409 = vrot.lane.b32.xlu0 %v13396_v8, %s17011_s10  ;;  %13924 = vst.msk [vmem:[%s20368_s2 + $0xf1] sm:$0x1] %vm901_vm6, %v10235_v24 }
 0x356   :  { %v13581_v10 = vpop.f32.mrb[62].mxu1  ;;  %v10440_v60 = vpop.permute.xlu0 %10439 }
 0x357   :  { %v13592_v5 = vrot.slane %v13581_v10, %v17836_v38  ;;  %v16068_v0 = vpop.f32.mrb[63].mxu1  ;;  %13411 = vrot.lane.b32.xlu1 %v13400_v50, %s17011_s10  ;;  %13929 = vst.msk [vmem:[%s20368_s2 + $0x6a] sm:$0x1] %vm248_vm3, %v10440_v60 }
 0x358   :  { %13935 = vst.msk [vmem:[%s20368_s2 + $0x6a] sm:$0x1] %vm473_vm4, %v19770_v56  ;;  %v10442_v18 = vpop.permute.xlu1 %10441 }
 0x359   :  { %v13593_v30 = vcombine.high %v13592_v5, %v13592_v5  ;;  %v13600_v47 = vrot.slane %v13592_v5, %v17836_v38  ;;  %13930 = vst.msk [vmem:[%s20368_s2 + $0xea] sm:$0x1] %vm248_vm3, %v10442_v18 }
 0x35a   :  { %13936 = vst.msk [vmem:[%s20368_s2 + $0xea] sm:$0x1] %vm473_vm4, %v19781_v49 }
 0x35b   :  { %v13607_v4 = vrot.slane %v13593_v30, %v17836_v38  ;;  %v13611_v46 = vrot.slane %v13600_v47, %v17849_v26 }
 0x35d   :  { %v13615_v23 = vrot.slane %v13607_v4, %v17849_v26  ;;  %13616 = vrot.lane.b32.xlu0 %v13611_v46, %s17010_s9 }
 0x35e   :  { %v10647_v56 = vpop.permute.xlu0 %10646 }
 0x35f   :  { %13618 = vrot.lane.b32.xlu1 %v13615_v23, %s17010_s9  ;;  %10652 = vst.msk [vmem:[%s20368_s2 + $0x2a] sm:$0x1] %vm473_vm4, %v10647_v56 }
 0x360   :  { %v10649_v38 = vpop.permute.xlu1 %10648 }
 0x361   :  { %13624 = vrot.lane.b32.xlu0 %v13611_v46, %s17009_s8  ;;  %10653 = vst.msk [vmem:[%s20368_s2 + $0xaa] sm:$0x1] %vm473_vm4, %v10649_v38 }
 0x362   :  { %v10858_v49 = vpop.permute.xlu0 %10857 }
 0x363   :  { %13626 = vrot.lane.b32.xlu1 %v13615_v23, %s17009_s8  ;;  %10863 = vst.msk [vmem:[%s20368_s2 + $0x2a] sm:$0x1] %vm685_vm5, %v10858_v49 }
 0x364   :  { %v10860_v26 = vpop.permute.xlu1 %10859 }
 0x365   :  { %10864 = vst.msk [vmem:[%s20368_s2 + $0xaa] sm:$0x1] %vm685_vm5, %v10860_v26 }
 0x366   :  { %v10866_v22 = vpop.permute.xlu0 %10865 }
 0x367   :  { %13941 = vst.msk [vmem:[%s20368_s2 + $0x6a] sm:$0x1] %vm685_vm5, %v10866_v22 }
 0x368   :  { %v10868_v51 = vpop.permute.xlu1 %10867 }
 0x369   :  { %13942 = vst.msk [vmem:[%s20368_s2 + $0xea] sm:$0x1] %vm685_vm5, %v10868_v51 }
 0x36f   :  { %v11073_v2 = vpop.permute.xlu0 %11072 }
 0x370   :  { %11078 = vst.msk [vmem:[%s20368_s2 + $0x2a] sm:$0x1] %vm901_vm6, %v11073_v2 }
 0x371   :  { %v11075_v37 = vpop.permute.xlu1 %11074 }
 0x372   :  { %11079 = vst.msk [vmem:[%s20368_s2 + $0xaa] sm:$0x1] %vm901_vm6, %v11075_v37 }
 0x373   :  { %v11081_v3 = vpop.permute.xlu0 %11080 }
 0x374   :  { %13947 = vst.msk [vmem:[%s20368_s2 + $0x6a] sm:$0x1] %vm901_vm6, %v11081_v3 }
 0x375   :  { %v11083_v45 = vpop.permute.xlu1 %11082 }
 0x376   :  { %13948 = vst.msk [vmem:[%s20368_s2 + $0xea] sm:$0x1] %vm901_vm6, %v11083_v45 }
 0x377   :  { %v11288_v43 = vpop.permute.xlu0 %11287 }
 0x378   :  { %13953 = vst.msk [vmem:[%s20368_s2 + $0x72] sm:$0x1] %vm248_vm3, %v11288_v43 }
 0x379   :  { %13959 = vst.msk [vmem:[%s20368_s2 + $0x72] sm:$0x1] %vm473_vm4, %v19874_v21  ;;  %v11290_v25 = vpop.permute.xlu1 %11289 }
 0x37a   :  { %13954 = vst.msk [vmem:[%s20368_s2 + $0xf2] sm:$0x1] %vm248_vm3, %v11290_v25 }
 0x37b   :  { %13960 = vst.msk [vmem:[%s20368_s2 + $0xf2] sm:$0x1] %vm473_vm4, %v19885_v17 }
 0x37f   :  { %v11495_v27 = vpop.permute.xlu0 %11494 }
 0x380   :  { %11500 = vst.msk [vmem:[%s20368_s2 + $0x32] sm:$0x1] %vm473_vm4, %v11495_v27 }
 0x381   :  { %v11497_v58 = vpop.permute.xlu1 %11496 }
 0x382   :  { %11501 = vst.msk [vmem:[%s20368_s2 + $0xb2] sm:$0x1] %vm473_vm4, %v11497_v58 }
 0x383   :  { %v11706_v21 = vpop.permute.xlu0 %11705 }
 0x384   :  { %11711 = vst.msk [vmem:[%s20368_s2 + $0x32] sm:$0x1] %vm685_vm5, %v11706_v21 }
 0x385   :  { %v11708_v14 = vpop.permute.xlu1 %11707 }
 0x386   :  { %11712 = vst.msk [vmem:[%s20368_s2 + $0xb2] sm:$0x1] %vm685_vm5, %v11708_v14 }
 0x387   :  { %v11714_v17 = vpop.permute.xlu0 %11713 }
 0x388   :  { %13965 = vst.msk [vmem:[%s20368_s2 + $0x72] sm:$0x1] %vm685_vm5, %v11714_v17 }
 0x389   :  { %v11716_v39 = vpop.permute.xlu1 %11715 }
 0x38a   :  { %13966 = vst.msk [vmem:[%s20368_s2 + $0xf2] sm:$0x1] %vm685_vm5, %v11716_v39 }
 0x390   :  { %v12136_v35 = vpop.permute.xlu0 %12135 }
 0x391   :  { %13977 = vst.msk [vmem:[%s20368_s2 + $0x6b] sm:$0x1] %vm248_vm3, %v12136_v35 }
 0x392   :  { %13983 = vst.msk [vmem:[%s20368_s2 + $0x6b] sm:$0x1] %vm473_vm4, %v19978_v16  ;;  %v12138_v42 = vpop.permute.xlu1 %12137 }
 0x393   :  { %13978 = vst.msk [vmem:[%s20368_s2 + $0xeb] sm:$0x1] %vm248_vm3, %v12138_v42 }
 0x394   :  { %13984 = vst.msk [vmem:[%s20368_s2 + $0xeb] sm:$0x1] %vm473_vm4, %v19989_v57  ;;  %v11921_v48 = vpop.permute.xlu0 %11920 }
 0x395   :  { %11926 = vst.msk [vmem:[%s20368_s2 + $0x32] sm:$0x1] %vm901_vm6, %v11921_v48 }
 0x396   :  { %v11923_v9 = vpop.permute.xlu1 %11922 }
 0x397   :  { %11927 = vst.msk [vmem:[%s20368_s2 + $0xb2] sm:$0x1] %vm901_vm6, %v11923_v9 }
 0x398   :  { %v11929_v16 = vpop.permute.xlu0 %11928 }
 0x399   :  { %13971 = vst.msk [vmem:[%s20368_s2 + $0x72] sm:$0x1] %vm901_vm6, %v11929_v16 }
 0x39a   :  { %v11931_v31 = vpop.permute.xlu1 %11930 }
 0x39b   :  { %13972 = vst.msk [vmem:[%s20368_s2 + $0xf2] sm:$0x1] %vm901_vm6, %v11931_v31 }
 0x39f   :  { %v12343_v57 = vpop.permute.xlu0 %12342 }
 0x3a0   :  { %12348 = vst.msk [vmem:[%s20368_s2 + $0x2b] sm:$0x1] %vm473_vm4, %v12343_v57 }
 0x3a1   :  { %v12345_v1 = vpop.permute.xlu1 %12344 }
 0x3a2   :  { %12349 = vst.msk [vmem:[%s20368_s2 + $0xab] sm:$0x1] %vm473_vm4, %v12345_v1 }
 0x3a3   :  { %v12554_v54 = vpop.permute.xlu0 %12553 }
 0x3a4   :  { %12559 = vst.msk [vmem:[%s20368_s2 + $0x2b] sm:$0x1] %vm685_vm5, %v12554_v54 }
 0x3a5   :  { %v12556_v34 = vpop.permute.xlu1 %12555 }
 0x3a6   :  { %12560 = vst.msk [vmem:[%s20368_s2 + $0xab] sm:$0x1] %vm685_vm5, %v12556_v34 }
 0x3a7   :  { %v12562_v6 = vpop.permute.xlu0 %12561 }
 0x3a8   :  { %13989 = vst.msk [vmem:[%s20368_s2 + $0x6b] sm:$0x1] %vm685_vm5, %v12562_v6 }
 0x3a9   :  { %v12564_v55 = vpop.permute.xlu1 %12563 }
 0x3aa   :  { %13990 = vst.msk [vmem:[%s20368_s2 + $0xeb] sm:$0x1] %vm685_vm5, %v12564_v55 }
 0x3b0   :  { %v12984_v28 = vpop.permute.xlu0 %12983 }
 0x3b1   :  { %14001 = vst.msk [vmem:[%s20368_s2 + $0x73] sm:$0x1] %vm248_vm3, %v12984_v28 }
 0x3b2   :  { %14007 = vst.msk [vmem:[%s20368_s2 + $0x73] sm:$0x1] %vm473_vm4, %v20082_v40  ;;  %v12986_v15 = vpop.permute.xlu1 %12985 }
 0x3b3   :  { %14002 = vst.msk [vmem:[%s20368_s2 + $0xf3] sm:$0x1] %vm248_vm3, %v12986_v15 }
 0x3b4   :  { %14008 = vst.msk [vmem:[%s20368_s2 + $0xf3] sm:$0x1] %vm473_vm4, %v20093_v19  ;;  %v12769_v52 = vpop.permute.xlu0 %12768 }
 0x3b5   :  { %12774 = vst.msk [vmem:[%s20368_s2 + $0x2b] sm:$0x1] %vm901_vm6, %v12769_v52 }
 0x3b6   :  { %v12771_v36 = vpop.permute.xlu1 %12770 }
 0x3b7   :  { %12775 = vst.msk [vmem:[%s20368_s2 + $0xab] sm:$0x1] %vm901_vm6, %v12771_v36 }
 0x3b8   :  { %v12777_v32 = vpop.permute.xlu0 %12776 }
 0x3b9   :  { %13995 = vst.msk [vmem:[%s20368_s2 + $0x6b] sm:$0x1] %vm901_vm6, %v12777_v32 }
 0x3ba   :  { %v12779_v41 = vpop.permute.xlu1 %12778 }
 0x3bb   :  { %13996 = vst.msk [vmem:[%s20368_s2 + $0xeb] sm:$0x1] %vm901_vm6, %v12779_v41 }
 0x3bf   :  { %v13191_v12 = vpop.permute.xlu0 %13190 }
 0x3c0   :  { %13196 = vst.msk [vmem:[%s20368_s2 + $0x33] sm:$0x1] %vm473_vm4, %v13191_v12 }
 0x3c1   :  { %v13193_v63 = vpop.permute.xlu1 %13192 }
 0x3c2   :  { %13197 = vst.msk [vmem:[%s20368_s2 + $0xb3] sm:$0x1] %vm473_vm4, %v13193_v63 }
 0x3c3   :  { %v13402_v61 = vpop.permute.xlu0 %13401 }
 0x3c4   :  { %13407 = vst.msk [vmem:[%s20368_s2 + $0x33] sm:$0x1] %vm685_vm5, %v13402_v61 }
 0x3c5   :  { %v13404_v59 = vpop.permute.xlu1 %13403 }
 0x3c6   :  { %13408 = vst.msk [vmem:[%s20368_s2 + $0xb3] sm:$0x1] %vm685_vm5, %v13404_v59 }
 0x3c7   :  { %v13410_v40 = vpop.permute.xlu0 %13409 }
 0x3c8   :  { %14013 = vst.msk [vmem:[%s20368_s2 + $0x73] sm:$0x1] %vm685_vm5, %v13410_v40 }
 0x3c9   :  { %v13412_v33 = vpop.permute.xlu1 %13411 }
 0x3ca   :  { %14014 = vst.msk [vmem:[%s20368_s2 + $0xf3] sm:$0x1] %vm685_vm5, %v13412_v33 }
 0x3cf   :  { %v13617_v44 = vpop.permute.xlu0 %13616 }
 0x3d0   :  { %13622 = vst.msk [vmem:[%s20368_s2 + $0x33] sm:$0x1] %vm901_vm6, %v13617_v44 }
 0x3d1   :  { %v13619_v19 = vpop.permute.xlu1 %13618 }
 0x3d2   :  { %13623 = vst.msk [vmem:[%s20368_s2 + $0xb3] sm:$0x1] %vm901_vm6, %v13619_v19 }
 0x3d3   :  { %v13625_v62 = vpop.permute.xlu0 %13624 }
 0x3d4   :  { %14019 = vst.msk [vmem:[%s20368_s2 + $0x73] sm:$0x1] %vm901_vm6, %v13625_v62 }
 0x3d5   :  { %v13627_v7 = vpop.permute.xlu1 %13626 }
 0x3d6   :  { %14020 = vst.msk [vmem:[%s20368_s2 + $0xf3] sm:$0x1] %vm901_vm6, %v13627_v7 }
 0x3d7   :  { %13636 = vsyncpa [#allocation3], 1 }

</bundles_post_ra>
